<compile_context>
chip_gen: v6e
topology: v6e:2x2x1
jax: 0.10.0
libtpu: 0.0.40
codegen_flags: <defaults>
</compile_context>

<pallas_src>
import jax
import jax.numpy as jnp
import numpy as np
from jax.experimental import pallas as pl
from jax.experimental.pallas import tpu as pltpu

K = 5            # Conv1d kernel size (padding = 2)
C1, C2 = 10, 5   # conv1 / conv2 out channels (fixed by the module)
C1P, C2P = 16, 8 # sublane-padded channel counts
H1, H2 = 1024, 256
SEQ_LEN = 2560   # fc1 = Linear(5 * 640, 1024) forces L // 4 == 640
_PADL = 128      # left lane pad of the pooled-conv1 buffer (lane alignment)


# ----------------------------------------------------------------------------
# Kernel 1: conv1 + ReLU + pool, conv2 + ReLU + pool  (one batch element/step)
# ----------------------------------------------------------------------------
def _conv_stage_kernel(x_ref, w1_ref, b1_ref, w2_ref, b2_ref, out_ref, y1p, s2):
    """x_ref:  (1, 8*CinP, L4)  8-phase, channel-padded, zero-padded input
                 row s*CinP + c  ==  x_pad[4j + s, c]  across lanes j
       w1_ref: (4*C1P, 8*CinP)  conv1 taps + 4 pooling phases folded in
       w2_ref: (2*C2P, 6*C1P)   conv2 taps, even/odd parity stacked on rows
       out_ref:(1, C2P, L4)     pooled conv2 output, channels-first
       y1p:    (2, C1P, 2*128+L4) pooled conv1 (even/odd), 128-lane left pad
       s2:     (6*C1P, L4)      conv2 row-block slab ({e,o} x shifts {-1,0,+1})"""
    L4 = x_ref.shape[-1]

    # ---- conv1 + bias + ReLU: single aligned dot (phases are weight rows) ---
    xflat = x_ref[0]                                                # (8*CinP, L4)
    c1 = jnp.dot(w1_ref[...], xflat, preferred_element_type=jnp.float32)
    c1 = jnp.maximum(c1 + b1_ref[...], 0.0)                         # (4*C1P, L4)
    # MaxPool(2,2): even/odd pooled positions (phase pairs 0/1 and 2/3)
    y1e = jnp.maximum(c1[0 * C1P:1 * C1P], c1[1 * C1P:2 * C1P])
    y1o = jnp.maximum(c1[2 * C1P:3 * C1P], c1[3 * C1P:4 * C1P])

    # ---- stage pooled conv1 with 128-lane left pad; zero only the 2 pad cols
    for ph in range(2):
        y1p[ph, :, pl.ds(_PADL - 1, 1)] = jnp.zeros((C1P, 1), jnp.float32)
        y1p[ph, :, pl.ds(_PADL + L4, 1)] = jnp.zeros((C1P, 1), jnp.float32)
    y1p[0, :, pl.ds(_PADL, L4)] = y1e
    y1p[1, :, pl.ds(_PADL, L4)] = y1o

    # ---- conv2 "im2col": 6 aligned row blocks = {even, odd} x shift {-1,0,+1}
    for ph in range(2):
        for d in range(3):
            s2[pl.ds((3 * ph + d) * C1P, C1P), :] = \
                y1p[ph, :, pl.ds(_PADL - 1 + d, L4)]

    # ---- conv2 + bias + ReLU (both output parities in one dot) + MaxPool ----
    c2 = jnp.dot(w2_ref[...], s2[...], preferred_element_type=jnp.float32)
    c2 = jnp.maximum(c2 + b2_ref[...], 0.0)                         # (2*C2P, L4)
    pooled = jnp.maximum(c2[0:C2P], c2[C2P:2 * C2P])                # (C2P, L4)
    out_ref[...] = pooled.reshape(out_ref.shape)


def _conv_stage(xph, w1b, b1b, w2b, b2b):
    B, R, L4 = xph.shape
    return pl.pallas_call(
        _conv_stage_kernel,
        out_shape=jax.ShapeDtypeStruct((B, C2P, L4), jnp.float32),
        grid_spec=pltpu.PrefetchScalarGridSpec(
            num_scalar_prefetch=0,
            grid=(B,),
            in_specs=[
                pl.BlockSpec((1, R, L4), lambda b: (b, 0, 0)),
                pl.BlockSpec(w1b.shape, lambda b: (0, 0)),
                pl.BlockSpec(b1b.shape, lambda b: (0, 0)),
                pl.BlockSpec(w2b.shape, lambda b: (0, 0)),
                pl.BlockSpec(b2b.shape, lambda b: (0, 0)),
            ],
            out_specs=pl.BlockSpec((1, C2P, L4), lambda b: (b, 0, 0)),
            scratch_shapes=[
                pltpu.VMEM((2, C1P, 2 * _PADL + L4), jnp.float32),
                pltpu.VMEM((6 * C1P, L4), jnp.float32),
            ]),
        compiler_params=pltpu.CompilerParams(
            dimension_semantics=("parallel",),
            vmem_limit_bytes=32 * 1024 * 1024),
    )(xph, w1b, b1b, w2b, b2b)


# ----------------------------------------------------------------------------
# Kernel 2: fc1 + ReLU -> fc2 -> fc3 over a (BM, F) batch tile (M >> 1)
# ----------------------------------------------------------------------------
def _mlp_head_kernel(x_ref, w1_ref, b1_ref, w2_ref, b2_ref, w3_ref, b3_ref,
                     out_ref):
    h = jnp.dot(x_ref[...].astype(jnp.bfloat16), w1_ref[...],
                preferred_element_type=jnp.float32) + b1_ref[...]
    h = jnp.maximum(h, 0.0)
    h = jnp.dot(h.astype(jnp.bfloat16), w2_ref[...],
                preferred_element_type=jnp.float32) + b2_ref[...]
    out_ref[...] = jnp.dot(h, w3_ref[...],
                           preferred_element_type=jnp.float32) + b3_ref[...]


def _mlp_head(flat, p):
    B, F = flat.shape
    BM = 128 if B >= 128 else ((B + 7) // 8) * 8
    Bp = ((B + BM - 1) // BM) * BM
    if Bp != B:
        flat = jnp.pad(flat, ((0, Bp - B), (0, 0)))
    NCP = p["w3f"].shape[1]
    ws = (p["w1f"], p["b1f"], p["w2f"], p["b2f"], p["w3f"], p["b3f"])
    out = pl.pallas_call(
        _mlp_head_kernel,
        out_shape=jax.ShapeDtypeStruct((Bp, NCP), jnp.float32),
        grid_spec=pltpu.PrefetchScalarGridSpec(
            num_scalar_prefetch=0,
            grid=(Bp // BM,),
            in_specs=[pl.BlockSpec((BM, F), lambda i: (i, 0))]
                     + [pl.BlockSpec(w.shape, lambda i: (0, 0)) for w in ws],
            out_specs=pl.BlockSpec((BM, NCP), lambda i: (i, 0))),
        compiler_params=pltpu.CompilerParams(
            dimension_semantics=("parallel",),
            vmem_limit_bytes=32 * 1024 * 1024),
    )(flat, *ws)
    return out[:B]


# ----------------------------------------------------------------------------
# Full forward (matches SequenceModel.forward)
# ----------------------------------------------------------------------------
def sequence_model_forward(x, p, num_classes):
    """x: (B, L, input_size) float32 (PyTorch permutes to NCL internally)."""
    B, L, Cin = x.shape
    assert L % 4 == 0
    L4 = L // 4
    CinP = p["w1b"].shape[1] // 8

    # Host glue: conv padding + 8-phase channel-major split, channels padded
    # to a sublane multiple -> every in-kernel conv1 read is fully aligned.
    x_pad = jnp.pad(x, ((0, 0), (2, 2), (0, CinP - Cin)))           # (B, L+4, CinP)
    xa = x_pad[:, 0:4 * L4, :].reshape(B, L4, 4, CinP)              # phases 0..3
    xb = x_pad[:, 4:4 * L4 + 4, :].reshape(B, L4, 4, CinP)          # phases 4..7
    xph = jnp.concatenate([xa, xb], axis=2)                         # (B, L4, 8, CinP)
    xph = xph.transpose(0, 2, 3, 1).reshape(B, 8 * CinP, L4)

    conv_out = _conv_stage(xph, p["w1b"], p["b1b"], p["w2b"], p["b2b"])
    # channel-major flatten (== torch.flatten on NCL); drop padded channels
    flat = conv_out[:, :C2, :].reshape(B, C2 * L4)
    logits = _mlp_head(flat, p)                                     # (B, NCP)
    return logits[:, :num_classes]


# ----------------------------------------------------------------------------
# Parameter init (PyTorch-style uniform) + packing into kernel layout
# ----------------------------------------------------------------------------
def init_params(key, input_size, num_classes):
    L4 = SEQ_LEN // 4
    ks = jax.random.split(key, 10)

    def uni(k, shape, fan_in):
        b = 1.0 / np.sqrt(fan_in)
        return jax.random.uniform(k, shape, jnp.float32, -b, b)

    return dict(
        conv1_w=uni(ks[0], (C1, input_size, K), input_size * K),
        conv1_b=uni(ks[1], (C1,), input_size * K),
        conv2_w=uni(ks[2], (C2, C1, K), C1 * K),
        conv2_b=uni(ks[3], (C2,), C1 * K),
        fc1_w=uni(ks[4], (H1, C2 * L4), C2 * L4),
        fc1_b=uni(ks[5], (H1,), C2 * L4),
        fc2_w=uni(ks[6], (H2, H1), H1),
        fc2_b=uni(ks[7], (H2,), H1),
        fc3_w=uni(ks[8], (num_classes, H2), H2),
        fc3_b=uni(ks[9], (num_classes,), H2),
    )


def pack_params(p, input_size, num_classes):
    CinP = ((input_size + 7) // 8) * 8
    NCP = ((num_classes + 127) // 128) * 128
    conv1_w = np.asarray(p["conv1_w"]); conv1_b = np.asarray(p["conv1_b"])
    conv2_w = np.asarray(p["conv2_w"]); conv2_b = np.asarray(p["conv2_b"])

    # conv1: fold K taps and the 4 pooling phases into one matmul.
    # column s*CinP + c multiplies x_pad[4j + s, c]; output row q*C1P + o is
    # conv1 output position 4j + q of channel o.
    w1b = np.zeros((4 * C1P, 8 * CinP), np.float32)
    b1b = np.zeros((4 * C1P, 1), np.float32)
    for q in range(4):
        for k in range(K):
            s = q + k
            w1b[q * C1P:q * C1P + C1,
                s * CinP:s * CinP + input_size] = conv1_w[:, :, k]
        b1b[q * C1P:q * C1P + C1, 0] = conv1_b

    # conv2: rows 0..C2P-1 = even outputs (t=2m), rows C2P.. = odd (t=2m+1);
    # column blocks 0..5 = {y1e[m-1], y1e[m], y1e[m+1], y1o[m-1], y1o[m], y1o[m+1]}.
    w2b = np.zeros((2 * C2P, 6 * C1P), np.float32)
    b2b = np.zeros((2 * C2P, 1), np.float32)
    even_taps = [(0, 0), (1, 2), (2, 4), (3, 1), (4, 3)]   # (block, tap k)
    odd_taps = [(1, 1), (2, 3), (3, 0), (4, 2), (5, 4)]
    for blk, t in even_taps:
        w2b[0:C2, blk * C1P:blk * C1P + C1] = conv2_w[:, :, t]
    for blk, t in odd_taps:
        w2b[C2P:C2P + C2, blk * C1P:blk * C1P + C1] = conv2_w[:, :, t]
    b2b[0:C2, 0] = conv2_b
    b2b[C2P:C2P + C2, 0] = conv2_b

    # fc3 padded to 128 output lanes (sliced in the wrapper)
    w3f = np.zeros((H2, NCP), np.float32)
    w3f[:, :num_classes] = np.asarray(p["fc3_w"]).T
    b3f = np.zeros((1, NCP), np.float32)
    b3f[0, :num_classes] = np.asarray(p["fc3_b"])

    return dict(
        w1b=jnp.asarray(w1b), b1b=jnp.asarray(b1b),
        w2b=jnp.asarray(w2b), b2b=jnp.asarray(b2b),
        w1f=jnp.asarray(p["fc1_w"]).T.astype(jnp.bfloat16),
        b1f=jnp.asarray(p["fc1_b"]).reshape(1, -1),
        w2f=jnp.asarray(p["fc2_w"]).T.astype(jnp.bfloat16),
        b2f=jnp.asarray(p["fc2_b"]).reshape(1, -1),
        w3f=jnp.asarray(w3f), b3f=jnp.asarray(b3f),
    )


# ----------------------------------------------------------------------------
# Pure-JAX reference (same math; fc1/fc2 weights bf16-rounded like the kernel)
# ----------------------------------------------------------------------------
def reference_forward(x, p):
    B = x.shape[0]

    def conv_relu_pool(h, w, b):
        Lc = h.shape[1]
        Co = w.shape[0]
        hp = jnp.pad(h, ((0, 0), (2, 2), (0, 0)))
        out = sum(jnp.einsum("blc,oc->blo", hp[:, k:k + Lc, :], w[:, :, k])
                  for k in range(K)) + b.reshape(1, 1, Co)
        out = jnp.maximum(out, 0.0)
        return out.reshape(B, Lc // 2, 2, Co).max(axis=2)

    h = conv_relu_pool(x, p["conv1_w"], p["conv1_b"])
    h = conv_relu_pool(h, p["conv2_w"], p["conv2_b"])
    flat = jnp.transpose(h, (0, 2, 1)).reshape(B, -1)       # channel-major
    w1 = p["fc1_w"].astype(jnp.bfloat16).astype(jnp.float32)
    w2 = p["fc2_w"].astype(jnp.bfloat16).astype(jnp.float32)
    h = jnp.maximum(flat @ w1.T + p["fc1_b"], 0.0)
    h = h @ w2.T + p["fc2_b"]
    return h @ p["fc3_w"].T + p["fc3_b"]


if __name__ == "__main__":
    # fc1 = Linear(5 * 640, 1024) forces L // 4 == 640, i.e. seq length 2560.
    B, L, input_size, num_classes = 2, SEQ_LEN, 20, 2
    key = jax.random.PRNGKey(0)
    kx, kp = jax.random.split(key)
    x = jax.random.normal(kx, (B, L, input_size), jnp.float32)
    torch_params = init_params(kp, input_size, num_classes)
    params = pack_params(torch_params, input_size, num_classes)

    fwd = jax.jit(sequence_model_forward, static_argnames=("num_classes",))
    out = jax.block_until_ready(fwd(x, params, num_classes=num_classes))

    with jax.default_matmul_precision("highest"):
        ref = jax.block_until_ready(reference_forward(x, torch_params))

    assert out.shape == (B, num_classes)
    np.testing.assert_allclose(np.asarray(out), np.asarray(ref),
                               rtol=5e-2, atol=1e-2)
    print("KERNEL_OK")
</pallas_src>

<mosaic_0001>
module attributes {stable_mosaic.version = 11 : i64} {
  func.func @_conv_stage_kernel(%arg0: i32, %arg1: memref<1x192x640xf32, #tpu.memory_space<vmem>>, %arg2: memref<64x192xf32, #tpu.memory_space<vmem>>, %arg3: memref<64x1xf32, #tpu.memory_space<vmem>>, %arg4: memref<16x96xf32, #tpu.memory_space<vmem>>, %arg5: memref<16x1xf32, #tpu.memory_space<vmem>>, %arg6: memref<1x8x640xf32, #tpu.memory_space<vmem>>, %arg7: memref<2x16x896xf32, #tpu.memory_space<vmem>>, %arg8: memref<96x640xf32, #tpu.memory_space<vmem>>) attributes {dimension_semantics = [#tpu.dimension_semantics<parallel>], iteration_bounds = array<i64: 2>, scalar_prefetch = 0 : i64, scratch_operands = 2 : i64, tpu.core_type = #tpu.core_type<tc>, window_params = [{transform_indices = @transform_0, window_bounds = array<i64: 1, 192, 640>}, {pipeline_mode = #tpu.pipeline_mode<synchronous>, transform_indices = @transform_1, window_bounds = array<i64: 64, 192>}, {pipeline_mode = #tpu.pipeline_mode<synchronous>, transform_indices = @transform_2, window_bounds = array<i64: 64, 1>}, {pipeline_mode = #tpu.pipeline_mode<synchronous>, transform_indices = @transform_3, window_bounds = array<i64: 16, 96>}, {pipeline_mode = #tpu.pipeline_mode<synchronous>, transform_indices = @transform_4, window_bounds = array<i64: 16, 1>}, {transform_indices = @transform_5, window_bounds = array<i64: 1, 8, 640>}]} {
    %c0 = arith.constant 0 : index
    %c0_0 = arith.constant 0 : index
    %c0_1 = arith.constant 0 : index
    %0 = vector.load %arg1[%c0, %c0_0, %c0_1] : memref<1x192x640xf32, #tpu.memory_space<vmem>>, vector<1x192x640xf32>
    %1 = vector.shape_cast %0 : vector<1x192x640xf32> to vector<192x640xf32>
    %c0_2 = arith.constant 0 : index
    %c0_3 = arith.constant 0 : index
    %2 = vector.load %arg2[%c0_2, %c0_3] : memref<64x192xf32, #tpu.memory_space<vmem>>, vector<64x192xf32>
    %cst = arith.constant dense<0.000000e+00> : vector<64x640xf32>
    %3 = tpu.matmul %2, %1, %cst {dimension_numbers = #tpu.dot_dimension_numbers<[1], [0], [0], [1], [0, 0, 1, 1], [], []>} : vector<64x192xf32>, vector<192x640xf32>, vector<64x640xf32> -> vector<64x640xf32>
    %c0_4 = arith.constant 0 : index
    %c0_5 = arith.constant 0 : index
    %4 = vector.load %arg3[%c0_4, %c0_5] : memref<64x1xf32, #tpu.memory_space<vmem>>, vector<64x1xf32>
    %5 = vector.broadcast %4 : vector<64x1xf32> to vector<64x640xf32>
    %6 = arith.addf %3, %5 : vector<64x640xf32>
    %cst_6 = arith.constant 0.000000e+00 : f32
    %7 = vector.broadcast %cst_6 : f32 to vector<64x640xf32>
    %8 = arith.maximumf %6, %7 : vector<64x640xf32>
    %9 = vector.extract_strided_slice %8 {offsets = [0, 0], sizes = [16, 640], strides = [1, 1]} : vector<64x640xf32> to vector<16x640xf32>
    %10 = vector.extract_strided_slice %8 {offsets = [16, 0], sizes = [16, 640], strides = [1, 1]} : vector<64x640xf32> to vector<16x640xf32>
    %11 = arith.maximumf %9, %10 : vector<16x640xf32>
    %12 = vector.extract_strided_slice %8 {offsets = [32, 0], sizes = [16, 640], strides = [1, 1]} : vector<64x640xf32> to vector<16x640xf32>
    %13 = vector.extract_strided_slice %8 {offsets = [48, 0], sizes = [16, 640], strides = [1, 1]} : vector<64x640xf32> to vector<16x640xf32>
    %14 = arith.maximumf %12, %13 : vector<16x640xf32>
    %cst_7 = arith.constant 0.000000e+00 : f32
    %15 = vector.broadcast %cst_7 : f32 to vector<16x1xf32>
    %c0_8 = arith.constant 0 : index
    %c0_9 = arith.constant 0 : index
    %c127 = arith.constant 127 : index
    %16 = vector.load %arg7[%c0_8, %c0_9, %c127] : memref<2x16x896xf32, #tpu.memory_space<vmem>>, vector<1x16x1xf32>
    %17 = vector.shape_cast %16 : vector<1x16x1xf32> to vector<16x1xf32>
    %18 = vector.shape_cast %15 : vector<16x1xf32> to vector<1x16x1xf32>
    tpu.vector_store %arg7[%c0_8, %c0_9, %c127], %18 {strides = array<i32>} : memref<2x16x896xf32, #tpu.memory_space<vmem>>, vector<1x16x1xf32>,
    %cst_10 = arith.constant 0.000000e+00 : f32
    %19 = vector.broadcast %cst_10 : f32 to vector<16x1xf32>
    %c0_11 = arith.constant 0 : index
    %c0_12 = arith.constant 0 : index
    %c768 = arith.constant 768 : index
    %20 = vector.load %arg7[%c0_11, %c0_12, %c768] : memref<2x16x896xf32, #tpu.memory_space<vmem>>, vector<1x16x1xf32>
    %21 = vector.shape_cast %20 : vector<1x16x1xf32> to vector<16x1xf32>
    %22 = vector.shape_cast %19 : vector<16x1xf32> to vector<1x16x1xf32>
    tpu.vector_store %arg7[%c0_11, %c0_12, %c768], %22 {strides = array<i32>} : memref<2x16x896xf32, #tpu.memory_space<vmem>>, vector<1x16x1xf32>,
    %cst_13 = arith.constant 0.000000e+00 : f32
    %23 = vector.broadcast %cst_13 : f32 to vector<16x1xf32>
    %c1 = arith.constant 1 : index
    %c0_14 = arith.constant 0 : index
    %c127_15 = arith.constant 127 : index
    %24 = vector.load %arg7[%c1, %c0_14, %c127_15] : memref<2x16x896xf32, #tpu.memory_space<vmem>>, vector<1x16x1xf32>
    %25 = vector.shape_cast %24 : vector<1x16x1xf32> to vector<16x1xf32>
    %26 = vector.shape_cast %23 : vector<16x1xf32> to vector<1x16x1xf32>
    tpu.vector_store %arg7[%c1, %c0_14, %c127_15], %26 {strides = array<i32>} : memref<2x16x896xf32, #tpu.memory_space<vmem>>, vector<1x16x1xf32>,
    %cst_16 = arith.constant 0.000000e+00 : f32
    %27 = vector.broadcast %cst_16 : f32 to vector<16x1xf32>
    %c1_17 = arith.constant 1 : index
    %c0_18 = arith.constant 0 : index
    %c768_19 = arith.constant 768 : index
    %28 = vector.load %arg7[%c1_17, %c0_18, %c768_19] : memref<2x16x896xf32, #tpu.memory_space<vmem>>, vector<1x16x1xf32>
    %29 = vector.shape_cast %28 : vector<1x16x1xf32> to vector<16x1xf32>
    %30 = vector.shape_cast %27 : vector<16x1xf32> to vector<1x16x1xf32>
    tpu.vector_store %arg7[%c1_17, %c0_18, %c768_19], %30 {strides = array<i32>} : memref<2x16x896xf32, #tpu.memory_space<vmem>>, vector<1x16x1xf32>,
    %c0_20 = arith.constant 0 : index
    %c0_21 = arith.constant 0 : index
    %c128 = arith.constant 128 : index
    %31 = vector.load %arg7[%c0_20, %c0_21, %c128] : memref<2x16x896xf32, #tpu.memory_space<vmem>>, vector<1x16x640xf32>
    %32 = vector.shape_cast %31 : vector<1x16x640xf32> to vector<16x640xf32>
    %33 = vector.shape_cast %11 : vector<16x640xf32> to vector<1x16x640xf32>
    tpu.vector_store %arg7[%c0_20, %c0_21, %c128], %33 {strides = array<i32>} : memref<2x16x896xf32, #tpu.memory_space<vmem>>, vector<1x16x640xf32>,
    %c1_22 = arith.constant 1 : index
    %c0_23 = arith.constant 0 : index
    %c128_24 = arith.constant 128 : index
    %34 = vector.load %arg7[%c1_22, %c0_23, %c128_24] : memref<2x16x896xf32, #tpu.memory_space<vmem>>, vector<1x16x640xf32>
    %35 = vector.shape_cast %34 : vector<1x16x640xf32> to vector<16x640xf32>
    %36 = vector.shape_cast %14 : vector<16x640xf32> to vector<1x16x640xf32>
    tpu.vector_store %arg7[%c1_22, %c0_23, %c128_24], %36 {strides = array<i32>} : memref<2x16x896xf32, #tpu.memory_space<vmem>>, vector<1x16x640xf32>,
    %c0_25 = arith.constant 0 : index
    %c0_26 = arith.constant 0 : index
    %c127_27 = arith.constant 127 : index
    %37 = vector.load %arg7[%c0_25, %c0_26, %c127_27] : memref<2x16x896xf32, #tpu.memory_space<vmem>>, vector<1x16x640xf32>
    %38 = vector.shape_cast %37 : vector<1x16x640xf32> to vector<16x640xf32>
    %c0_28 = arith.constant 0 : index
    %c0_29 = arith.constant 0 : index
    %39 = vector.load %arg8[%c0_28, %c0_29] : memref<96x640xf32, #tpu.memory_space<vmem>>, vector<16x640xf32>
    tpu.vector_store %arg8[%c0_28, %c0_29], %38 {strides = array<i32>} : memref<96x640xf32, #tpu.memory_space<vmem>>, vector<16x640xf32>,
    %c0_30 = arith.constant 0 : index
    %c0_31 = arith.constant 0 : index
    %c128_32 = arith.constant 128 : index
    %40 = vector.load %arg7[%c0_30, %c0_31, %c128_32] : memref<2x16x896xf32, #tpu.memory_space<vmem>>, vector<1x16x640xf32>
    %41 = vector.shape_cast %40 : vector<1x16x640xf32> to vector<16x640xf32>
    %c16 = arith.constant 16 : index
    %c0_33 = arith.constant 0 : index
    %42 = vector.load %arg8[%c16, %c0_33] : memref<96x640xf32, #tpu.memory_space<vmem>>, vector<16x640xf32>
    tpu.vector_store %arg8[%c16, %c0_33], %41 {strides = array<i32>} : memref<96x640xf32, #tpu.memory_space<vmem>>, vector<16x640xf32>,
    %c0_34 = arith.constant 0 : index
    %c0_35 = arith.constant 0 : index
    %c129 = arith.constant 129 : index
    %43 = vector.load %arg7[%c0_34, %c0_35, %c129] : memref<2x16x896xf32, #tpu.memory_space<vmem>>, vector<1x16x640xf32>
    %44 = vector.shape_cast %43 : vector<1x16x640xf32> to vector<16x640xf32>
    %c32 = arith.constant 32 : index
    %c0_36 = arith.constant 0 : index
    %45 = vector.load %arg8[%c32, %c0_36] : memref<96x640xf32, #tpu.memory_space<vmem>>, vector<16x640xf32>
    tpu.vector_store %arg8[%c32, %c0_36], %44 {strides = array<i32>} : memref<96x640xf32, #tpu.memory_space<vmem>>, vector<16x640xf32>,
    %c1_37 = arith.constant 1 : index
    %c0_38 = arith.constant 0 : index
    %c127_39 = arith.constant 127 : index
    %46 = vector.load %arg7[%c1_37, %c0_38, %c127_39] : memref<2x16x896xf32, #tpu.memory_space<vmem>>, vector<1x16x640xf32>
    %47 = vector.shape_cast %46 : vector<1x16x640xf32> to vector<16x640xf32>
    %c48 = arith.constant 48 : index
    %c0_40 = arith.constant 0 : index
    %48 = vector.load %arg8[%c48, %c0_40] : memref<96x640xf32, #tpu.memory_space<vmem>>, vector<16x640xf32>
    tpu.vector_store %arg8[%c48, %c0_40], %47 {strides = array<i32>} : memref<96x640xf32, #tpu.memory_space<vmem>>, vector<16x640xf32>,
    %c1_41 = arith.constant 1 : index
    %c0_42 = arith.constant 0 : index
    %c128_43 = arith.constant 128 : index
    %49 = vector.load %arg7[%c1_41, %c0_42, %c128_43] : memref<2x16x896xf32, #tpu.memory_space<vmem>>, vector<1x16x640xf32>
    %50 = vector.shape_cast %49 : vector<1x16x640xf32> to vector<16x640xf32>
    %c64 = arith.constant 64 : index
    %c0_44 = arith.constant 0 : index
    %51 = vector.load %arg8[%c64, %c0_44] : memref<96x640xf32, #tpu.memory_space<vmem>>, vector<16x640xf32>
    tpu.vector_store %arg8[%c64, %c0_44], %50 {strides = array<i32>} : memref<96x640xf32, #tpu.memory_space<vmem>>, vector<16x640xf32>,
    %c1_45 = arith.constant 1 : index
    %c0_46 = arith.constant 0 : index
    %c129_47 = arith.constant 129 : index
    %52 = vector.load %arg7[%c1_45, %c0_46, %c129_47] : memref<2x16x896xf32, #tpu.memory_space<vmem>>, vector<1x16x640xf32>
    %53 = vector.shape_cast %52 : vector<1x16x640xf32> to vector<16x640xf32>
    %c80 = arith.constant 80 : index
    %c0_48 = arith.constant 0 : index
    %54 = vector.load %arg8[%c80, %c0_48] : memref<96x640xf32, #tpu.memory_space<vmem>>, vector<16x640xf32>
    tpu.vector_store %arg8[%c80, %c0_48], %53 {strides = array<i32>} : memref<96x640xf32, #tpu.memory_space<vmem>>, vector<16x640xf32>,
    %c0_49 = arith.constant 0 : index
    %c0_50 = arith.constant 0 : index
    %55 = vector.load %arg4[%c0_49, %c0_50] : memref<16x96xf32, #tpu.memory_space<vmem>>, vector<16x96xf32>
    %c0_51 = arith.constant 0 : index
    %c0_52 = arith.constant 0 : index
    %56 = vector.load %arg8[%c0_51, %c0_52] : memref<96x640xf32, #tpu.memory_space<vmem>>, vector<96x640xf32>
    %cst_53 = arith.constant dense<0.000000e+00> : vector<16x640xf32>
    %57 = tpu.matmul %55, %56, %cst_53 {dimension_numbers = #tpu.dot_dimension_numbers<[1], [0], [0], [1], [0, 0, 1, 1], [], []>} : vector<16x96xf32>, vector<96x640xf32>, vector<16x640xf32> -> vector<16x640xf32>
    %c0_54 = arith.constant 0 : index
    %c0_55 = arith.constant 0 : index
    %58 = vector.load %arg5[%c0_54, %c0_55] : memref<16x1xf32, #tpu.memory_space<vmem>>, vector<16x1xf32>
    %59 = vector.broadcast %58 : vector<16x1xf32> to vector<16x640xf32>
    %60 = arith.addf %57, %59 : vector<16x640xf32>
    %cst_56 = arith.constant 0.000000e+00 : f32
    %61 = vector.broadcast %cst_56 : f32 to vector<16x640xf32>
    %62 = arith.maximumf %60, %61 : vector<16x640xf32>
    %63 = vector.extract_strided_slice %62 {offsets = [0, 0], sizes = [8, 640], strides = [1, 1]} : vector<16x640xf32> to vector<8x640xf32>
    %64 = vector.extract_strided_slice %62 {offsets = [8, 0], sizes = [8, 640], strides = [1, 1]} : vector<16x640xf32> to vector<8x640xf32>
    %65 = arith.maximumf %63, %64 : vector<8x640xf32>
    %66 = vector.shape_cast %65 : vector<8x640xf32> to vector<1x8x640xf32>
    %c0_57 = arith.constant 0 : index
    %c0_58 = arith.constant 0 : index
    %c0_59 = arith.constant 0 : index
    %67 = vector.load %arg6[%c0_57, %c0_58, %c0_59] : memref<1x8x640xf32, #tpu.memory_space<vmem>>, vector<1x8x640xf32>
    tpu.vector_store %arg6[%c0_57, %c0_58, %c0_59], %66 {strides = array<i32>} : memref<1x8x640xf32, #tpu.memory_space<vmem>>, vector<1x8x640xf32>,
    return
  }
  func.func @transform_0(%arg0: i32) -> (i32, i32, i32) {
    %c0_i32 = arith.constant 0 : i32
    %c0_i32_0 = arith.constant 0 : i32
    %c0_i32_1 = arith.constant 0 : i32
    return %arg0, %c0_i32, %c0_i32_0 : i32, i32, i32
  }
  func.func @transform_1(%arg0: i32) -> (i32, i32) {
    %c0_i32 = arith.constant 0 : i32
    %c0_i32_0 = arith.constant 0 : i32
    %c0_i32_1 = arith.constant 0 : i32
    return %c0_i32, %c0_i32_0 : i32, i32
  }
  func.func @transform_2(%arg0: i32) -> (i32, i32) {
    %c0_i32 = arith.constant 0 : i32
    %c0_i32_0 = arith.constant 0 : i32
    %c0_i32_1 = arith.constant 0 : i32
    return %c0_i32, %c0_i32_0 : i32, i32
  }
  func.func @transform_3(%arg0: i32) -> (i32, i32) {
    %c0_i32 = arith.constant 0 : i32
    %c0_i32_0 = arith.constant 0 : i32
    %c0_i32_1 = arith.constant 0 : i32
    return %c0_i32, %c0_i32_0 : i32, i32
  }
  func.func @transform_4(%arg0: i32) -> (i32, i32) {
    %c0_i32 = arith.constant 0 : i32
    %c0_i32_0 = arith.constant 0 : i32
    %c0_i32_1 = arith.constant 0 : i32
    return %c0_i32, %c0_i32_0 : i32, i32
  }
  func.func @transform_5(%arg0: i32) -> (i32, i32, i32) {
    %c0_i32 = arith.constant 0 : i32
    %c0_i32_0 = arith.constant 0 : i32
    %c0_i32_1 = arith.constant 0 : i32
    return %arg0, %c0_i32, %c0_i32_0 : i32, i32, i32
  }
}

module attributes {stable_mosaic.version = 11 : i64} {
  func.func @_mlp_head_kernel(%arg0: i32, %arg1: memref<8x3200xf32, #tpu.memory_space<vmem>>, %arg2: memref<3200x1024xbf16, #tpu.memory_space<vmem>>, %arg3: memref<1x1024xf32, #tpu.memory_space<vmem>>, %arg4: memref<1024x256xbf16, #tpu.memory_space<vmem>>, %arg5: memref<1x256xf32, #tpu.memory_space<vmem>>, %arg6: memref<256x128xf32, #tpu.memory_space<vmem>>, %arg7: memref<1x128xf32, #tpu.memory_space<vmem>>, %arg8: memref<8x128xf32, #tpu.memory_space<vmem>>) attributes {dimension_semantics = [#tpu.dimension_semantics<parallel>], iteration_bounds = array<i64: 1>, scalar_prefetch = 0 : i64, scratch_operands = 0 : i64, tpu.core_type = #tpu.core_type<tc>, window_params = [{transform_indices = @transform_0, window_bounds = array<i64: 8, 3200>}, {pipeline_mode = #tpu.pipeline_mode<synchronous>, transform_indices = @transform_1, window_bounds = array<i64: 3200, 1024>}, {pipeline_mode = #tpu.pipeline_mode<synchronous>, transform_indices = @transform_2, window_bounds = array<i64: 1, 1024>}, {pipeline_mode = #tpu.pipeline_mode<synchronous>, transform_indices = @transform_3, window_bounds = array<i64: 1024, 256>}, {pipeline_mode = #tpu.pipeline_mode<synchronous>, transform_indices = @transform_4, window_bounds = array<i64: 1, 256>}, {pipeline_mode = #tpu.pipeline_mode<synchronous>, transform_indices = @transform_5, window_bounds = array<i64: 256, 128>}, {pipeline_mode = #tpu.pipeline_mode<synchronous>, transform_indices = @transform_6, window_bounds = array<i64: 1, 128>}, {transform_indices = @transform_7, window_bounds = array<i64: 8, 128>}]} {
    %c0 = arith.constant 0 : index
    %c0_0 = arith.constant 0 : index
    %0 = vector.load %arg1[%c0, %c0_0] : memref<8x3200xf32, #tpu.memory_space<vmem>>, vector<8x3200xf32>
    %1 = arith.truncf %0 : vector<8x3200xf32> to vector<8x3200xbf16>
    %c0_1 = arith.constant 0 : index
    %c0_2 = arith.constant 0 : index
    %2 = vector.load %arg2[%c0_1, %c0_2] : memref<3200x1024xbf16, #tpu.memory_space<vmem>>, vector<3200x1024xbf16>
    %cst = arith.constant dense<0.000000e+00> : vector<8x1024xf32>
    %3 = tpu.matmul %1, %2, %cst {dimension_numbers = #tpu.dot_dimension_numbers<[1], [0], [0], [1], [0, 0, 1, 1], [], []>} : vector<8x3200xbf16>, vector<3200x1024xbf16>, vector<8x1024xf32> -> vector<8x1024xf32>
    %c0_3 = arith.constant 0 : index
    %c0_4 = arith.constant 0 : index
    %4 = vector.load %arg3[%c0_3, %c0_4] : memref<1x1024xf32, #tpu.memory_space<vmem>>, vector<1x1024xf32>
    %5 = vector.broadcast %4 : vector<1x1024xf32> to vector<8x1024xf32>
    %6 = arith.addf %3, %5 : vector<8x1024xf32>
    %cst_5 = arith.constant 0.000000e+00 : f32
    %7 = vector.broadcast %cst_5 : f32 to vector<8x1024xf32>
    %8 = arith.maximumf %6, %7 : vector<8x1024xf32>
    %9 = arith.truncf %8 : vector<8x1024xf32> to vector<8x1024xbf16>
    %c0_6 = arith.constant 0 : index
    %c0_7 = arith.constant 0 : index
    %10 = vector.load %arg4[%c0_6, %c0_7] : memref<1024x256xbf16, #tpu.memory_space<vmem>>, vector<1024x256xbf16>
    %cst_8 = arith.constant dense<0.000000e+00> : vector<8x256xf32>
    %11 = tpu.matmul %9, %10, %cst_8 {dimension_numbers = #tpu.dot_dimension_numbers<[1], [0], [0], [1], [0, 0, 1, 1], [], []>} : vector<8x1024xbf16>, vector<1024x256xbf16>, vector<8x256xf32> -> vector<8x256xf32>
    %c0_9 = arith.constant 0 : index
    %c0_10 = arith.constant 0 : index
    %12 = vector.load %arg5[%c0_9, %c0_10] : memref<1x256xf32, #tpu.memory_space<vmem>>, vector<1x256xf32>
    %13 = vector.broadcast %12 : vector<1x256xf32> to vector<8x256xf32>
    %14 = arith.addf %11, %13 : vector<8x256xf32>
    %c0_11 = arith.constant 0 : index
    %c0_12 = arith.constant 0 : index
    %15 = vector.load %arg6[%c0_11, %c0_12] : memref<256x128xf32, #tpu.memory_space<vmem>>, vector<256x128xf32>
    %cst_13 = arith.constant dense<0.000000e+00> : vector<8x128xf32>
    %16 = tpu.matmul %14, %15, %cst_13 {dimension_numbers = #tpu.dot_dimension_numbers<[1], [0], [0], [1], [0, 0, 1, 1], [], []>} : vector<8x256xf32>, vector<256x128xf32>, vector<8x128xf32> -> vector<8x128xf32>
    %c0_14 = arith.constant 0 : index
    %c0_15 = arith.constant 0 : index
    %17 = vector.load %arg7[%c0_14, %c0_15] : memref<1x128xf32, #tpu.memory_space<vmem>>, vector<1x128xf32>
    %18 = vector.broadcast %17 : vector<1x128xf32> to vector<8x128xf32>
    %19 = arith.addf %16, %18 : vector<8x128xf32>
    %c0_16 = arith.constant 0 : index
    %c0_17 = arith.constant 0 : index
    %20 = vector.load %arg8[%c0_16, %c0_17] : memref<8x128xf32, #tpu.memory_space<vmem>>, vector<8x128xf32>
    tpu.vector_store %arg8[%c0_16, %c0_17], %19 {strides = array<i32>} : memref<8x128xf32, #tpu.memory_space<vmem>>, vector<8x128xf32>,
    return
  }
  func.func @transform_0(%arg0: i32) -> (i32, i32) {
    %c0_i32 = arith.constant 0 : i32
    %c0_i32_0 = arith.constant 0 : i32
    return %arg0, %c0_i32 : i32, i32
  }
  func.func @transform_1(%arg0: i32) -> (i32, i32) {
    %c0_i32 = arith.constant 0 : i32
    %c0_i32_0 = arith.constant 0 : i32
    %c0_i32_1 = arith.constant 0 : i32
    return %c0_i32, %c0_i32_0 : i32, i32
  }
  func.func @transform_2(%arg0: i32) -> (i32, i32) {
    %c0_i32 = arith.constant 0 : i32
    %c0_i32_0 = arith.constant 0 : i32
    %c0_i32_1 = arith.constant 0 : i32
    return %c0_i32, %c0_i32_0 : i32, i32
  }
  func.func @transform_3(%arg0: i32) -> (i32, i32) {
    %c0_i32 = arith.constant 0 : i32
    %c0_i32_0 = arith.constant 0 : i32
    %c0_i32_1 = arith.constant 0 : i32
    return %c0_i32, %c0_i32_0 : i32, i32
  }
  func.func @transform_4(%arg0: i32) -> (i32, i32) {
    %c0_i32 = arith.constant 0 : i32
    %c0_i32_0 = arith.constant 0 : i32
    %c0_i32_1 = arith.constant 0 : i32
    return %c0_i32, %c0_i32_0 : i32, i32
  }
  func.func @transform_5(%arg0: i32) -> (i32, i32) {
    %c0_i32 = arith.constant 0 : i32
    %c0_i32_0 = arith.constant 0 : i32
    %c0_i32_1 = arith.constant 0 : i32
    return %c0_i32, %c0_i32_0 : i32, i32
  }
  func.func @transform_6(%arg0: i32) -> (i32, i32) {
    %c0_i32 = arith.constant 0 : i32
    %c0_i32_0 = arith.constant 0 : i32
    %c0_i32_1 = arith.constant 0 : i32
    return %c0_i32, %c0_i32_0 : i32, i32
  }
  func.func @transform_7(%arg0: i32) -> (i32, i32) {
    %c0_i32 = arith.constant 0 : i32
    %c0_i32_0 = arith.constant 0 : i32
    return %arg0, %c0_i32 : i32, i32
  }
}

</mosaic_0001>

<bundles_post_ra>
// kernel: sequence_model_forward.2
= control target key start
LH: loop header
LB: loop body
LE: loop exit
PB: predicated region body
PF: predicated region fallthrough
CT: control target
= control target key end

     0   :  { %s1732_s18 = smov 0   ;;  %s2428_s0 = inlined_call_operand.vmem [shape: f32[2,192,640], index: 0, kind: input, shape index: {}]   ;;  %s2429_s1 = inlined_call_operand.vmem [shape: f32[64,192], index: 1, kind: input, shape index: {}]   ;;  %s2430_s2 = inlined_call_operand.vmem [shape: f32[64,1], index: 2, kind: input, shape index: {}]   ;;  %s2431_s3 = inlined_call_operand.vmem [shape: f32[16,96], index: 3, kind: input, shape index: {}]   ;;  %s2432_s4 = inlined_call_operand.vmem [shape: f32[16,1], index: 4, kind: input, shape index: {}]   ;;  %s2433_s5 = inlined_call_operand.vmem [shape: f32[2,8,640], index: 5, kind: output, shape index: {}]  }
   0x1 LB: > { %s1594_s19 = sadd.s32 4294967295, %s1696_s18   ;;  %p1598_p0 = scmp.ge.s32.totalorder %s1696_s18, 1  ;;  %s1696_s18 = sphi %s1732_s18, %s15_s18  }
   0x2   : > { %p187_p1 = scmp.lt.s32.totalorder %s1696_s18, 3 }
   0x4   : > { %p188_p2 = pnand %p1598_p0, %p187_p1 }
   0x5   : > { %p215_p3 = scmp.lt.s32.totalorder (!%p188_p2), %s1594_s19, 1  ;;  %s1701_s27 = smov (!%p188_p2), 127  }
   0x6   : > { %191 = sbr.rel (%p188_p2) target bundleno = 688 (0x2b0), region = 40 }
   0xb   : > { %v1743_v0 = vld [vmem:[%s2429_s1 + $0x8] sm:$0xff]  ;;  %vm409_vm0 = vcmask 523264   ;;  %s2435_s19 = smov (!%p215_p3, %s1594_s19), 1  ;;  %v1698_v1 = vmov 0   ;;  %v365_v3 = vld [vmem:[%s2430_s2 + $0x20] sm:$0xff]  ;;  %vm825_vm1 = vcmask 1048568  }
   0xc   : > { %1601 = vmatprep.mubr.msk.f32.mxu0 %vm409_vm0, %v1743_v0  ;;  %1609 = vmatprep.mubr.msk.f32.mxu1 %vm409_vm0, %v1743_v0  ;;  %s1674_s22 = smul.u32 960, %s2435_s19  ;;  %v366_v2 = vld [vmem:[%s2430_s2 + $0x28] sm:$0xff]  ;;  %vm828_vm2 = vcmask 7168   ;;  %vm1283_vm3 = vcmask 785408   ;;  %vm1002_vm4 = vcmask 1039360  }
   0xd   : > { %1689 = vset.pattern.permute.xlu1 %v1698_v1  ;;  %1688 = vset.pattern.permute.xlu0 %v1698_v1  ;;  %s1675_s12 = smul.u32 40, %s2435_s19 }
   0xe   : > { %s1761_s29 = scalar_lea.vmem %s2428_s0, %s1674_s22  ;;  %396 = vperm.xlu0 %1688, %v366_v2   ;;  %391 = vperm.xlu1 %1689, %v365_v3  }
   0xf   : > { %v301_v4 = vld [vmem:[%s1761_s29 + $0x260] sm:$0xff]  ;;  %v303_v5 = vld [vmem:[%s1761_s29 + $0x270] sm:$0xff]  ;;  %v300_v6 = vld [vmem:[%s1761_s29 + $0x258] sm:$0xff]  ;;  %s224_s15 = scalar_lea.vmem %s2433_s5, %s1675_s12 }
  0x10   : > { %434 = vmatprep.subr.mxu0 %v301_v4  ;;  %547 = vmatprep.subr.mxu1 %v303_v5  ;;  %v302_v7 = vld [vmem:[%s1761_s29 + $0x268] sm:$0xff]  ;;  %v296_v8 = vld [vmem:[%s1761_s29 + $0x238] sm:$0xff]  ;;  %v295_v10 = vld [vmem:[%s1761_s29 + $0x230] sm:$0xff] }
  0x11   : > { %v298_v9 = vld [vmem:[%s1761_s29 + $0x248] sm:$0xff]  ;;  %435 = vmatpush1.msra.mxu0 %v300_v6  ;;  %548 = vmatpush1.msra.mxu1 %v302_v7  ;;  %v297_v11 = vld [vmem:[%s1761_s29 + $0x240] sm:$0xff]  ;;  %v291_v12 = vld [vmem:[%s1761_s29 + $0x210] sm:$0xff] }
  0x12   : > { %436 = vmatprep.subr.mxu0 %v296_v8  ;;  %549 = vmatprep.subr.mxu1 %v298_v9  ;;  %v293_v13 = vld [vmem:[%s1761_s29 + $0x220] sm:$0xff]  ;;  %v290_v14 = vld [vmem:[%s1761_s29 + $0x208] sm:$0xff]  ;;  %v292_v15 = vld [vmem:[%s1761_s29 + $0x218] sm:$0xff] }
  0x13   : > { %437 = vmatpush1.msra.mxu0 %v295_v10  ;;  %550 = vmatpush1.msra.mxu1 %v297_v11  ;;  %v286_v16 = vld [vmem:[%s1761_s29 + $0x1e8] sm:$0xff]  ;;  %v288_v17 = vld [vmem:[%s1761_s29 + $0x1f8] sm:$0xff]  ;;  %v285_v18 = vld [vmem:[%s1761_s29 + $0x1e0] sm:$0xff] }
  0x14   : > { %438 = vmatprep.subr.mxu0 %v291_v12  ;;  %551 = vmatprep.subr.mxu1 %v293_v13  ;;  %v287_v19 = vld [vmem:[%s1761_s29 + $0x1f0] sm:$0xff]  ;;  %v281_v20 = vld [vmem:[%s1761_s29 + $0x1c0] sm:$0xff]  ;;  %v280_v22 = vld [vmem:[%s1761_s29 + $0x1b8] sm:$0xff] }
  0x15   : > { %439 = vmatpush1.msra.mxu0 %v290_v14  ;;  %552 = vmatpush1.msra.mxu1 %v292_v15  ;;  %v283_v21 = vld [vmem:[%s1761_s29 + $0x1d0] sm:$0xff]  ;;  %v282_v23 = vld [vmem:[%s1761_s29 + $0x1c8] sm:$0xff]  ;;  %v276_v24 = vld [vmem:[%s1761_s29 + $0x198] sm:$0xff] }
  0x16   : > { %440 = vmatprep.subr.mxu0 %v286_v16  ;;  %553 = vmatprep.subr.mxu1 %v288_v17  ;;  %v278_v25 = vld [vmem:[%s1761_s29 + $0x1a8] sm:$0xff]  ;;  %v275_v26 = vld [vmem:[%s1761_s29 + $0x190] sm:$0xff]  ;;  %v277_v27 = vld [vmem:[%s1761_s29 + $0x1a0] sm:$0xff] }
  0x17   : > { %441 = vmatpush1.msra.mxu0 %v285_v18  ;;  %554 = vmatpush1.msra.mxu1 %v287_v19  ;;  %v271_v28 = vld [vmem:[%s1761_s29 + $0x170] sm:$0xff]  ;;  %v273_v29 = vld [vmem:[%s1761_s29 + $0x180] sm:$0xff]  ;;  %v270_v30 = vld [vmem:[%s1761_s29 + $0x168] sm:$0xff] }
  0x18   : > { %442 = vmatprep.subr.mxu0 %v281_v20  ;;  %555 = vmatprep.subr.mxu1 %v283_v21  ;;  %v272_v31 = vld [vmem:[%s1761_s29 + $0x178] sm:$0xff]  ;;  %v266_v32 = vld [vmem:[%s1761_s29 + $0x148] sm:$0xff]  ;;  %v265_v34 = vld [vmem:[%s1761_s29 + $0x140] sm:$0xff] }
  0x19   : > { %443 = vmatpush1.msra.mxu0 %v280_v22  ;;  %556 = vmatpush1.msra.mxu1 %v282_v23  ;;  %v268_v33 = vld [vmem:[%s1761_s29 + $0x158] sm:$0xff]  ;;  %v267_v35 = vld [vmem:[%s1761_s29 + $0x150] sm:$0xff]  ;;  %v261_v36 = vld [vmem:[%s1761_s29 + $0x120] sm:$0xff] }
  0x1a   : > { %444 = vmatprep.subr.mxu0 %v276_v24  ;;  %557 = vmatprep.subr.mxu1 %v278_v25  ;;  %v263_v37 = vld [vmem:[%s1761_s29 + $0x130] sm:$0xff]  ;;  %v260_v38 = vld [vmem:[%s1761_s29 + $0x118] sm:$0xff]  ;;  %v262_v39 = vld [vmem:[%s1761_s29 + $0x128] sm:$0xff] }
  0x1b   : > { %445 = vmatpush1.msra.mxu0 %v275_v26  ;;  %558 = vmatpush1.msra.mxu1 %v277_v27  ;;  %v256_v40 = vld [vmem:[%s1761_s29 + $0xf8] sm:$0xff]  ;;  %v258_v41 = vld [vmem:[%s1761_s29 + $0x108] sm:$0xff]  ;;  %v255_v42 = vld [vmem:[%s1761_s29 + $0xf0] sm:$0xff] }
  0x1c   : > { %446 = vmatprep.subr.mxu0 %v271_v28  ;;  %559 = vmatprep.subr.mxu1 %v273_v29  ;;  %v257_v43 = vld [vmem:[%s1761_s29 + $0x100] sm:$0xff]  ;;  %v251_v44 = vld [vmem:[%s1761_s29 + $0xd0] sm:$0xff]  ;;  %v250_v46 = vld [vmem:[%s1761_s29 + $0xc8] sm:$0xff] }
  0x1d   : > { %447 = vmatpush1.msra.mxu0 %v270_v30  ;;  %560 = vmatpush1.msra.mxu1 %v272_v31  ;;  %v253_v45 = vld [vmem:[%s1761_s29 + $0xe0] sm:$0xff]  ;;  %v252_v47 = vld [vmem:[%s1761_s29 + $0xd8] sm:$0xff]  ;;  %v246_v48 = vld [vmem:[%s1761_s29 + $0xa8] sm:$0xff] }
  0x1e   : > { %448 = vmatprep.subr.mxu0 %v266_v32  ;;  %561 = vmatprep.subr.mxu1 %v268_v33  ;;  %v248_v49 = vld [vmem:[%s1761_s29 + $0xb8] sm:$0xff]  ;;  %v245_v50 = vld [vmem:[%s1761_s29 + $0xa0] sm:$0xff]  ;;  %v247_v51 = vld [vmem:[%s1761_s29 + $0xb0] sm:$0xff] }
  0x1f   : > { %449 = vmatpush1.msra.mxu0 %v265_v34  ;;  %562 = vmatpush1.msra.mxu1 %v267_v35  ;;  %v241_v52 = vld [vmem:[%s1761_s29 + $0x80] sm:$0xff]  ;;  %v243_v53 = vld [vmem:[%s1761_s29 + $0x90] sm:$0xff]  ;;  %v240_v54 = vld [vmem:[%s1761_s29 + $0x78] sm:$0xff] }
  0x20   : > { %450 = vmatprep.subr.mxu0 %v261_v36  ;;  %563 = vmatprep.subr.mxu1 %v263_v37  ;;  %v242_v55 = vld [vmem:[%s1761_s29 + $0x88] sm:$0xff]  ;;  %v236_v56 = vld [vmem:[%s1761_s29 + $0x58] sm:$0xff]  ;;  %v235_v58 = vld [vmem:[%s1761_s29 + $0x50] sm:$0xff] }
  0x21   : > { %451 = vmatpush1.msra.mxu0 %v260_v38  ;;  %564 = vmatpush1.msra.mxu1 %v262_v39  ;;  %v238_v57 = vld [vmem:[%s1761_s29 + $0x68] sm:$0xff]  ;;  %v237_v59 = vld [vmem:[%s1761_s29 + $0x60] sm:$0xff]  ;;  %v231_v60 = vld [vmem:[%s1761_s29 + $0x30] sm:$0xff] }
  0x22   : > { %452 = vmatprep.subr.mxu0 %v256_v40  ;;  %565 = vmatprep.subr.mxu1 %v258_v41  ;;  %v233_v61 = vld [vmem:[%s1761_s29 + $0x40] sm:$0xff]  ;;  %v230_v62 = vld [vmem:[%s1761_s29 + $0x28] sm:$0xff]  ;;  %v232_v63 = vld [vmem:[%s1761_s29 + $0x38] sm:$0xff]  ;;  %v1699_v41 = vmov 0.0  }
  0x23   : > { %453 = vmatpush1.msra.mxu0 %v255_v42  ;;  %566 = vmatpush1.msra.mxu1 %v257_v43  ;;  %v226_v1 = vld [vmem:[%s1761_s29 + $0x8] sm:$0xff]  ;;  %v228_v2 = vld [vmem:[%s1761_s29 + $0x18] sm:$0xff]  ;;  %v225_v3 = vld [vmem:[%s1761_s29] sm:$0xff]  ;;  %832 = vst.msk [vmem:[#allocation2 + $0x70] sm:$0xff] %vm825_vm1, %v1699_v41 }
  0x24   : > { %454 = vmatprep.subr.mxu0 %v251_v44  ;;  %567 = vmatprep.subr.mxu1 %v253_v45  ;;  %v227_v4 = vld [vmem:[%s1761_s29 + $0x10] sm:$0xff]  ;;  %v341_v5 = vld [vmem:[%s1761_s29 + $0x3a0] sm:$0xff]  ;;  %v340_v7 = vld [vmem:[%s1761_s29 + $0x398] sm:$0xff]  ;;  %826 = vst.msk [vmem:[#allocation2] sm:$0xff] %vm825_vm1, %v1699_v41 }
  0x25   : > { %455 = vmatpush1.msra.mxu0 %v250_v46  ;;  %568 = vmatpush1.msra.mxu1 %v252_v47  ;;  %v343_v6 = vld [vmem:[%s1761_s29 + $0x3b0] sm:$0xff]  ;;  %v342_v8 = vld [vmem:[%s1761_s29 + $0x3a8] sm:$0xff]  ;;  %v336_v9 = vld [vmem:[%s1761_s29 + $0x378] sm:$0xff]  ;;  %827 = vst.msk [vmem:[#allocation2 + $0x38] sm:$0xff] %vm825_vm1, %v1699_v41 }
  0x26   : > { %456 = vmatprep.subr.mxu0 %v246_v48  ;;  %569 = vmatprep.subr.mxu1 %v248_v49  ;;  %v338_v10 = vld [vmem:[%s1761_s29 + $0x388] sm:$0xff]  ;;  %v335_v11 = vld [vmem:[%s1761_s29 + $0x370] sm:$0xff]  ;;  %v337_v12 = vld [vmem:[%s1761_s29 + $0x380] sm:$0xff]  ;;  %833 = vst.msk [vmem:[#allocation2 + $0xa8] sm:$0xff] %vm825_vm1, %v1699_v41 }
  0x27   : > { %457 = vmatpush1.msra.mxu0 %v245_v50  ;;  %570 = vmatpush1.msra.mxu1 %v247_v51  ;;  %v331_v13 = vld [vmem:[%s1761_s29 + $0x350] sm:$0xff]  ;;  %v333_v14 = vld [vmem:[%s1761_s29 + $0x360] sm:$0xff]  ;;  %v330_v15 = vld [vmem:[%s1761_s29 + $0x348] sm:$0xff]  ;;  %834 = vst.msk [vmem:[#allocation2 + $0xa0] sm:$0xff] %vm828_vm2, %v1699_v41 }
  0x28   : > { %458 = vmatprep.subr.mxu0 %v241_v52  ;;  %571 = vmatprep.subr.mxu1 %v243_v53  ;;  %v332_v16 = vld [vmem:[%s1761_s29 + $0x358] sm:$0xff]  ;;  %v326_v17 = vld [vmem:[%s1761_s29 + $0x328] sm:$0xff]  ;;  %v325_v19 = vld [vmem:[%s1761_s29 + $0x320] sm:$0xff]  ;;  %829 = vst.msk [vmem:[#allocation2 + $0x30] sm:$0xff] %vm828_vm2, %v1699_v41 }
  0x29   : > { %459 = vmatpush1.msra.mxu0 %v240_v54  ;;  %572 = vmatpush1.msra.mxu1 %v242_v55  ;;  %v328_v18 = vld [vmem:[%s1761_s29 + $0x338] sm:$0xff]  ;;  %v327_v20 = vld [vmem:[%s1761_s29 + $0x330] sm:$0xff]  ;;  %v321_v21 = vld [vmem:[%s1761_s29 + $0x300] sm:$0xff]  ;;  %830 = vst.msk [vmem:[#allocation2 + $0x68] sm:$0xff] %vm828_vm2, %v1699_v41 }
  0x2a   : > { %460 = vmatprep.subr.mxu0 %v236_v56  ;;  %573 = vmatprep.subr.mxu1 %v238_v57  ;;  %v323_v22 = vld [vmem:[%s1761_s29 + $0x310] sm:$0xff]  ;;  %v320_v23 = vld [vmem:[%s1761_s29 + $0x2f8] sm:$0xff]  ;;  %v322_v24 = vld [vmem:[%s1761_s29 + $0x308] sm:$0xff]  ;;  %835 = vst.msk [vmem:[#allocation2 + $0xd8] sm:$0xff] %vm828_vm2, %v1699_v41 }
  0x2b   : > { %461 = vmatpush1.msra.mxu0 %v235_v58  ;;  %574 = vmatpush1.msra.mxu1 %v237_v59  ;;  %v316_v25 = vld [vmem:[%s1761_s29 + $0x2d8] sm:$0xff]  ;;  %v318_v26 = vld [vmem:[%s1761_s29 + $0x2e8] sm:$0xff]  ;;  %v315_v27 = vld [vmem:[%s1761_s29 + $0x2d0] sm:$0xff] }
  0x2c   : > { %462 = vmatprep.subr.mxu0 %v231_v60  ;;  %575 = vmatprep.subr.mxu1 %v233_v61  ;;  %v317_v28 = vld [vmem:[%s1761_s29 + $0x2e0] sm:$0xff]  ;;  %v311_v29 = vld [vmem:[%s1761_s29 + $0x2b0] sm:$0xff]  ;;  %v310_v31 = vld [vmem:[%s1761_s29 + $0x2a8] sm:$0xff] }
  0x2d   : > { %463 = vmatpush1.msra.mxu0 %v230_v62  ;;  %576 = vmatpush1.msra.mxu1 %v232_v63  ;;  %v313_v30 = vld [vmem:[%s1761_s29 + $0x2c0] sm:$0xff]  ;;  %v312_v32 = vld [vmem:[%s1761_s29 + $0x2b8] sm:$0xff]  ;;  %v306_v33 = vld [vmem:[%s1761_s29 + $0x288] sm:$0xff] }
  0x2e   : > { %464 = vmatprep.subr.mxu0 %v226_v1  ;;  %577 = vmatprep.subr.mxu1 %v228_v2  ;;  %v308_v34 = vld [vmem:[%s1761_s29 + $0x298] sm:$0xff]  ;;  %v305_v35 = vld [vmem:[%s1761_s29 + $0x280] sm:$0xff]  ;;  %v307_v36 = vld [vmem:[%s1761_s29 + $0x290] sm:$0xff] }
  0x2f   : > { %465 = vmatpush1.msra.mxu0 %v225_v3  ;;  %578 = vmatpush1.msra.mxu1 %v227_v4  ;;  %v1862_v37 = vld [vmem:[%s2429_s1] sm:$0xff]  ;;  %v1867_v38 = vld [vmem:[%s2429_s1 + $0x18] sm:$0xff]  ;;  %v299_v42 = vld [vmem:[%s1761_s29 + $0x250] sm:$0xff] }
  0x30   : > { %482 = vmatprep.subr.mxu0 %v341_v5  ;;  %595 = vmatprep.subr.mxu1 %v343_v6  ;;  %v304_v39 = vld [vmem:[%s1761_s29 + $0x278] sm:$0xff]  ;;  %v1882_v43 = vld [vmem:[%s2429_s1 + $0x10] sm:$0xff]  ;;  %v294_v44 = vld [vmem:[%s1761_s29 + $0x228] sm:$0xff] }
  0x31   : > { %483 = vmatpush2.msra.mxu0 %v340_v7  ;;  %596 = vmatpush2.msra.mxu1 %v342_v8  ;;  %v368_v40 = vld [vmem:[%s2430_s2 + $0x38] sm:$0xff]  ;;  %v1891_v45 = vld [vmem:[%s2429_s1 + $0x28] sm:$0xff]  ;;  %v289_v46 = vld [vmem:[%s1761_s29 + $0x200] sm:$0xff] }
  0x32   : > { %484 = vmatprep.subr.mxu0 %v336_v9  ;;  %597 = vmatprep.subr.mxu1 %v338_v10  ;;  %v1900_v47 = vld [vmem:[%s2429_s1 + $0x20] sm:$0xff]  ;;  %v284_v48 = vld [vmem:[%s1761_s29 + $0x1d8] sm:$0xff]  ;;  %v279_v50 = vld [vmem:[%s1761_s29 + $0x1b0] sm:$0xff] }
  0x33   : > { %485 = vmatpush2.msra.mxu0 %v335_v11  ;;  %598 = vmatpush2.msra.mxu1 %v337_v12  ;;  %v1911_v49 = vld [vmem:[%s2429_s1 + $0x38] sm:$0xff]  ;;  %v1920_v51 = vld [vmem:[%s2429_s1 + $0x30] sm:$0xff]  ;;  %v274_v52 = vld [vmem:[%s1761_s29 + $0x188] sm:$0xff] }
  0x34   : > { %486 = vmatprep.subr.mxu0 %v331_v13  ;;  %599 = vmatprep.subr.mxu1 %v333_v14  ;;  %v1931_v53 = vld [vmem:[%s2429_s1 + $0x48] sm:$0xff]  ;;  %v269_v54 = vld [vmem:[%s1761_s29 + $0x160] sm:$0xff]  ;;  %v264_v56 = vld [vmem:[%s1761_s29 + $0x138] sm:$0xff] }
  0x35   : > { %487 = vmatpush2.msra.mxu0 %v330_v15  ;;  %600 = vmatpush2.msra.mxu1 %v332_v16  ;;  %v1940_v55 = vld [vmem:[%s2429_s1 + $0x40] sm:$0xff]  ;;  %v1951_v57 = vld [vmem:[%s2429_s1 + $0x58] sm:$0xff]  ;;  %v259_v58 = vld [vmem:[%s1761_s29 + $0x110] sm:$0xff] }
  0x36   : > { %488 = vmatprep.subr.mxu0 %v326_v17  ;;  %601 = vmatprep.subr.mxu1 %v328_v18  ;;  %v1960_v59 = vld [vmem:[%s2429_s1 + $0x50] sm:$0xff]  ;;  %v254_v60 = vld [vmem:[%s1761_s29 + $0xe8] sm:$0xff]  ;;  %v249_v62 = vld [vmem:[%s1761_s29 + $0xc0] sm:$0xff] }
  0x37   : > { %489 = vmatpush2.msra.mxu0 %v325_v19  ;;  %602 = vmatpush2.msra.mxu1 %v327_v20  ;;  %v1971_v61 = vld [vmem:[%s2429_s1 + $0x68] sm:$0xff]  ;;  %v1980_v63 = vld [vmem:[%s2429_s1 + $0x60] sm:$0xff]  ;;  %v244_v1 = vld [vmem:[%s1761_s29 + $0x98] sm:$0xff] }
  0x38   : > { %490 = vmatprep.subr.mxu0 %v321_v21  ;;  %603 = vmatprep.subr.mxu1 %v323_v22  ;;  %v1991_v2 = vld [vmem:[%s2429_s1 + $0x78] sm:$0xff]  ;;  %v239_v3 = vld [vmem:[%s1761_s29 + $0x70] sm:$0xff]  ;;  %v234_v5 = vld [vmem:[%s1761_s29 + $0x48] sm:$0xff] }
  0x39   : > { %491 = vmatpush2.msra.mxu0 %v320_v23  ;;  %604 = vmatpush2.msra.mxu1 %v322_v24  ;;  %v2000_v4 = vld [vmem:[%s2429_s1 + $0x70] sm:$0xff]  ;;  %v229_v7 = vld [vmem:[%s1761_s29 + $0x20] sm:$0xff]  ;;  %v362_v8 = vld [vmem:[%s2430_s2 + $0x8] sm:$0xff] }
  0x3a   : > { %492 = vmatprep.subr.mxu0 %v316_v25  ;;  %605 = vmatprep.subr.mxu1 %v318_v26  ;;  %v367_v6 = vld [vmem:[%s2430_s2 + $0x30] sm:$0xff]  ;;  %v344_v9 = vld [vmem:[%s1761_s29 + $0x3b8] sm:$0xff]  ;;  %v361_v12 = vld [vmem:[%s2430_s2] sm:$0xff] }
  0x3b   : > { %493 = vmatpush2.msra.mxu0 %v315_v27  ;;  %606 = vmatpush2.msra.mxu1 %v317_v28  ;;  %v364_v10 = vld [vmem:[%s2430_s2 + $0x18] sm:$0xff]  ;;  %v339_v11 = vld [vmem:[%s1761_s29 + $0x390] sm:$0xff]  ;;  %v329_v14 = vld [vmem:[%s1761_s29 + $0x340] sm:$0xff] }
  0x3c   : > { %494 = vmatprep.subr.mxu0 %v311_v29  ;;  %607 = vmatprep.subr.mxu1 %v313_v30  ;;  %v363_v13 = vld [vmem:[%s2430_s2 + $0x10] sm:$0xff]  ;;  %v324_v15 = vld [vmem:[%s1761_s29 + $0x318] sm:$0xff]  ;;  %v314_v17 = vld [vmem:[%s1761_s29 + $0x2c8] sm:$0xff] }
  0x3d   : > { %495 = vmatpush2.msra.mxu0 %v310_v31  ;;  %608 = vmatpush2.msra.mxu1 %v312_v32  ;;  %v319_v16 = vld [vmem:[%s1761_s29 + $0x2f0] sm:$0xff]  ;;  %v309_v18 = vld [vmem:[%s1761_s29 + $0x2a0] sm:$0xff]  ;;  %v1039_v20 = vld [vmem:[#allocation2 + $0xa8] sm:$0xff] }
  0x3e   : > { %496 = vmatprep.subr.mxu0 %v306_v33  ;;  %609 = vmatprep.subr.mxu1 %v308_v34  ;;  %v1033_v19 = vld [vmem:[#allocation2 + $0x70] sm:$0xff]  ;;  %v856_v21 = vld [vmem:[#allocation2] sm:$0xff]  ;;  %v862_v22 = vld [vmem:[#allocation2 + $0x38] sm:$0xff] }
  0x3f   : > { %497 = vmatpush2.msra.mxu0 %v305_v35  ;;  %610 = vmatpush2.msra.mxu1 %v307_v36 }
  0x40   : > { %499 = vmatmul.mubr.f32.vlgmr.msra.gmra.mxu0 %v1862_v37  ;;  %612 = vmatmul.mubr.f32.vlgmr.msra.gmra.mxu1 %v1862_v37 }
  0x41   : > { %660 = vmatprep.subr.mxu0 %v1699_v41  ;;  %1602 = vmatprep.mubr.msk.f32.mxu0 %vm409_vm0, %v1867_v38 }
  0x42   : > { %661 = vmatpush1.msra.mxu0 %v304_v39  ;;  %1610 = vmatprep.mubr.msk.f32.mxu1 %vm409_vm0, %v1867_v38 }
  0x43   : > { %662 = vmatprep.subr.mxu0 %v1699_v41  ;;  %406 = vperm.xlu0 %1688, %v368_v40  }
  0x44   : > { %663 = vmatpush1.msra.mxu0 %v299_v42  ;;  %618 = vmatmul.mubr.f32.gmra.mxu1 %v1882_v43 }
  0x45   : > { %505 = vmatmul.mubr.f32.gmra.mxu0 %v1882_v43  ;;  %664 = vmatprep.subr.mxu0 %v1699_v41 }
  0x46   : > { %665 = vmatpush1.msra.mxu0 %v294_v44  ;;  %1603 = vmatprep.mubr.msk.f32.mxu0 %vm409_vm0, %v1891_v45 }
  0x47   : > { %666 = vmatprep.subr.mxu0 %v1699_v41  ;;  %1611 = vmatprep.mubr.msk.f32.mxu1 %vm409_vm0, %v1891_v45 }
  0x48   : > { %667 = vmatpush1.msra.mxu0 %v289_v46  ;;  %624 = vmatmul.mubr.f32.gmra.mxu1 %v1900_v47 }
  0x49   : > { %511 = vmatmul.mubr.f32.gmra.mxu0 %v1900_v47  ;;  %668 = vmatprep.subr.mxu0 %v1699_v41 }
  0x4a   : > { %669 = vmatpush1.msra.mxu0 %v284_v48  ;;  %1604 = vmatprep.mubr.msk.f32.mxu0 %vm409_vm0, %v1911_v49 }
  0x4b   : > { %670 = vmatprep.subr.mxu0 %v1699_v41  ;;  %1612 = vmatprep.mubr.msk.f32.mxu1 %vm409_vm0, %v1911_v49 }
  0x4c   : > { %671 = vmatpush1.msra.mxu0 %v279_v50  ;;  %630 = vmatmul.mubr.f32.gmra.mxu1 %v1920_v51 }
  0x4d   : > { %517 = vmatmul.mubr.f32.gmra.mxu0 %v1920_v51  ;;  %672 = vmatprep.subr.mxu0 %v1699_v41 }
  0x4e   : > { %673 = vmatpush1.msra.mxu0 %v274_v52  ;;  %1605 = vmatprep.mubr.msk.f32.mxu0 %vm409_vm0, %v1931_v53 }
  0x4f   : > { %674 = vmatprep.subr.mxu0 %v1699_v41  ;;  %1613 = vmatprep.mubr.msk.f32.mxu1 %vm409_vm0, %v1931_v53 }
  0x50   : > { %675 = vmatpush1.msra.mxu0 %v269_v54  ;;  %636 = vmatmul.mubr.f32.gmra.mxu1 %v1940_v55 }
  0x51   : > { %523 = vmatmul.mubr.f32.gmra.mxu0 %v1940_v55  ;;  %676 = vmatprep.subr.mxu0 %v1699_v41 }
  0x52   : > { %677 = vmatpush1.msra.mxu0 %v264_v56  ;;  %1606 = vmatprep.mubr.msk.f32.mxu0 %vm409_vm0, %v1951_v57 }
  0x53   : > { %678 = vmatprep.subr.mxu0 %v1699_v41  ;;  %1614 = vmatprep.mubr.msk.f32.mxu1 %vm409_vm0, %v1951_v57 }
  0x54   : > { %679 = vmatpush1.msra.mxu0 %v259_v58  ;;  %642 = vmatmul.mubr.f32.gmra.mxu1 %v1960_v59 }
  0x55   : > { %529 = vmatmul.mubr.f32.gmra.mxu0 %v1960_v59  ;;  %680 = vmatprep.subr.mxu0 %v1699_v41 }
  0x56   : > { %681 = vmatpush1.msra.mxu0 %v254_v60  ;;  %1607 = vmatprep.mubr.msk.f32.mxu0 %vm409_vm0, %v1971_v61 }
  0x57   : > { %682 = vmatprep.subr.mxu0 %v1699_v41  ;;  %1615 = vmatprep.mubr.msk.f32.mxu1 %vm409_vm0, %v1971_v61 }
  0x58   : > { %683 = vmatpush1.msra.mxu0 %v249_v62  ;;  %648 = vmatmul.mubr.f32.gmra.mxu1 %v1980_v63 }
  0x59   : > { %535 = vmatmul.mubr.f32.gmra.mxu0 %v1980_v63  ;;  %684 = vmatprep.subr.mxu0 %v1699_v41 }
  0x5a   : > { %685 = vmatpush1.msra.mxu0 %v244_v1  ;;  %1608 = vmatprep.mubr.msk.f32.mxu0 %vm409_vm0, %v1991_v2 }
  0x5b   : > { %686 = vmatprep.subr.mxu0 %v1699_v41  ;;  %1616 = vmatprep.mubr.msk.f32.mxu1 %vm409_vm0, %v1991_v2 }
  0x5c   : > { %687 = vmatpush1.msra.mxu0 %v239_v3  ;;  %654 = vmatmul.mubr.f32.gmra.mxu1 %v2000_v4 }
  0x5d   : > { %541 = vmatmul.mubr.f32.gmra.mxu0 %v2000_v4  ;;  %688 = vmatprep.subr.mxu0 %v1699_v41 }
  0x5e   : > { %689 = vmatpush1.msra.mxu0 %v234_v5  ;;  %1617 = vmatprep.mubr.msk.f32.mxu0 %vm409_vm0, %v1743_v0  ;;  %v334_v0 = vld [vmem:[%s1761_s29 + $0x368] sm:$0xff]  ;;  %s1700_s29 = smov 1  }
  0x5f   : > { %690 = vmatprep.subr.mxu0 %v1699_v41  ;;  %401 = vperm.xlu1 %1689, %v367_v6  }
  0x60   : > { %691 = vmatpush1.msra.mxu0 %v229_v7  ;;  %376 = vperm.xlu0 %1688, %v362_v8  }
  0x61   : > { %708 = vmatprep.subr.mxu0 %v1699_v41  ;;  %1354 = vmatprep.mubr.f32.mxu1 %v1699_v41 }
  0x62   : > { %709 = vmatpush2.msra.mxu0 %v344_v9 }
  0x63   : > { %710 = vmatprep.subr.mxu0 %v1699_v41  ;;  %386 = vperm.xlu1 %1689, %v364_v10  }
  0x64   : > { %711 = vmatpush2.msra.mxu0 %v339_v11  ;;  %371 = vperm.xlu0 %1688, %v361_v12  }
  0x65   : > { %712 = vmatprep.subr.mxu0 %v1699_v41 }
  0x66   : > { %713 = vmatpush2.msra.mxu0 %v334_v0 }
  0x67   : > { %714 = vmatprep.subr.mxu0 %v1699_v41  ;;  %381 = vperm.xlu1 %1689, %v363_v13  }
  0x68   : > { %715 = vmatpush2.msra.mxu0 %v329_v14  ;;  %1069 = vrot.lane.b32.xlu0 %v1039_v20, %s1700_s29 }
  0x69   : > { %716 = vmatprep.subr.mxu0 %v1699_v41 }
  0x6a   : > { %717 = vmatpush2.msra.mxu0 %v324_v15 }
  0x6b   : > { %718 = vmatprep.subr.mxu0 %v1699_v41  ;;  %1057 = vrot.lane.b32.xlu1 %v1033_v19, %s1700_s29 }
  0x6c   : > { %719 = vmatpush2.msra.mxu0 %v319_v16  ;;  %892 = vrot.lane.b32.xlu0 %v862_v22, %s1700_s29 }
  0x6d   : > { %720 = vmatprep.subr.mxu0 %v1699_v41 }
  0x6e   : > { %721 = vmatpush2.msra.mxu0 %v314_v17 }
  0x6f   : > { %722 = vmatprep.subr.mxu0 %v1699_v41  ;;  %880 = vrot.lane.b32.xlu1 %v856_v21, %s1700_s29 }
  0x70   : > { %723 = vmatpush2.msra.mxu0 %v309_v18 }
  0x71   : > { %725 = vmatmul.mubr.f32.vlgmr.msra.gmra.mxu0 %v1862_v37 }
  0x72   : > { %1618 = vmatprep.mubr.msk.f32.mxu0 %vm409_vm0, %v1867_v38 }
  0x75   : > { %730 = vmatmul.mubr.f32.gmra.mxu0 %v1882_v43 }
  0x76   : > { %1619 = vmatprep.mubr.msk.f32.mxu0 %vm409_vm0, %v1891_v45 }
  0x79   : > { %735 = vmatmul.mubr.f32.gmra.mxu0 %v1900_v47 }
  0x7a   : > { %1620 = vmatprep.mubr.msk.f32.mxu0 %vm409_vm0, %v1911_v49 }
  0x7d   : > { %740 = vmatmul.mubr.f32.gmra.mxu0 %v1920_v51 }
  0x7e   : > { %1621 = vmatprep.mubr.msk.f32.mxu0 %vm409_vm0, %v1931_v53 }
  0x81   : > { %745 = vmatmul.mubr.f32.gmra.mxu0 %v1940_v55 }
  0x82   : > { %1622 = vmatprep.mubr.msk.f32.mxu0 %vm409_vm0, %v1951_v57 }
  0x85   : > { %750 = vmatmul.mubr.f32.gmra.mxu0 %v1960_v59 }
  0x86   : > { %1623 = vmatprep.mubr.msk.f32.mxu0 %vm409_vm0, %v1971_v61 }
  0x89   : > { %755 = vmatmul.mubr.f32.gmra.mxu0 %v1980_v63  ;;  %v2085_v23 = vpop.permute.xlu0 %396  ;;  %v2087_v24 = vpop.permute.xlu1 %391 }
  0x8a   : > { %1624 = vmatprep.mubr.msk.f32.mxu0 %vm409_vm0, %v1991_v2 }
  0x8d   : > { %760 = vmatmul.mubr.f32.gmra.mxu0 %v2000_v4 }
  0xbe   : > { %v2089_v25 = vpop.permute.xlu0 %406 }
  0xda   : > { %v2091_v26 = vpop.permute.xlu1 %401 }
  0xdb   : > { %v2093_v27 = vpop.permute.xlu0 %376 }
  0xde   : > { %v2095_v30 = vpop.permute.xlu1 %386 }
  0xdf   : > { %v2097_v33 = vpop.permute.xlu0 %371 }
  0xe2   : > { %v2102_v42 = vpop.permute.xlu1 %381 }
 0x100   : > { %v500_v28 = vpop.f32.mrf.mxu0  ;;  %v613_v29 = vpop.f32.mrf.mxu1 }
 0x101   : > { %v501_v37 = vadd.f32 %v500_v28, %v2097_v33  ;;  %v614_v38 = vadd.f32 %v613_v29, %v2097_v33 }
 0x102   : > { %v502_v31 = vpop.f32.mrf.mxu0  ;;  %v615_v32 = vpop.f32.mrf.mxu1 }
 0x103   : > { %v503_v39 = vadd.f32 %v502_v31, %v2097_v33  ;;  %v616_v43 = vadd.f32 %v615_v32, %v2097_v33  ;;  %v765_v48 = vmax.f32 %v501_v37, 0.0  ;;  %v767_v49 = vmax.f32 %v614_v38, 0.0 }
 0x104   : > { %v619_v34 = vpop.f32.mrf.mxu1 }
 0x105   : > { %v506_v35 = vpop.f32.mrf.mxu0  ;;  %v766_v51 = vmax.f32 %v503_v39, 0.0  ;;  %v620_v52 = vadd.f32 %v619_v34, %v2093_v27  ;;  %v768_v56 = vmax.f32 %v616_v43, 0.0 }
 0x106   : > { %v621_v36 = vpop.f32.mrf.mxu1  ;;  %v507_v57 = vadd.f32 %v506_v35, %v2093_v27 }
 0x107   : > { %v508_v40 = vpop.f32.mrf.mxu0  ;;  %v622_v61 = vadd.f32 %v621_v36, %v2093_v27  ;;  %v772_v8 = vmax.f32 %v620_v52, 0.0 }
 0x108   : > { %v625_v44 = vpop.f32.mrf.mxu1  ;;  %v509_v3 = vadd.f32 %v508_v40, %v2093_v27  ;;  %v770_v0 = vmax.f32 %v507_v57, 0.0 }
 0x109   : > { %v512_v45 = vpop.f32.mrf.mxu0  ;;  %v626_v46 = vadd.f32 %v625_v44, %v2102_v42  ;;  %v773_v17 = vmax.f32 %v622_v61, 0.0 }
 0x10a   : > { %v513_v47 = vadd.f32 %v512_v45, %v2102_v42  ;;  %v627_v50 = vpop.f32.mrf.mxu1  ;;  %v771_v21 = vmax.f32 %v509_v3, 0.0 }
 0x10b   : > { %v777_v53 = vmax.f32 %v626_v46, 0.0  ;;  %v514_v54 = vpop.f32.mrf.mxu0  ;;  %v628_v55 = vadd.f32 %v627_v50, %v2102_v42 }
 0x10c   : > { %v775_v58 = vmax.f32 %v513_v47, 0.0  ;;  %v515_v59 = vadd.f32 %v514_v54, %v2102_v42  ;;  %v631_v60 = vpop.f32.mrf.mxu1 }
 0x10d   : > { %v2112_v62 = vmax.f32 %v767_v49, %v777_v53  ;;  %v778_v63 = vmax.f32 %v628_v55, 0.0  ;;  %v518_v1 = vpop.f32.mrf.mxu0  ;;  %v632_v2 = vadd.f32 %v631_v60, %v2095_v30 }
 0x10e   : > { %v2116_v4 = vmax.f32 %v765_v48, %v775_v58  ;;  %v776_v5 = vmax.f32 %v515_v59, 0.0  ;;  %v519_v6 = vadd.f32 %v518_v1, %v2095_v30  ;;  %v633_v7 = vpop.f32.mrf.mxu1 }
 0x10f   : > { %v2119_v9 = vmax.f32 %v768_v56, %v778_v63  ;;  %v782_v10 = vmax.f32 %v632_v2, 0.0  ;;  %v520_v11 = vpop.f32.mrf.mxu0  ;;  %v634_v12 = vadd.f32 %v633_v7, %v2095_v30  ;;  %982 = vrot.lane.b32.xlu0 %v2112_v62, %s1701_s27 }
 0x110   : > { %v2124_v13 = vmax.f32 %v766_v51, %v776_v5  ;;  %v780_v14 = vmax.f32 %v519_v6, 0.0  ;;  %v521_v15 = vadd.f32 %v520_v11, %v2095_v30  ;;  %v637_v16 = vpop.f32.mrf.mxu1  ;;  %978 = vrot.lane.b32.xlu1 %v2116_v4, %s1701_s27 }
 0x111   : > { %v2129_v18 = vmax.f32 %v772_v8, %v782_v10  ;;  %v783_v19 = vmax.f32 %v634_v12, 0.0  ;;  %v524_v20 = vpop.f32.mrf.mxu0  ;;  %v638_v38 = vadd.f32 %v637_v16, %v2087_v24 }
 0x112   : > { %v2131_v22 = vmax.f32 %v770_v0, %v780_v14  ;;  %v781_v28 = vmax.f32 %v521_v15, 0.0  ;;  %v639_v29 = vpop.f32.mrf.mxu1  ;;  %v525_v37 = vadd.f32 %v524_v20, %v2087_v24 }
 0x113   : > { %v2133_v31 = vmax.f32 %v773_v17, %v783_v19  ;;  %v526_v32 = vpop.f32.mrf.mxu0  ;;  %884 = vrot.lane.b32.xlu0 %v2124_v13, %s1700_s29  ;;  %v640_v40 = vadd.f32 %v639_v29, %v2087_v24  ;;  %v787_v49 = vmax.f32 %v638_v38, 0.0 }
 0x114   : > { %v2137_v34 = vmax.f32 %v771_v21, %v781_v28  ;;  %v643_v35 = vpop.f32.mrf.mxu1  ;;  %882 = vrot.lane.b32.xlu1 %v2116_v4, %s1700_s29  ;;  %v527_v44 = vadd.f32 %v526_v32, %v2087_v24  ;;  %v785_v48 = vmax.f32 %v525_v37, 0.0 }
 0x115   : > { %v530_v36 = vpop.f32.mrf.mxu0  ;;  %v788_v52 = vmax.f32 %v640_v40, 0.0  ;;  %v644_v53 = vadd.f32 %v643_v35, %v2085_v23 }
 0x116   : > { %v645_v39 = vpop.f32.mrf.mxu1  ;;  %v786_v57 = vmax.f32 %v527_v44, 0.0  ;;  %v531_v58 = vadd.f32 %v530_v36, %v2085_v23 }
 0x117   : > { %v532_v43 = vpop.f32.mrf.mxu0  ;;  %990 = vrot.lane.b32.xlu0 %v2131_v22, %s1701_s27  ;;  %v646_v63 = vadd.f32 %v645_v39, %v2085_v23  ;;  %v792_v12 = vmax.f32 %v644_v53, 0.0 }
 0x118   : > { %v649_v45 = vpop.f32.mrf.mxu1  ;;  %980 = vrot.lane.b32.xlu1 %v2124_v13, %s1701_s27  ;;  %v533_v6 = vadd.f32 %v532_v43, %v2085_v23  ;;  %v790_v17 = vmax.f32 %v531_v58, 0.0  ;;  %v1136_v43 = vld [vmem:[#allocation2 + $0xa0] sm:$0xff] }
 0x119   : > { %v536_v46 = vpop.f32.mrf.mxu0  ;;  %v650_v47 = vadd.f32 %v649_v45, %v2091_v26  ;;  %v793_v28 = vmax.f32 %v646_v63, 0.0 }
 0x11a   : > { %v537_v50 = vadd.f32 %v536_v46, %v2091_v26  ;;  %v651_v51 = vpop.f32.mrf.mxu1  ;;  %v791_v35 = vmax.f32 %v533_v6, 0.0 }
 0x11b   : > { %v797_v54 = vmax.f32 %v650_v47, 0.0  ;;  %v538_v55 = vpop.f32.mrf.mxu0  ;;  %v652_v56 = vadd.f32 %v651_v51, %v2091_v26  ;;  %894 = vrot.lane.b32.xlu0 %v2131_v22, %s1700_s29 }
 0x11c   : > { %v795_v59 = vmax.f32 %v537_v50, 0.0  ;;  %v539_v60 = vadd.f32 %v538_v55, %v2091_v26  ;;  %v655_v61 = vpop.f32.mrf.mxu1  ;;  %994 = vrot.lane.b32.xlu1 %v2129_v18, %s1701_s27 }
 0x11d   : > { %v2160_v1 = vmax.f32 %v787_v49, %v797_v54  ;;  %v798_v2 = vmax.f32 %v652_v56, 0.0  ;;  %v542_v3 = vpop.f32.mrf.mxu0  ;;  %v656_v5 = vadd.f32 %v655_v61, %v2089_v25 }
 0x11e   : > { %v2164_v7 = vmax.f32 %v785_v48, %v795_v59  ;;  %v796_v8 = vmax.f32 %v539_v60, 0.0  ;;  %v543_v10 = vadd.f32 %v542_v3, %v2089_v25  ;;  %v657_v11 = vpop.f32.mrf.mxu1  ;;  %v1142_v48 = vld [vmem:[#allocation2 + $0xd8] sm:$0xff] }
 0x11f   : > { %v2167_v0 = vmax.f32 %v788_v52, %v798_v2  ;;  %v802_v14 = vmax.f32 %v656_v5, 0.0  ;;  %v544_v15 = vpop.f32.mrf.mxu0  ;;  %v658_v16 = vadd.f32 %v657_v11, %v2089_v25  ;;  %992 = vrot.lane.b32.xlu0 %v2137_v34, %s1701_s27 }
 0x120   : > { %v2172_v19 = vmax.f32 %v786_v57, %v796_v8  ;;  %v800_v20 = vmax.f32 %v543_v10, 0.0  ;;  %v545_v21 = vadd.f32 %v544_v15, %v2089_v25  ;;  %896 = vrot.lane.b32.xlu1 %v2137_v34, %s1700_s29  ;;  %v2220_v57 = vld [vmem:[%s2431_s3] sm:$0xff] }
 0x121   : > { %v2177_v29 = vmax.f32 %v792_v12, %v802_v14  ;;  %v803_v32 = vmax.f32 %v658_v16, 0.0  ;;  %1671 = vmatprep.mubr.msk.f32.mxu0 %vm1283_vm3, %v2220_v57 }
 0x122   : > { %v2179_v36 = vmax.f32 %v790_v17, %v800_v20  ;;  %v801_v37 = vmax.f32 %v545_v21, 0.0  ;;  %v1272_v21 = vld [vmem:[%s2432_s4 + $0x8] sm:$0xff] }
 0x123   : > { %v2181_v38 = vmax.f32 %v793_v28, %v803_v32  ;;  %1159 = vrot.lane.b32.xlu0 %v2160_v1, %s1701_s27  ;;  %v1070_v28 = vpop.permute.xlu0 %1069  ;;  %v1058_v32 = vpop.permute.xlu1 %1057 }
 0x124   : > { %v2185_v39 = vmax.f32 %v791_v35, %v801_v37  ;;  %1155 = vrot.lane.b32.xlu1 %v2164_v7, %s1701_s27 }
 0x127   : > { %1061 = vrot.lane.b32.xlu0 %v2172_v19, %s1700_s29  ;;  %v2278_v35 = vpop.permute.xlu0 %892  ;;  %v2280_v37 = vpop.permute.xlu1 %880 }
 0x128   : > { %1059 = vrot.lane.b32.xlu1 %v2164_v7, %s1700_s29 }
 0x12b   : > { %1167 = vrot.lane.b32.xlu0 %v2179_v36, %s1701_s27 }
 0x12c   : > { %1157 = vrot.lane.b32.xlu1 %v2172_v19, %s1701_s27 }
 0x12f   : > { %1071 = vrot.lane.b32.xlu0 %v2179_v36, %s1700_s29 }
 0x130   : > { %1171 = vrot.lane.b32.xlu1 %v2177_v29, %s1701_s27 }
 0x131   : > { %v726_v40 = vpop.f32.mrf.mxu0 }
 0x132   : > { %v727_v47 = vadd.f32 %v726_v40, %v2097_v33 }
 0x133   : > { %v728_v44 = vpop.f32.mrf.mxu0  ;;  %1169 = vrot.lane.b32.xlu0 %v2185_v39, %s1701_s27 }
 0x134   : > { %1165 = vrot.lane.b32.xlu1 %v1136_v43, %s1701_s27  ;;  %v769_v52 = vmax.f32 %v727_v47, 0.0 }
 0x135   : > { %v731_v45 = vpop.f32.mrf.mxu0 }
 0x136   : > { %v732_v53 = vadd.f32 %v731_v45, %v2093_v27 }
 0x137   : > { %v733_v46 = vpop.f32.mrf.mxu0  ;;  %1161 = vrot.lane.b32.xlu0 %v2167_v0, %s1701_s27 }
 0x138   : > { %1073 = vrot.lane.b32.xlu1 %v2185_v39, %s1700_s29  ;;  %v774_v27 = vmax.f32 %v732_v53, 0.0 }
 0x139   : > { %v736_v49 = vpop.f32.mrf.mxu0 }
 0x13a   : > { %v737_v50 = vadd.f32 %v736_v49, %v2102_v42 }
 0x13b   : > { %v738_v51 = vpop.f32.mrf.mxu0  ;;  %1177 = vrot.lane.b32.xlu0 %v1142_v48, %s1701_s27 }
 0x13c   : > { %v779_v54 = vmax.f32 %v737_v50, 0.0  ;;  %1065 = vrot.lane.b32.xlu1 %v2167_v0, %s1700_s29 }
 0x13d   : > { %v741_v55 = vpop.f32.mrf.mxu0 }
 0x13e   : > { %v2214_v56 = vmax.f32 %v769_v52, %v779_v54  ;;  %v742_v33 = vadd.f32 %v741_v55, %v2095_v30 }
 0x13f   : > { %v743_v42 = vpop.f32.mrf.mxu0  ;;  %1075 = vrot.lane.b32.xlu0 %v2177_v29, %s1700_s29 }
 0x140   : > { %v784_v58 = vmax.f32 %v742_v33, 0.0  ;;  %1077 = vrot.lane.b32.xlu1 %v2181_v38, %s1700_s29 }
 0x141   : > { %v746_v59 = vpop.f32.mrf.mxu0 }
 0x142   : > { %v2228_v30 = vmax.f32 %v774_v27, %v784_v58  ;;  %v747_v2 = vadd.f32 %v746_v59, %v2087_v24 }
 0x143   : > { %v748_v60 = vpop.f32.mrf.mxu0  ;;  %1063 = vrot.lane.b32.xlu0 %v2160_v1, %s1700_s29 }
 0x144   : > { %v789_v8 = vmax.f32 %v747_v2, 0.0 }
 0x145   : > { %v751_v61 = vpop.f32.mrf.mxu0 }
 0x146   : > { %v752_v10 = vadd.f32 %v751_v61, %v2085_v23  ;;  %v959_v23 = vld [vmem:[#allocation2 + $0x30] sm:$0xff] }
 0x147   : > { %v753_v63 = vpop.f32.mrf.mxu0  ;;  %996 = vrot.lane.b32.xlu0 %v2133_v31, %s1701_s27 }
 0x148   : > { %v794_v24 = vmax.f32 %v752_v10, 0.0 }
 0x149   : > { %v756_v3 = vpop.f32.mrf.mxu0 }
 0x14a   : > { %v757_v5 = vadd.f32 %v756_v3, %v2091_v26  ;;  %v965_v26 = vld [vmem:[#allocation2 + $0x68] sm:$0xff] }
 0x14b   : > { %v758_v6 = vpop.f32.mrf.mxu0  ;;  %1173 = vrot.lane.b32.xlu0 %v2181_v38, %s1701_s27 }
 0x14c   : > { %v799_v11 = vmax.f32 %v757_v5, 0.0 }
 0x14d   : > { %v761_v12 = vpop.f32.mrf.mxu0 }
 0x14e   : > { %v2239_v14 = vmax.f32 %v789_v8, %v799_v11  ;;  %v762_v15 = vadd.f32 %v761_v12, %v2089_v25  ;;  %v1271_v25 = vld [vmem:[%s2432_s4] sm:$0xff] }
 0x14f   : > { %v763_v16 = vpop.f32.mrf.mxu0  ;;  %986 = vrot.lane.b32.xlu0 %v2214_v56, %s1701_s27 }
 0x150   : > { %v804_v17 = vmax.f32 %v762_v15, 0.0  ;;  %1163 = vrot.lane.b32.xlu1 %v2239_v14, %s1701_s27 }
 0x152   : > { %v2246_v20 = vmax.f32 %v794_v24, %v804_v17 }
 0x153   : > { %1000 = vrot.lane.b32.xlu0 %v965_v26, %s1701_s27 }
 0x154   : > { %1175 = vrot.lane.b32.xlu1 %v2246_v20, %s1701_s27 }
 0x157   : > { %1079 = vrot.lane.b32.xlu0 %v2246_v20, %s1700_s29 }
 0x158   : > { %998 = vrot.lane.b32.xlu1 %v2228_v30, %s1701_s27 }
 0x15b   : > { %898 = vrot.lane.b32.xlu0 %v2129_v18, %s1700_s29 }
 0x15c   : > { %984 = vrot.lane.b32.xlu1 %v2119_v9, %s1701_s27 }
 0x15f   : > { %886 = vrot.lane.b32.xlu0 %v2112_v62, %s1700_s29 }
 0x160   : > { %1067 = vrot.lane.b32.xlu1 %v2239_v14, %s1700_s29 }
 0x163   : > { %902 = vrot.lane.b32.xlu0 %v2228_v30, %s1700_s29 }
 0x164   : > { %988 = vrot.lane.b32.xlu1 %v959_v23, %s1701_s27 }
 0x167   : > { %1275 = vperm.xlu0 %1688, %v1271_v25  }
 0x168   : > { %900 = vrot.lane.b32.xlu1 %v2133_v31, %s1700_s29 }
 0x16c   : > { %888 = vrot.lane.b32.xlu1 %v2119_v9, %s1700_s29 }
 0x170   : > { %890 = vrot.lane.b32.xlu1 %v2214_v56, %s1700_s29 }
 0x174   : > { %1280 = vperm.xlu1 %1689, %v1272_v21  }
 0x181   : > { %v2282_v40 = vpop.permute.xlu0 %982 }
 0x182   : > { %v979_v43 = vpop.permute.xlu1 %978 }
 0x185   : > { %v2284_v44 = vpop.permute.xlu0 %884 }
 0x186   : > { %v2286_v45 = vpop.permute.xlu1 %882 }
 0x189   : > { %v991_v46 = vpop.permute.xlu0 %990 }
 0x18a   : > { %v981_v47 = vpop.permute.xlu1 %980 }
 0x18b   : > { %v1003_v16 = vsel %vm1002_vm4, %v979_v43, %v981_v47 }
 0x18d   : > { %v895_v48 = vpop.permute.xlu0 %894 }
 0x18e   : > { %v2288_v49 = vpop.permute.xlu1 %994  ;;  %v909_v25 = vsel %vm828_vm2, %v2278_v35, %v895_v48 }
 0x191   : > { %v993_v50 = vpop.permute.xlu0 %992 }
 0x192   : > { %v2290_v51 = vpop.permute.xlu1 %896 }
 0x193   : > { %v910_v23 = vsel %vm828_vm2, %v895_v48, %v2290_v51 }
 0x195   : > { %v2292_v52 = vpop.permute.xlu0 %1159 }
 0x196   : > { %v1156_v53 = vpop.permute.xlu1 %1155 }
 0x199   : > { %v2294_v54 = vpop.permute.xlu0 %1061 }
 0x19a   : > { %v1060_v55 = vpop.permute.xlu1 %1059 }
 0x19b   : > { %v1082_v12 = vsel %vm828_vm2, %v1060_v55, %v2294_v54  ;;  %v1081_v15 = vsel %vm828_vm2, %v1058_v32, %v1060_v55 }
 0x19d   : > { %v1168_v33 = vpop.permute.xlu0 %1167 }
 0x19e   : > { %v1158_v42 = vpop.permute.xlu1 %1157 }
 0x19f   : > { %v1180_v2 = vsel %vm1002_vm4, %v1158_v42, %v2292_v52  ;;  %v1179_v3 = vsel %vm1002_vm4, %v1156_v53, %v1158_v42 }
 0x1a1   : > { %v1072_v27 = vpop.permute.xlu0 %1071 }
 0x1a2   : > { %v2296_v58 = vpop.permute.xlu1 %1171  ;;  %v1086_v11 = vsel %vm828_vm2, %v1070_v28, %v1072_v27 }
 0x1a5   : > { %v1170_v59 = vpop.permute.xlu0 %1169 }
 0x1a6   : > { %v1184_v60 = vsel %vm1002_vm4, %v1168_v33, %v1170_v59  ;;  %v2299_v61 = vpop.permute.xlu1 %1165  ;;  %v1185_v63 = vsel %vm1002_vm4, %v1170_v59, %v2296_v58 }
 0x1a7   : > { %1298 = vmatprep.subr.mxu1 %v1185_v63 }
 0x1a8   : > { %1299 = vmatpush1.msra.mxu1 %v1184_v60 }
 0x1a9   : > { %v1162_v5 = vpop.permute.xlu0 %1161  ;;  %1300 = vmatprep.subr.mxu1 %v1180_v2 }
 0x1aa   : > { %1301 = vmatpush1.msra.mxu1 %v1179_v3  ;;  %v2306_v6 = vpop.permute.xlu1 %1073 }
 0x1ab   : > { %1302 = vmatprep.subr.mxu1 %v2185_v39  ;;  %v1087_v10 = vsel %vm828_vm2, %v1072_v27, %v2306_v6 }
 0x1ac   : > { %1303 = vmatpush1.msra.mxu1 %v2179_v36  ;;  %v1004_v36 = vsel %vm1002_vm4, %v981_v47, %v2282_v40 }
 0x1ad   : > { %v1178_v8 = vpop.permute.xlu0 %1177  ;;  %1304 = vmatprep.subr.mxu1 %v2172_v19  ;;  %v1009_v19 = vsel %vm1002_vm4, %v993_v50, %v2288_v49 }
 0x1ae   : > { %1305 = vmatpush1.msra.mxu1 %v2164_v7  ;;  %v1008_v7 = vsel %vm1002_vm4, %v991_v46, %v993_v50  ;;  %v2329_v17 = vpop.permute.xlu1 %1065  ;;  %v1181_v50 = vsel %vm1002_vm4, %v2292_v52, %v1162_v5 }
 0x1af   : > { %1306 = vmatprep.subr.mxu1 %v1087_v10 }
 0x1b0   : > { %1307 = vmatpush1.msra.mxu1 %v1086_v11 }
 0x1b1   : > { %v2318_v39 = vpop.permute.xlu0 %1075  ;;  %1308 = vmatprep.subr.mxu1 %v1082_v12 }
 0x1b2   : > { %1309 = vmatpush1.msra.mxu1 %v1081_v15 }
 0x1b3   : > { %1310 = vmatprep.subr.mxu1 %v1009_v19 }
 0x1b4   : > { %1311 = vmatpush1.msra.mxu1 %v1008_v7 }
 0x1b5   : > { %v2326_v24 = vpop.permute.xlu0 %1063  ;;  %1312 = vmatprep.subr.mxu1 %v1004_v36 }
 0x1b6   : > { %1313 = vmatpush1.msra.mxu1 %v1003_v16 }
 0x1b7   : > { %1314 = vmatprep.subr.mxu1 %v2137_v34  ;;  %v905_v34 = vsel %vm828_vm2, %v2286_v45, %v2284_v44 }
 0x1b8   : > { %1315 = vmatpush1.msra.mxu1 %v2131_v22  ;;  %v904_v22 = vsel %vm828_vm2, %v2280_v37, %v2286_v45 }
 0x1b9   : > { %v2332_v26 = vpop.permute.xlu0 %996  ;;  %1316 = vmatprep.subr.mxu1 %v2124_v13  ;;  %v1078_v13 = vpop.permute.xlu1 %1077 }
 0x1ba   : > { %1317 = vmatpush1.msra.mxu1 %v2116_v4  ;;  %v2352_v4 = vld [vmem:[%s2431_s3 + $0x8] sm:$0xff]  ;;  %v1089_v52 = vsel %vm828_vm2, %v2318_v39, %v1078_v13 }
 0x1bb   : > { %1318 = vmatprep.subr.mxu1 %v910_v23 }
 0x1bc   : > { %1319 = vmatpush1.msra.mxu1 %v909_v25 }
 0x1bd   : > { %v1174_v21 = vpop.permute.xlu0 %1173  ;;  %1320 = vmatprep.subr.mxu1 %v905_v34 }
 0x1be   : > { %1321 = vmatpush1.msra.mxu1 %v904_v22  ;;  %v1186_v46 = vsel %vm1002_vm4, %v2296_v58, %v1174_v21  ;;  %v1010_v58 = vsel %vm1002_vm4, %v2288_v49, %v2332_v26 }
 0x1bf   : > { %1625 = vmatmul.mubr.msk.f32.vlgmr.msra.gmra.mxu1 %vm1283_vm3, %v2220_v57 }
 0x1c0   : > { %1360 = vmatprep.mubr.f32.mxu1 %v1699_v41 }
 0x1c1   : > { %v987_v28 = vpop.permute.xlu0 %986 }
 0x1c2   : > { %v1164_v32 = vpop.permute.xlu1 %1163 }
 0x1c3   : > { %1626 = vmatmul.mubr.msk.f32.gmra.mxu1 %vm1283_vm3, %v2352_v4  ;;  %v1182_v47 = vsel %vm1002_vm4, %v1162_v5, %v1164_v32  ;;  %v1183_v48 = vsel %vm1002_vm4, %v1164_v32, %v2299_v61 }
 0x1c4   : > { %1431 = vmatprep.mubr.f32.mxu1 %v1699_v41 }
 0x1c5   : > { %v1001_v35 = vpop.permute.xlu0 %1000 }
 0x1c6   : > { %v1176_v37 = vpop.permute.xlu1 %1175 }
 0x1c7   : > { %v1187_v43 = vsel %vm1002_vm4, %v1174_v21, %v1176_v37  ;;  %v1188_v45 = vsel %vm1002_vm4, %v1176_v37, %v1178_v8 }
 0x1c8   : > { %1375 = vmatprep.subr.mxu1 %v1187_v43  ;;  %1647 = vmatprep.subr.mxu0 %v1188_v45 }
 0x1c9   : > { %1376 = vmatpush1.msra.mxu1 %v1186_v46  ;;  %1648 = vmatpush3.msra.mxu0 %v1188_v45  ;;  %v1080_v53 = vpop.permute.xlu0 %1079 }
 0x1ca   : > { %1377 = vmatprep.subr.mxu1 %v1182_v47  ;;  %1649 = vmatprep.subr.mxu0 %v1183_v48  ;;  %v999_v55 = vpop.permute.xlu1 %998 }
 0x1cb   : > { %1378 = vmatpush1.msra.mxu1 %v1181_v50  ;;  %1650 = vmatpush3.msra.mxu0 %v1183_v48 }
 0x1cc   : > { %1379 = vmatprep.subr.mxu1 %v2181_v38  ;;  %1651 = vmatprep.subr.mxu0 %v2246_v20  ;;  %v1090_v38 = vsel %vm828_vm2, %v1078_v13, %v1080_v53 }
 0x1cd   : > { %1380 = vmatpush1.msra.mxu1 %v2177_v29  ;;  %1652 = vmatpush3.msra.mxu0 %v2246_v20  ;;  %v1088_v29 = vsel %vm828_vm2, %v2306_v6, %v2318_v39  ;;  %v899_v42 = vpop.permute.xlu0 %898  ;;  %v1011_v20 = vsel %vm1002_vm4, %v2332_v26, %v999_v55 }
 0x1ce   : > { %1381 = vmatprep.subr.mxu1 %v2167_v0  ;;  %1653 = vmatprep.subr.mxu0 %v2239_v14  ;;  %v985_v33 = vpop.permute.xlu1 %984  ;;  %v1083_v0 = vsel %vm828_vm2, %v2294_v54, %v2326_v24  ;;  %v1012_v54 = vsel %vm1002_vm4, %v999_v55, %v1001_v35  ;;  %v911_v3 = vsel %vm828_vm2, %v2290_v51, %v899_v42 }
 0x1cf   : > { %1382 = vmatpush1.msra.mxu1 %v2160_v1  ;;  %1654 = vmatpush3.msra.mxu0 %v2239_v14  ;;  %v1084_v1 = vsel %vm828_vm2, %v2326_v24, %v2329_v17  ;;  %v1006_v59 = vsel %vm1002_vm4, %v985_v33, %v987_v28  ;;  %v1005_v60 = vsel %vm1002_vm4, %v2282_v40, %v985_v33 }
 0x1d0   : > { %1383 = vmatprep.subr.mxu1 %v1089_v52  ;;  %1655 = vmatprep.subr.mxu0 %v1090_v38 }
 0x1d1   : > { %1384 = vmatpush1.msra.mxu1 %v1088_v29  ;;  %1656 = vmatpush3.msra.mxu0 %v1090_v38  ;;  %v887_v61 = vpop.permute.xlu0 %886 }
 0x1d2   : > { %1385 = vmatprep.subr.mxu1 %v1084_v1  ;;  %v1068_v14 = vpop.permute.xlu1 %1067 }
 0x1d3   : > { %1386 = vmatpush1.msra.mxu1 %v1083_v0  ;;  %v1085_v27 = vsel %vm828_vm2, %v2329_v17, %v1068_v14 }
 0x1d4   : > { %1387 = vmatprep.subr.mxu1 %v1011_v20  ;;  %1657 = vmatprep.subr.mxu0 %v1085_v27 }
 0x1d5   : > { %1388 = vmatpush1.msra.mxu1 %v1010_v58  ;;  %1658 = vmatpush3.msra.mxu0 %v1085_v27  ;;  %v903_v5 = vpop.permute.xlu0 %902 }
 0x1d6   : > { %1389 = vmatprep.subr.mxu1 %v1006_v59  ;;  %1659 = vmatprep.subr.mxu0 %v1012_v54  ;;  %v989_v63 = vpop.permute.xlu1 %988 }
 0x1d7   : > { %1390 = vmatpush1.msra.mxu1 %v1005_v60  ;;  %1660 = vmatpush3.msra.mxu0 %v1012_v54  ;;  %v1007_v2 = vsel %vm1002_vm4, %v987_v28, %v989_v63 }
 0x1d8   : > { %1391 = vmatprep.subr.mxu1 %v2133_v31  ;;  %1661 = vmatprep.subr.mxu0 %v1007_v2  ;;  %v906_v31 = vsel %vm828_vm2, %v2284_v44, %v887_v61 }
 0x1d9   : > { %1392 = vmatpush1.msra.mxu1 %v2129_v18  ;;  %1662 = vmatpush3.msra.mxu0 %v1007_v2 }
 0x1da   : > { %1393 = vmatprep.subr.mxu1 %v2119_v9  ;;  %1663 = vmatprep.subr.mxu0 %v2228_v30  ;;  %v901_v49 = vpop.permute.xlu1 %900 }
 0x1db   : > { %1394 = vmatpush1.msra.mxu1 %v2112_v62  ;;  %1664 = vmatpush3.msra.mxu0 %v2228_v30  ;;  %v912_v40 = vsel %vm828_vm2, %v899_v42, %v901_v49  ;;  %v913_v9 = vsel %vm828_vm2, %v901_v49, %v903_v5 }
 0x1dc   : > { %1395 = vmatprep.subr.mxu1 %v912_v40  ;;  %1665 = vmatprep.subr.mxu0 %v2214_v56 }
 0x1dd   : > { %1396 = vmatpush1.msra.mxu1 %v911_v3  ;;  %1666 = vmatpush3.msra.mxu0 %v2214_v56 }
 0x1de   : > { %1667 = vmatprep.subr.mxu0 %v913_v9  ;;  %v889_v18 = vpop.permute.xlu1 %888 }
 0x1df   : > { %1668 = vmatpush3.msra.mxu0 %v913_v9  ;;  %v907_v62 = vsel %vm828_vm2, %v887_v61, %v889_v18 }
 0x1e0   : > { %1397 = vmatprep.subr.mxu1 %v907_v62 }
 0x1e1   : > { %1398 = vmatpush1.msra.mxu1 %v906_v31 }
 0x1e2   : > { %1627 = vmatmul.mubr.msk.f32.vlgmr.msra.gmra.mxu1 %vm1283_vm3, %v2220_v57  ;;  %v891_v30 = vpop.permute.xlu1 %890  ;;  %v1276_v44 = vpop.permute.xlu0 %1275 }
 0x1e3   : > { %v908_v51 = vsel %vm828_vm2, %v889_v18, %v891_v30  ;;  %1437 = vmatprep.mubr.f32.mxu1 %v1699_v41 }
 0x1e4   : > { %1669 = vmatprep.subr.mxu0 %v908_v51 }
 0x1e5   : > { %1670 = vmatpush3.msra.mxu0 %v908_v51 }
 0x1e6   : > { %1628 = vmatmul.mubr.msk.f32.gmra.mxu1 %vm1283_vm3, %v2352_v4  ;;  %1672 = vmatmul.mubr.msk.f32.vlgmr.msra.gmra.mxu0 %vm1283_vm3, %v2352_v4 }
 0x1ef   : > { %v1281_v10 = vpop.permute.xlu1 %1280 }
 0x27f   : > { %v1356_v56 = vpop.f32.mrf.mxu1 }
 0x280   : > { %v1357_v8 = vadd.f32 %v1356_v56, %v1276_v44 }
 0x281   : > { %v1358_v6 = vpop.f32.mrf.mxu1 }
 0x282   : > { %v1359_v11 = vadd.f32 %v1358_v6, %v1276_v44  ;;  %v1519_v39 = vmax.f32 %v1357_v8, 0.0 }
 0x283   : > { %v1362_v57 = vpop.f32.mrf.mxu1 }
 0x284   : > { %v1363_v12 = vadd.f32 %v1362_v57, %v1281_v10  ;;  %v1520_v7 = vmax.f32 %v1359_v11, 0.0 }
 0x285   : > { %v1364_v15 = vpop.f32.mrf.mxu1 }
 0x286   : > { %v1524_v41 = vmax.f32 %v1363_v12, 0.0  ;;  %v1365_v19 = vadd.f32 %v1364_v15, %v1281_v10 }
 0x288   : > { %v1529_v36 = vmax.f32 %v1519_v39, %v1524_v41  ;;  %v1525_v16 = vmax.f32 %v1365_v19, 0.0 }
 0x28a   : > { %1534 = vst [vmem:[%s224_s15] sm:$0xff] %v1529_v36  ;;  %v1530_v24 = vmax.f32 %v1520_v7, %v1525_v16 }
 0x28c   : > { %1535 = vst [vmem:[%s224_s15 + $0x8] sm:$0xff] %v1530_v24 }
 0x2a2   : > { %v1433_v17 = vpop.f32.mrf.mxu1 }
 0x2a3   : > { %v1434_v23 = vadd.f32 %v1433_v17, %v1276_v44 }
 0x2a4   : > { %v1435_v26 = vpop.f32.mrf.mxu1 }
 0x2a5   : > { %v1436_v25 = vadd.f32 %v1435_v26, %v1276_v44  ;;  %v1521_v32 = vmax.f32 %v1434_v23, 0.0 }
 0x2a6   : > { %v1439_v34 = vpop.f32.mrf.mxu1  ;;  %v1673_v22 = vpop.f32.mrf.mxu0 }
 0x2a7   : > { %v1440_v21 = vadd.f32 %v1439_v34, %v1281_v10  ;;  %v1516_v13 = vadd.f32 %v1673_v22, %v1281_v10  ;;  %v1522_v45 = vmax.f32 %v1436_v25, 0.0 }
 0x2a8   : > { %v1441_v4 = vpop.f32.mrf.mxu1  ;;  %v1510_v28 = vpop.f32.mrf.mxu0 }
 0x2a9   : > { %v1526_v35 = vmax.f32 %v1440_v21, 0.0  ;;  %v1442_v37 = vadd.f32 %v1441_v4, %v1281_v10  ;;  %v1511_v43 = vadd.f32 %v1510_v28, %v1276_v44  ;;  %v1528_v47 = vmax.f32 %v1516_v13, 0.0 }
 0x2ab   : > { %v1531_v46 = vmax.f32 %v1521_v32, %v1526_v35  ;;  %v1527_v48 = vmax.f32 %v1442_v37, 0.0  ;;  %v1523_v50 = vmax.f32 %v1511_v43, 0.0 }
 0x2ad   : > { %1536 = vst [vmem:[%s224_s15 + $0x10] sm:$0xff] %v1531_v46  ;;  %v1532_v53 = vmax.f32 %v1522_v45, %v1527_v48  ;;  %v1533_v55 = vmax.f32 %v1523_v50, %v1528_v47 }
 0x2af   : > { %1537 = vst [vmem:[%s224_s15 + $0x18] sm:$0xff] %v1532_v53  ;;  %1538 = vst [vmem:[%s224_s15 + $0x20] sm:$0xff] %v1533_v55 }
 0x2b0 PF: > { %s15_s18 = sadd.s32 1, %s1696_s18  }
 0x2b1   : > { %p12_p4 = scmp.ge.s32.totalorder %s15_s18, 4  }
 0x2b3   :  { %14 = sbr.rel (!%p12_p4) target bundleno = 1 (0x1), region = 71 }

// kernel: sequence_model_forward.3
= control target key start
LH: loop header
LB: loop body
LE: loop exit
PB: predicated region body
PF: predicated region fallthrough
CT: control target
= control target key end

     0   :  { %s20691_s1 = inlined_call_operand.vmem [shape: bf16[3200,1024], index: 1, kind: input, shape index: {}]   ;;  %s20692_s0 = inlined_call_operand.vmem [shape: f32[8,3200], index: 0, kind: input, shape index: {}]   ;;  %s20693_s2 = inlined_call_operand.vmem [shape: f32[1,1024], index: 2, kind: input, shape index: {}]   ;;  %s20694_s3 = inlined_call_operand.vmem [shape: bf16[1024,256], index: 3, kind: input, shape index: {}]   ;;  %s20695_s5 = inlined_call_operand.vmem [shape: f32[256,128], index: 5, kind: input, shape index: {}]   ;;  %s20696_s4 = inlined_call_operand.vmem [shape: f32[1,256], index: 4, kind: input, shape index: {}]   ;;  %s20697_s6 = inlined_call_operand.vmem [shape: f32[1,128], index: 6, kind: input, shape index: {}]   ;;  %s20698_s7 = inlined_call_operand.vmem [shape: f32[8,128], index: 7, kind: output, shape index: {}]  }
   0x1   :  { %v133_v0 = vld [vmem:[%s20691_s1 + $0x1c0] sm:$0xff]  ;;  %v28_v53 = vld [vmem:[%s20692_s0 + $0x8] sm:$0xff]  ;;  %v30_v54 = vld [vmem:[%s20692_s0 + $0x18] sm:$0xff] }
   0x2   :  { %v137_v1 = vld [vmem:[%s20691_s1 + $0x1e0] sm:$0xff]  ;;  %v15022_v58 = vpack.c.bf16 %v28_v53, %v28_v53  ;;  %v15024_v59 = vpack.c.bf16 %v30_v54, %v30_v54 }
   0x3   :  { %v261_v2 = vld [vmem:[%s20691_s1 + $0x5c0] sm:$0xff]  ;;  %v12982_v3 = vcombine.high %v133_v0, %v137_v1  ;;  %v12981_v5 = vcombine.low %v133_v0, %v137_v1 }
   0x4   :  { %v265_v4 = vld [vmem:[%s20691_s1 + $0x5e0] sm:$0xff]  ;;  %9751 = vmatprep.mubr.bf16.mxu0 %v15022_v58  ;;  %9792 = vmatprep.mubr.bf16.mxu1 %v15024_v59 }
   0x5   :  { %v125_v6 = vld [vmem:[%s20691_s1 + $0x180] sm:$0xff]  ;;  %v13110_v8 = vcombine.high %v261_v2, %v265_v4  ;;  %v13109_v9 = vcombine.low %v261_v2, %v265_v4  ;;  %9719 = vmatprep.subr.bf16.mxu0 %v12982_v3 }
   0x6   :  { %v129_v7 = vld [vmem:[%s20691_s1 + $0x1a0] sm:$0xff]  ;;  %9720 = vmatpush1.bf16.msra.mxu0 %v12981_v5 }
   0x7   :  { %v12974_v10 = vcombine.high %v125_v6, %v129_v7  ;;  %v253_v11 = vld [vmem:[%s20691_s1 + $0x580] sm:$0xff]  ;;  %9760 = vmatprep.subr.bf16.mxu1 %v13110_v8  ;;  %v12973_v18 = vcombine.low %v125_v6, %v129_v7 }
   0x8   :  { %v257_v12 = vld [vmem:[%s20691_s1 + $0x5a0] sm:$0xff]  ;;  %9761 = vmatpush1.bf16.msra.mxu1 %v13109_v9 }
   0x9   :  { %v117_v13 = vld [vmem:[%s20691_s1 + $0x140] sm:$0xff]  ;;  %v13102_v14 = vcombine.high %v253_v11, %v257_v12  ;;  %9721 = vmatprep.subr.bf16.mxu0 %v12974_v10  ;;  %v13101_v19 = vcombine.low %v253_v11, %v257_v12 }
   0xa   :  { %v121_v15 = vld [vmem:[%s20691_s1 + $0x160] sm:$0xff]  ;;  %9722 = vmatpush1.bf16.msra.mxu0 %v12973_v18 }
   0xb   :  { %v245_v16 = vld [vmem:[%s20691_s1 + $0x540] sm:$0xff]  ;;  %v12966_v20 = vcombine.high %v117_v13, %v121_v15  ;;  %9762 = vmatprep.subr.bf16.mxu1 %v13102_v14  ;;  %v12965_v26 = vcombine.low %v117_v13, %v121_v15 }
   0xc   :  { %v249_v17 = vld [vmem:[%s20691_s1 + $0x560] sm:$0xff]  ;;  %9763 = vmatpush1.bf16.msra.mxu1 %v13101_v19 }
   0xd   :  { %v13094_v21 = vcombine.high %v245_v16, %v249_v17  ;;  %v109_v22 = vld [vmem:[%s20691_s1 + $0x100] sm:$0xff]  ;;  %9723 = vmatprep.subr.bf16.mxu0 %v12966_v20  ;;  %v13093_v27 = vcombine.low %v245_v16, %v249_v17 }
   0xe   :  { %v113_v23 = vld [vmem:[%s20691_s1 + $0x120] sm:$0xff]  ;;  %9724 = vmatpush1.bf16.msra.mxu0 %v12965_v26 }
   0xf   :  { %v237_v24 = vld [vmem:[%s20691_s1 + $0x500] sm:$0xff]  ;;  %v12958_v28 = vcombine.high %v109_v22, %v113_v23  ;;  %9764 = vmatprep.subr.bf16.mxu1 %v13094_v21  ;;  %v12957_v34 = vcombine.low %v109_v22, %v113_v23 }
  0x10   :  { %v241_v25 = vld [vmem:[%s20691_s1 + $0x520] sm:$0xff]  ;;  %9765 = vmatpush1.bf16.msra.mxu1 %v13093_v27 }
  0x11   :  { %v13086_v29 = vcombine.high %v237_v24, %v241_v25  ;;  %v101_v30 = vld [vmem:[%s20691_s1 + $0xc0] sm:$0xff]  ;;  %9725 = vmatprep.subr.bf16.mxu0 %v12958_v28  ;;  %v13085_v35 = vcombine.low %v237_v24, %v241_v25 }
  0x12   :  { %v105_v31 = vld [vmem:[%s20691_s1 + $0xe0] sm:$0xff]  ;;  %9726 = vmatpush1.bf16.msra.mxu0 %v12957_v34 }
  0x13   :  { %v229_v32 = vld [vmem:[%s20691_s1 + $0x4c0] sm:$0xff]  ;;  %v12950_v36 = vcombine.high %v101_v30, %v105_v31  ;;  %9766 = vmatprep.subr.bf16.mxu1 %v13086_v29  ;;  %v12949_v42 = vcombine.low %v101_v30, %v105_v31 }
  0x14   :  { %v233_v33 = vld [vmem:[%s20691_s1 + $0x4e0] sm:$0xff]  ;;  %9767 = vmatpush1.bf16.msra.mxu1 %v13085_v35 }
  0x15   :  { %v13078_v37 = vcombine.high %v229_v32, %v233_v33  ;;  %v93_v38 = vld [vmem:[%s20691_s1 + $0x80] sm:$0xff]  ;;  %9727 = vmatprep.subr.bf16.mxu0 %v12950_v36  ;;  %v13077_v43 = vcombine.low %v229_v32, %v233_v33 }
  0x16   :  { %v97_v39 = vld [vmem:[%s20691_s1 + $0xa0] sm:$0xff]  ;;  %9728 = vmatpush1.bf16.msra.mxu0 %v12949_v42 }
  0x17   :  { %v221_v40 = vld [vmem:[%s20691_s1 + $0x480] sm:$0xff]  ;;  %v12942_v44 = vcombine.high %v93_v38, %v97_v39  ;;  %9768 = vmatprep.subr.bf16.mxu1 %v13078_v37  ;;  %v12941_v50 = vcombine.low %v93_v38, %v97_v39 }
  0x18   :  { %v225_v41 = vld [vmem:[%s20691_s1 + $0x4a0] sm:$0xff]  ;;  %9769 = vmatpush1.bf16.msra.mxu1 %v13077_v43 }
  0x19   :  { %v13070_v45 = vcombine.high %v221_v40, %v225_v41  ;;  %v85_v46 = vld [vmem:[%s20691_s1 + $0x40] sm:$0xff]  ;;  %9729 = vmatprep.subr.bf16.mxu0 %v12942_v44  ;;  %v13069_v51 = vcombine.low %v221_v40, %v225_v41 }
  0x1a   :  { %v89_v47 = vld [vmem:[%s20691_s1 + $0x60] sm:$0xff]  ;;  %9730 = vmatpush1.bf16.msra.mxu0 %v12941_v50 }
  0x1b   :  { %v213_v48 = vld [vmem:[%s20691_s1 + $0x440] sm:$0xff]  ;;  %v12934_v52 = vcombine.high %v85_v46, %v89_v47  ;;  %9770 = vmatprep.subr.bf16.mxu1 %v13070_v45  ;;  %v12933_v62 = vcombine.low %v85_v46, %v89_v47 }
  0x1c   :  { %v217_v49 = vld [vmem:[%s20691_s1 + $0x460] sm:$0xff]  ;;  %9771 = vmatpush1.bf16.msra.mxu1 %v13069_v51 }
  0x1d   :  { %v13062_v55 = vcombine.high %v213_v48, %v217_v49  ;;  %v77_v56 = vld [vmem:[%s20691_s1] sm:$0xff]  ;;  %9731 = vmatprep.subr.bf16.mxu0 %v12934_v52  ;;  %v13061_v63 = vcombine.low %v213_v48, %v217_v49 }
  0x1e   :  { %v81_v57 = vld [vmem:[%s20691_s1 + $0x20] sm:$0xff]  ;;  %9732 = vmatpush1.bf16.msra.mxu0 %v12933_v62 }
  0x1f   :  { %v205_v60 = vld [vmem:[%s20691_s1 + $0x400] sm:$0xff]  ;;  %v12926_v0 = vcombine.high %v77_v56, %v81_v57  ;;  %9772 = vmatprep.subr.bf16.mxu1 %v13062_v55  ;;  %v12925_v6 = vcombine.low %v77_v56, %v81_v57 }
  0x20   :  { %v209_v61 = vld [vmem:[%s20691_s1 + $0x420] sm:$0xff]  ;;  %9773 = vmatpush1.bf16.msra.mxu1 %v13061_v63 }
  0x21   :  { %v13054_v1 = vcombine.high %v205_v60, %v209_v61  ;;  %v197_v2 = vld [vmem:[%s20691_s1 + $0x3c0] sm:$0xff]  ;;  %9733 = vmatprep.subr.bf16.mxu0 %v12926_v0  ;;  %v13053_v7 = vcombine.low %v205_v60, %v209_v61 }
  0x22   :  { %v201_v3 = vld [vmem:[%s20691_s1 + $0x3e0] sm:$0xff]  ;;  %9734 = vmatpush1.bf16.msra.mxu0 %v12925_v6 }
  0x23   :  { %v325_v4 = vld [vmem:[%s20691_s1 + $0x7c0] sm:$0xff]  ;;  %v13046_v8 = vcombine.high %v197_v2, %v201_v3  ;;  %9774 = vmatprep.subr.bf16.mxu1 %v13054_v1  ;;  %v13045_v14 = vcombine.low %v197_v2, %v201_v3 }
  0x24   :  { %v329_v5 = vld [vmem:[%s20691_s1 + $0x7e0] sm:$0xff]  ;;  %9775 = vmatpush1.bf16.msra.mxu1 %v13053_v7 }
  0x25   :  { %v13174_v9 = vcombine.high %v325_v4, %v329_v5  ;;  %v189_v10 = vld [vmem:[%s20691_s1 + $0x380] sm:$0xff]  ;;  %9735 = vmatprep.subr.bf16.mxu0 %v13046_v8  ;;  %v13173_v15 = vcombine.low %v325_v4, %v329_v5 }
  0x26   :  { %v193_v11 = vld [vmem:[%s20691_s1 + $0x3a0] sm:$0xff]  ;;  %9736 = vmatpush2.bf16.msra.mxu0 %v13045_v14 }
  0x27   :  { %v317_v12 = vld [vmem:[%s20691_s1 + $0x780] sm:$0xff]  ;;  %v13038_v16 = vcombine.high %v189_v10, %v193_v11  ;;  %9776 = vmatprep.subr.bf16.mxu1 %v13174_v9  ;;  %v13037_v22 = vcombine.low %v189_v10, %v193_v11  ;;  %v29_v11 = vld [vmem:[%s20692_s0 + $0x10] sm:$0xff] }
  0x28   :  { %v321_v13 = vld [vmem:[%s20691_s1 + $0x7a0] sm:$0xff]  ;;  %9777 = vmatpush2.bf16.msra.mxu1 %v13173_v15 }
  0x29   :  { %v13166_v17 = vcombine.high %v317_v12, %v321_v13  ;;  %v181_v18 = vld [vmem:[%s20691_s1 + $0x340] sm:$0xff]  ;;  %9737 = vmatprep.subr.bf16.mxu0 %v13038_v16  ;;  %v13165_v23 = vcombine.low %v317_v12, %v321_v13 }
  0x2a   :  { %v185_v19 = vld [vmem:[%s20691_s1 + $0x360] sm:$0xff]  ;;  %9738 = vmatpush2.bf16.msra.mxu0 %v13037_v22  ;;  %v34_v22 = vld [vmem:[%s20692_s0 + $0x38] sm:$0xff] }
  0x2b   :  { %v309_v20 = vld [vmem:[%s20691_s1 + $0x740] sm:$0xff]  ;;  %v13030_v24 = vcombine.high %v181_v18, %v185_v19  ;;  %9778 = vmatprep.subr.bf16.mxu1 %v13166_v17  ;;  %v13029_v30 = vcombine.low %v181_v18, %v185_v19  ;;  %v32_v19 = vld [vmem:[%s20692_s0 + $0x28] sm:$0xff] }
  0x2c   :  { %v313_v21 = vld [vmem:[%s20691_s1 + $0x760] sm:$0xff]  ;;  %9779 = vmatpush2.bf16.msra.mxu1 %v13165_v23 }
  0x2d   :  { %v13158_v25 = vcombine.high %v309_v20, %v313_v21  ;;  %v173_v26 = vld [vmem:[%s20691_s1 + $0x300] sm:$0xff]  ;;  %9739 = vmatprep.subr.bf16.mxu0 %v13030_v24  ;;  %v13157_v31 = vcombine.low %v309_v20, %v313_v21  ;;  %v15165_v20 = vpack.c.bf16 %v29_v11, %v29_v11 }
  0x2e   :  { %v177_v27 = vld [vmem:[%s20691_s1 + $0x320] sm:$0xff]  ;;  %9740 = vmatpush2.bf16.msra.mxu0 %v13029_v30 }
  0x2f   :  { %v301_v28 = vld [vmem:[%s20691_s1 + $0x700] sm:$0xff]  ;;  %v13022_v32 = vcombine.high %v173_v26, %v177_v27  ;;  %9780 = vmatprep.subr.bf16.mxu1 %v13158_v25  ;;  %v13021_v38 = vcombine.low %v173_v26, %v177_v27 }
  0x30   :  { %v305_v29 = vld [vmem:[%s20691_s1 + $0x720] sm:$0xff]  ;;  %9781 = vmatpush2.bf16.msra.mxu1 %v13157_v31  ;;  %v15185_v31 = vpack.c.bf16 %v34_v22, %v34_v22 }
  0x31   :  { %v13150_v33 = vcombine.high %v301_v28, %v305_v29  ;;  %v165_v34 = vld [vmem:[%s20691_s1 + $0x2c0] sm:$0xff]  ;;  %9741 = vmatprep.subr.bf16.mxu0 %v13022_v32  ;;  %v13149_v39 = vcombine.low %v301_v28, %v305_v29  ;;  %v15176_v28 = vpack.c.bf16 %v32_v19, %v32_v19 }
  0x32   :  { %v169_v35 = vld [vmem:[%s20691_s1 + $0x2e0] sm:$0xff]  ;;  %9742 = vmatpush2.bf16.msra.mxu0 %v13021_v38 }
  0x33   :  { %v293_v36 = vld [vmem:[%s20691_s1 + $0x6c0] sm:$0xff]  ;;  %v13014_v40 = vcombine.high %v165_v34, %v169_v35  ;;  %9782 = vmatprep.subr.bf16.mxu1 %v13150_v33  ;;  %v13013_v46 = vcombine.low %v165_v34, %v169_v35 }
  0x34   :  { %v297_v37 = vld [vmem:[%s20691_s1 + $0x6e0] sm:$0xff]  ;;  %9783 = vmatpush2.bf16.msra.mxu1 %v13149_v39 }
  0x35   :  { %v13142_v41 = vcombine.high %v293_v36, %v297_v37  ;;  %v157_v42 = vld [vmem:[%s20691_s1 + $0x280] sm:$0xff]  ;;  %9743 = vmatprep.subr.bf16.mxu0 %v13014_v40  ;;  %v13141_v47 = vcombine.low %v293_v36, %v297_v37 }
  0x36   :  { %v161_v43 = vld [vmem:[%s20691_s1 + $0x2a0] sm:$0xff]  ;;  %9744 = vmatpush2.bf16.msra.mxu0 %v13013_v46 }
  0x37   :  { %v285_v44 = vld [vmem:[%s20691_s1 + $0x680] sm:$0xff]  ;;  %v13006_v48 = vcombine.high %v157_v42, %v161_v43  ;;  %9784 = vmatprep.subr.bf16.mxu1 %v13142_v41  ;;  %v13005_v54 = vcombine.low %v157_v42, %v161_v43 }
  0x38   :  { %v289_v45 = vld [vmem:[%s20691_s1 + $0x6a0] sm:$0xff]  ;;  %9785 = vmatpush2.bf16.msra.mxu1 %v13141_v47 }
  0x39   :  { %v13134_v49 = vcombine.high %v285_v44, %v289_v45  ;;  %v149_v50 = vld [vmem:[%s20691_s1 + $0x240] sm:$0xff]  ;;  %9745 = vmatprep.subr.bf16.mxu0 %v13006_v48  ;;  %v13133_v55 = vcombine.low %v285_v44, %v289_v45 }
  0x3a   :  { %v153_v51 = vld [vmem:[%s20691_s1 + $0x260] sm:$0xff]  ;;  %9746 = vmatpush2.bf16.msra.mxu0 %v13005_v54 }
  0x3b   :  { %v277_v52 = vld [vmem:[%s20691_s1 + $0x640] sm:$0xff]  ;;  %v12998_v56 = vcombine.high %v149_v50, %v153_v51  ;;  %9786 = vmatprep.subr.bf16.mxu1 %v13134_v49  ;;  %v12997_v0 = vcombine.low %v149_v50, %v153_v51 }
  0x3c   :  { %v281_v53 = vld [vmem:[%s20691_s1 + $0x660] sm:$0xff]  ;;  %9787 = vmatpush2.bf16.msra.mxu1 %v13133_v55 }
  0x3d   :  { %v13126_v57 = vcombine.high %v277_v52, %v281_v53  ;;  %v141_v60 = vld [vmem:[%s20691_s1 + $0x200] sm:$0xff]  ;;  %9747 = vmatprep.subr.bf16.mxu0 %v12998_v56  ;;  %v13125_v1 = vcombine.low %v277_v52, %v281_v53 }
  0x3e   :  { %v145_v61 = vld [vmem:[%s20691_s1 + $0x220] sm:$0xff]  ;;  %9748 = vmatpush2.bf16.msra.mxu0 %v12997_v0 }
  0x3f   :  { %v269_v62 = vld [vmem:[%s20691_s1 + $0x600] sm:$0xff]  ;;  %v12990_v2 = vcombine.high %v141_v60, %v145_v61  ;;  %9788 = vmatprep.subr.bf16.mxu1 %v13126_v57  ;;  %v12989_v8 = vcombine.low %v141_v60, %v145_v61 }
  0x40   :  { %v273_v63 = vld [vmem:[%s20691_s1 + $0x620] sm:$0xff]  ;;  %9789 = vmatpush2.bf16.msra.mxu1 %v13125_v1 }
  0x41   :  { %v13118_v3 = vcombine.high %v269_v62, %v273_v63  ;;  %v389_v4 = vld [vmem:[%s20691_s1 + $0x9c0] sm:$0xff]  ;;  %9749 = vmatprep.subr.bf16.mxu0 %v12990_v2  ;;  %v13117_v10 = vcombine.low %v269_v62, %v273_v63 }
  0x42   :  { %v393_v5 = vld [vmem:[%s20691_s1 + $0x9e0] sm:$0xff]  ;;  %9750 = vmatpush2.bf16.msra.mxu0 %v12989_v8 }
  0x43   :  { %v517_v6 = vld [vmem:[%s20691_s1 + $0xdc0] sm:$0xff]  ;;  %v13238_v12 = vcombine.high %v389_v4, %v393_v5  ;;  %9790 = vmatprep.subr.bf16.mxu1 %v13118_v3  ;;  %v13237_v21 = vcombine.low %v389_v4, %v393_v5 }
  0x44   :  { %v521_v7 = vld [vmem:[%s20691_s1 + $0xde0] sm:$0xff]  ;;  %9791 = vmatpush2.bf16.msra.mxu1 %v13117_v10 }
  0x45   :  { %v27_v9 = vld [vmem:[%s20692_s0] sm:$0xff]  ;;  %v13366_v13 = vcombine.high %v517_v6, %v521_v7  ;;  %9801 = vmatprep.subr.bf16.mxu0 %v13238_v12  ;;  %v13365_v23 = vcombine.low %v517_v6, %v521_v7 }
  0x46   :  { %v381_v14 = vld [vmem:[%s20691_s1 + $0x980] sm:$0xff]  ;;  %v15154_v16 = vpack.c.bf16 %v27_v9, %v27_v9 }
  0x47   :  { %v385_v15 = vld [vmem:[%s20691_s1 + $0x9a0] sm:$0xff]  ;;  %9842 = vmatprep.subr.bf16.mxu1 %v13366_v13  ;;  %9793 = vmatmul.mubr.bf16.vlgmr.msra.gmra.mxu1 %v15165_v20 }
  0x48   :  { %v509_v17 = vld [vmem:[%s20691_s1 + $0xd80] sm:$0xff]  ;;  %v13230_v24 = vcombine.high %v381_v14, %v385_v15  ;;  %9752 = vmatmul.mubr.bf16.vlgmr.msra.gmra.mxu0 %v15154_v16  ;;  %v13229_v32 = vcombine.low %v381_v14, %v385_v15  ;;  %9843 = vmatpush1.bf16.msra.mxu1 %v13365_v23 }
  0x49   :  { %v513_v18 = vld [vmem:[%s20691_s1 + $0xda0] sm:$0xff]  ;;  %9802 = vmatpush1.bf16.msra.mxu0 %v13237_v21  ;;  %9833 = vmatprep.mubr.bf16.mxu0 %v15176_v28 }
  0x4a   :  { %v13358_v25 = vcombine.high %v509_v17, %v513_v18  ;;  %v373_v26 = vld [vmem:[%s20691_s1 + $0x940] sm:$0xff]  ;;  %9803 = vmatprep.subr.bf16.mxu0 %v13230_v24  ;;  %v13357_v33 = vcombine.low %v509_v17, %v513_v18  ;;  %9874 = vmatprep.mubr.bf16.mxu1 %v15185_v31 }
  0x4b   :  { %v377_v27 = vld [vmem:[%s20691_s1 + $0x960] sm:$0xff] }
  0x4c   :  { %v501_v29 = vld [vmem:[%s20691_s1 + $0xd40] sm:$0xff]  ;;  %v13222_v34 = vcombine.high %v373_v26, %v377_v27  ;;  %9844 = vmatprep.subr.bf16.mxu1 %v13358_v25  ;;  %v13221_v40 = vcombine.low %v373_v26, %v377_v27 }
  0x4d   :  { %v505_v30 = vld [vmem:[%s20691_s1 + $0xd60] sm:$0xff]  ;;  %9804 = vmatpush1.bf16.msra.mxu0 %v13229_v32  ;;  %9845 = vmatpush1.bf16.msra.mxu1 %v13357_v33 }
  0x4e   :  { %v13350_v35 = vcombine.high %v501_v29, %v505_v30  ;;  %v365_v36 = vld [vmem:[%s20691_s1 + $0x900] sm:$0xff]  ;;  %9805 = vmatprep.subr.bf16.mxu0 %v13222_v34  ;;  %v13349_v41 = vcombine.low %v501_v29, %v505_v30 }
  0x4f   :  { %v369_v37 = vld [vmem:[%s20691_s1 + $0x920] sm:$0xff] }
  0x50   :  { %v493_v38 = vld [vmem:[%s20691_s1 + $0xd00] sm:$0xff]  ;;  %v13214_v42 = vcombine.high %v365_v36, %v369_v37  ;;  %9846 = vmatprep.subr.bf16.mxu1 %v13350_v35  ;;  %v13213_v48 = vcombine.low %v365_v36, %v369_v37 }
  0x51   :  { %v497_v39 = vld [vmem:[%s20691_s1 + $0xd20] sm:$0xff]  ;;  %9806 = vmatpush1.bf16.msra.mxu0 %v13221_v40  ;;  %9847 = vmatpush1.bf16.msra.mxu1 %v13349_v41 }
  0x52   :  { %v13342_v43 = vcombine.high %v493_v38, %v497_v39  ;;  %v357_v44 = vld [vmem:[%s20691_s1 + $0x8c0] sm:$0xff]  ;;  %9807 = vmatprep.subr.bf16.mxu0 %v13214_v42  ;;  %v13341_v49 = vcombine.low %v493_v38, %v497_v39 }
  0x53   :  { %v361_v45 = vld [vmem:[%s20691_s1 + $0x8e0] sm:$0xff] }
  0x54   :  { %v485_v46 = vld [vmem:[%s20691_s1 + $0xcc0] sm:$0xff]  ;;  %v13206_v50 = vcombine.high %v357_v44, %v361_v45  ;;  %9848 = vmatprep.subr.bf16.mxu1 %v13342_v43  ;;  %v13205_v56 = vcombine.low %v357_v44, %v361_v45 }
  0x55   :  { %v489_v47 = vld [vmem:[%s20691_s1 + $0xce0] sm:$0xff]  ;;  %9808 = vmatpush1.bf16.msra.mxu0 %v13213_v48  ;;  %9849 = vmatpush1.bf16.msra.mxu1 %v13341_v49 }
  0x56   :  { %v13334_v51 = vcombine.high %v485_v46, %v489_v47  ;;  %v349_v52 = vld [vmem:[%s20691_s1 + $0x880] sm:$0xff]  ;;  %9809 = vmatprep.subr.bf16.mxu0 %v13206_v50  ;;  %v13333_v57 = vcombine.low %v485_v46, %v489_v47 }
  0x57   :  { %v353_v53 = vld [vmem:[%s20691_s1 + $0x8a0] sm:$0xff] }
  0x58   :  { %v477_v54 = vld [vmem:[%s20691_s1 + $0xc80] sm:$0xff]  ;;  %v13198_v60 = vcombine.high %v349_v52, %v353_v53  ;;  %9850 = vmatprep.subr.bf16.mxu1 %v13334_v51  ;;  %v13197_v2 = vcombine.low %v349_v52, %v353_v53 }
  0x59   :  { %v481_v55 = vld [vmem:[%s20691_s1 + $0xca0] sm:$0xff]  ;;  %9810 = vmatpush1.bf16.msra.mxu0 %v13205_v56  ;;  %9851 = vmatpush1.bf16.msra.mxu1 %v13333_v57 }
  0x5a   :  { %v13326_v61 = vcombine.high %v477_v54, %v481_v55  ;;  %v341_v62 = vld [vmem:[%s20691_s1 + $0x840] sm:$0xff]  ;;  %9811 = vmatprep.subr.bf16.mxu0 %v13198_v60  ;;  %v13325_v3 = vcombine.low %v477_v54, %v481_v55 }
  0x5b   :  { %v345_v63 = vld [vmem:[%s20691_s1 + $0x860] sm:$0xff] }
  0x5c   :  { %v469_v0 = vld [vmem:[%s20691_s1 + $0xc40] sm:$0xff]  ;;  %v13190_v4 = vcombine.high %v341_v62, %v345_v63  ;;  %9852 = vmatprep.subr.bf16.mxu1 %v13326_v61  ;;  %v13189_v10 = vcombine.low %v341_v62, %v345_v63 }
  0x5d   :  { %v473_v1 = vld [vmem:[%s20691_s1 + $0xc60] sm:$0xff]  ;;  %9812 = vmatpush1.bf16.msra.mxu0 %v13197_v2  ;;  %9853 = vmatpush1.bf16.msra.mxu1 %v13325_v3 }
  0x5e   :  { %v13318_v5 = vcombine.high %v469_v0, %v473_v1  ;;  %v333_v6 = vld [vmem:[%s20691_s1 + $0x800] sm:$0xff]  ;;  %9813 = vmatprep.subr.bf16.mxu0 %v13190_v4  ;;  %v13317_v11 = vcombine.low %v469_v0, %v473_v1 }
  0x5f   :  { %v337_v7 = vld [vmem:[%s20691_s1 + $0x820] sm:$0xff] }
  0x60   :  { %v461_v8 = vld [vmem:[%s20691_s1 + $0xc00] sm:$0xff]  ;;  %v13182_v12 = vcombine.high %v333_v6, %v337_v7  ;;  %9854 = vmatprep.subr.bf16.mxu1 %v13318_v5  ;;  %v13181_v19 = vcombine.low %v333_v6, %v337_v7 }
  0x61   :  { %v465_v9 = vld [vmem:[%s20691_s1 + $0xc20] sm:$0xff]  ;;  %9814 = vmatpush1.bf16.msra.mxu0 %v13189_v10  ;;  %9855 = vmatpush1.bf16.msra.mxu1 %v13317_v11 }
  0x62   :  { %v13310_v13 = vcombine.high %v461_v8, %v465_v9  ;;  %v453_v14 = vld [vmem:[%s20691_s1 + $0xbc0] sm:$0xff]  ;;  %9815 = vmatprep.subr.bf16.mxu0 %v13182_v12  ;;  %v13309_v21 = vcombine.low %v461_v8, %v465_v9 }
  0x63   :  { %v457_v15 = vld [vmem:[%s20691_s1 + $0xbe0] sm:$0xff] }
  0x64   :  { %v581_v17 = vld [vmem:[%s20691_s1 + $0xfc0] sm:$0xff]  ;;  %v13302_v22 = vcombine.high %v453_v14, %v457_v15  ;;  %9856 = vmatprep.subr.bf16.mxu1 %v13310_v13  ;;  %v13301_v29 = vcombine.low %v453_v14, %v457_v15 }
  0x65   :  { %v585_v18 = vld [vmem:[%s20691_s1 + $0xfe0] sm:$0xff]  ;;  %9816 = vmatpush1.bf16.msra.mxu0 %v13181_v19  ;;  %9857 = vmatpush1.bf16.msra.mxu1 %v13309_v21 }
  0x66   :  { %v13430_v23 = vcombine.high %v581_v17, %v585_v18  ;;  %v445_v24 = vld [vmem:[%s20691_s1 + $0xb80] sm:$0xff]  ;;  %9817 = vmatprep.subr.bf16.mxu0 %v13302_v22  ;;  %v13429_v30 = vcombine.low %v581_v17, %v585_v18 }
  0x67   :  { %v449_v25 = vld [vmem:[%s20691_s1 + $0xba0] sm:$0xff] }
  0x68   :  { %v573_v26 = vld [vmem:[%s20691_s1 + $0xf80] sm:$0xff]  ;;  %v13294_v32 = vcombine.high %v445_v24, %v449_v25  ;;  %9858 = vmatprep.subr.bf16.mxu1 %v13430_v23  ;;  %v13293_v38 = vcombine.low %v445_v24, %v449_v25 }
  0x69   :  { %v577_v27 = vld [vmem:[%s20691_s1 + $0xfa0] sm:$0xff]  ;;  %9818 = vmatpush2.bf16.msra.mxu0 %v13301_v29  ;;  %9859 = vmatpush2.bf16.msra.mxu1 %v13429_v30  ;;  %v33_v30 = vld [vmem:[%s20692_s0 + $0x30] sm:$0xff] }
  0x6a   :  { %v13422_v33 = vcombine.high %v573_v26, %v577_v27  ;;  %v437_v34 = vld [vmem:[%s20691_s1 + $0xb40] sm:$0xff]  ;;  %9819 = vmatprep.subr.bf16.mxu0 %v13294_v32  ;;  %v13421_v39 = vcombine.low %v573_v26, %v577_v27 }
  0x6b   :  { %v441_v35 = vld [vmem:[%s20691_s1 + $0xb60] sm:$0xff] }
  0x6c   :  { %v565_v36 = vld [vmem:[%s20691_s1 + $0xf40] sm:$0xff]  ;;  %v13286_v40 = vcombine.high %v437_v34, %v441_v35  ;;  %9860 = vmatprep.subr.bf16.mxu1 %v13422_v33  ;;  %v13285_v46 = vcombine.low %v437_v34, %v441_v35 }
  0x6d   :  { %v569_v37 = vld [vmem:[%s20691_s1 + $0xf60] sm:$0xff]  ;;  %9820 = vmatpush2.bf16.msra.mxu0 %v13293_v38  ;;  %9861 = vmatpush2.bf16.msra.mxu1 %v13421_v39  ;;  %v36_v39 = vld [vmem:[%s20692_s0 + $0x48] sm:$0xff] }
  0x6e   :  { %v13414_v41 = vcombine.high %v565_v36, %v569_v37  ;;  %v429_v42 = vld [vmem:[%s20691_s1 + $0xb00] sm:$0xff]  ;;  %9821 = vmatprep.subr.bf16.mxu0 %v13286_v40  ;;  %v13413_v47 = vcombine.low %v565_v36, %v569_v37  ;;  %v15381_v40 = vpack.c.bf16 %v33_v30, %v33_v30 }
  0x6f   :  { %v433_v43 = vld [vmem:[%s20691_s1 + $0xb20] sm:$0xff] }
  0x70   :  { %v557_v44 = vld [vmem:[%s20691_s1 + $0xf00] sm:$0xff]  ;;  %v13278_v48 = vcombine.high %v429_v42, %v433_v43  ;;  %9862 = vmatprep.subr.bf16.mxu1 %v13414_v41  ;;  %v13277_v54 = vcombine.low %v429_v42, %v433_v43  ;;  %v38_v42 = vld [vmem:[%s20692_s0 + $0x58] sm:$0xff] }
  0x71   :  { %v561_v45 = vld [vmem:[%s20691_s1 + $0xf20] sm:$0xff]  ;;  %9822 = vmatpush2.bf16.msra.mxu0 %v13285_v46  ;;  %9863 = vmatpush2.bf16.msra.mxu1 %v13413_v47 }
  0x72   :  { %v13406_v49 = vcombine.high %v557_v44, %v561_v45  ;;  %v421_v50 = vld [vmem:[%s20691_s1 + $0xac0] sm:$0xff]  ;;  %9823 = vmatprep.subr.bf16.mxu0 %v13278_v48  ;;  %v13405_v55 = vcombine.low %v557_v44, %v561_v45  ;;  %v15392_v48 = vpack.c.bf16 %v36_v39, %v36_v39 }
  0x73   :  { %v425_v51 = vld [vmem:[%s20691_s1 + $0xae0] sm:$0xff] }
  0x74   :  { %v549_v52 = vld [vmem:[%s20691_s1 + $0xec0] sm:$0xff]  ;;  %v13270_v56 = vcombine.high %v421_v50, %v425_v51  ;;  %9864 = vmatprep.subr.bf16.mxu1 %v13406_v49  ;;  %v13269_v0 = vcombine.low %v421_v50, %v425_v51  ;;  %v15401_v51 = vpack.c.bf16 %v38_v42, %v38_v42 }
  0x75   :  { %v553_v53 = vld [vmem:[%s20691_s1 + $0xee0] sm:$0xff]  ;;  %9824 = vmatpush2.bf16.msra.mxu0 %v13277_v54  ;;  %9865 = vmatpush2.bf16.msra.mxu1 %v13405_v55 }
  0x76   :  { %v13398_v57 = vcombine.high %v549_v52, %v553_v53  ;;  %v413_v60 = vld [vmem:[%s20691_s1 + $0xa80] sm:$0xff]  ;;  %9825 = vmatprep.subr.bf16.mxu0 %v13270_v56  ;;  %v13397_v1 = vcombine.low %v549_v52, %v553_v53 }
  0x77   :  { %v417_v61 = vld [vmem:[%s20691_s1 + $0xaa0] sm:$0xff] }
  0x78   :  { %v541_v62 = vld [vmem:[%s20691_s1 + $0xe80] sm:$0xff]  ;;  %v13262_v2 = vcombine.high %v413_v60, %v417_v61  ;;  %9866 = vmatprep.subr.bf16.mxu1 %v13398_v57  ;;  %v13261_v8 = vcombine.low %v413_v60, %v417_v61 }
  0x79   :  { %v545_v63 = vld [vmem:[%s20691_s1 + $0xea0] sm:$0xff]  ;;  %9826 = vmatpush2.bf16.msra.mxu0 %v13269_v0  ;;  %9867 = vmatpush2.bf16.msra.mxu1 %v13397_v1 }
  0x7a   :  { %v13390_v3 = vcombine.high %v541_v62, %v545_v63  ;;  %v405_v4 = vld [vmem:[%s20691_s1 + $0xa40] sm:$0xff]  ;;  %9827 = vmatprep.subr.bf16.mxu0 %v13262_v2  ;;  %v13389_v9 = vcombine.low %v541_v62, %v545_v63 }
  0x7b   :  { %v409_v5 = vld [vmem:[%s20691_s1 + $0xa60] sm:$0xff] }
  0x7c   :  { %v533_v6 = vld [vmem:[%s20691_s1 + $0xe40] sm:$0xff]  ;;  %v13254_v10 = vcombine.high %v405_v4, %v409_v5  ;;  %9868 = vmatprep.subr.bf16.mxu1 %v13390_v3  ;;  %v13253_v17 = vcombine.low %v405_v4, %v409_v5 }
  0x7d   :  { %v537_v7 = vld [vmem:[%s20691_s1 + $0xe60] sm:$0xff]  ;;  %9828 = vmatpush2.bf16.msra.mxu0 %v13261_v8  ;;  %9869 = vmatpush2.bf16.msra.mxu1 %v13389_v9 }
  0x7e   :  { %v13382_v11 = vcombine.high %v533_v6, %v537_v7  ;;  %v397_v12 = vld [vmem:[%s20691_s1 + $0xa00] sm:$0xff]  ;;  %9829 = vmatprep.subr.bf16.mxu0 %v13254_v10  ;;  %v13381_v18 = vcombine.low %v533_v6, %v537_v7 }
  0x7f   :  { %v401_v13 = vld [vmem:[%s20691_s1 + $0xa20] sm:$0xff] }
  0x80   :  { %v525_v14 = vld [vmem:[%s20691_s1 + $0xe00] sm:$0xff]  ;;  %v13246_v19 = vcombine.high %v397_v12, %v401_v13  ;;  %9870 = vmatprep.subr.bf16.mxu1 %v13382_v11  ;;  %v13245_v26 = vcombine.low %v397_v12, %v401_v13 }
  0x81   :  { %v529_v15 = vld [vmem:[%s20691_s1 + $0xe20] sm:$0xff]  ;;  %9830 = vmatpush2.bf16.msra.mxu0 %v13253_v17  ;;  %9871 = vmatpush2.bf16.msra.mxu1 %v13381_v18 }
  0x82   :  { %v13374_v21 = vcombine.high %v525_v14, %v529_v15  ;;  %v645_v22 = vld [vmem:[%s20691_s1 + $0x11c0] sm:$0xff]  ;;  %9831 = vmatprep.subr.bf16.mxu0 %v13246_v19  ;;  %v13373_v29 = vcombine.low %v525_v14, %v529_v15 }
  0x83   :  { %v649_v23 = vld [vmem:[%s20691_s1 + $0x11e0] sm:$0xff] }
  0x84   :  { %v773_v24 = vld [vmem:[%s20691_s1 + $0x15c0] sm:$0xff]  ;;  %v13494_v32 = vcombine.high %v645_v22, %v649_v23  ;;  %9872 = vmatprep.subr.bf16.mxu1 %v13374_v21  ;;  %v13493_v41 = vcombine.low %v645_v22, %v649_v23 }
  0x85   :  { %v777_v25 = vld [vmem:[%s20691_s1 + $0x15e0] sm:$0xff]  ;;  %9832 = vmatpush2.bf16.msra.mxu0 %v13245_v26  ;;  %9873 = vmatpush2.bf16.msra.mxu1 %v13373_v29 }
  0x86   :  { %v31_v27 = vld [vmem:[%s20692_s0 + $0x20] sm:$0xff]  ;;  %v13622_v33 = vcombine.high %v773_v24, %v777_v25  ;;  %9883 = vmatprep.subr.bf16.mxu0 %v13494_v32  ;;  %v13621_v43 = vcombine.low %v773_v24, %v777_v25 }
  0x87   :  { %v637_v34 = vld [vmem:[%s20691_s1 + $0x1180] sm:$0xff]  ;;  %v15370_v36 = vpack.c.bf16 %v31_v27, %v31_v27 }
  0x88   :  { %v641_v35 = vld [vmem:[%s20691_s1 + $0x11a0] sm:$0xff]  ;;  %9924 = vmatprep.subr.bf16.mxu1 %v13622_v33  ;;  %9875 = vmatmul.mubr.bf16.vlgmr.msra.gmra.mxu1 %v15381_v40 }
  0x89   :  { %v765_v37 = vld [vmem:[%s20691_s1 + $0x1580] sm:$0xff]  ;;  %v13486_v44 = vcombine.high %v637_v34, %v641_v35  ;;  %9834 = vmatmul.mubr.bf16.vlgmr.msra.gmra.mxu0 %v15370_v36  ;;  %v13485_v52 = vcombine.low %v637_v34, %v641_v35  ;;  %9925 = vmatpush1.bf16.msra.mxu1 %v13621_v43 }
  0x8a   :  { %v769_v38 = vld [vmem:[%s20691_s1 + $0x15a0] sm:$0xff]  ;;  %9884 = vmatpush1.bf16.msra.mxu0 %v13493_v41  ;;  %9915 = vmatprep.mubr.bf16.mxu0 %v15392_v48 }
  0x8b   :  { %v13614_v45 = vcombine.high %v765_v37, %v769_v38  ;;  %v629_v46 = vld [vmem:[%s20691_s1 + $0x1140] sm:$0xff]  ;;  %9885 = vmatprep.subr.bf16.mxu0 %v13486_v44  ;;  %v13613_v53 = vcombine.low %v765_v37, %v769_v38  ;;  %9956 = vmatprep.mubr.bf16.mxu1 %v15401_v51 }
  0x8c   :  { %v633_v47 = vld [vmem:[%s20691_s1 + $0x1160] sm:$0xff] }
  0x8d   :  { %v757_v49 = vld [vmem:[%s20691_s1 + $0x1540] sm:$0xff]  ;;  %v13478_v54 = vcombine.high %v629_v46, %v633_v47  ;;  %9926 = vmatprep.subr.bf16.mxu1 %v13614_v45  ;;  %v13477_v62 = vcombine.low %v629_v46, %v633_v47 }
  0x8e   :  { %v761_v50 = vld [vmem:[%s20691_s1 + $0x1560] sm:$0xff]  ;;  %9886 = vmatpush1.bf16.msra.mxu0 %v13485_v52  ;;  %9927 = vmatpush1.bf16.msra.mxu1 %v13613_v53 }
  0x8f   :  { %v13606_v55 = vcombine.high %v757_v49, %v761_v50  ;;  %v621_v56 = vld [vmem:[%s20691_s1 + $0x1100] sm:$0xff]  ;;  %9887 = vmatprep.subr.bf16.mxu0 %v13478_v54  ;;  %v13605_v63 = vcombine.low %v757_v49, %v761_v50 }
  0x90   :  { %v625_v57 = vld [vmem:[%s20691_s1 + $0x1120] sm:$0xff] }
  0x91   :  { %v749_v60 = vld [vmem:[%s20691_s1 + $0x1500] sm:$0xff]  ;;  %v13470_v0 = vcombine.high %v621_v56, %v625_v57  ;;  %9928 = vmatprep.subr.bf16.mxu1 %v13606_v55  ;;  %v13469_v6 = vcombine.low %v621_v56, %v625_v57 }
  0x92   :  { %v753_v61 = vld [vmem:[%s20691_s1 + $0x1520] sm:$0xff]  ;;  %9888 = vmatpush1.bf16.msra.mxu0 %v13477_v62  ;;  %9929 = vmatpush1.bf16.msra.mxu1 %v13605_v63 }
  0x93   :  { %v13598_v1 = vcombine.high %v749_v60, %v753_v61  ;;  %v613_v2 = vld [vmem:[%s20691_s1 + $0x10c0] sm:$0xff]  ;;  %9889 = vmatprep.subr.bf16.mxu0 %v13470_v0  ;;  %v13597_v7 = vcombine.low %v749_v60, %v753_v61 }
  0x94   :  { %v617_v3 = vld [vmem:[%s20691_s1 + $0x10e0] sm:$0xff] }
  0x95   :  { %v741_v4 = vld [vmem:[%s20691_s1 + $0x14c0] sm:$0xff]  ;;  %v13462_v8 = vcombine.high %v613_v2, %v617_v3  ;;  %9930 = vmatprep.subr.bf16.mxu1 %v13598_v1  ;;  %v13461_v14 = vcombine.low %v613_v2, %v617_v3 }
  0x96   :  { %v745_v5 = vld [vmem:[%s20691_s1 + $0x14e0] sm:$0xff]  ;;  %9890 = vmatpush1.bf16.msra.mxu0 %v13469_v6  ;;  %9931 = vmatpush1.bf16.msra.mxu1 %v13597_v7 }
  0x97   :  { %v13590_v9 = vcombine.high %v741_v4, %v745_v5  ;;  %v605_v10 = vld [vmem:[%s20691_s1 + $0x1080] sm:$0xff]  ;;  %9891 = vmatprep.subr.bf16.mxu0 %v13462_v8  ;;  %v13589_v15 = vcombine.low %v741_v4, %v745_v5 }
  0x98   :  { %v609_v11 = vld [vmem:[%s20691_s1 + $0x10a0] sm:$0xff] }
  0x99   :  { %v733_v12 = vld [vmem:[%s20691_s1 + $0x1480] sm:$0xff]  ;;  %v13454_v17 = vcombine.high %v605_v10, %v609_v11  ;;  %9932 = vmatprep.subr.bf16.mxu1 %v13590_v9  ;;  %v13453_v24 = vcombine.low %v605_v10, %v609_v11 }
  0x9a   :  { %v737_v13 = vld [vmem:[%s20691_s1 + $0x14a0] sm:$0xff]  ;;  %9892 = vmatpush1.bf16.msra.mxu0 %v13461_v14  ;;  %9933 = vmatpush1.bf16.msra.mxu1 %v13589_v15 }
  0x9b   :  { %v13582_v18 = vcombine.high %v733_v12, %v737_v13  ;;  %v597_v19 = vld [vmem:[%s20691_s1 + $0x1040] sm:$0xff]  ;;  %9893 = vmatprep.subr.bf16.mxu0 %v13454_v17  ;;  %v13581_v25 = vcombine.low %v733_v12, %v737_v13 }
  0x9c   :  { %v601_v21 = vld [vmem:[%s20691_s1 + $0x1060] sm:$0xff] }
  0x9d   :  { %v725_v22 = vld [vmem:[%s20691_s1 + $0x1440] sm:$0xff]  ;;  %v13446_v26 = vcombine.high %v597_v19, %v601_v21  ;;  %9934 = vmatprep.subr.bf16.mxu1 %v13582_v18  ;;  %v13445_v34 = vcombine.low %v597_v19, %v601_v21 }
  0x9e   :  { %v729_v23 = vld [vmem:[%s20691_s1 + $0x1460] sm:$0xff]  ;;  %9894 = vmatpush1.bf16.msra.mxu0 %v13453_v24  ;;  %9935 = vmatpush1.bf16.msra.mxu1 %v13581_v25 }
  0x9f   :  { %v13574_v27 = vcombine.high %v725_v22, %v729_v23  ;;  %v589_v29 = vld [vmem:[%s20691_s1 + $0x1000] sm:$0xff]  ;;  %9895 = vmatprep.subr.bf16.mxu0 %v13446_v26  ;;  %v13573_v35 = vcombine.low %v725_v22, %v729_v23 }
  0xa0   :  { %v593_v30 = vld [vmem:[%s20691_s1 + $0x1020] sm:$0xff] }
  0xa1   :  { %v717_v32 = vld [vmem:[%s20691_s1 + $0x1400] sm:$0xff]  ;;  %v13438_v37 = vcombine.high %v589_v29, %v593_v30  ;;  %9936 = vmatprep.subr.bf16.mxu1 %v13574_v27  ;;  %v13437_v44 = vcombine.low %v589_v29, %v593_v30 }
  0xa2   :  { %v721_v33 = vld [vmem:[%s20691_s1 + $0x1420] sm:$0xff]  ;;  %9896 = vmatpush1.bf16.msra.mxu0 %v13445_v34  ;;  %9937 = vmatpush1.bf16.msra.mxu1 %v13573_v35 }
  0xa3   :  { %v13566_v38 = vcombine.high %v717_v32, %v721_v33  ;;  %v709_v39 = vld [vmem:[%s20691_s1 + $0x13c0] sm:$0xff]  ;;  %9897 = vmatprep.subr.bf16.mxu0 %v13438_v37  ;;  %v13565_v45 = vcombine.low %v717_v32, %v721_v33 }
  0xa4   :  { %v713_v41 = vld [vmem:[%s20691_s1 + $0x13e0] sm:$0xff] }
  0xa5   :  { %v837_v42 = vld [vmem:[%s20691_s1 + $0x17c0] sm:$0xff]  ;;  %v13558_v46 = vcombine.high %v709_v39, %v713_v41  ;;  %9938 = vmatprep.subr.bf16.mxu1 %v13566_v38  ;;  %v13557_v54 = vcombine.low %v709_v39, %v713_v41 }
  0xa6   :  { %v841_v43 = vld [vmem:[%s20691_s1 + $0x17e0] sm:$0xff]  ;;  %9898 = vmatpush1.bf16.msra.mxu0 %v13437_v44  ;;  %9939 = vmatpush1.bf16.msra.mxu1 %v13565_v45 }
  0xa7   :  { %v13686_v47 = vcombine.high %v837_v42, %v841_v43  ;;  %v701_v49 = vld [vmem:[%s20691_s1 + $0x1380] sm:$0xff]  ;;  %9899 = vmatprep.subr.bf16.mxu0 %v13558_v46  ;;  %v13685_v55 = vcombine.low %v837_v42, %v841_v43 }
  0xa8   :  { %v705_v50 = vld [vmem:[%s20691_s1 + $0x13a0] sm:$0xff] }
  0xa9   :  { %v829_v52 = vld [vmem:[%s20691_s1 + $0x1780] sm:$0xff]  ;;  %v13550_v56 = vcombine.high %v701_v49, %v705_v50  ;;  %9940 = vmatprep.subr.bf16.mxu1 %v13686_v47  ;;  %v13549_v0 = vcombine.low %v701_v49, %v705_v50 }
  0xaa   :  { %v833_v53 = vld [vmem:[%s20691_s1 + $0x17a0] sm:$0xff]  ;;  %9900 = vmatpush2.bf16.msra.mxu0 %v13557_v54  ;;  %9941 = vmatpush2.bf16.msra.mxu1 %v13685_v55 }
  0xab   :  { %v13678_v57 = vcombine.high %v829_v52, %v833_v53  ;;  %v693_v60 = vld [vmem:[%s20691_s1 + $0x1340] sm:$0xff]  ;;  %9901 = vmatprep.subr.bf16.mxu0 %v13550_v56  ;;  %v13677_v1 = vcombine.low %v829_v52, %v833_v53 }
  0xac   :  { %v697_v61 = vld [vmem:[%s20691_s1 + $0x1360] sm:$0xff] }
  0xad   :  { %v821_v62 = vld [vmem:[%s20691_s1 + $0x1740] sm:$0xff]  ;;  %v13542_v2 = vcombine.high %v693_v60, %v697_v61  ;;  %9942 = vmatprep.subr.bf16.mxu1 %v13678_v57  ;;  %v13541_v8 = vcombine.low %v693_v60, %v697_v61  ;;  %v37_v61 = vld [vmem:[%s20692_s0 + $0x50] sm:$0xff] }
  0xae   :  { %v825_v63 = vld [vmem:[%s20691_s1 + $0x1760] sm:$0xff]  ;;  %9902 = vmatpush2.bf16.msra.mxu0 %v13549_v0  ;;  %9943 = vmatpush2.bf16.msra.mxu1 %v13677_v1 }
  0xaf   :  { %v13670_v3 = vcombine.high %v821_v62, %v825_v63  ;;  %v685_v4 = vld [vmem:[%s20691_s1 + $0x1300] sm:$0xff]  ;;  %9903 = vmatprep.subr.bf16.mxu0 %v13542_v2  ;;  %v13669_v9 = vcombine.low %v821_v62, %v825_v63 }
  0xb0   :  { %v689_v5 = vld [vmem:[%s20691_s1 + $0x1320] sm:$0xff] }
  0xb1   :  { %v813_v6 = vld [vmem:[%s20691_s1 + $0x1700] sm:$0xff]  ;;  %v13534_v10 = vcombine.high %v685_v4, %v689_v5  ;;  %9944 = vmatprep.subr.bf16.mxu1 %v13670_v3  ;;  %v13533_v17 = vcombine.low %v685_v4, %v689_v5  ;;  %v40_v5 = vld [vmem:[%s20692_s0 + $0x68] sm:$0xff] }
  0xb2   :  { %v817_v7 = vld [vmem:[%s20691_s1 + $0x1720] sm:$0xff]  ;;  %9904 = vmatpush2.bf16.msra.mxu0 %v13541_v8  ;;  %9945 = vmatpush2.bf16.msra.mxu1 %v13669_v9  ;;  %v42_v8 = vld [vmem:[%s20692_s0 + $0x78] sm:$0xff] }
  0xb3   :  { %v13662_v11 = vcombine.high %v813_v6, %v817_v7  ;;  %v677_v12 = vld [vmem:[%s20691_s1 + $0x12c0] sm:$0xff]  ;;  %9905 = vmatprep.subr.bf16.mxu0 %v13534_v10  ;;  %v13661_v18 = vcombine.low %v813_v6, %v817_v7  ;;  %v15597_v6 = vpack.c.bf16 %v37_v61, %v37_v61 }
  0xb4   :  { %v681_v13 = vld [vmem:[%s20691_s1 + $0x12e0] sm:$0xff] }
  0xb5   :  { %v805_v14 = vld [vmem:[%s20691_s1 + $0x16c0] sm:$0xff]  ;;  %v13526_v19 = vcombine.high %v677_v12, %v681_v13  ;;  %9946 = vmatprep.subr.bf16.mxu1 %v13662_v11  ;;  %v13525_v26 = vcombine.low %v677_v12, %v681_v13 }
  0xb6   :  { %v809_v15 = vld [vmem:[%s20691_s1 + $0x16e0] sm:$0xff]  ;;  %9906 = vmatpush2.bf16.msra.mxu0 %v13533_v17  ;;  %9947 = vmatpush2.bf16.msra.mxu1 %v13661_v18  ;;  %v15617_v18 = vpack.c.bf16 %v42_v8, %v42_v8 }
  0xb7   :  { %v13654_v21 = vcombine.high %v805_v14, %v809_v15  ;;  %v669_v22 = vld [vmem:[%s20691_s1 + $0x1280] sm:$0xff]  ;;  %9907 = vmatprep.subr.bf16.mxu0 %v13526_v19  ;;  %v13653_v27 = vcombine.low %v805_v14, %v809_v15  ;;  %v15608_v14 = vpack.c.bf16 %v40_v5, %v40_v5 }
  0xb8   :  { %v673_v23 = vld [vmem:[%s20691_s1 + $0x12a0] sm:$0xff] }
  0xb9   :  { %v797_v24 = vld [vmem:[%s20691_s1 + $0x1680] sm:$0xff]  ;;  %v13518_v29 = vcombine.high %v669_v22, %v673_v23  ;;  %9948 = vmatprep.subr.bf16.mxu1 %v13654_v21  ;;  %v13517_v37 = vcombine.low %v669_v22, %v673_v23 }
  0xba   :  { %v801_v25 = vld [vmem:[%s20691_s1 + $0x16a0] sm:$0xff]  ;;  %9908 = vmatpush2.bf16.msra.mxu0 %v13525_v26  ;;  %9949 = vmatpush2.bf16.msra.mxu1 %v13653_v27 }
  0xbb   :  { %v13646_v30 = vcombine.high %v797_v24, %v801_v25  ;;  %v661_v32 = vld [vmem:[%s20691_s1 + $0x1240] sm:$0xff]  ;;  %9909 = vmatprep.subr.bf16.mxu0 %v13518_v29  ;;  %v13645_v38 = vcombine.low %v797_v24, %v801_v25 }
  0xbc   :  { %v665_v33 = vld [vmem:[%s20691_s1 + $0x1260] sm:$0xff] }
  0xbd   :  { %v789_v34 = vld [vmem:[%s20691_s1 + $0x1640] sm:$0xff]  ;;  %v13510_v39 = vcombine.high %v661_v32, %v665_v33  ;;  %9950 = vmatprep.subr.bf16.mxu1 %v13646_v30  ;;  %v13509_v46 = vcombine.low %v661_v32, %v665_v33 }
  0xbe   :  { %v793_v35 = vld [vmem:[%s20691_s1 + $0x1660] sm:$0xff]  ;;  %9910 = vmatpush2.bf16.msra.mxu0 %v13517_v37  ;;  %9951 = vmatpush2.bf16.msra.mxu1 %v13645_v38 }
  0xbf   :  { %v13638_v41 = vcombine.high %v789_v34, %v793_v35  ;;  %v653_v42 = vld [vmem:[%s20691_s1 + $0x1200] sm:$0xff]  ;;  %9911 = vmatprep.subr.bf16.mxu0 %v13510_v39  ;;  %v13637_v47 = vcombine.low %v789_v34, %v793_v35 }
  0xc0   :  { %v657_v43 = vld [vmem:[%s20691_s1 + $0x1220] sm:$0xff] }
  0xc1   :  { %v781_v44 = vld [vmem:[%s20691_s1 + $0x1600] sm:$0xff]  ;;  %v13502_v49 = vcombine.high %v653_v42, %v657_v43  ;;  %9952 = vmatprep.subr.bf16.mxu1 %v13638_v41  ;;  %v13501_v56 = vcombine.low %v653_v42, %v657_v43 }
  0xc2   :  { %v785_v45 = vld [vmem:[%s20691_s1 + $0x1620] sm:$0xff]  ;;  %9912 = vmatpush2.bf16.msra.mxu0 %v13509_v46  ;;  %9953 = vmatpush2.bf16.msra.mxu1 %v13637_v47 }
  0xc3   :  { %v13630_v50 = vcombine.high %v781_v44, %v785_v45  ;;  %v901_v52 = vld [vmem:[%s20691_s1 + $0x19c0] sm:$0xff]  ;;  %9913 = vmatprep.subr.bf16.mxu0 %v13502_v49  ;;  %v13629_v60 = vcombine.low %v781_v44, %v785_v45 }
  0xc4   :  { %v905_v53 = vld [vmem:[%s20691_s1 + $0x19e0] sm:$0xff] }
  0xc5   :  { %v1029_v54 = vld [vmem:[%s20691_s1 + $0x1dc0] sm:$0xff]  ;;  %v13750_v62 = vcombine.high %v901_v52, %v905_v53  ;;  %9954 = vmatprep.subr.bf16.mxu1 %v13630_v50  ;;  %v13749_v7 = vcombine.low %v901_v52, %v905_v53 }
  0xc6   :  { %v1033_v55 = vld [vmem:[%s20691_s1 + $0x1de0] sm:$0xff]  ;;  %9914 = vmatpush2.bf16.msra.mxu0 %v13501_v56  ;;  %9955 = vmatpush2.bf16.msra.mxu1 %v13629_v60 }
  0xc7   :  { %v35_v57 = vld [vmem:[%s20692_s0 + $0x40] sm:$0xff]  ;;  %v13878_v63 = vcombine.high %v1029_v54, %v1033_v55  ;;  %9965 = vmatprep.subr.bf16.mxu0 %v13750_v62  ;;  %v13877_v9 = vcombine.low %v1029_v54, %v1033_v55 }
  0xc8   :  { %v893_v0 = vld [vmem:[%s20691_s1 + $0x1980] sm:$0xff]  ;;  %v15586_v2 = vpack.c.bf16 %v35_v57, %v35_v57 }
  0xc9   :  { %v897_v1 = vld [vmem:[%s20691_s1 + $0x19a0] sm:$0xff]  ;;  %10006 = vmatprep.subr.bf16.mxu1 %v13878_v63  ;;  %9957 = vmatmul.mubr.bf16.vlgmr.msra.gmra.mxu1 %v15597_v6 }
  0xca   :  { %v1021_v3 = vld [vmem:[%s20691_s1 + $0x1d80] sm:$0xff]  ;;  %v13742_v10 = vcombine.high %v893_v0, %v897_v1  ;;  %9916 = vmatmul.mubr.bf16.vlgmr.msra.gmra.mxu0 %v15586_v2  ;;  %v13741_v19 = vcombine.low %v893_v0, %v897_v1  ;;  %10007 = vmatpush1.bf16.msra.mxu1 %v13877_v9 }
  0xcb   :  { %v1025_v4 = vld [vmem:[%s20691_s1 + $0x1da0] sm:$0xff]  ;;  %9966 = vmatpush1.bf16.msra.mxu0 %v13749_v7  ;;  %9997 = vmatprep.mubr.bf16.mxu0 %v15608_v14 }
  0xcc   :  { %v13870_v11 = vcombine.high %v1021_v3, %v1025_v4  ;;  %v885_v12 = vld [vmem:[%s20691_s1 + $0x1940] sm:$0xff]  ;;  %9967 = vmatprep.subr.bf16.mxu0 %v13742_v10  ;;  %v13869_v21 = vcombine.low %v1021_v3, %v1025_v4  ;;  %10038 = vmatprep.mubr.bf16.mxu1 %v15617_v18 }
  0xcd   :  { %v889_v13 = vld [vmem:[%s20691_s1 + $0x1960] sm:$0xff] }
  0xce   :  { %v1013_v15 = vld [vmem:[%s20691_s1 + $0x1d40] sm:$0xff]  ;;  %v13734_v22 = vcombine.high %v885_v12, %v889_v13  ;;  %10008 = vmatprep.subr.bf16.mxu1 %v13870_v11  ;;  %v13733_v29 = vcombine.low %v885_v12, %v889_v13 }
  0xcf   :  { %v1017_v17 = vld [vmem:[%s20691_s1 + $0x1d60] sm:$0xff]  ;;  %9968 = vmatpush1.bf16.msra.mxu0 %v13741_v19  ;;  %10009 = vmatpush1.bf16.msra.mxu1 %v13869_v21 }
  0xd0   :  { %v13862_v23 = vcombine.high %v1013_v15, %v1017_v17  ;;  %v877_v24 = vld [vmem:[%s20691_s1 + $0x1900] sm:$0xff]  ;;  %9969 = vmatprep.subr.bf16.mxu0 %v13734_v22  ;;  %v13861_v30 = vcombine.low %v1013_v15, %v1017_v17 }
  0xd1   :  { %v881_v25 = vld [vmem:[%s20691_s1 + $0x1920] sm:$0xff] }
  0xd2   :  { %v1005_v26 = vld [vmem:[%s20691_s1 + $0x1d00] sm:$0xff]  ;;  %v13726_v32 = vcombine.high %v877_v24, %v881_v25  ;;  %10010 = vmatprep.subr.bf16.mxu1 %v13862_v23  ;;  %v13725_v39 = vcombine.low %v877_v24, %v881_v25 }
  0xd3   :  { %v1009_v27 = vld [vmem:[%s20691_s1 + $0x1d20] sm:$0xff]  ;;  %9970 = vmatpush1.bf16.msra.mxu0 %v13733_v29  ;;  %10011 = vmatpush1.bf16.msra.mxu1 %v13861_v30 }
  0xd4   :  { %v13854_v33 = vcombine.high %v1005_v26, %v1009_v27  ;;  %v869_v34 = vld [vmem:[%s20691_s1 + $0x18c0] sm:$0xff]  ;;  %9971 = vmatprep.subr.bf16.mxu0 %v13726_v32  ;;  %v13853_v41 = vcombine.low %v1005_v26, %v1009_v27 }
  0xd5   :  { %v873_v35 = vld [vmem:[%s20691_s1 + $0x18e0] sm:$0xff] }
  0xd6   :  { %v997_v37 = vld [vmem:[%s20691_s1 + $0x1cc0] sm:$0xff]  ;;  %v13718_v42 = vcombine.high %v869_v34, %v873_v35  ;;  %10012 = vmatprep.subr.bf16.mxu1 %v13854_v33  ;;  %v13717_v49 = vcombine.low %v869_v34, %v873_v35 }
  0xd7   :  { %v1001_v38 = vld [vmem:[%s20691_s1 + $0x1ce0] sm:$0xff]  ;;  %9972 = vmatpush1.bf16.msra.mxu0 %v13725_v39  ;;  %10013 = vmatpush1.bf16.msra.mxu1 %v13853_v41 }
  0xd8   :  { %v13846_v43 = vcombine.high %v997_v37, %v1001_v38  ;;  %v861_v44 = vld [vmem:[%s20691_s1 + $0x1880] sm:$0xff]  ;;  %9973 = vmatprep.subr.bf16.mxu0 %v13718_v42  ;;  %v13845_v50 = vcombine.low %v997_v37, %v1001_v38 }
  0xd9   :  { %v865_v45 = vld [vmem:[%s20691_s1 + $0x18a0] sm:$0xff] }
  0xda   :  { %v989_v46 = vld [vmem:[%s20691_s1 + $0x1c80] sm:$0xff]  ;;  %v13710_v52 = vcombine.high %v861_v44, %v865_v45  ;;  %10014 = vmatprep.subr.bf16.mxu1 %v13846_v43  ;;  %v13709_v60 = vcombine.low %v861_v44, %v865_v45 }
  0xdb   :  { %v993_v47 = vld [vmem:[%s20691_s1 + $0x1ca0] sm:$0xff]  ;;  %9974 = vmatpush1.bf16.msra.mxu0 %v13717_v49  ;;  %10015 = vmatpush1.bf16.msra.mxu1 %v13845_v50 }
  0xdc   :  { %v13838_v53 = vcombine.high %v989_v46, %v993_v47  ;;  %v853_v54 = vld [vmem:[%s20691_s1 + $0x1840] sm:$0xff]  ;;  %9975 = vmatprep.subr.bf16.mxu0 %v13710_v52  ;;  %v13837_v61 = vcombine.low %v989_v46, %v993_v47 }
  0xdd   :  { %v857_v55 = vld [vmem:[%s20691_s1 + $0x1860] sm:$0xff] }
  0xde   :  { %v981_v56 = vld [vmem:[%s20691_s1 + $0x1c40] sm:$0xff]  ;;  %v13702_v62 = vcombine.high %v853_v54, %v857_v55  ;;  %10016 = vmatprep.subr.bf16.mxu1 %v13838_v53  ;;  %v13701_v5 = vcombine.low %v853_v54, %v857_v55 }
  0xdf   :  { %v985_v57 = vld [vmem:[%s20691_s1 + $0x1c60] sm:$0xff]  ;;  %9976 = vmatpush1.bf16.msra.mxu0 %v13709_v60  ;;  %10017 = vmatpush1.bf16.msra.mxu1 %v13837_v61 }
  0xe0   :  { %v13830_v63 = vcombine.high %v981_v56, %v985_v57  ;;  %v845_v0 = vld [vmem:[%s20691_s1 + $0x1800] sm:$0xff]  ;;  %9977 = vmatprep.subr.bf16.mxu0 %v13702_v62  ;;  %v13829_v7 = vcombine.low %v981_v56, %v985_v57 }
  0xe1   :  { %v849_v1 = vld [vmem:[%s20691_s1 + $0x1820] sm:$0xff] }
  0xe2   :  { %v973_v3 = vld [vmem:[%s20691_s1 + $0x1c00] sm:$0xff]  ;;  %v13694_v8 = vcombine.high %v845_v0, %v849_v1  ;;  %10018 = vmatprep.subr.bf16.mxu1 %v13830_v63  ;;  %v13693_v15 = vcombine.low %v845_v0, %v849_v1 }
  0xe3   :  { %v977_v4 = vld [vmem:[%s20691_s1 + $0x1c20] sm:$0xff]  ;;  %9978 = vmatpush1.bf16.msra.mxu0 %v13701_v5  ;;  %10019 = vmatpush1.bf16.msra.mxu1 %v13829_v7 }
  0xe4   :  { %v13822_v9 = vcombine.high %v973_v3, %v977_v4  ;;  %v965_v10 = vld [vmem:[%s20691_s1 + $0x1bc0] sm:$0xff]  ;;  %9979 = vmatprep.subr.bf16.mxu0 %v13694_v8  ;;  %v13821_v17 = vcombine.low %v973_v3, %v977_v4 }
  0xe5   :  { %v969_v11 = vld [vmem:[%s20691_s1 + $0x1be0] sm:$0xff] }
  0xe6   :  { %v1093_v12 = vld [vmem:[%s20691_s1 + $0x1fc0] sm:$0xff]  ;;  %v13814_v19 = vcombine.high %v965_v10, %v969_v11  ;;  %10020 = vmatprep.subr.bf16.mxu1 %v13822_v9  ;;  %v13813_v26 = vcombine.low %v965_v10, %v969_v11 }
  0xe7   :  { %v1097_v13 = vld [vmem:[%s20691_s1 + $0x1fe0] sm:$0xff]  ;;  %9980 = vmatpush1.bf16.msra.mxu0 %v13693_v15  ;;  %10021 = vmatpush1.bf16.msra.mxu1 %v13821_v17 }
  0xe8   :  { %v13942_v21 = vcombine.high %v1093_v12, %v1097_v13  ;;  %v957_v22 = vld [vmem:[%s20691_s1 + $0x1b80] sm:$0xff]  ;;  %9981 = vmatprep.subr.bf16.mxu0 %v13814_v19  ;;  %v13941_v27 = vcombine.low %v1093_v12, %v1097_v13  ;;  %v1679_v13 = vlaneseq }
  0xe9   :  { %v961_v23 = vld [vmem:[%s20691_s1 + $0x1ba0] sm:$0xff] }
  0xea   :  { %v1085_v24 = vld [vmem:[%s20691_s1 + $0x1f80] sm:$0xff]  ;;  %v13806_v29 = vcombine.high %v957_v22, %v961_v23  ;;  %10022 = vmatprep.subr.bf16.mxu1 %v13942_v21  ;;  %v13805_v37 = vcombine.low %v957_v22, %v961_v23 }
  0xeb   :  { %v1089_v25 = vld [vmem:[%s20691_s1 + $0x1fa0] sm:$0xff]  ;;  %9982 = vmatpush2.bf16.msra.mxu0 %v13813_v26  ;;  %10023 = vmatpush2.bf16.msra.mxu1 %v13941_v27  ;;  %v15778_v26 = vshrl.u32 %v1679_v13, 7 }
  0xec   :  { %v13934_v30 = vcombine.high %v1085_v24, %v1089_v25  ;;  %v949_v32 = vld [vmem:[%s20691_s1 + $0x1b40] sm:$0xff]  ;;  %9983 = vmatprep.subr.bf16.mxu0 %v13806_v29  ;;  %v13933_v38 = vcombine.low %v1085_v24, %v1089_v25 }
  0xed   :  { %v953_v33 = vld [vmem:[%s20691_s1 + $0x1b60] sm:$0xff] }
  0xee   :  { %v1077_v34 = vld [vmem:[%s20691_s1 + $0x1f40] sm:$0xff]  ;;  %v13798_v39 = vcombine.high %v949_v32, %v953_v33  ;;  %10024 = vmatprep.subr.bf16.mxu1 %v13934_v30  ;;  %v13797_v46 = vcombine.low %v949_v32, %v953_v33 }
  0xef   :  { %v1081_v35 = vld [vmem:[%s20691_s1 + $0x1f60] sm:$0xff]  ;;  %9984 = vmatpush2.bf16.msra.mxu0 %v13805_v37  ;;  %10025 = vmatpush2.bf16.msra.mxu1 %v13933_v38  ;;  %v1681_v38 = vsub.s32 0, %v15778_v26 }
  0xf0   :  { %v13926_v41 = vcombine.high %v1077_v34, %v1081_v35  ;;  %v941_v42 = vld [vmem:[%s20691_s1 + $0x1b00] sm:$0xff]  ;;  %9985 = vmatprep.subr.bf16.mxu0 %v13798_v39  ;;  %v13925_v47 = vcombine.low %v1077_v34, %v1081_v35 }
  0xf1   :  { %v945_v43 = vld [vmem:[%s20691_s1 + $0x1b20] sm:$0xff] }
  0xf2   :  { %v1069_v44 = vld [vmem:[%s20691_s1 + $0x1f00] sm:$0xff]  ;;  %v13790_v49 = vcombine.high %v941_v42, %v945_v43  ;;  %10026 = vmatprep.subr.bf16.mxu1 %v13926_v41  ;;  %v13789_v56 = vcombine.low %v941_v42, %v945_v43  ;;  %v41_v43 = vld [vmem:[%s20692_s0 + $0x70] sm:$0xff] }
  0xf3   :  { %v1073_v45 = vld [vmem:[%s20691_s1 + $0x1f20] sm:$0xff]  ;;  %9986 = vmatpush2.bf16.msra.mxu0 %v13797_v46  ;;  %10027 = vmatpush2.bf16.msra.mxu1 %v13925_v47 }
  0xf4   :  { %v13918_v50 = vcombine.high %v1069_v44, %v1073_v45  ;;  %v933_v52 = vld [vmem:[%s20691_s1 + $0x1ac0] sm:$0xff]  ;;  %9987 = vmatprep.subr.bf16.mxu0 %v13790_v49  ;;  %v13917_v57 = vcombine.low %v1069_v44, %v1073_v45 }
  0xf5   :  { %v937_v53 = vld [vmem:[%s20691_s1 + $0x1ae0] sm:$0xff] }
  0xf6   :  { %v1061_v54 = vld [vmem:[%s20691_s1 + $0x1ec0] sm:$0xff]  ;;  %v13782_v60 = vcombine.high %v933_v52, %v937_v53  ;;  %10028 = vmatprep.subr.bf16.mxu1 %v13918_v50  ;;  %v13781_v3 = vcombine.low %v933_v52, %v937_v53  ;;  %v44_v53 = vld [vmem:[%s20692_s0 + $0x88] sm:$0xff] }
  0xf7   :  { %v1065_v55 = vld [vmem:[%s20691_s1 + $0x1ee0] sm:$0xff]  ;;  %9988 = vmatpush2.bf16.msra.mxu0 %v13789_v56  ;;  %10029 = vmatpush2.bf16.msra.mxu1 %v13917_v57  ;;  %v46_v57 = vld [vmem:[%s20692_s0 + $0x98] sm:$0xff] }
  0xf8   :  { %v13910_v61 = vcombine.high %v1061_v54, %v1065_v55  ;;  %v925_v62 = vld [vmem:[%s20691_s1 + $0x1a80] sm:$0xff]  ;;  %9989 = vmatprep.subr.bf16.mxu0 %v13782_v60  ;;  %v13909_v4 = vcombine.low %v1061_v54, %v1065_v55  ;;  %v15824_v55 = vpack.c.bf16 %v41_v43, %v41_v43 }
  0xf9   :  { %v929_v63 = vld [vmem:[%s20691_s1 + $0x1aa0] sm:$0xff] }
  0xfa   :  { %v1053_v0 = vld [vmem:[%s20691_s1 + $0x1e80] sm:$0xff]  ;;  %v13774_v5 = vcombine.high %v925_v62, %v929_v63  ;;  %10030 = vmatprep.subr.bf16.mxu1 %v13910_v61  ;;  %v13773_v12 = vcombine.low %v925_v62, %v929_v63 }
  0xfb   :  { %v1057_v1 = vld [vmem:[%s20691_s1 + $0x1ea0] sm:$0xff]  ;;  %9990 = vmatpush2.bf16.msra.mxu0 %v13781_v3  ;;  %10031 = vmatpush2.bf16.msra.mxu1 %v13909_v4 }
  0xfc   :  { %v13902_v7 = vcombine.high %v1053_v0, %v1057_v1  ;;  %v917_v8 = vld [vmem:[%s20691_s1 + $0x1a40] sm:$0xff]  ;;  %9991 = vmatprep.subr.bf16.mxu0 %v13774_v5  ;;  %v13901_v15 = vcombine.low %v1053_v0, %v1057_v1  ;;  %v15835_v1 = vpack.c.bf16 %v44_v53, %v44_v53 }
  0xfd   :  { %v921_v9 = vld [vmem:[%s20691_s1 + $0x1a60] sm:$0xff] }
  0xfe   :  { %v1045_v10 = vld [vmem:[%s20691_s1 + $0x1e40] sm:$0xff]  ;;  %v13766_v17 = vcombine.high %v917_v8, %v921_v9  ;;  %10032 = vmatprep.subr.bf16.mxu1 %v13902_v7  ;;  %v13765_v25 = vcombine.low %v917_v8, %v921_v9  ;;  %v15844_v7 = vpack.c.bf16 %v46_v57, %v46_v57 }
  0xff   :  { %v1049_v11 = vld [vmem:[%s20691_s1 + $0x1e60] sm:$0xff]  ;;  %9992 = vmatpush2.bf16.msra.mxu0 %v13773_v12  ;;  %10033 = vmatpush2.bf16.msra.mxu1 %v13901_v15 }
 0x100   :  { %v13894_v19 = vcombine.high %v1045_v10, %v1049_v11  ;;  %v909_v21 = vld [vmem:[%s20691_s1 + $0x1a00] sm:$0xff]  ;;  %9993 = vmatprep.subr.bf16.mxu0 %v13766_v17  ;;  %v13893_v27 = vcombine.low %v1045_v10, %v1049_v11 }
 0x101   :  { %v913_v22 = vld [vmem:[%s20691_s1 + $0x1a20] sm:$0xff] }
 0x102   :  { %v1037_v23 = vld [vmem:[%s20691_s1 + $0x1e00] sm:$0xff]  ;;  %v13758_v29 = vcombine.high %v909_v21, %v913_v22  ;;  %10034 = vmatprep.subr.bf16.mxu1 %v13894_v19  ;;  %v13757_v37 = vcombine.low %v909_v21, %v913_v22 }
 0x103   :  { %v1041_v24 = vld [vmem:[%s20691_s1 + $0x1e20] sm:$0xff]  ;;  %9994 = vmatpush2.bf16.msra.mxu0 %v13765_v25  ;;  %10035 = vmatpush2.bf16.msra.mxu1 %v13893_v27 }
 0x104   :  { %v13886_v30 = vcombine.high %v1037_v23, %v1041_v24  ;;  %v1157_v32 = vld [vmem:[%s20691_s1 + $0x21c0] sm:$0xff]  ;;  %9995 = vmatprep.subr.bf16.mxu0 %v13758_v29  ;;  %v13885_v41 = vcombine.low %v1037_v23, %v1041_v24 }
 0x105   :  { %v1161_v33 = vld [vmem:[%s20691_s1 + $0x21e0] sm:$0xff] }
 0x106   :  { %v1285_v34 = vld [vmem:[%s20691_s1 + $0x25c0] sm:$0xff]  ;;  %v14006_v44 = vcombine.high %v1157_v32, %v1161_v33  ;;  %10036 = vmatprep.subr.bf16.mxu1 %v13886_v30  ;;  %v14005_v56 = vcombine.low %v1157_v32, %v1161_v33 }
 0x107   :  { %v1289_v35 = vld [vmem:[%s20691_s1 + $0x25e0] sm:$0xff]  ;;  %9996 = vmatpush2.bf16.msra.mxu0 %v13757_v37  ;;  %10037 = vmatpush2.bf16.msra.mxu1 %v13885_v41  ;;  %v9794_v9 = vpop.f32.mrf.mxu1 }
 0x108   :  { %v39_v39 = vld [vmem:[%s20692_s0 + $0x60] sm:$0xff]  ;;  %v14134_v45 = vcombine.high %v1285_v34, %v1289_v35  ;;  %10047 = vmatprep.subr.bf16.mxu0 %v14006_v44  ;;  %v14133_v60 = vcombine.low %v1285_v34, %v1289_v35  ;;  %v9753_v3 = vpop.f32.mrf.mxu0 }
 0x109   :  { %v15799_v42 = vld [vmem:[%s20693_s2] sm:$0xff]  ;;  %v15810_v49 = vpack.c.bf16 %v39_v39, %v39_v39  ;;  %v15851_v17 = vpop.f32.mrf.mxu1 }
 0x10a   :  { %v1149_v46 = vld [vmem:[%s20691_s1 + $0x2180] sm:$0xff]  ;;  %v1682_v54 = vrot.slane %v15799_v42, %v1681_v38  ;;  %10088 = vmatprep.subr.bf16.mxu1 %v14134_v45  ;;  %10039 = vmatmul.mubr.bf16.vlgmr.msra.gmra.mxu1 %v15824_v55  ;;  %v15847_v11 = vpop.f32.mrf.mxu0 }
 0x10b   :  { %v1153_v47 = vld [vmem:[%s20691_s1 + $0x21a0] sm:$0xff]  ;;  %9998 = vmatmul.mubr.bf16.vlgmr.msra.gmra.mxu0 %v15810_v49  ;;  %10089 = vmatpush1.bf16.msra.mxu1 %v14133_v60  ;;  %v9798_v27 = vpop.f32.mrf.mxu1 }
 0x10c   :  { %v1277_v50 = vld [vmem:[%s20691_s1 + $0x2580] sm:$0xff]  ;;  %v13998_v61 = vcombine.high %v1149_v46, %v1153_v47  ;;  %v9754_v8 = vadd.f32 %v9753_v3, %v1682_v54  ;;  %10048 = vmatpush1.bf16.msra.mxu0 %v14005_v56  ;;  %v13997_v10 = vcombine.low %v1149_v46, %v1153_v47  ;;  %10079 = vmatprep.mubr.bf16.mxu0 %v15835_v1  ;;  %v9757_v23 = vpop.f32.mrf.mxu0 }
 0x10d   :  { %v1281_v52 = vld [vmem:[%s20691_s1 + $0x25a0] sm:$0xff]  ;;  %10120 = vmatprep.mubr.bf16.mxu1 %v15844_v7  ;;  %v9799_v34 = vpop.f32.mrf.mxu1 }
 0x10e   :  { %v14126_v62 = vcombine.high %v1277_v50, %v1281_v52  ;;  %v1141_v63 = vld [vmem:[%s20691_s1 + $0x2140] sm:$0xff]  ;;  %10049 = vmatprep.subr.bf16.mxu0 %v13998_v61  ;;  %v14125_v12 = vcombine.low %v1277_v50, %v1281_v52  ;;  %v15849_v15 = vadd.f32 %v9794_v9, %v9754_v8  ;;  %v9758_v30 = vpop.f32.mrf.mxu0 }
 0x10f   :  { %v1145_v0 = vld [vmem:[%s20691_s1 + $0x2160] sm:$0xff] }
 0x110   :  { %v1269_v4 = vld [vmem:[%s20691_s1 + $0x2540] sm:$0xff]  ;;  %v13990_v13 = vcombine.high %v1141_v63, %v1145_v0  ;;  %10090 = vmatprep.subr.bf16.mxu1 %v14126_v62  ;;  %10050 = vmatpush1.bf16.msra.mxu0 %v13997_v10  ;;  %v13989_v29 = vcombine.low %v1141_v63, %v1145_v0 }
 0x111   :  { %v1273_v5 = vld [vmem:[%s20691_s1 + $0x2560] sm:$0xff]  ;;  %10091 = vmatpush1.bf16.msra.mxu1 %v14125_v12 }
 0x112   :  { %v14118_v19 = vcombine.high %v1269_v4, %v1273_v5  ;;  %v1133_v21 = vld [vmem:[%s20691_s1 + $0x2100] sm:$0xff]  ;;  %10051 = vmatprep.subr.bf16.mxu0 %v13990_v13  ;;  %v14117_v32 = vcombine.low %v1269_v4, %v1273_v5 }
 0x113   :  { %v1137_v22 = vld [vmem:[%s20691_s1 + $0x2120] sm:$0xff] }
 0x114   :  { %v1261_v24 = vld [vmem:[%s20691_s1 + $0x2500] sm:$0xff]  ;;  %v13982_v33 = vcombine.high %v1133_v21, %v1137_v22  ;;  %10092 = vmatprep.subr.bf16.mxu1 %v14118_v19  ;;  %10052 = vmatpush1.bf16.msra.mxu0 %v13989_v29  ;;  %v13981_v44 = vcombine.low %v1133_v21, %v1137_v22 }
 0x115   :  { %v1265_v25 = vld [vmem:[%s20691_s1 + $0x2520] sm:$0xff]  ;;  %10093 = vmatpush1.bf16.msra.mxu1 %v14117_v32 }
 0x116   :  { %v14110_v35 = vcombine.high %v1261_v24, %v1265_v25  ;;  %v1125_v37 = vld [vmem:[%s20691_s1 + $0x20c0] sm:$0xff]  ;;  %10053 = vmatprep.subr.bf16.mxu0 %v13982_v33  ;;  %v14109_v45 = vcombine.low %v1261_v24, %v1265_v25 }
 0x117   :  { %v1129_v39 = vld [vmem:[%s20691_s1 + $0x20e0] sm:$0xff] }
 0x118   :  { %v1253_v41 = vld [vmem:[%s20691_s1 + $0x24c0] sm:$0xff]  ;;  %v13974_v46 = vcombine.high %v1125_v37, %v1129_v39  ;;  %10094 = vmatprep.subr.bf16.mxu1 %v14110_v35  ;;  %10054 = vmatpush1.bf16.msra.mxu0 %v13981_v44  ;;  %v13973_v56 = vcombine.low %v1125_v37, %v1129_v39 }
 0x119   :  { %v1257_v43 = vld [vmem:[%s20691_s1 + $0x24e0] sm:$0xff]  ;;  %10095 = vmatpush1.bf16.msra.mxu1 %v14109_v45 }
 0x11a   :  { %v14102_v47 = vcombine.high %v1253_v41, %v1257_v43  ;;  %v1117_v50 = vld [vmem:[%s20691_s1 + $0x2080] sm:$0xff]  ;;  %10055 = vmatprep.subr.bf16.mxu0 %v13974_v46  ;;  %v14101_v57 = vcombine.low %v1253_v41, %v1257_v43 }
 0x11b   :  { %v1121_v52 = vld [vmem:[%s20691_s1 + $0x20a0] sm:$0xff] }
 0x11c   :  { %v1245_v53 = vld [vmem:[%s20691_s1 + $0x2480] sm:$0xff]  ;;  %v13966_v60 = vcombine.high %v1117_v50, %v1121_v52  ;;  %10096 = vmatprep.subr.bf16.mxu1 %v14102_v47  ;;  %10056 = vmatpush1.bf16.msra.mxu0 %v13973_v56  ;;  %v13965_v4 = vcombine.low %v1117_v50, %v1121_v52 }
 0x11d   :  { %v1249_v54 = vld [vmem:[%s20691_s1 + $0x24a0] sm:$0xff]  ;;  %10097 = vmatpush1.bf16.msra.mxu1 %v14101_v57 }
 0x11e   :  { %v14094_v61 = vcombine.high %v1245_v53, %v1249_v54  ;;  %v1109_v62 = vld [vmem:[%s20691_s1 + $0x2040] sm:$0xff]  ;;  %10057 = vmatprep.subr.bf16.mxu0 %v13966_v60  ;;  %v14093_v5 = vcombine.low %v1245_v53, %v1249_v54 }
 0x11f   :  { %v1113_v63 = vld [vmem:[%s20691_s1 + $0x2060] sm:$0xff] }
 0x120   :  { %v1237_v0 = vld [vmem:[%s20691_s1 + $0x2440] sm:$0xff]  ;;  %v13958_v8 = vcombine.high %v1109_v62, %v1113_v63  ;;  %10098 = vmatprep.subr.bf16.mxu1 %v14094_v61  ;;  %10058 = vmatpush1.bf16.msra.mxu0 %v13965_v4  ;;  %v13957_v21 = vcombine.low %v1109_v62, %v1113_v63 }
 0x121   :  { %v1241_v3 = vld [vmem:[%s20691_s1 + $0x2460] sm:$0xff]  ;;  %10099 = vmatpush1.bf16.msra.mxu1 %v14093_v5 }
 0x122   :  { %v14086_v9 = vcombine.high %v1237_v0, %v1241_v3  ;;  %v1101_v10 = vld [vmem:[%s20691_s1 + $0x2000] sm:$0xff]  ;;  %10059 = vmatprep.subr.bf16.mxu0 %v13958_v8  ;;  %v14085_v22 = vcombine.low %v1237_v0, %v1241_v3 }
 0x123   :  { %v1105_v12 = vld [vmem:[%s20691_s1 + $0x2020] sm:$0xff] }
 0x124   :  { %v1229_v13 = vld [vmem:[%s20691_s1 + $0x2400] sm:$0xff]  ;;  %v13950_v23 = vcombine.high %v1101_v10, %v1105_v12  ;;  %10100 = vmatprep.subr.bf16.mxu1 %v14086_v9  ;;  %10060 = vmatpush1.bf16.msra.mxu0 %v13957_v21  ;;  %v13949_v32 = vcombine.low %v1101_v10, %v1105_v12 }
 0x125   :  { %v1233_v19 = vld [vmem:[%s20691_s1 + $0x2420] sm:$0xff]  ;;  %10101 = vmatpush1.bf16.msra.mxu1 %v14085_v22 }
 0x126   :  { %v14078_v24 = vcombine.high %v1229_v13, %v1233_v19  ;;  %v1221_v25 = vld [vmem:[%s20691_s1 + $0x23c0] sm:$0xff]  ;;  %10061 = vmatprep.subr.bf16.mxu0 %v13950_v23  ;;  %v14077_v33 = vcombine.low %v1229_v13, %v1233_v19 }
 0x127   :  { %v1225_v27 = vld [vmem:[%s20691_s1 + $0x23e0] sm:$0xff] }
 0x128   :  { %v1349_v29 = vld [vmem:[%s20691_s1 + $0x27c0] sm:$0xff]  ;;  %v14070_v34 = vcombine.high %v1221_v25, %v1225_v27  ;;  %10102 = vmatprep.subr.bf16.mxu1 %v14078_v24  ;;  %10062 = vmatpush1.bf16.msra.mxu0 %v13949_v32  ;;  %v14069_v44 = vcombine.low %v1221_v25, %v1225_v27 }
 0x129   :  { %v1353_v30 = vld [vmem:[%s20691_s1 + $0x27e0] sm:$0xff]  ;;  %10103 = vmatpush1.bf16.msra.mxu1 %v14077_v33 }
 0x12a   :  { %v14198_v35 = vcombine.high %v1349_v29, %v1353_v30  ;;  %v1213_v37 = vld [vmem:[%s20691_s1 + $0x2380] sm:$0xff]  ;;  %10063 = vmatprep.subr.bf16.mxu0 %v14070_v34  ;;  %v14197_v45 = vcombine.low %v1349_v29, %v1353_v30 }
 0x12b   :  { %v1217_v39 = vld [vmem:[%s20691_s1 + $0x23a0] sm:$0xff] }
 0x12c   :  { %v1341_v41 = vld [vmem:[%s20691_s1 + $0x2780] sm:$0xff]  ;;  %v14062_v46 = vcombine.high %v1213_v37, %v1217_v39  ;;  %10104 = vmatprep.subr.bf16.mxu1 %v14198_v35  ;;  %10064 = vmatpush2.bf16.msra.mxu0 %v14069_v44  ;;  %v14061_v56 = vcombine.low %v1213_v37, %v1217_v39 }
 0x12d   :  { %v1345_v43 = vld [vmem:[%s20691_s1 + $0x27a0] sm:$0xff]  ;;  %10105 = vmatpush2.bf16.msra.mxu1 %v14197_v45 }
 0x12e   :  { %v14190_v47 = vcombine.high %v1341_v41, %v1345_v43  ;;  %v1205_v50 = vld [vmem:[%s20691_s1 + $0x2340] sm:$0xff]  ;;  %10065 = vmatprep.subr.bf16.mxu0 %v14062_v46  ;;  %v14189_v57 = vcombine.low %v1341_v41, %v1345_v43 }
 0x12f   :  { %v1209_v52 = vld [vmem:[%s20691_s1 + $0x2360] sm:$0xff] }
 0x130   :  { %v1333_v53 = vld [vmem:[%s20691_s1 + $0x2740] sm:$0xff]  ;;  %v14054_v60 = vcombine.high %v1205_v50, %v1209_v52  ;;  %10106 = vmatprep.subr.bf16.mxu1 %v14190_v47  ;;  %10066 = vmatpush2.bf16.msra.mxu0 %v14061_v56  ;;  %v14053_v4 = vcombine.low %v1205_v50, %v1209_v52  ;;  %v1685_v56 = vsub.s32 1, %v15778_v26 }
 0x131   :  { %v1337_v54 = vld [vmem:[%s20691_s1 + $0x2760] sm:$0xff]  ;;  %10107 = vmatpush2.bf16.msra.mxu1 %v14189_v57 }
 0x132   :  { %v14182_v61 = vcombine.high %v1333_v53, %v1337_v54  ;;  %v1197_v62 = vld [vmem:[%s20691_s1 + $0x2300] sm:$0xff]  ;;  %10067 = vmatprep.subr.bf16.mxu0 %v14054_v60  ;;  %v14181_v5 = vcombine.low %v1333_v53, %v1337_v54 }
 0x133   :  { %v1201_v63 = vld [vmem:[%s20691_s1 + $0x2320] sm:$0xff] }
 0x134   :  { %v1325_v0 = vld [vmem:[%s20691_s1 + $0x2700] sm:$0xff]  ;;  %v14046_v8 = vcombine.high %v1197_v62, %v1201_v63  ;;  %10108 = vmatprep.subr.bf16.mxu1 %v14182_v61  ;;  %10068 = vmatpush2.bf16.msra.mxu0 %v14053_v4  ;;  %v14045_v21 = vcombine.low %v1197_v62, %v1201_v63 }
 0x135   :  { %v1329_v3 = vld [vmem:[%s20691_s1 + $0x2720] sm:$0xff]  ;;  %10109 = vmatpush2.bf16.msra.mxu1 %v14181_v5  ;;  %v1686_v5 = vrot.slane %v15799_v42, %v1685_v56 }
 0x136   :  { %v14174_v9 = vcombine.high %v1325_v0, %v1329_v3  ;;  %v1189_v10 = vld [vmem:[%s20691_s1 + $0x22c0] sm:$0xff]  ;;  %10069 = vmatprep.subr.bf16.mxu0 %v14046_v8  ;;  %v14173_v22 = vcombine.low %v1325_v0, %v1329_v3 }
 0x137   :  { %v1193_v12 = vld [vmem:[%s20691_s1 + $0x22e0] sm:$0xff] }
 0x138   :  { %v1317_v13 = vld [vmem:[%s20691_s1 + $0x26c0] sm:$0xff]  ;;  %v14038_v23 = vcombine.high %v1189_v10, %v1193_v12  ;;  %10110 = vmatprep.subr.bf16.mxu1 %v14174_v9  ;;  %10070 = vmatpush2.bf16.msra.mxu0 %v14045_v21  ;;  %v14037_v32 = vcombine.low %v1189_v10, %v1193_v12  ;;  %v45_v12 = vld [vmem:[%s20692_s0 + $0x90] sm:$0xff] }
 0x139   :  { %v1321_v19 = vld [vmem:[%s20691_s1 + $0x26e0] sm:$0xff]  ;;  %10111 = vmatpush2.bf16.msra.mxu1 %v14173_v22 }
 0x13a   :  { %v14166_v24 = vcombine.high %v1317_v13, %v1321_v19  ;;  %v1181_v25 = vld [vmem:[%s20691_s1 + $0x2280] sm:$0xff]  ;;  %10071 = vmatprep.subr.bf16.mxu0 %v14038_v23  ;;  %v14165_v33 = vcombine.low %v1317_v13, %v1321_v19 }
 0x13b   :  { %v1185_v27 = vld [vmem:[%s20691_s1 + $0x22a0] sm:$0xff] }
 0x13c   :  { %v1309_v29 = vld [vmem:[%s20691_s1 + $0x2680] sm:$0xff]  ;;  %v14030_v34 = vcombine.high %v1181_v25, %v1185_v27  ;;  %10112 = vmatprep.subr.bf16.mxu1 %v14166_v24  ;;  %10072 = vmatpush2.bf16.msra.mxu0 %v14037_v32  ;;  %v14029_v44 = vcombine.low %v1181_v25, %v1185_v27  ;;  %v48_v25 = vld [vmem:[%s20692_s0 + $0xa8] sm:$0xff]  ;;  %v9756_v27 = vadd.f32 %v15847_v11, %v1686_v5  ;;  %v50_v32 = vld [vmem:[%s20692_s0 + $0xb8] sm:$0xff] }
 0x13d   :  { %v1313_v30 = vld [vmem:[%s20691_s1 + $0x26a0] sm:$0xff]  ;;  %10113 = vmatpush2.bf16.msra.mxu1 %v14165_v33 }
 0x13e   :  { %v14158_v35 = vcombine.high %v1309_v29, %v1313_v30  ;;  %v1173_v37 = vld [vmem:[%s20691_s1 + $0x2240] sm:$0xff]  ;;  %10073 = vmatprep.subr.bf16.mxu0 %v14030_v34  ;;  %v14157_v45 = vcombine.low %v1309_v29, %v1313_v30  ;;  %v16051_v29 = vpack.c.bf16 %v45_v12, %v45_v12 }
 0x13f   :  { %v1177_v39 = vld [vmem:[%s20691_s1 + $0x2260] sm:$0xff] }
 0x140   :  { %v1301_v41 = vld [vmem:[%s20691_s1 + $0x2640] sm:$0xff]  ;;  %v14022_v46 = vcombine.high %v1173_v37, %v1177_v39  ;;  %10114 = vmatprep.subr.bf16.mxu1 %v14158_v35  ;;  %10074 = vmatpush2.bf16.msra.mxu0 %v14029_v44  ;;  %v14021_v57 = vcombine.low %v1173_v37, %v1177_v39  ;;  %v16062_v39 = vpack.c.bf16 %v48_v25, %v48_v25 }
 0x141   :  { %v1305_v43 = vld [vmem:[%s20691_s1 + $0x2660] sm:$0xff]  ;;  %10115 = vmatpush2.bf16.msra.mxu1 %v14157_v45  ;;  %v16071_v45 = vpack.c.bf16 %v50_v32, %v50_v32 }
 0x142   :  { %v14150_v47 = vcombine.high %v1301_v41, %v1305_v43  ;;  %v1165_v50 = vld [vmem:[%s20691_s1 + $0x2200] sm:$0xff]  ;;  %10075 = vmatprep.subr.bf16.mxu0 %v14022_v46  ;;  %v14149_v60 = vcombine.low %v1301_v41, %v1305_v43  ;;  %v9797_v46 = vadd.f32 %v15851_v17, %v9756_v27 }
 0x143   :  { %v1169_v52 = vld [vmem:[%s20691_s1 + $0x2220] sm:$0xff] }
 0x144   :  { %v1293_v53 = vld [vmem:[%s20691_s1 + $0x2600] sm:$0xff]  ;;  %v14014_v61 = vcombine.high %v1165_v50, %v1169_v52  ;;  %10116 = vmatprep.subr.bf16.mxu1 %v14150_v47  ;;  %10076 = vmatpush2.bf16.msra.mxu0 %v14021_v57  ;;  %v14013_v8 = vcombine.low %v1165_v50, %v1169_v52 }
 0x145   :  { %v1297_v54 = vld [vmem:[%s20691_s1 + $0x2620] sm:$0xff]  ;;  %10117 = vmatpush2.bf16.msra.mxu1 %v14149_v60 }
 0x146   :  { %v14142_v62 = vcombine.high %v1293_v53, %v1297_v54  ;;  %v1413_v63 = vld [vmem:[%s20691_s1 + $0x29c0] sm:$0xff]  ;;  %10077 = vmatprep.subr.bf16.mxu0 %v14014_v61  ;;  %v14141_v10 = vcombine.low %v1293_v53, %v1297_v54 }
 0x147   :  { %v1417_v0 = vld [vmem:[%s20691_s1 + $0x29e0] sm:$0xff] }
 0x148   :  { %v1541_v3 = vld [vmem:[%s20691_s1 + $0x2dc0] sm:$0xff]  ;;  %v14262_v13 = vcombine.high %v1413_v63, %v1417_v0  ;;  %10118 = vmatprep.subr.bf16.mxu1 %v14142_v62  ;;  %10078 = vmatpush2.bf16.msra.mxu0 %v14013_v8  ;;  %v14261_v30 = vcombine.low %v1413_v63, %v1417_v0  ;;  %v9876_v50 = vpop.f32.mrf.mxu1 }
 0x149   :  { %v1545_v4 = vld [vmem:[%s20691_s1 + $0x2de0] sm:$0xff]  ;;  %10119 = vmatpush2.bf16.msra.mxu1 %v14141_v10  ;;  %v9835_v41 = vpop.f32.mrf.mxu0 }
 0x14a   :  { %v43_v9 = vld [vmem:[%s20692_s0 + $0x80] sm:$0xff]  ;;  %v14390_v19 = vcombine.high %v1541_v3, %v1545_v4  ;;  %10129 = vmatprep.subr.bf16.mxu0 %v14262_v13  ;;  %v14389_v33 = vcombine.low %v1541_v3, %v1545_v4  ;;  %v9836_v47 = vadd.f32 %v9835_v41, %v15849_v15  ;;  %v9878_v62 = vpop.f32.mrf.mxu1 }
 0x14b   :  { %v1405_v42 = vld [vmem:[%s20691_s1 + $0x2980] sm:$0xff]  ;;  %v16039_v22 = vpack.c.bf16 %v43_v9, %v43_v9  ;;  %v9837_v53 = vpop.f32.mrf.mxu0 }
 0x14c   :  { %v1409_v21 = vld [vmem:[%s20691_s1 + $0x29a0] sm:$0xff]  ;;  %10170 = vmatprep.subr.bf16.mxu1 %v14390_v19  ;;  %10121 = vmatmul.mubr.bf16.vlgmr.msra.gmra.mxu1 %v16051_v29  ;;  %v16076_v60 = vadd.f32 %v9876_v50, %v9836_v47  ;;  %v9838_v61 = vadd.f32 %v9837_v53, %v9797_v46  ;;  %v9880_v8 = vpop.f32.mrf.mxu1 }
 0x14d   :  { %v1533_v23 = vld [vmem:[%s20691_s1 + $0x2d80] sm:$0xff]  ;;  %v14254_v34 = vcombine.high %v1405_v42, %v1409_v21  ;;  %10080 = vmatmul.mubr.bf16.vlgmr.msra.gmra.mxu0 %v16039_v22  ;;  %v14253_v52 = vcombine.low %v1405_v42, %v1409_v21  ;;  %10171 = vmatpush1.bf16.msra.mxu1 %v14389_v33  ;;  %v9839_v0 = vpop.f32.mrf.mxu0 }
 0x14e   :  { %v1537_v24 = vld [vmem:[%s20691_s1 + $0x2da0] sm:$0xff]  ;;  %10130 = vmatpush1.bf16.msra.mxu0 %v14261_v30  ;;  %10161 = vmatprep.mubr.bf16.mxu0 %v16062_v39  ;;  %v16092_v5 = vadd.f32 %v9878_v62, %v9838_v61  ;;  %v9881_v19 = vpop.f32.mrf.mxu1 }
 0x14f   :  { %v14382_v35 = vcombine.high %v1533_v23, %v1537_v24  ;;  %v1397_v37 = vld [vmem:[%s20691_s1 + $0x2940] sm:$0xff]  ;;  %10131 = vmatprep.subr.bf16.mxu0 %v14254_v34  ;;  %v14381_v54 = vcombine.low %v1533_v23, %v1537_v24  ;;  %10202 = vmatprep.mubr.bf16.mxu1 %v16071_v45  ;;  %v9840_v10 = vpop.f32.mrf.mxu0 }
 0x150   :  { %v1401_v11 = vld [vmem:[%s20691_s1 + $0x2960] sm:$0xff] }
 0x151   :  { %v1525_v43 = vld [vmem:[%s20691_s1 + $0x2d40] sm:$0xff]  ;;  %v14246_v57 = vcombine.high %v1397_v37, %v1401_v11  ;;  %10172 = vmatprep.subr.bf16.mxu1 %v14382_v35  ;;  %v14245_v9 = vcombine.low %v1397_v37, %v1401_v11 }
 0x152   :  { %v1529_v44 = vld [vmem:[%s20691_s1 + $0x2d60] sm:$0xff]  ;;  %10132 = vmatpush1.bf16.msra.mxu0 %v14253_v52  ;;  %10173 = vmatpush1.bf16.msra.mxu1 %v14381_v54 }
 0x153   :  { %v14374_v63 = vcombine.high %v1525_v43, %v1529_v44  ;;  %v1389_v15 = vld [vmem:[%s20691_s1 + $0x2900] sm:$0xff]  ;;  %10133 = vmatprep.subr.bf16.mxu0 %v14246_v57  ;;  %v14373_v12 = vcombine.low %v1525_v43, %v1529_v44 }
 0x154   :  { %v1393_v17 = vld [vmem:[%s20691_s1 + $0x2920] sm:$0xff] }
 0x155   :  { %v1517_v3 = vld [vmem:[%s20691_s1 + $0x2d00] sm:$0xff]  ;;  %v14238_v13 = vcombine.high %v1389_v15, %v1393_v17  ;;  %10174 = vmatprep.subr.bf16.mxu1 %v14374_v63  ;;  %v14237_v27 = vcombine.low %v1389_v15, %v1393_v17 }
 0x156   :  { %v1521_v4 = vld [vmem:[%s20691_s1 + $0x2d20] sm:$0xff]  ;;  %10134 = vmatpush1.bf16.msra.mxu0 %v14245_v9  ;;  %10175 = vmatpush1.bf16.msra.mxu1 %v14373_v12 }
 0x157   :  { %v14366_v42 = vcombine.high %v1517_v3, %v1521_v4  ;;  %v1381_v21 = vld [vmem:[%s20691_s1 + $0x28c0] sm:$0xff]  ;;  %10135 = vmatprep.subr.bf16.mxu0 %v14238_v13  ;;  %v14365_v30 = vcombine.low %v1517_v3, %v1521_v4 }
 0x158   :  { %v1385_v23 = vld [vmem:[%s20691_s1 + $0x28e0] sm:$0xff] }
 0x159   :  { %v1509_v24 = vld [vmem:[%s20691_s1 + $0x2cc0] sm:$0xff]  ;;  %v14230_v32 = vcombine.high %v1381_v21, %v1385_v23  ;;  %10176 = vmatprep.subr.bf16.mxu1 %v14366_v42  ;;  %v14229_v41 = vcombine.low %v1381_v21, %v1385_v23 }
 0x15a   :  { %v1513_v25 = vld [vmem:[%s20691_s1 + $0x2ce0] sm:$0xff]  ;;  %10136 = vmatpush1.bf16.msra.mxu0 %v14237_v27  ;;  %10177 = vmatpush1.bf16.msra.mxu1 %v14365_v30 }
 0x15b   :  { %v14358_v33 = vcombine.high %v1509_v24, %v1513_v25  ;;  %v1373_v34 = vld [vmem:[%s20691_s1 + $0x2880] sm:$0xff]  ;;  %10137 = vmatprep.subr.bf16.mxu0 %v14230_v32  ;;  %v14357_v43 = vcombine.low %v1509_v24, %v1513_v25 }
 0x15c   :  { %v1377_v35 = vld [vmem:[%s20691_s1 + $0x28a0] sm:$0xff] }
 0x15d   :  { %v1501_v37 = vld [vmem:[%s20691_s1 + $0x2c80] sm:$0xff]  ;;  %v14222_v44 = vcombine.high %v1373_v34, %v1377_v35  ;;  %10178 = vmatprep.subr.bf16.mxu1 %v14358_v33  ;;  %v14221_v54 = vcombine.low %v1373_v34, %v1377_v35 }
 0x15e   :  { %v1505_v11 = vld [vmem:[%s20691_s1 + $0x2ca0] sm:$0xff]  ;;  %10138 = vmatpush1.bf16.msra.mxu0 %v14229_v41  ;;  %10179 = vmatpush1.bf16.msra.mxu1 %v14357_v43 }
 0x15f   :  { %v14350_v46 = vcombine.high %v1501_v37, %v1505_v11  ;;  %v1365_v47 = vld [vmem:[%s20691_s1 + $0x2840] sm:$0xff]  ;;  %10139 = vmatprep.subr.bf16.mxu0 %v14222_v44  ;;  %v14349_v57 = vcombine.low %v1501_v37, %v1505_v11 }
 0x160   :  { %v1369_v50 = vld [vmem:[%s20691_s1 + $0x2860] sm:$0xff] }
 0x161   :  { %v1493_v52 = vld [vmem:[%s20691_s1 + $0x2c40] sm:$0xff]  ;;  %v14214_v61 = vcombine.high %v1365_v47, %v1369_v50  ;;  %10180 = vmatprep.subr.bf16.mxu1 %v14350_v46  ;;  %v14213_v3 = vcombine.low %v1365_v47, %v1369_v50 }
 0x162   :  { %v1497_v53 = vld [vmem:[%s20691_s1 + $0x2c60] sm:$0xff]  ;;  %10140 = vmatpush1.bf16.msra.mxu0 %v14221_v54  ;;  %10181 = vmatpush1.bf16.msra.mxu1 %v14349_v57 }
 0x163   :  { %v14342_v62 = vcombine.high %v1493_v52, %v1497_v53  ;;  %v1357_v63 = vld [vmem:[%s20691_s1 + $0x2800] sm:$0xff]  ;;  %10141 = vmatprep.subr.bf16.mxu0 %v14214_v61  ;;  %v14341_v4 = vcombine.low %v1493_v52, %v1497_v53 }
 0x164   :  { %v1361_v15 = vld [vmem:[%s20691_s1 + $0x2820] sm:$0xff] }
 0x165   :  { %v1485_v17 = vld [vmem:[%s20691_s1 + $0x2c00] sm:$0xff]  ;;  %v14206_v8 = vcombine.high %v1357_v63, %v1361_v15  ;;  %10182 = vmatprep.subr.bf16.mxu1 %v14342_v62  ;;  %v14205_v42 = vcombine.low %v1357_v63, %v1361_v15 }
 0x166   :  { %v1489_v0 = vld [vmem:[%s20691_s1 + $0x2c20] sm:$0xff]  ;;  %10142 = vmatpush1.bf16.msra.mxu0 %v14213_v3  ;;  %10183 = vmatpush1.bf16.msra.mxu1 %v14341_v4 }
 0x167   :  { %v14334_v9 = vcombine.high %v1485_v17, %v1489_v0  ;;  %v1477_v10 = vld [vmem:[%s20691_s1 + $0x2bc0] sm:$0xff]  ;;  %10143 = vmatprep.subr.bf16.mxu0 %v14206_v8  ;;  %v14333_v21 = vcombine.low %v1485_v17, %v1489_v0 }
 0x168   :  { %v1481_v12 = vld [vmem:[%s20691_s1 + $0x2be0] sm:$0xff] }
 0x169   :  { %v1605_v13 = vld [vmem:[%s20691_s1 + $0x2fc0] sm:$0xff]  ;;  %v14326_v23 = vcombine.high %v1477_v10, %v1481_v12  ;;  %10184 = vmatprep.subr.bf16.mxu1 %v14334_v9  ;;  %v14325_v33 = vcombine.low %v1477_v10, %v1481_v12 }
 0x16a   :  { %v1609_v19 = vld [vmem:[%s20691_s1 + $0x2fe0] sm:$0xff]  ;;  %10144 = vmatpush1.bf16.msra.mxu0 %v14205_v42  ;;  %10185 = vmatpush1.bf16.msra.mxu1 %v14333_v21 }
 0x16b   :  { %v14454_v24 = vcombine.high %v1605_v13, %v1609_v19  ;;  %v1469_v25 = vld [vmem:[%s20691_s1 + $0x2b80] sm:$0xff]  ;;  %10145 = vmatprep.subr.bf16.mxu0 %v14326_v23  ;;  %v14453_v34 = vcombine.low %v1605_v13, %v1609_v19 }
 0x16c   :  { %v1473_v27 = vld [vmem:[%s20691_s1 + $0x2ba0] sm:$0xff] }
 0x16d   :  { %v1597_v30 = vld [vmem:[%s20691_s1 + $0x2f80] sm:$0xff]  ;;  %v14318_v35 = vcombine.high %v1469_v25, %v1473_v27  ;;  %10186 = vmatprep.subr.bf16.mxu1 %v14454_v24  ;;  %v14317_v46 = vcombine.low %v1469_v25, %v1473_v27 }
 0x16e   :  { %v1601_v32 = vld [vmem:[%s20691_s1 + $0x2fa0] sm:$0xff]  ;;  %10146 = vmatpush2.bf16.msra.mxu0 %v14325_v33  ;;  %10187 = vmatpush2.bf16.msra.mxu1 %v14453_v34 }
 0x16f   :  { %v14446_v37 = vcombine.high %v1597_v30, %v1601_v32  ;;  %v1461_v11 = vld [vmem:[%s20691_s1 + $0x2b40] sm:$0xff]  ;;  %10147 = vmatprep.subr.bf16.mxu0 %v14318_v35  ;;  %v14445_v47 = vcombine.low %v1597_v30, %v1601_v32 }
 0x170   :  { %v1465_v41 = vld [vmem:[%s20691_s1 + $0x2b60] sm:$0xff] }
 0x171   :  { %v1589_v43 = vld [vmem:[%s20691_s1 + $0x2f40] sm:$0xff]  ;;  %v14310_v50 = vcombine.high %v1461_v11, %v1465_v41  ;;  %10188 = vmatprep.subr.bf16.mxu1 %v14446_v37  ;;  %v14309_v62 = vcombine.low %v1461_v11, %v1465_v41 }
 0x172   :  { %v1593_v44 = vld [vmem:[%s20691_s1 + $0x2f60] sm:$0xff]  ;;  %10148 = vmatpush2.bf16.msra.mxu0 %v14317_v46  ;;  %10189 = vmatpush2.bf16.msra.mxu1 %v14445_v47 }
 0x173   :  { %v14438_v52 = vcombine.high %v1589_v43, %v1593_v44  ;;  %v1453_v53 = vld [vmem:[%s20691_s1 + $0x2b00] sm:$0xff]  ;;  %10149 = vmatprep.subr.bf16.mxu0 %v14310_v50  ;;  %v14437_v63 = vcombine.low %v1589_v43, %v1593_v44 }
 0x174   :  { %v1457_v54 = vld [vmem:[%s20691_s1 + $0x2b20] sm:$0xff] }
 0x175   :  { %v1581_v57 = vld [vmem:[%s20691_s1 + $0x2f00] sm:$0xff]  ;;  %v14302_v15 = vcombine.high %v1453_v53, %v1457_v54  ;;  %10190 = vmatprep.subr.bf16.mxu1 %v14438_v52  ;;  %v14301_v9 = vcombine.low %v1453_v53, %v1457_v54 }
 0x176   :  { %v1585_v61 = vld [vmem:[%s20691_s1 + $0x2f20] sm:$0xff]  ;;  %10150 = vmatpush2.bf16.msra.mxu0 %v14309_v62  ;;  %10191 = vmatpush2.bf16.msra.mxu1 %v14437_v63  ;;  %v134_v63 = vld [vmem:[%s20691_s1 + $0x1c8] sm:$0xff] }
 0x177   :  { %v14430_v17 = vcombine.high %v1581_v57, %v1585_v61  ;;  %v1445_v0 = vld [vmem:[%s20691_s1 + $0x2ac0] sm:$0xff]  ;;  %10151 = vmatprep.subr.bf16.mxu0 %v14302_v15  ;;  %v14429_v10 = vcombine.low %v1581_v57, %v1585_v61  ;;  %v138_v15 = vld [vmem:[%s20691_s1 + $0x1e8] sm:$0xff] }
 0x178   :  { %v1449_v3 = vld [vmem:[%s20691_s1 + $0x2ae0] sm:$0xff] }
 0x179   :  { %v1573_v4 = vld [vmem:[%s20691_s1 + $0x2ec0] sm:$0xff]  ;;  %v14294_v12 = vcombine.high %v1445_v0, %v1449_v3  ;;  %10192 = vmatprep.subr.bf16.mxu1 %v14430_v17  ;;  %v14293_v24 = vcombine.low %v1445_v0, %v1449_v3 }
 0x17a   :  { %v1577_v8 = vld [vmem:[%s20691_s1 + $0x2ee0] sm:$0xff]  ;;  %10152 = vmatpush2.bf16.msra.mxu0 %v14301_v9  ;;  %10193 = vmatpush2.bf16.msra.mxu1 %v14429_v10  ;;  %v12984_v9 = vcombine.high %v134_v63, %v138_v15 }
 0x17b   :  { %v14422_v13 = vcombine.high %v1573_v4, %v1577_v8  ;;  %v1437_v19 = vld [vmem:[%s20691_s1 + $0x2a80] sm:$0xff]  ;;  %10153 = vmatprep.subr.bf16.mxu0 %v14294_v12  ;;  %v14421_v25 = vcombine.low %v1573_v4, %v1577_v8  ;;  %v49_v4 = vld [vmem:[%s20692_s0 + $0xb0] sm:$0xff] }
 0x17c   :  { %v1441_v42 = vld [vmem:[%s20691_s1 + $0x2aa0] sm:$0xff] }
 0x17d   :  { %v1565_v21 = vld [vmem:[%s20691_s1 + $0x2e80] sm:$0xff]  ;;  %v14286_v27 = vcombine.high %v1437_v19, %v1441_v42  ;;  %10194 = vmatprep.subr.bf16.mxu1 %v14422_v13  ;;  %v14285_v37 = vcombine.low %v1437_v19, %v1441_v42  ;;  %v126_v19 = vld [vmem:[%s20691_s1 + $0x188] sm:$0xff] }
 0x17e   :  { %v1569_v23 = vld [vmem:[%s20691_s1 + $0x2ea0] sm:$0xff]  ;;  %10154 = vmatpush2.bf16.msra.mxu0 %v14293_v24  ;;  %10195 = vmatpush2.bf16.msra.mxu1 %v14421_v25  ;;  %v130_v42 = vld [vmem:[%s20691_s1 + $0x1a8] sm:$0xff]  ;;  %v12983_v24 = vcombine.low %v134_v63, %v138_v15 }
 0x17f   :  { %v14414_v30 = vcombine.high %v1565_v21, %v1569_v23  ;;  %v1429_v32 = vld [vmem:[%s20691_s1 + $0x2a40] sm:$0xff]  ;;  %10155 = vmatprep.subr.bf16.mxu0 %v14286_v27  ;;  %v14413_v11 = vcombine.low %v1565_v21, %v1569_v23  ;;  %v16270_v21 = vpack.c.bf16 %v49_v4, %v49_v4  ;;  %v12976_v27 = vcombine.high %v126_v19, %v130_v42 }
 0x180   :  { %v1433_v33 = vld [vmem:[%s20691_s1 + $0x2a60] sm:$0xff] }
 0x181   :  { %v1557_v34 = vld [vmem:[%s20691_s1 + $0x2e40] sm:$0xff]  ;;  %v14278_v41 = vcombine.high %v1429_v32, %v1433_v33  ;;  %10196 = vmatprep.subr.bf16.mxu1 %v14414_v30  ;;  %v14277_v52 = vcombine.low %v1429_v32, %v1433_v33 }
 0x182   :  { %v1561_v35 = vld [vmem:[%s20691_s1 + $0x2e60] sm:$0xff]  ;;  %10156 = vmatpush2.bf16.msra.mxu0 %v14285_v37  ;;  %10197 = vmatpush2.bf16.msra.mxu1 %v14413_v11 }
 0x183   :  { %v14406_v43 = vcombine.high %v1557_v34, %v1561_v35  ;;  %v1421_v44 = vld [vmem:[%s20691_s1 + $0x2a00] sm:$0xff]  ;;  %10157 = vmatprep.subr.bf16.mxu0 %v14278_v41  ;;  %v14405_v53 = vcombine.low %v1557_v34, %v1561_v35  ;;  %v118_v34 = vld [vmem:[%s20691_s1 + $0x148] sm:$0xff] }
 0x184   :  { %v1425_v46 = vld [vmem:[%s20691_s1 + $0x2a20] sm:$0xff]  ;;  %v122_v35 = vld [vmem:[%s20691_s1 + $0x168] sm:$0xff] }
 0x185   :  { %v1549_v47 = vld [vmem:[%s20691_s1 + $0x2e00] sm:$0xff]  ;;  %v14270_v54 = vcombine.high %v1421_v44, %v1425_v46  ;;  %10198 = vmatprep.subr.bf16.mxu1 %v14406_v43  ;;  %v14269_v17 = vcombine.low %v1421_v44, %v1425_v46  ;;  %v12975_v44 = vcombine.low %v126_v19, %v130_v42  ;;  %v102_v19 = vld [vmem:[%s20691_s1 + $0xc8] sm:$0xff] }
 0x186   :  { %v1553_v50 = vld [vmem:[%s20691_s1 + $0x2e20] sm:$0xff]  ;;  %10158 = vmatpush2.bf16.msra.mxu0 %v14277_v52  ;;  %10199 = vmatpush2.bf16.msra.mxu1 %v14405_v53  ;;  %v12968_v53 = vcombine.high %v118_v34, %v122_v35  ;;  %v106_v42 = vld [vmem:[%s20691_s1 + $0xe8] sm:$0xff] }
 0x187   :  { %v14398_v57 = vcombine.high %v1549_v47, %v1553_v50  ;;  %v1669_v61 = vld [vmem:[%s20691_s1 + $0x31c0] sm:$0xff]  ;;  %10159 = vmatprep.subr.bf16.mxu0 %v14270_v54  ;;  %v14397_v3 = vcombine.low %v1549_v47, %v1553_v50 }
 0x188   :  { %v1673_v62 = vld [vmem:[%s20691_s1 + $0x31e0] sm:$0xff] }
 0x189   :  { %v47_v0 = vld [vmem:[%s20692_s0 + $0xa0] sm:$0xff]  ;;  %v14518_v8 = vcombine.high %v1669_v61, %v1673_v62  ;;  %10200 = vmatprep.subr.bf16.mxu1 %v14398_v57  ;;  %v14517_v23 = vcombine.low %v1669_v61, %v1673_v62  ;;  %v9958_v11 = vpop.f32.mrf.mxu1  ;;  %v14885_v57 = vmov 0   ;;  %v110_v62 = vld [vmem:[%s20691_s1 + $0x108] sm:$0xff] }
 0x18a   :  { %v1661_v10 = vld [vmem:[%s20691_s1 + $0x3180] sm:$0xff]  ;;  %v16262_v13 = vpack.c.bf16 %v47_v0, %v47_v0  ;;  %10160 = vmatpush2.bf16.msra.mxu0 %v14269_v17  ;;  %10201 = vmatpush2.bf16.msra.mxu1 %v14397_v3  ;;  %v9917_v33 = vpop.f32.mrf.mxu0  ;;  %v12967_v3 = vcombine.low %v118_v34, %v122_v35  ;;  %v98_v34 = vld [vmem:[%s20691_s1 + $0xa8] sm:$0xff] }
 0x18b   :  { %v1665_v12 = vld [vmem:[%s20691_s1 + $0x31a0] sm:$0xff]  ;;  %10211 = vmatprep.subr.bf16.mxu0 %v14518_v8  ;;  %10252 = vmatprep.subr.bf16.mxu1 %v12984_v9  ;;  %v9918_v37 = vadd.f32 %v9917_v33, %v16076_v60  ;;  %v9960_v52 = vpop.f32.mrf.mxu1  ;;  %v94_v33 = vld [vmem:[%s20691_s1 + $0x88] sm:$0xff] }
 0x18c   :  { %v14510_v25 = vcombine.high %v1661_v10, %v1665_v12  ;;  %v1653_v30 = vld [vmem:[%s20691_s1 + $0x3140] sm:$0xff]  ;;  %v14509_v41 = vcombine.low %v1661_v10, %v1665_v12  ;;  %v9919_v43 = vpop.f32.mrf.mxu0 }
 0x18d   :  { %v1657_v32 = vld [vmem:[%s20691_s1 + $0x3160] sm:$0xff]  ;;  %10162 = vmatmul.mubr.bf16.vlgmr.msra.gmra.mxu0 %v16262_v13  ;;  %10203 = vmatmul.mubr.bf16.vlgmr.msra.gmra.mxu1 %v16270_v21  ;;  %v16287_v47 = vadd.f32 %v9958_v11, %v9918_v37  ;;  %v9920_v50 = vadd.f32 %v9919_v43, %v16092_v5  ;;  %v114_v5 = vld [vmem:[%s20691_s1 + $0x128] sm:$0xff]  ;;  %v9962_v15 = vpop.f32.mrf.mxu1  ;;  %v12951_v37 = vcombine.low %v102_v19, %v106_v42 }
 0x18e   :  { %10212 = vmatpush1.bf16.msra.mxu0 %v14517_v23  ;;  %10253 = vmatpush1.bf16.msra.mxu1 %v12983_v24  ;;  %v14502_v46 = vcombine.high %v1653_v30, %v1657_v32  ;;  %v1645_v60 = vld [vmem:[%s20691_s1 + $0x3100] sm:$0xff]  ;;  %v9921_v61 = vpop.f32.mrf.mxu0  ;;  %v14501_v17 = vcombine.low %v1653_v30, %v1657_v32  ;;  %v12960_v9 = vcombine.high %v110_v62, %v114_v5  ;;  %v82_v15 = vld [vmem:[%s20691_s1 + $0x28] sm:$0xff] }
 0x18f   :  { %10213 = vmatprep.subr.bf16.mxu0 %v14510_v25  ;;  %10254 = vmatprep.subr.bf16.mxu1 %v12976_v27  ;;  %v1649_v54 = vld [vmem:[%s20691_s1 + $0x3120] sm:$0xff]  ;;  %v16304_v63 = vadd.f32 %v9960_v52, %v9920_v50  ;;  %v9963_v8 = vpop.f32.mrf.mxu1  ;;  %v12959_v24 = vcombine.low %v110_v62, %v114_v5  ;;  %v12952_v27 = vcombine.high %v102_v19, %v106_v42  ;;  %v90_v50 = vld [vmem:[%s20691_s1 + $0x68] sm:$0xff] }
 0x190   :  { %10243 = vmatprep.mubr.bf16.mxu0 %v14885_v57  ;;  %10284 = vmatprep.mubr.bf16.mxu1 %v15022_v58  ;;  %v9922_v0 = vpop.f32.mrf.mxu0  ;;  %v14494_v4 = vcombine.high %v1645_v60, %v1649_v54  ;;  %v1637_v10 = vld [vmem:[%s20691_s1 + $0x30c0] sm:$0xff]  ;;  %v14493_v23 = vcombine.low %v1645_v60, %v1649_v54  ;;  %v78_v5 = vld [vmem:[%s20691_s1 + $0x8] sm:$0xff] }
 0x191   :  { %v1641_v12 = vld [vmem:[%s20691_s1 + $0x30e0] sm:$0xff]  ;;  %v262_v8 = vld [vmem:[%s20691_s1 + $0x5c8] sm:$0xff] }
 0x192   :  { %10214 = vmatpush1.bf16.msra.mxu0 %v14509_v41  ;;  %10255 = vmatpush1.bf16.msra.mxu1 %v12975_v44  ;;  %v14486_v25 = vcombine.high %v1637_v10, %v1641_v12  ;;  %v1629_v30 = vld [vmem:[%s20691_s1 + $0x3080] sm:$0xff]  ;;  %v14485_v35 = vcombine.low %v1637_v10, %v1641_v12  ;;  %v12944_v41 = vcombine.high %v94_v33, %v98_v34  ;;  %v198_v10 = vld [vmem:[%s20691_s1 + $0x3c8] sm:$0xff] }
 0x193   :  { %10215 = vmatprep.subr.bf16.mxu0 %v14502_v46  ;;  %10256 = vmatprep.subr.bf16.mxu1 %v12968_v53  ;;  %v1633_v32 = vld [vmem:[%s20691_s1 + $0x30a0] sm:$0xff]  ;;  %v86_v46 = vld [vmem:[%s20691_s1 + $0x48] sm:$0xff]  ;;  %v12943_v53 = vcombine.low %v94_v33, %v98_v34 }
 0x194   :  { %v14478_v11 = vcombine.high %v1629_v30, %v1633_v32  ;;  %v1621_v43 = vld [vmem:[%s20691_s1 + $0x3040] sm:$0xff]  ;;  %v14477_v52 = vcombine.low %v1629_v30, %v1633_v32  ;;  %v12936_v54 = vcombine.high %v86_v46, %v90_v50  ;;  %v12935_v0 = vcombine.low %v86_v46, %v90_v50  ;;  %v202_v12 = vld [vmem:[%s20691_s1 + $0x3e8] sm:$0xff] }
 0x195   :  { %v1625_v44 = vld [vmem:[%s20691_s1 + $0x3060] sm:$0xff]  ;;  %v258_v30 = vld [vmem:[%s20691_s1 + $0x5a8] sm:$0xff] }
 0x196   :  { %10216 = vmatpush1.bf16.msra.mxu0 %v14501_v17  ;;  %10257 = vmatpush1.bf16.msra.mxu1 %v12967_v3  ;;  %v14470_v60 = vcombine.high %v1621_v43, %v1625_v44  ;;  %v1613_v61 = vld [vmem:[%s20691_s1 + $0x3000] sm:$0xff]  ;;  %v14469_v17 = vcombine.low %v1621_v43, %v1625_v44  ;;  %v190_v33 = vld [vmem:[%s20691_s1 + $0x388] sm:$0xff] }
 0x197   :  { %10217 = vmatprep.subr.bf16.mxu0 %v14494_v4  ;;  %10258 = vmatprep.subr.bf16.mxu1 %v12960_v9  ;;  %v1617_v62 = vld [vmem:[%s20691_s1 + $0x3020] sm:$0xff]  ;;  %v12928_v4 = vcombine.high %v78_v5, %v82_v15  ;;  %v266_v9 = vld [vmem:[%s20691_s1 + $0x5e8] sm:$0xff] }
 0x198   :  { %v14462_v3 = vcombine.high %v1613_v61, %v1617_v62  ;;  %v14461_v19 = vcombine.low %v1613_v61, %v1617_v62  ;;  %v51_v42 = vld [vmem:[%s20692_s0 + $0xc0] sm:$0xff]  ;;  %v194_v34 = vld [vmem:[%s20691_s1 + $0x3a8] sm:$0xff] }
 0x199   :  { %v16375_v32 = vpack.c.bf16 %v51_v42, %v51_v42  ;;  %v246_v43 = vld [vmem:[%s20691_s1 + $0x548] sm:$0xff] }
 0x19a   :  { %10218 = vmatpush1.bf16.msra.mxu0 %v14493_v23  ;;  %10259 = vmatpush1.bf16.msra.mxu1 %v12959_v24  ;;  %v12927_v23 = vcombine.low %v78_v5, %v82_v15  ;;  %v13112_v24 = vcombine.high %v262_v8, %v266_v9  ;;  %v250_v44 = vld [vmem:[%s20691_s1 + $0x568] sm:$0xff] }
 0x19b   :  { %10219 = vmatprep.subr.bf16.mxu0 %v14486_v25  ;;  %10260 = vmatprep.subr.bf16.mxu1 %v12952_v27  ;;  %v13048_v25 = vcombine.high %v198_v10, %v202_v12  ;;  %v254_v27 = vld [vmem:[%s20691_s1 + $0x588] sm:$0xff] }
 0x19c   :  { %v182_v46 = vld [vmem:[%s20691_s1 + $0x348] sm:$0xff] }
 0x19d   :  { %v186_v50 = vld [vmem:[%s20691_s1 + $0x368] sm:$0xff] }
 0x19e   :  { %10220 = vmatpush1.bf16.msra.mxu0 %v14485_v35  ;;  %10261 = vmatpush1.bf16.msra.mxu1 %v12951_v37  ;;  %v13111_v35 = vcombine.low %v262_v8, %v266_v9  ;;  %v13047_v37 = vcombine.low %v198_v10, %v202_v12  ;;  %v238_v61 = vld [vmem:[%s20691_s1 + $0x508] sm:$0xff] }
 0x19f   :  { %10221 = vmatprep.subr.bf16.mxu0 %v14478_v11  ;;  %10262 = vmatprep.subr.bf16.mxu1 %v12944_v41  ;;  %v13104_v11 = vcombine.high %v254_v27, %v258_v30  ;;  %v13040_v41 = vcombine.high %v190_v33, %v194_v34  ;;  %v242_v62 = vld [vmem:[%s20691_s1 + $0x528] sm:$0xff] }
 0x1a0   :  { %v174_v5 = vld [vmem:[%s20691_s1 + $0x308] sm:$0xff] }
 0x1a1   :  { %v178_v15 = vld [vmem:[%s20691_s1 + $0x328] sm:$0xff] }
 0x1a2   :  { %10222 = vmatpush1.bf16.msra.mxu0 %v14477_v52  ;;  %10263 = vmatpush1.bf16.msra.mxu1 %v12943_v53  ;;  %v13103_v52 = vcombine.low %v254_v27, %v258_v30  ;;  %v13039_v53 = vcombine.low %v190_v33, %v194_v34  ;;  %v230_v8 = vld [vmem:[%s20691_s1 + $0x4c8] sm:$0xff]  ;;  %v13023_v42 = vcombine.low %v174_v5, %v178_v15 }
 0x1a3   :  { %10223 = vmatprep.subr.bf16.mxu0 %v14470_v60  ;;  %10264 = vmatprep.subr.bf16.mxu1 %v12936_v54  ;;  %v13096_v60 = vcombine.high %v246_v43, %v250_v44  ;;  %v13032_v54 = vcombine.high %v182_v46, %v186_v50  ;;  %v234_v9 = vld [vmem:[%s20691_s1 + $0x4e8] sm:$0xff] }
 0x1a4   :  { %v166_v10 = vld [vmem:[%s20691_s1 + $0x2c8] sm:$0xff]  ;;  %v13079_v34 = vcombine.low %v230_v8, %v234_v9 }
 0x1a5   :  { %v170_v12 = vld [vmem:[%s20691_s1 + $0x2e8] sm:$0xff] }
 0x1a6   :  { %10224 = vmatpush1.bf16.msra.mxu0 %v14469_v17  ;;  %10265 = vmatpush1.bf16.msra.mxu1 %v12935_v0  ;;  %v13095_v17 = vcombine.low %v246_v43, %v250_v44  ;;  %v13031_v0 = vcombine.low %v182_v46, %v186_v50  ;;  %v226_v27 = vld [vmem:[%s20691_s1 + $0x4a8] sm:$0xff] }
 0x1a7   :  { %10225 = vmatprep.subr.bf16.mxu0 %v14462_v3  ;;  %10266 = vmatprep.subr.bf16.mxu1 %v12928_v4  ;;  %v13088_v3 = vcombine.high %v238_v61, %v242_v62  ;;  %v13024_v4 = vcombine.high %v174_v5, %v178_v15  ;;  %v158_v30 = vld [vmem:[%s20691_s1 + $0x288] sm:$0xff] }
 0x1a8   :  { %v162_v33 = vld [vmem:[%s20691_s1 + $0x2a8] sm:$0xff] }
 0x1a9   :  { %v218_v43 = vld [vmem:[%s20691_s1 + $0x468] sm:$0xff] }
 0x1aa   :  { %10226 = vmatpush1.bf16.msra.mxu0 %v14461_v19  ;;  %10267 = vmatpush1.bf16.msra.mxu1 %v12927_v23  ;;  %v13087_v19 = vcombine.low %v238_v61, %v242_v62  ;;  %v13080_v23 = vcombine.high %v230_v8, %v234_v9  ;;  %v150_v44 = vld [vmem:[%s20691_s1 + $0x248] sm:$0xff] }
 0x1ab   :  { %10293 = vmatprep.subr.bf16.mxu0 %v13112_v24  ;;  %10268 = vmatprep.subr.bf16.mxu1 %v13048_v25  ;;  %v13016_v24 = vcombine.high %v166_v10, %v170_v12  ;;  %v222_v25 = vld [vmem:[%s20691_s1 + $0x488] sm:$0xff] }
 0x1ac   :  { %v154_v46 = vld [vmem:[%s20691_s1 + $0x268] sm:$0xff]  ;;  %v13071_v50 = vcombine.low %v222_v25, %v226_v27 }
 0x1ad   :  { %10244 = vmatmul.mubr.bf16.vlgmr.msra.gmra.mxu0 %v16375_v32  ;;  %v210_v61 = vld [vmem:[%s20691_s1 + $0x428] sm:$0xff] }
 0x1ae   :  { %10294 = vmatpush1.bf16.msra.mxu0 %v13111_v35  ;;  %10325 = vmatprep.mubr.bf16.mxu0 %v15024_v59  ;;  %v13015_v35 = vcombine.low %v166_v10, %v170_v12  ;;  %v142_v62 = vld [vmem:[%s20691_s1 + $0x208] sm:$0xff] }
 0x1af   :  { %10269 = vmatpush2.bf16.msra.mxu1 %v13047_v37  ;;  %10295 = vmatprep.subr.bf16.mxu0 %v13104_v11  ;;  %v13072_v37 = vcombine.high %v222_v25, %v226_v27  ;;  %v13008_v11 = vcombine.high %v158_v30, %v162_v33  ;;  %v146_v5 = vld [vmem:[%s20691_s1 + $0x228] sm:$0xff] }
 0x1b0   :  { %10270 = vmatprep.subr.bf16.mxu1 %v13040_v41  ;;  %v214_v41 = vld [vmem:[%s20691_s1 + $0x448] sm:$0xff] }
 0x1b1   :  { %v13063_v15 = vcombine.low %v214_v41, %v218_v43  ;;  %v330_v8 = vld [vmem:[%s20691_s1 + $0x7e8] sm:$0xff] }
 0x1b2   :  { %10296 = vmatpush1.bf16.msra.mxu0 %v13103_v52  ;;  %v13007_v52 = vcombine.low %v158_v30, %v162_v33  ;;  %v390_v9 = vld [vmem:[%s20691_s1 + $0x9c8] sm:$0xff] }
 0x1b3   :  { %10271 = vmatpush2.bf16.msra.mxu1 %v13039_v53  ;;  %10297 = vmatprep.subr.bf16.mxu0 %v13096_v60  ;;  %v13064_v53 = vcombine.high %v214_v41, %v218_v43  ;;  %v13000_v60 = vcombine.high %v150_v44, %v154_v46  ;;  %v394_v10 = vld [vmem:[%s20691_s1 + $0x9e8] sm:$0xff] }
 0x1b4   :  { %10272 = vmatprep.subr.bf16.mxu1 %v13032_v54  ;;  %v206_v54 = vld [vmem:[%s20691_s1 + $0x408] sm:$0xff] }
 0x1b5   :  { %v13055_v12 = vcombine.low %v206_v54, %v210_v61  ;;  %v322_v25 = vld [vmem:[%s20691_s1 + $0x7a8] sm:$0xff] }
 0x1b6   :  { %10298 = vmatpush1.bf16.msra.mxu0 %v13095_v17  ;;  %v12999_v17 = vcombine.low %v150_v44, %v154_v46  ;;  %v382_v27 = vld [vmem:[%s20691_s1 + $0x988] sm:$0xff] }
 0x1b7   :  { %10273 = vmatpush2.bf16.msra.mxu1 %v13031_v0  ;;  %10299 = vmatprep.subr.bf16.mxu0 %v13088_v3  ;;  %v13056_v0 = vcombine.high %v206_v54, %v210_v61  ;;  %v12992_v3 = vcombine.high %v142_v62, %v146_v5  ;;  %v386_v30 = vld [vmem:[%s20691_s1 + $0x9a8] sm:$0xff] }
 0x1b8   :  { %10274 = vmatprep.subr.bf16.mxu1 %v13024_v4  ;;  %v326_v4 = vld [vmem:[%s20691_s1 + $0x7c8] sm:$0xff]  ;;  %v13231_v54 = vcombine.low %v382_v27, %v386_v30 }
 0x1b9   :  { %v13175_v33 = vcombine.low %v326_v4, %v330_v8  ;;  %v314_v41 = vld [vmem:[%s20691_s1 + $0x768] sm:$0xff] }
 0x1ba   :  { %10300 = vmatpush1.bf16.msra.mxu0 %v13087_v19  ;;  %v12991_v19 = vcombine.low %v142_v62, %v146_v5  ;;  %v374_v44 = vld [vmem:[%s20691_s1 + $0x948] sm:$0xff] }
 0x1bb   :  { %10275 = vmatpush2.bf16.msra.mxu1 %v13023_v42  ;;  %10301 = vmatprep.subr.bf16.mxu0 %v13080_v23  ;;  %v13176_v42 = vcombine.high %v326_v4, %v330_v8  ;;  %v13240_v23 = vcombine.high %v390_v9, %v394_v10  ;;  %v378_v46 = vld [vmem:[%s20691_s1 + $0x968] sm:$0xff] }
 0x1bc   :  { %10276 = vmatprep.subr.bf16.mxu1 %v13016_v24  ;;  %v318_v24 = vld [vmem:[%s20691_s1 + $0x788] sm:$0xff] }
 0x1bd   :  { %v366_v4 = vld [vmem:[%s20691_s1 + $0x908] sm:$0xff] }
 0x1be   :  { %10302 = vmatpush1.bf16.msra.mxu0 %v13079_v34  ;;  %v13239_v34 = vcombine.low %v390_v9, %v394_v10 }
 0x1bf   :  { %10277 = vmatpush2.bf16.msra.mxu1 %v13015_v35  ;;  %10303 = vmatprep.subr.bf16.mxu0 %v13072_v37  ;;  %v13168_v35 = vcombine.high %v318_v24, %v322_v25  ;;  %v13232_v37 = vcombine.high %v382_v27, %v386_v30  ;;  %v298_v27 = vld [vmem:[%s20691_s1 + $0x6e8] sm:$0xff] }
 0x1c0   :  { %10278 = vmatprep.subr.bf16.mxu1 %v13008_v11  ;;  %v310_v11 = vld [vmem:[%s20691_s1 + $0x748] sm:$0xff] }
 0x1c1   :  { %v13160_v61 = vcombine.high %v310_v11, %v314_v41  ;;  %v13159_v10 = vcombine.low %v310_v11, %v314_v41  ;;  %v358_v30 = vld [vmem:[%s20691_s1 + $0x8c8] sm:$0xff] }
 0x1c2   :  { %10304 = vmatpush1.bf16.msra.mxu0 %v13071_v50  ;;  %v286_v41 = vld [vmem:[%s20691_s1 + $0x688] sm:$0xff] }
 0x1c3   :  { %10279 = vmatpush2.bf16.msra.mxu1 %v13007_v52  ;;  %10305 = vmatprep.subr.bf16.mxu0 %v13064_v53  ;;  %v13167_v53 = vcombine.low %v318_v24, %v322_v25  ;;  %v294_v25 = vld [vmem:[%s20691_s1 + $0x6c8] sm:$0xff] }
 0x1c4   :  { %10280 = vmatprep.subr.bf16.mxu1 %v13000_v60 }
 0x1c6   :  { %10306 = vmatpush1.bf16.msra.mxu0 %v13063_v15 }
 0x1c7   :  { %10281 = vmatpush2.bf16.msra.mxu1 %v12999_v17  ;;  %10307 = vmatprep.subr.bf16.mxu0 %v13056_v0  ;;  %v13224_v17 = vcombine.high %v374_v44, %v378_v46  ;;  %v306_v0 = vld [vmem:[%s20691_s1 + $0x728] sm:$0xff] }
 0x1c8   :  { %10282 = vmatprep.subr.bf16.mxu1 %v12992_v3 }
 0x1ca   :  { %10308 = vmatpush1.bf16.msra.mxu0 %v13055_v12  ;;  %v10040_v52 = vpop.f32.mrf.mxu1 }
 0x1cb   :  { %10283 = vmatpush2.bf16.msra.mxu1 %v12991_v19  ;;  %10309 = vmatprep.subr.bf16.mxu0 %v13176_v42  ;;  %v9999_v43 = vpop.f32.mrf.mxu0  ;;  %v13223_v19 = vcombine.low %v374_v44, %v378_v46  ;;  %v350_v44 = vld [vmem:[%s20691_s1 + $0x888] sm:$0xff] }
 0x1cc   :  { %10334 = vmatprep.subr.bf16.mxu1 %v13240_v23  ;;  %v10000_v50 = vadd.f32 %v9999_v43, %v16287_v47  ;;  %v10042_v15 = vpop.f32.mrf.mxu1  ;;  %v302_v47 = vld [vmem:[%s20691_s1 + $0x708] sm:$0xff] }
 0x1cd   :  { %v10001_v60 = vpop.f32.mrf.mxu0  ;;  %v13152_v42 = vcombine.high %v302_v47, %v306_v0  ;;  %v290_v43 = vld [vmem:[%s20691_s1 + $0x6a8] sm:$0xff] }
 0x1ce   :  { %10285 = vmatmul.mubr.bf16.vlgmr.msra.gmra.mxu1 %v15154_v16  ;;  %10310 = vmatpush2.bf16.msra.mxu0 %v13175_v33  ;;  %v16495_v62 = vadd.f32 %v10040_v52, %v10000_v50  ;;  %v10002_v5 = vadd.f32 %v10001_v60, %v16304_v63  ;;  %v370_v63 = vld [vmem:[%s20691_s1 + $0x928] sm:$0xff]  ;;  %v10044_v9 = vpop.f32.mrf.mxu1  ;;  %v13143_v50 = vcombine.low %v294_v25, %v298_v27 }
 0x1cf   :  { %10335 = vmatpush1.bf16.msra.mxu1 %v13239_v34  ;;  %10311 = vmatprep.subr.bf16.mxu0 %v13168_v35  ;;  %v10003_v3 = vpop.f32.mrf.mxu0  ;;  %v13216_v24 = vcombine.high %v366_v4, %v370_v63  ;;  %v362_v33 = vld [vmem:[%s20691_s1 + $0x8e8] sm:$0xff]  ;;  %v13151_v34 = vcombine.low %v302_v47, %v306_v0  ;;  %v13215_v35 = vcombine.low %v366_v4, %v370_v63 }
 0x1d0   :  { %10336 = vmatprep.subr.bf16.mxu1 %v13232_v37  ;;  %10366 = vmatprep.mubr.bf16.mxu1 %v15176_v28  ;;  %v16511_v8 = vadd.f32 %v10042_v15, %v10002_v5  ;;  %v10045_v23 = vpop.f32.mrf.mxu1  ;;  %v13144_v37 = vcombine.high %v294_v25, %v298_v27  ;;  %v13208_v11 = vcombine.high %v358_v30, %v362_v33  ;;  %v354_v46 = vld [vmem:[%s20691_s1 + $0x8a8] sm:$0xff] }
 0x1d1   :  { %v10004_v12 = vpop.f32.mrf.mxu0  ;;  %v13207_v52 = vcombine.low %v358_v30, %v362_v33  ;;  %v13200_v60 = vcombine.high %v350_v44, %v354_v46  ;;  %v342_v5 = vld [vmem:[%s20691_s1 + $0x848] sm:$0xff]  ;;  %v13199_v47 = vcombine.low %v350_v44, %v354_v46 }
 0x1d2   :  { %10312 = vmatpush2.bf16.msra.mxu0 %v13167_v53  ;;  %v13136_v53 = vcombine.high %v286_v41, %v290_v43  ;;  %v346_v15 = vld [vmem:[%s20691_s1 + $0x868] sm:$0xff] }
 0x1d3   :  { %10337 = vmatpush1.bf16.msra.mxu1 %v13231_v54  ;;  %10313 = vmatprep.subr.bf16.mxu0 %v13160_v61  ;;  %v278_v54 = vld [vmem:[%s20691_s1 + $0x648] sm:$0xff]  ;;  %v13192_v3 = vcombine.high %v342_v5, %v346_v15 }
 0x1d4   :  { %10338 = vmatprep.subr.bf16.mxu1 %v13224_v17  ;;  %v282_v61 = vld [vmem:[%s20691_s1 + $0x668] sm:$0xff]  ;;  %v13135_v17 = vcombine.low %v286_v41, %v290_v43 }
 0x1d5   :  { %v13128_v0 = vcombine.high %v278_v54, %v282_v61  ;;  %v270_v4 = vld [vmem:[%s20691_s1 + $0x608] sm:$0xff]  ;;  %v13127_v12 = vcombine.low %v278_v54, %v282_v61 }
 0x1d6   :  { %10314 = vmatpush2.bf16.msra.mxu0 %v13159_v10  ;;  %v274_v63 = vld [vmem:[%s20691_s1 + $0x628] sm:$0xff] }
 0x1d7   :  { %10339 = vmatpush1.bf16.msra.mxu1 %v13223_v19  ;;  %10315 = vmatprep.subr.bf16.mxu0 %v13152_v42  ;;  %v334_v9 = vld [vmem:[%s20691_s1 + $0x808] sm:$0xff]  ;;  %v13191_v19 = vcombine.low %v342_v5, %v346_v15  ;;  %v13120_v42 = vcombine.high %v270_v4, %v274_v63  ;;  %v13119_v33 = vcombine.low %v270_v4, %v274_v63 }
 0x1d8   :  { %10340 = vmatprep.subr.bf16.mxu1 %v13216_v24  ;;  %v338_v10 = vld [vmem:[%s20691_s1 + $0x828] sm:$0xff] }
 0x1d9   :  { %v13184_v23 = vcombine.high %v334_v9, %v338_v10  ;;  %v518_v24 = vld [vmem:[%s20691_s1 + $0xdc8] sm:$0xff] }
 0x1da   :  { %10316 = vmatpush2.bf16.msra.mxu0 %v13151_v34  ;;  %v522_v25 = vld [vmem:[%s20691_s1 + $0xde8] sm:$0xff]  ;;  %v13183_v34 = vcombine.low %v334_v9, %v338_v10 }
 0x1db   :  { %10341 = vmatpush1.bf16.msra.mxu1 %v13215_v35  ;;  %10317 = vmatprep.subr.bf16.mxu0 %v13144_v37  ;;  %v454_v27 = vld [vmem:[%s20691_s1 + $0xbc8] sm:$0xff]  ;;  %v13368_v35 = vcombine.high %v518_v24, %v522_v25  ;;  %v13367_v46 = vcombine.low %v518_v24, %v522_v25 }
 0x1dc   :  { %10342 = vmatprep.subr.bf16.mxu1 %v13208_v11  ;;  %v458_v30 = vld [vmem:[%s20691_s1 + $0xbe8] sm:$0xff] }
 0x1dd   :  { %v13304_v37 = vcombine.high %v454_v27, %v458_v30  ;;  %v510_v11 = vld [vmem:[%s20691_s1 + $0xd88] sm:$0xff] }
 0x1de   :  { %10318 = vmatpush2.bf16.msra.mxu0 %v13143_v50  ;;  %v514_v41 = vld [vmem:[%s20691_s1 + $0xda8] sm:$0xff]  ;;  %v13303_v50 = vcombine.low %v454_v27, %v458_v30 }
 0x1df   :  { %10343 = vmatpush1.bf16.msra.mxu1 %v13207_v52  ;;  %10319 = vmatprep.subr.bf16.mxu0 %v13136_v53  ;;  %v446_v43 = vld [vmem:[%s20691_s1 + $0xb88] sm:$0xff]  ;;  %v13360_v52 = vcombine.high %v510_v11, %v514_v41  ;;  %v13359_v15 = vcombine.low %v510_v11, %v514_v41 }
 0x1e0   :  { %10344 = vmatprep.subr.bf16.mxu1 %v13200_v60  ;;  %v450_v44 = vld [vmem:[%s20691_s1 + $0xba8] sm:$0xff] }
 0x1e1   :  { %v13296_v53 = vcombine.high %v446_v43, %v450_v44  ;;  %v502_v60 = vld [vmem:[%s20691_s1 + $0xd48] sm:$0xff] }
 0x1e2   :  { %10320 = vmatpush2.bf16.msra.mxu0 %v13135_v17  ;;  %v506_v54 = vld [vmem:[%s20691_s1 + $0xd68] sm:$0xff]  ;;  %v13295_v17 = vcombine.low %v446_v43, %v450_v44 }
 0x1e3   :  { %10345 = vmatpush1.bf16.msra.mxu1 %v13199_v47  ;;  %10321 = vmatprep.subr.bf16.mxu0 %v13128_v0  ;;  %v438_v61 = vld [vmem:[%s20691_s1 + $0xb48] sm:$0xff]  ;;  %v13352_v47 = vcombine.high %v502_v60, %v506_v54  ;;  %v13351_v10 = vcombine.low %v502_v60, %v506_v54 }
 0x1e4   :  { %10346 = vmatprep.subr.bf16.mxu1 %v13192_v3  ;;  %v442_v5 = vld [vmem:[%s20691_s1 + $0xb68] sm:$0xff] }
 0x1e5   :  { %v13288_v0 = vcombine.high %v438_v61, %v442_v5  ;;  %v494_v3 = vld [vmem:[%s20691_s1 + $0xd08] sm:$0xff] }
 0x1e6   :  { %10322 = vmatpush2.bf16.msra.mxu0 %v13127_v12  ;;  %v498_v4 = vld [vmem:[%s20691_s1 + $0xd28] sm:$0xff]  ;;  %v13287_v12 = vcombine.low %v438_v61, %v442_v5 }
 0x1e7   :  { %10347 = vmatpush1.bf16.msra.mxu1 %v13191_v19  ;;  %10323 = vmatprep.subr.bf16.mxu0 %v13120_v42  ;;  %v430_v63 = vld [vmem:[%s20691_s1 + $0xb08] sm:$0xff]  ;;  %v13344_v19 = vcombine.high %v494_v3, %v498_v4  ;;  %v13343_v30 = vcombine.low %v494_v3, %v498_v4 }
 0x1e8   :  { %10348 = vmatprep.subr.bf16.mxu1 %v13184_v23  ;;  %v434_v9 = vld [vmem:[%s20691_s1 + $0xb28] sm:$0xff] }
 0x1e9   :  { %v13280_v42 = vcombine.high %v430_v63, %v434_v9  ;;  %v486_v23 = vld [vmem:[%s20691_s1 + $0xcc8] sm:$0xff] }
 0x1ea   :  { %10324 = vmatpush2.bf16.msra.mxu0 %v13119_v33  ;;  %v490_v24 = vld [vmem:[%s20691_s1 + $0xce8] sm:$0xff]  ;;  %v13279_v33 = vcombine.low %v430_v63, %v434_v9 }
 0x1eb   :  { %10349 = vmatpush1.bf16.msra.mxu1 %v13183_v34  ;;  %10375 = vmatprep.subr.bf16.mxu0 %v13368_v35  ;;  %v422_v25 = vld [vmem:[%s20691_s1 + $0xac8] sm:$0xff]  ;;  %v13336_v34 = vcombine.high %v486_v23, %v490_v24  ;;  %v13335_v44 = vcombine.low %v486_v23, %v490_v24 }
 0x1ec   :  { %10350 = vmatprep.subr.bf16.mxu1 %v13304_v37  ;;  %v426_v27 = vld [vmem:[%s20691_s1 + $0xae8] sm:$0xff] }
 0x1ed   :  { %10326 = vmatmul.mubr.bf16.vlgmr.msra.gmra.mxu0 %v15165_v20  ;;  %v13272_v35 = vcombine.high %v422_v25, %v426_v27  ;;  %v478_v37 = vld [vmem:[%s20691_s1 + $0xc88] sm:$0xff] }
 0x1ee   :  { %10376 = vmatpush1.bf16.msra.mxu0 %v13367_v46  ;;  %10407 = vmatprep.mubr.bf16.mxu0 %v15185_v31  ;;  %v482_v11 = vld [vmem:[%s20691_s1 + $0xca8] sm:$0xff]  ;;  %v13271_v46 = vcombine.low %v422_v25, %v426_v27 }
 0x1ef   :  { %10351 = vmatpush2.bf16.msra.mxu1 %v13303_v50  ;;  %10377 = vmatprep.subr.bf16.mxu0 %v13360_v52  ;;  %v414_v41 = vld [vmem:[%s20691_s1 + $0xa88] sm:$0xff]  ;;  %v13328_v50 = vcombine.high %v478_v37, %v482_v11  ;;  %v13327_v5 = vcombine.low %v478_v37, %v482_v11 }
 0x1f0   :  { %10352 = vmatprep.subr.bf16.mxu1 %v13296_v53  ;;  %v418_v43 = vld [vmem:[%s20691_s1 + $0xaa8] sm:$0xff] }
 0x1f1   :  { %v13264_v52 = vcombine.high %v414_v41, %v418_v43  ;;  %v470_v53 = vld [vmem:[%s20691_s1 + $0xc48] sm:$0xff] }
 0x1f2   :  { %10378 = vmatpush1.bf16.msra.mxu0 %v13359_v15  ;;  %v474_v60 = vld [vmem:[%s20691_s1 + $0xc68] sm:$0xff]  ;;  %v13263_v15 = vcombine.low %v414_v41, %v418_v43 }
 0x1f3   :  { %10353 = vmatpush2.bf16.msra.mxu1 %v13295_v17  ;;  %10379 = vmatprep.subr.bf16.mxu0 %v13352_v47  ;;  %v406_v54 = vld [vmem:[%s20691_s1 + $0xa48] sm:$0xff]  ;;  %v13320_v17 = vcombine.high %v470_v53, %v474_v60  ;;  %v13319_v9 = vcombine.low %v470_v53, %v474_v60 }
 0x1f4   :  { %10354 = vmatprep.subr.bf16.mxu1 %v13288_v0  ;;  %v410_v61 = vld [vmem:[%s20691_s1 + $0xa68] sm:$0xff] }
 0x1f5   :  { %v13256_v47 = vcombine.high %v406_v54, %v410_v61  ;;  %v462_v0 = vld [vmem:[%s20691_s1 + $0xc08] sm:$0xff] }
 0x1f6   :  { %10380 = vmatpush1.bf16.msra.mxu0 %v13351_v10  ;;  %v466_v3 = vld [vmem:[%s20691_s1 + $0xc28] sm:$0xff]  ;;  %v13255_v10 = vcombine.low %v406_v54, %v410_v61 }
 0x1f7   :  { %10355 = vmatpush2.bf16.msra.mxu1 %v13287_v12  ;;  %10381 = vmatprep.subr.bf16.mxu0 %v13344_v19  ;;  %v398_v4 = vld [vmem:[%s20691_s1 + $0xa08] sm:$0xff]  ;;  %v13312_v12 = vcombine.high %v462_v0, %v466_v3  ;;  %v13311_v27 = vcombine.low %v462_v0, %v466_v3 }
 0x1f8   :  { %10356 = vmatprep.subr.bf16.mxu1 %v13280_v42  ;;  %v402_v63 = vld [vmem:[%s20691_s1 + $0xa28] sm:$0xff] }
 0x1f9   :  { %v13248_v19 = vcombine.high %v398_v4, %v402_v63  ;;  %v582_v42 = vld [vmem:[%s20691_s1 + $0xfc8] sm:$0xff] }
 0x1fa   :  { %10382 = vmatpush1.bf16.msra.mxu0 %v13343_v30  ;;  %v586_v23 = vld [vmem:[%s20691_s1 + $0xfe8] sm:$0xff]  ;;  %v13247_v30 = vcombine.low %v398_v4, %v402_v63 }
 0x1fb   :  { %10357 = vmatpush2.bf16.msra.mxu1 %v13279_v33  ;;  %10383 = vmatprep.subr.bf16.mxu0 %v13336_v34  ;;  %v646_v24 = vld [vmem:[%s20691_s1 + $0x11c8] sm:$0xff]  ;;  %v13432_v33 = vcombine.high %v582_v42, %v586_v23  ;;  %v13431_v43 = vcombine.low %v582_v42, %v586_v23 }
 0x1fc   :  { %10358 = vmatprep.subr.bf16.mxu1 %v13272_v35  ;;  %v650_v25 = vld [vmem:[%s20691_s1 + $0x11e8] sm:$0xff] }
 0x1fd   :  { %v13496_v34 = vcombine.high %v646_v24, %v650_v25  ;;  %v574_v35 = vld [vmem:[%s20691_s1 + $0xf88] sm:$0xff] }
 0x1fe   :  { %10384 = vmatpush1.bf16.msra.mxu0 %v13335_v44  ;;  %v578_v37 = vld [vmem:[%s20691_s1 + $0xfa8] sm:$0xff]  ;;  %v13495_v44 = vcombine.low %v646_v24, %v650_v25 }
 0x1ff   :  { %10359 = vmatpush2.bf16.msra.mxu1 %v13271_v46  ;;  %10385 = vmatprep.subr.bf16.mxu0 %v13328_v50  ;;  %v638_v11 = vld [vmem:[%s20691_s1 + $0x1188] sm:$0xff]  ;;  %v13424_v46 = vcombine.high %v574_v35, %v578_v37 }
 0x200   :  { %10360 = vmatprep.subr.bf16.mxu1 %v13264_v52  ;;  %v642_v41 = vld [vmem:[%s20691_s1 + $0x11a8] sm:$0xff] }
 0x201   :  { %v13488_v50 = vcombine.high %v638_v11, %v642_v41  ;;  %v566_v52 = vld [vmem:[%s20691_s1 + $0xf48] sm:$0xff]  ;;  %v13487_v0 = vcombine.low %v638_v11, %v642_v41 }
 0x202   :  { %10386 = vmatpush1.bf16.msra.mxu0 %v13327_v5  ;;  %v570_v53 = vld [vmem:[%s20691_s1 + $0xf68] sm:$0xff] }
 0x203   :  { %10361 = vmatpush2.bf16.msra.mxu1 %v13263_v15  ;;  %10387 = vmatprep.subr.bf16.mxu0 %v13320_v17  ;;  %v630_v54 = vld [vmem:[%s20691_s1 + $0x1148] sm:$0xff]  ;;  %v13423_v17 = vcombine.low %v574_v35, %v578_v37  ;;  %v13416_v3 = vcombine.high %v566_v52, %v570_v53  ;;  %v13415_v25 = vcombine.low %v566_v52, %v570_v53 }
 0x204   :  { %10362 = vmatprep.subr.bf16.mxu1 %v13256_v47  ;;  %v634_v61 = vld [vmem:[%s20691_s1 + $0x1168] sm:$0xff] }
 0x205   :  { %v622_v42 = vld [vmem:[%s20691_s1 + $0x1108] sm:$0xff] }
 0x206   :  { %10388 = vmatpush1.bf16.msra.mxu0 %v13319_v9  ;;  %v550_v37 = vld [vmem:[%s20691_s1 + $0xec8] sm:$0xff] }
 0x207   :  { %10363 = vmatpush2.bf16.msra.mxu1 %v13255_v10  ;;  %10389 = vmatprep.subr.bf16.mxu0 %v13312_v12  ;;  %v13480_v10 = vcombine.high %v630_v54, %v634_v61  ;;  %v562_v12 = vld [vmem:[%s20691_s1 + $0xf28] sm:$0xff] }
 0x208   :  { %10364 = vmatprep.subr.bf16.mxu1 %v13248_v19  ;;  %v554_v11 = vld [vmem:[%s20691_s1 + $0xee8] sm:$0xff] }
 0x209   :  { %v614_v41 = vld [vmem:[%s20691_s1 + $0x10c8] sm:$0xff] }
 0x20a   :  { %10390 = vmatpush1.bf16.msra.mxu0 %v13311_v27  ;;  %v542_v53 = vld [vmem:[%s20691_s1 + $0xe88] sm:$0xff] }
 0x20b   :  { %10365 = vmatpush2.bf16.msra.mxu1 %v13247_v30  ;;  %10391 = vmatprep.subr.bf16.mxu0 %v13432_v33  ;;  %v13479_v30 = vcombine.low %v630_v54, %v634_v61  ;;  %v606_v54 = vld [vmem:[%s20691_s1 + $0x1088] sm:$0xff] }
 0x20c   :  { %10416 = vmatprep.subr.bf16.mxu1 %v13496_v34  ;;  %v10122_v15 = vpop.f32.mrf.mxu1  ;;  %v610_v61 = vld [vmem:[%s20691_s1 + $0x10a8] sm:$0xff] }
 0x20d   :  { %v10081_v60 = vpop.f32.mrf.mxu0 }
 0x20e   :  { %v10082_v5 = vadd.f32 %v10081_v60, %v16495_v62  ;;  %10367 = vmatmul.mubr.bf16.vlgmr.msra.gmra.mxu1 %v15370_v36  ;;  %10392 = vmatpush2.bf16.msra.mxu0 %v13431_v43  ;;  %v10124_v9 = vpop.f32.mrf.mxu1  ;;  %v558_v62 = vld [vmem:[%s20691_s1 + $0xf08] sm:$0xff] }
 0x20f   :  { %10417 = vmatpush1.bf16.msra.mxu1 %v13495_v44  ;;  %v10083_v47 = vpop.f32.mrf.mxu0  ;;  %10393 = vmatprep.subr.bf16.mxu0 %v13424_v46  ;;  %v13408_v33 = vcombine.high %v558_v62, %v562_v12  ;;  %v618_v43 = vld [vmem:[%s20691_s1 + $0x10e8] sm:$0xff]  ;;  %v13407_v44 = vcombine.low %v558_v62, %v562_v12  ;;  %v13455_v62 = vcombine.low %v606_v54, %v610_v61 }
 0x210   :  { %v16697_v4 = vadd.f32 %v10122_v15, %v10082_v5  ;;  %v10084_v63 = vadd.f32 %v10083_v47, %v16511_v8  ;;  %10418 = vmatprep.subr.bf16.mxu1 %v13488_v50  ;;  %10448 = vmatprep.mubr.bf16.mxu1 %v15392_v48  ;;  %v626_v8 = vld [vmem:[%s20691_s1 + $0x1128] sm:$0xff]  ;;  %v10126_v24 = vpop.f32.mrf.mxu1  ;;  %v13400_v50 = vcombine.high %v550_v37, %v554_v11 }
 0x211   :  { %v10085_v19 = vpop.f32.mrf.mxu0  ;;  %v13472_v35 = vcombine.high %v622_v42, %v626_v8  ;;  %v13471_v46 = vcombine.low %v622_v42, %v626_v8  ;;  %v13464_v52 = vcombine.high %v614_v41, %v618_v43  ;;  %v546_v60 = vld [vmem:[%s20691_s1 + $0xea8] sm:$0xff]  ;;  %v13399_v5 = vcombine.low %v550_v37, %v554_v11 }
 0x212   :  { %v16713_v23 = vadd.f32 %v10124_v9, %v10084_v63  ;;  %10394 = vmatpush2.bf16.msra.mxu0 %v13423_v17  ;;  %v10127_v34 = vpop.f32.mrf.mxu1  ;;  %v13463_v15 = vcombine.low %v614_v41, %v618_v43  ;;  %v13392_v17 = vcombine.high %v542_v53, %v546_v60  ;;  %v13456_v47 = vcombine.high %v606_v54, %v610_v61  ;;  %v598_v63 = vld [vmem:[%s20691_s1 + $0x1048] sm:$0xff] }
 0x213   :  { %10419 = vmatpush1.bf16.msra.mxu1 %v13487_v0  ;;  %v10086_v27 = vpop.f32.mrf.mxu0  ;;  %10395 = vmatprep.subr.bf16.mxu0 %v13416_v3  ;;  %v534_v0 = vld [vmem:[%s20691_s1 + $0xe48] sm:$0xff] }
 0x214   :  { %10420 = vmatprep.subr.bf16.mxu1 %v13480_v10  ;;  %v538_v3 = vld [vmem:[%s20691_s1 + $0xe68] sm:$0xff]  ;;  %v13391_v10 = vcombine.low %v542_v53, %v546_v60 }
 0x215   :  { %v602_v9 = vld [vmem:[%s20691_s1 + $0x1068] sm:$0xff]  ;;  %v13384_v12 = vcombine.high %v534_v0, %v538_v3  ;;  %v13383_v27 = vcombine.low %v534_v0, %v538_v3 }
 0x216   :  { %10396 = vmatpush2.bf16.msra.mxu0 %v13415_v25  ;;  %v13448_v19 = vcombine.high %v598_v63, %v602_v9  ;;  %v526_v42 = vld [vmem:[%s20691_s1 + $0xe08] sm:$0xff] }
 0x217   :  { %10421 = vmatpush1.bf16.msra.mxu1 %v13479_v30  ;;  %10397 = vmatprep.subr.bf16.mxu0 %v13408_v33  ;;  %v530_v8 = vld [vmem:[%s20691_s1 + $0xe28] sm:$0xff]  ;;  %v13447_v30 = vcombine.low %v598_v63, %v602_v9 }
 0x218   :  { %10422 = vmatprep.subr.bf16.mxu1 %v13472_v35  ;;  %v590_v24 = vld [vmem:[%s20691_s1 + $0x1008] sm:$0xff]  ;;  %v13376_v33 = vcombine.high %v526_v42, %v530_v8  ;;  %v13375_v43 = vcombine.low %v526_v42, %v530_v8 }
 0x219   :  { %v594_v25 = vld [vmem:[%s20691_s1 + $0x1028] sm:$0xff] }
 0x21a   :  { %10398 = vmatpush2.bf16.msra.mxu0 %v13407_v44  ;;  %v13440_v34 = vcombine.high %v590_v24, %v594_v25  ;;  %v774_v35 = vld [vmem:[%s20691_s1 + $0x15c8] sm:$0xff]  ;;  %v13439_v44 = vcombine.low %v590_v24, %v594_v25 }
 0x21b   :  { %10423 = vmatpush1.bf16.msra.mxu1 %v13471_v46  ;;  %10399 = vmatprep.subr.bf16.mxu0 %v13400_v50  ;;  %v778_v37 = vld [vmem:[%s20691_s1 + $0x15e8] sm:$0xff] }
 0x21c   :  { %10424 = vmatprep.subr.bf16.mxu1 %v13464_v52  ;;  %v710_v11 = vld [vmem:[%s20691_s1 + $0x13c8] sm:$0xff]  ;;  %v13624_v46 = vcombine.high %v774_v35, %v778_v37  ;;  %v13623_v61 = vcombine.low %v774_v35, %v778_v37 }
 0x21d   :  { %v714_v41 = vld [vmem:[%s20691_s1 + $0x13e8] sm:$0xff] }
 0x21e   :  { %10400 = vmatpush2.bf16.msra.mxu0 %v13399_v5  ;;  %v13560_v50 = vcombine.high %v710_v11, %v714_v41  ;;  %v766_v52 = vld [vmem:[%s20691_s1 + $0x1588] sm:$0xff]  ;;  %v13559_v5 = vcombine.low %v710_v11, %v714_v41 }
 0x21f   :  { %10425 = vmatpush1.bf16.msra.mxu1 %v13463_v15  ;;  %10401 = vmatprep.subr.bf16.mxu0 %v13392_v17  ;;  %v770_v53 = vld [vmem:[%s20691_s1 + $0x15a8] sm:$0xff] }
 0x220   :  { %10426 = vmatprep.subr.bf16.mxu1 %v13456_v47  ;;  %v702_v60 = vld [vmem:[%s20691_s1 + $0x1388] sm:$0xff]  ;;  %v13616_v15 = vcombine.high %v766_v52, %v770_v53  ;;  %v13615_v9 = vcombine.low %v766_v52, %v770_v53 }
 0x221   :  { %v706_v54 = vld [vmem:[%s20691_s1 + $0x13a8] sm:$0xff] }
 0x222   :  { %10402 = vmatpush2.bf16.msra.mxu0 %v13391_v10  ;;  %v13552_v17 = vcombine.high %v702_v60, %v706_v54  ;;  %v758_v47 = vld [vmem:[%s20691_s1 + $0x1548] sm:$0xff]  ;;  %v13551_v10 = vcombine.low %v702_v60, %v706_v54 }
 0x223   :  { %10427 = vmatpush1.bf16.msra.mxu1 %v13455_v62  ;;  %10403 = vmatprep.subr.bf16.mxu0 %v13384_v12  ;;  %v762_v0 = vld [vmem:[%s20691_s1 + $0x1568] sm:$0xff] }
 0x224   :  { %10428 = vmatprep.subr.bf16.mxu1 %v13448_v19  ;;  %v694_v3 = vld [vmem:[%s20691_s1 + $0x1348] sm:$0xff]  ;;  %v13608_v62 = vcombine.high %v758_v47, %v762_v0  ;;  %v13607_v25 = vcombine.low %v758_v47, %v762_v0 }
 0x225   :  { %v698_v63 = vld [vmem:[%s20691_s1 + $0x1368] sm:$0xff] }
 0x226   :  { %10404 = vmatpush2.bf16.msra.mxu0 %v13383_v27  ;;  %v13544_v12 = vcombine.high %v694_v3, %v698_v63  ;;  %v750_v19 = vld [vmem:[%s20691_s1 + $0x1508] sm:$0xff]  ;;  %v13543_v27 = vcombine.low %v694_v3, %v698_v63 }
 0x227   :  { %10429 = vmatpush1.bf16.msra.mxu1 %v13447_v30  ;;  %10405 = vmatprep.subr.bf16.mxu0 %v13376_v33  ;;  %v754_v42 = vld [vmem:[%s20691_s1 + $0x1528] sm:$0xff] }
 0x228   :  { %10430 = vmatprep.subr.bf16.mxu1 %v13440_v34  ;;  %v686_v8 = vld [vmem:[%s20691_s1 + $0x1308] sm:$0xff]  ;;  %v13600_v30 = vcombine.high %v750_v19, %v754_v42  ;;  %v13599_v41 = vcombine.low %v750_v19, %v754_v42 }
 0x229   :  { %v690_v24 = vld [vmem:[%s20691_s1 + $0x1328] sm:$0xff] }
 0x22a   :  { %10406 = vmatpush2.bf16.msra.mxu0 %v13375_v43  ;;  %v13536_v33 = vcombine.high %v686_v8, %v690_v24  ;;  %v742_v34 = vld [vmem:[%s20691_s1 + $0x14c8] sm:$0xff]  ;;  %v13535_v43 = vcombine.low %v686_v8, %v690_v24 }
 0x22b   :  { %10431 = vmatpush1.bf16.msra.mxu1 %v13439_v44  ;;  %10457 = vmatprep.subr.bf16.mxu0 %v13624_v46  ;;  %v746_v35 = vld [vmem:[%s20691_s1 + $0x14e8] sm:$0xff] }
 0x22c   :  { %10432 = vmatprep.subr.bf16.mxu1 %v13560_v50  ;;  %v678_v37 = vld [vmem:[%s20691_s1 + $0x12c8] sm:$0xff]  ;;  %v13592_v44 = vcombine.high %v742_v34, %v746_v35  ;;  %v13591_v54 = vcombine.low %v742_v34, %v746_v35 }
 0x22d   :  { %10408 = vmatmul.mubr.bf16.vlgmr.msra.gmra.mxu0 %v15381_v40  ;;  %v682_v11 = vld [vmem:[%s20691_s1 + $0x12e8] sm:$0xff] }
 0x22e   :  { %10458 = vmatpush1.bf16.msra.mxu0 %v13623_v61  ;;  %10489 = vmatprep.mubr.bf16.mxu0 %v15401_v51  ;;  %v13528_v46 = vcombine.high %v678_v37, %v682_v11  ;;  %v734_v50 = vld [vmem:[%s20691_s1 + $0x1488] sm:$0xff]  ;;  %v13527_v61 = vcombine.low %v678_v37, %v682_v11 }
 0x22f   :  { %10433 = vmatpush2.bf16.msra.mxu1 %v13559_v5  ;;  %10459 = vmatprep.subr.bf16.mxu0 %v13616_v15  ;;  %v738_v52 = vld [vmem:[%s20691_s1 + $0x14a8] sm:$0xff] }
 0x230   :  { %10434 = vmatprep.subr.bf16.mxu1 %v13552_v17  ;;  %v670_v53 = vld [vmem:[%s20691_s1 + $0x1288] sm:$0xff]  ;;  %v13584_v5 = vcombine.high %v734_v50, %v738_v52  ;;  %v13583_v63 = vcombine.low %v734_v50, %v738_v52 }
 0x231   :  { %v674_v60 = vld [vmem:[%s20691_s1 + $0x12a8] sm:$0xff] }
 0x232   :  { %10460 = vmatpush1.bf16.msra.mxu0 %v13615_v9  ;;  %v13520_v15 = vcombine.high %v670_v53, %v674_v60  ;;  %v726_v17 = vld [vmem:[%s20691_s1 + $0x1448] sm:$0xff]  ;;  %v13519_v9 = vcombine.low %v670_v53, %v674_v60 }
 0x233   :  { %10435 = vmatpush2.bf16.msra.mxu1 %v13551_v10  ;;  %10461 = vmatprep.subr.bf16.mxu0 %v13608_v62  ;;  %v730_v47 = vld [vmem:[%s20691_s1 + $0x1468] sm:$0xff] }
 0x234   :  { %10436 = vmatprep.subr.bf16.mxu1 %v13544_v12  ;;  %v662_v0 = vld [vmem:[%s20691_s1 + $0x1248] sm:$0xff]  ;;  %v13576_v10 = vcombine.high %v726_v17, %v730_v47  ;;  %v13575_v24 = vcombine.low %v726_v17, %v730_v47 }
 0x235   :  { %v666_v3 = vld [vmem:[%s20691_s1 + $0x1268] sm:$0xff] }
 0x236   :  { %10462 = vmatpush1.bf16.msra.mxu0 %v13607_v25  ;;  %v13512_v62 = vcombine.high %v662_v0, %v666_v3  ;;  %v718_v12 = vld [vmem:[%s20691_s1 + $0x1408] sm:$0xff]  ;;  %v13511_v25 = vcombine.low %v662_v0, %v666_v3 }
 0x237   :  { %10437 = vmatpush2.bf16.msra.mxu1 %v13543_v27  ;;  %10463 = vmatprep.subr.bf16.mxu0 %v13600_v30  ;;  %v722_v19 = vld [vmem:[%s20691_s1 + $0x1428] sm:$0xff] }
 0x238   :  { %10438 = vmatprep.subr.bf16.mxu1 %v13536_v33  ;;  %v654_v42 = vld [vmem:[%s20691_s1 + $0x1208] sm:$0xff]  ;;  %v13568_v27 = vcombine.high %v718_v12, %v722_v19  ;;  %v13567_v11 = vcombine.low %v718_v12, %v722_v19 }
 0x239   :  { %v658_v8 = vld [vmem:[%s20691_s1 + $0x1228] sm:$0xff] }
 0x23a   :  { %10464 = vmatpush1.bf16.msra.mxu0 %v13599_v41  ;;  %v13504_v30 = vcombine.high %v654_v42, %v658_v8  ;;  %v838_v33 = vld [vmem:[%s20691_s1 + $0x17c8] sm:$0xff]  ;;  %v13503_v41 = vcombine.low %v654_v42, %v658_v8 }
 0x23b   :  { %10439 = vmatpush2.bf16.msra.mxu1 %v13535_v43  ;;  %10465 = vmatprep.subr.bf16.mxu0 %v13592_v44  ;;  %v842_v34 = vld [vmem:[%s20691_s1 + $0x17e8] sm:$0xff] }
 0x23c   :  { %10440 = vmatprep.subr.bf16.mxu1 %v13528_v46  ;;  %v902_v35 = vld [vmem:[%s20691_s1 + $0x19c8] sm:$0xff]  ;;  %v13688_v43 = vcombine.high %v838_v33, %v842_v34  ;;  %v13687_v60 = vcombine.low %v838_v33, %v842_v34 }
 0x23d   :  { %v906_v37 = vld [vmem:[%s20691_s1 + $0x19e8] sm:$0xff] }
 0x23e   :  { %10466 = vmatpush1.bf16.msra.mxu0 %v13591_v54  ;;  %v13752_v44 = vcombine.high %v902_v35, %v906_v37  ;;  %v830_v46 = vld [vmem:[%s20691_s1 + $0x1788] sm:$0xff]  ;;  %v13751_v54 = vcombine.low %v902_v35, %v906_v37 }
 0x23f   :  { %10441 = vmatpush2.bf16.msra.mxu1 %v13527_v61  ;;  %10467 = vmatprep.subr.bf16.mxu0 %v13584_v5  ;;  %v834_v50 = vld [vmem:[%s20691_s1 + $0x17a8] sm:$0xff] }
 0x240   :  { %10442 = vmatprep.subr.bf16.mxu1 %v13520_v15  ;;  %v894_v52 = vld [vmem:[%s20691_s1 + $0x1988] sm:$0xff]  ;;  %v13680_v61 = vcombine.high %v830_v46, %v834_v50 }
 0x241   :  { %v898_v53 = vld [vmem:[%s20691_s1 + $0x19a8] sm:$0xff] }
 0x242   :  { %10468 = vmatpush1.bf16.msra.mxu0 %v13583_v63  ;;  %v13744_v5 = vcombine.high %v894_v52, %v898_v53  ;;  %v822_v15 = vld [vmem:[%s20691_s1 + $0x1748] sm:$0xff]  ;;  %v13743_v12 = vcombine.low %v894_v52, %v898_v53 }
 0x243   :  { %10443 = vmatpush2.bf16.msra.mxu1 %v13519_v9  ;;  %10469 = vmatprep.subr.bf16.mxu0 %v13576_v10  ;;  %v826_v17 = vld [vmem:[%s20691_s1 + $0x1768] sm:$0xff]  ;;  %v13679_v10 = vcombine.low %v830_v46, %v834_v50 }
 0x244   :  { %10444 = vmatprep.subr.bf16.mxu1 %v13512_v62  ;;  %v886_v0 = vld [vmem:[%s20691_s1 + $0x1948] sm:$0xff]  ;;  %v13672_v19 = vcombine.high %v822_v15, %v826_v17  ;;  %v13671_v37 = vcombine.low %v822_v15, %v826_v17 }
 0x245   :  { %v890_v3 = vld [vmem:[%s20691_s1 + $0x1968] sm:$0xff] }
 0x246   :  { %10470 = vmatpush1.bf16.msra.mxu0 %v13575_v24  ;;  %v878_v33 = vld [vmem:[%s20691_s1 + $0x1908] sm:$0xff] }
 0x247   :  { %10445 = vmatpush2.bf16.msra.mxu1 %v13511_v25  ;;  %10471 = vmatprep.subr.bf16.mxu0 %v13568_v27  ;;  %v13736_v25 = vcombine.high %v886_v0, %v890_v3  ;;  %v818_v27 = vld [vmem:[%s20691_s1 + $0x1728] sm:$0xff] }
 0x248   :  { %10446 = vmatprep.subr.bf16.mxu1 %v13504_v30  ;;  %v806_v50 = vld [vmem:[%s20691_s1 + $0x16c8] sm:$0xff] }
 0x249   :  { %v810_v52 = vld [vmem:[%s20691_s1 + $0x16e8] sm:$0xff] }
 0x24a   :  { %10472 = vmatpush1.bf16.msra.mxu0 %v13567_v11  ;;  %v870_v53 = vld [vmem:[%s20691_s1 + $0x18c8] sm:$0xff] }
 0x24b   :  { %10447 = vmatpush2.bf16.msra.mxu1 %v13503_v41  ;;  %10473 = vmatprep.subr.bf16.mxu0 %v13688_v43  ;;  %v13735_v41 = vcombine.low %v886_v0, %v890_v3  ;;  %v798_v17 = vld [vmem:[%s20691_s1 + $0x1688] sm:$0xff] }
 0x24c   :  { %10498 = vmatprep.subr.bf16.mxu1 %v13752_v44  ;;  %v862_v0 = vld [vmem:[%s20691_s1 + $0x1888] sm:$0xff] }
 0x24d   :  { %v10163_v47 = vpop.f32.mrf.mxu0  ;;  %v10204_v9 = vpop.f32.mrf.mxu1  ;;  %v866_v3 = vld [vmem:[%s20691_s1 + $0x18a8] sm:$0xff] }
 0x24e   :  { %v10164_v63 = vadd.f32 %v10163_v47, %v16697_v4  ;;  %10449 = vmatmul.mubr.bf16.vlgmr.msra.gmra.mxu1 %v15586_v2  ;;  %10474 = vmatpush2.bf16.msra.mxu0 %v13687_v60  ;;  %v814_v4 = vld [vmem:[%s20691_s1 + $0x1708] sm:$0xff] }
 0x24f   :  { %10499 = vmatpush1.bf16.msra.mxu1 %v13751_v54  ;;  %v10165_v62 = vpop.f32.mrf.mxu0  ;;  %10475 = vmatprep.subr.bf16.mxu0 %v13680_v61  ;;  %v10206_v24 = vpop.f32.mrf.mxu1  ;;  %v13664_v43 = vcombine.high %v814_v4, %v818_v27  ;;  %v874_v60 = vld [vmem:[%s20691_s1 + $0x18e8] sm:$0xff]  ;;  %v13663_v54 = vcombine.low %v814_v4, %v818_v27  ;;  %v13711_v4 = vcombine.low %v862_v0, %v866_v3 }
 0x250   :  { %v16899_v42 = vadd.f32 %v10204_v9, %v10164_v63  ;;  %v10166_v8 = vadd.f32 %v10165_v62, %v16713_v23  ;;  %10500 = vmatprep.subr.bf16.mxu1 %v13744_v5  ;;  %10530 = vmatprep.mubr.bf16.mxu1 %v15608_v14  ;;  %v882_v23 = vld [vmem:[%s20691_s1 + $0x1928] sm:$0xff]  ;;  %v13656_v5 = vcombine.high %v806_v50, %v810_v52 }
 0x251   :  { %v10167_v30 = vpop.f32.mrf.mxu0  ;;  %v10208_v35 = vpop.f32.mrf.mxu1  ;;  %v13728_v46 = vcombine.high %v878_v33, %v882_v23  ;;  %v13727_v61 = vcombine.low %v878_v33, %v882_v23  ;;  %v13720_v15 = vcombine.high %v870_v53, %v874_v60  ;;  %v802_v47 = vld [vmem:[%s20691_s1 + $0x16a8] sm:$0xff]  ;;  %v13655_v63 = vcombine.low %v806_v50, %v810_v52 }
 0x252   :  { %v16915_v34 = vadd.f32 %v10206_v24, %v10166_v8  ;;  %10476 = vmatpush2.bf16.msra.mxu0 %v13679_v10  ;;  %v13719_v9 = vcombine.low %v870_v53, %v874_v60  ;;  %v13648_v10 = vcombine.high %v798_v17, %v802_v47  ;;  %v13712_v62 = vcombine.high %v862_v0, %v866_v3  ;;  %v854_v8 = vld [vmem:[%s20691_s1 + $0x1848] sm:$0xff] }
 0x253   :  { %10501 = vmatpush1.bf16.msra.mxu1 %v13743_v12  ;;  %v10168_v11 = vpop.f32.mrf.mxu0  ;;  %10477 = vmatprep.subr.bf16.mxu0 %v13672_v19  ;;  %v10209_v44 = vpop.f32.mrf.mxu1  ;;  %v790_v12 = vld [vmem:[%s20691_s1 + $0x1648] sm:$0xff] }
 0x254   :  { %10502 = vmatprep.subr.bf16.mxu1 %v13736_v25  ;;  %v794_v19 = vld [vmem:[%s20691_s1 + $0x1668] sm:$0xff]  ;;  %v13647_v25 = vcombine.low %v798_v17, %v802_v47 }
 0x255   :  { %v858_v24 = vld [vmem:[%s20691_s1 + $0x1868] sm:$0xff]  ;;  %v13640_v27 = vcombine.high %v790_v12, %v794_v19  ;;  %v13639_v11 = vcombine.low %v790_v12, %v794_v19 }
 0x256   :  { %10478 = vmatpush2.bf16.msra.mxu0 %v13671_v37  ;;  %v13704_v30 = vcombine.high %v854_v8, %v858_v24  ;;  %v782_v33 = vld [vmem:[%s20691_s1 + $0x1608] sm:$0xff] }
 0x257   :  { %10503 = vmatpush1.bf16.msra.mxu1 %v13735_v41  ;;  %10479 = vmatprep.subr.bf16.mxu0 %v13664_v43  ;;  %v786_v23 = vld [vmem:[%s20691_s1 + $0x1628] sm:$0xff]  ;;  %v13703_v41 = vcombine.low %v854_v8, %v858_v24 }
 0x258   :  { %10504 = vmatprep.subr.bf16.mxu1 %v13728_v46  ;;  %v846_v35 = vld [vmem:[%s20691_s1 + $0x1808] sm:$0xff]  ;;  %v13632_v43 = vcombine.high %v782_v33, %v786_v23  ;;  %v13631_v60 = vcombine.low %v782_v33, %v786_v23 }
 0x259   :  { %v850_v37 = vld [vmem:[%s20691_s1 + $0x1828] sm:$0xff] }
 0x25a   :  { %10480 = vmatpush2.bf16.msra.mxu0 %v13663_v54  ;;  %v13696_v44 = vcombine.high %v846_v35, %v850_v37  ;;  %v1030_v46 = vld [vmem:[%s20691_s1 + $0x1dc8] sm:$0xff]  ;;  %v13695_v54 = vcombine.low %v846_v35, %v850_v37 }
 0x25b   :  { %10505 = vmatpush1.bf16.msra.mxu1 %v13727_v61  ;;  %10481 = vmatprep.subr.bf16.mxu0 %v13656_v5  ;;  %v1034_v50 = vld [vmem:[%s20691_s1 + $0x1de8] sm:$0xff] }
 0x25c   :  { %10506 = vmatprep.subr.bf16.mxu1 %v13720_v15  ;;  %v966_v52 = vld [vmem:[%s20691_s1 + $0x1bc8] sm:$0xff]  ;;  %v13880_v61 = vcombine.high %v1030_v46, %v1034_v50  ;;  %v13879_v3 = vcombine.low %v1030_v46, %v1034_v50 }
 0x25d   :  { %v970_v53 = vld [vmem:[%s20691_s1 + $0x1be8] sm:$0xff] }
 0x25e   :  { %10482 = vmatpush2.bf16.msra.mxu0 %v13655_v63  ;;  %v13816_v5 = vcombine.high %v966_v52, %v970_v53  ;;  %v1022_v15 = vld [vmem:[%s20691_s1 + $0x1d88] sm:$0xff]  ;;  %v13815_v63 = vcombine.low %v966_v52, %v970_v53 }
 0x25f   :  { %10507 = vmatpush1.bf16.msra.mxu1 %v13719_v9  ;;  %10483 = vmatprep.subr.bf16.mxu0 %v13648_v10  ;;  %v1026_v17 = vld [vmem:[%s20691_s1 + $0x1da8] sm:$0xff] }
 0x260   :  { %10508 = vmatprep.subr.bf16.mxu1 %v13712_v62  ;;  %v958_v47 = vld [vmem:[%s20691_s1 + $0x1b88] sm:$0xff]  ;;  %v13872_v9 = vcombine.high %v1022_v15, %v1026_v17 }
 0x261   :  { %v962_v0 = vld [vmem:[%s20691_s1 + $0x1ba8] sm:$0xff] }
 0x262   :  { %10484 = vmatpush2.bf16.msra.mxu0 %v13647_v25  ;;  %v13808_v10 = vcombine.high %v958_v47, %v962_v0  ;;  %v1014_v62 = vld [vmem:[%s20691_s1 + $0x1d48] sm:$0xff] }
 0x263   :  { %10509 = vmatpush1.bf16.msra.mxu1 %v13711_v4  ;;  %10485 = vmatprep.subr.bf16.mxu0 %v13640_v27  ;;  %v1018_v12 = vld [vmem:[%s20691_s1 + $0x1d68] sm:$0xff]  ;;  %v13871_v4 = vcombine.low %v1022_v15, %v1026_v17 }
 0x264   :  { %10510 = vmatprep.subr.bf16.mxu1 %v13704_v30  ;;  %v950_v8 = vld [vmem:[%s20691_s1 + $0x1b48] sm:$0xff]  ;;  %v13807_v30 = vcombine.low %v958_v47, %v962_v0  ;;  %v13864_v33 = vcombine.high %v1014_v62, %v1018_v12 }
 0x265   :  { %v954_v24 = vld [vmem:[%s20691_s1 + $0x1b68] sm:$0xff] }
 0x266   :  { %10486 = vmatpush2.bf16.msra.mxu0 %v13639_v11  ;;  %v13800_v35 = vcombine.high %v950_v8, %v954_v24  ;;  %v1006_v37 = vld [vmem:[%s20691_s1 + $0x1d08] sm:$0xff]  ;;  %v13799_v46 = vcombine.low %v950_v8, %v954_v24 }
 0x267   :  { %10511 = vmatpush1.bf16.msra.mxu1 %v13703_v41  ;;  %10487 = vmatprep.subr.bf16.mxu0 %v13632_v43  ;;  %v942_v41 = vld [vmem:[%s20691_s1 + $0x1b08] sm:$0xff]  ;;  %v13863_v43 = vcombine.low %v1014_v62, %v1018_v12 }
 0x268   :  { %10512 = vmatprep.subr.bf16.mxu1 %v13696_v44  ;;  %v998_v53 = vld [vmem:[%s20691_s1 + $0x1cc8] sm:$0xff] }
 0x269   :  { %v990_v0 = vld [vmem:[%s20691_s1 + $0x1c88] sm:$0xff] }
 0x26a   :  { %10488 = vmatpush2.bf16.msra.mxu0 %v13631_v60  ;;  %v1002_v60 = vld [vmem:[%s20691_s1 + $0x1ce8] sm:$0xff] }
 0x26b   :  { %10513 = vmatpush1.bf16.msra.mxu1 %v13695_v54  ;;  %10539 = vmatprep.subr.bf16.mxu0 %v13880_v61  ;;  %v934_v54 = vld [vmem:[%s20691_s1 + $0x1ac8] sm:$0xff]  ;;  %v13848_v17 = vcombine.high %v998_v53, %v1002_v60 }
 0x26c   :  { %10514 = vmatprep.subr.bf16.mxu1 %v13816_v5  ;;  %v938_v61 = vld [vmem:[%s20691_s1 + $0x1ae8] sm:$0xff] }
 0x26d   :  { %v10245_v19 = vpop.f32.mrf.mxu0  ;;  %10490 = vmatmul.mubr.bf16.vlgmr.msra.gmra.mxu0 %v15597_v6  ;;  %v13784_v47 = vcombine.high %v934_v54, %v938_v61  ;;  %v13783_v62 = vcombine.low %v934_v54, %v938_v61  ;;  %v982_v8 = vld [vmem:[%s20691_s1 + $0x1c48] sm:$0xff] }
 0x26e   :  { %v17003_v25 = vadd.f32 %v10245_v19, %v16899_v42  ;;  %10540 = vmatpush1.bf16.msra.mxu0 %v13879_v3  ;;  %10571 = vmatprep.mubr.bf16.mxu0 %v15617_v18  ;;  %v1010_v42 = vld [vmem:[%s20691_s1 + $0x1d28] sm:$0xff] }
 0x26f   :  { %10515 = vmatpush2.bf16.msra.mxu1 %v13815_v63  ;;  %v10247_v27 = vpop.f32.mrf.mxu0  ;;  %10541 = vmatprep.subr.bf16.mxu0 %v13872_v9  ;;  %v13856_v50 = vcombine.high %v1006_v37, %v1010_v42  ;;  %v13855_v5 = vcombine.low %v1006_v37, %v1010_v42  ;;  %v994_v3 = vld [vmem:[%s20691_s1 + $0x1ca8] sm:$0xff] }
 0x270   :  { %v17007_v23 = vadd.f32 %v10247_v27, %v16915_v34  ;;  %10516 = vmatprep.subr.bf16.mxu1 %v13808_v10  ;;  %v946_v34 = vld [vmem:[%s20691_s1 + $0x1b28] sm:$0xff]  ;;  %v13847_v10 = vcombine.low %v998_v53, %v1002_v60  ;;  %v13840_v12 = vcombine.high %v990_v0, %v994_v3 }
 0x271   :  { %v10249_v11 = vpop.f32.mrf.mxu0  ;;  %v13792_v52 = vcombine.high %v942_v41, %v946_v34  ;;  %v13791_v15 = vcombine.low %v942_v41, %v946_v34  ;;  %v926_v63 = vld [vmem:[%s20691_s1 + $0x1a88] sm:$0xff] }
 0x272   :  { %10542 = vmatpush1.bf16.msra.mxu0 %v13871_v4  ;;  %v930_v9 = vld [vmem:[%s20691_s1 + $0x1aa8] sm:$0xff] }
 0x273   :  { %10517 = vmatpush2.bf16.msra.mxu1 %v13807_v30  ;;  %v10250_v44 = vpop.f32.mrf.mxu0  ;;  %10543 = vmatprep.subr.bf16.mxu0 %v13864_v33  ;;  %v13776_v19 = vcombine.high %v926_v63, %v930_v9  ;;  %v986_v24 = vld [vmem:[%s20691_s1 + $0x1c68] sm:$0xff]  ;;  %v13839_v30 = vcombine.low %v990_v0, %v994_v3  ;;  %v13775_v33 = vcombine.low %v926_v63, %v930_v9 }
 0x274   :  { %10518 = vmatprep.subr.bf16.mxu1 %v13800_v35  ;;  %v918_v4 = vld [vmem:[%s20691_s1 + $0x1a48] sm:$0xff]  ;;  %v13832_v35 = vcombine.high %v982_v8, %v986_v24 }
 0x275   :  { %v922_v27 = vld [vmem:[%s20691_s1 + $0x1a68] sm:$0xff] }
 0x276   :  { %10544 = vmatpush1.bf16.msra.mxu0 %v13863_v43  ;;  %v13768_v37 = vcombine.high %v918_v4, %v922_v27  ;;  %v974_v42 = vld [vmem:[%s20691_s1 + $0x1c08] sm:$0xff]  ;;  %v13831_v43 = vcombine.low %v982_v8, %v986_v24  ;;  %v13767_v44 = vcombine.low %v918_v4, %v922_v27 }
 0x277   :  { %10519 = vmatpush2.bf16.msra.mxu1 %v13799_v46  ;;  %10545 = vmatprep.subr.bf16.mxu0 %v13856_v50  ;;  %v978_v11 = vld [vmem:[%s20691_s1 + $0x1c28] sm:$0xff] }
 0x278   :  { %10520 = vmatprep.subr.bf16.mxu1 %v13792_v52  ;;  %v910_v41 = vld [vmem:[%s20691_s1 + $0x1a08] sm:$0xff]  ;;  %v13824_v46 = vcombine.high %v974_v42, %v978_v11  ;;  %v13823_v61 = vcombine.low %v974_v42, %v978_v11 }
 0x279   :  { %v914_v34 = vld [vmem:[%s20691_s1 + $0x1a28] sm:$0xff] }
 0x27a   :  { %10546 = vmatpush1.bf16.msra.mxu0 %v13855_v5  ;;  %v13760_v50 = vcombine.high %v910_v41, %v914_v34  ;;  %v1094_v52 = vld [vmem:[%s20691_s1 + $0x1fc8] sm:$0xff]  ;;  %v13759_v5 = vcombine.low %v910_v41, %v914_v34 }
 0x27b   :  { %10521 = vmatpush2.bf16.msra.mxu1 %v13791_v15  ;;  %10547 = vmatprep.subr.bf16.mxu0 %v13848_v17  ;;  %v1098_v53 = vld [vmem:[%s20691_s1 + $0x1fe8] sm:$0xff] }
 0x27c   :  { %10522 = vmatprep.subr.bf16.mxu1 %v13784_v47  ;;  %v1158_v60 = vld [vmem:[%s20691_s1 + $0x21c8] sm:$0xff]  ;;  %v13944_v15 = vcombine.high %v1094_v52, %v1098_v53  ;;  %v13943_v9 = vcombine.low %v1094_v52, %v1098_v53 }
 0x27d   :  { %v1162_v54 = vld [vmem:[%s20691_s1 + $0x21e8] sm:$0xff] }
 0x27e   :  { %10548 = vmatpush1.bf16.msra.mxu0 %v13847_v10  ;;  %v14008_v17 = vcombine.high %v1158_v60, %v1162_v54  ;;  %v1086_v47 = vld [vmem:[%s20691_s1 + $0x1f88] sm:$0xff]  ;;  %v14007_v10 = vcombine.low %v1158_v60, %v1162_v54 }
 0x27f   :  { %10523 = vmatpush2.bf16.msra.mxu1 %v13783_v62  ;;  %10549 = vmatprep.subr.bf16.mxu0 %v13840_v12  ;;  %v1090_v0 = vld [vmem:[%s20691_s1 + $0x1fa8] sm:$0xff] }
 0x280   :  { %10524 = vmatprep.subr.bf16.mxu1 %v13776_v19  ;;  %v1150_v3 = vld [vmem:[%s20691_s1 + $0x2188] sm:$0xff]  ;;  %v13936_v62 = vcombine.high %v1086_v47, %v1090_v0 }
 0x281   :  { %v1154_v63 = vld [vmem:[%s20691_s1 + $0x21a8] sm:$0xff] }
 0x282   :  { %10550 = vmatpush1.bf16.msra.mxu0 %v13839_v30  ;;  %v14000_v12 = vcombine.high %v1150_v3, %v1154_v63  ;;  %v1078_v19 = vld [vmem:[%s20691_s1 + $0x1f48] sm:$0xff]  ;;  %v13935_v30 = vcombine.low %v1086_v47, %v1090_v0 }
 0x283   :  { %10525 = vmatpush2.bf16.msra.mxu1 %v13775_v33  ;;  %10551 = vmatprep.subr.bf16.mxu0 %v13832_v35  ;;  %v1082_v8 = vld [vmem:[%s20691_s1 + $0x1f68] sm:$0xff]  ;;  %v13999_v33 = vcombine.low %v1150_v3, %v1154_v63 }
 0x284   :  { %10526 = vmatprep.subr.bf16.mxu1 %v13768_v37  ;;  %v1142_v24 = vld [vmem:[%s20691_s1 + $0x2148] sm:$0xff]  ;;  %v13928_v35 = vcombine.high %v1078_v19, %v1082_v8 }
 0x285   :  { %v1146_v4 = vld [vmem:[%s20691_s1 + $0x2168] sm:$0xff] }
 0x286   :  { %10552 = vmatpush1.bf16.msra.mxu0 %v13831_v43  ;;  %v13992_v42 = vcombine.high %v1142_v24, %v1146_v4  ;;  %v1070_v11 = vld [vmem:[%s20691_s1 + $0x1f08] sm:$0xff] }
 0x287   :  { %10527 = vmatpush2.bf16.msra.mxu1 %v13767_v44  ;;  %10553 = vmatprep.subr.bf16.mxu0 %v13824_v46  ;;  %v1074_v41 = vld [vmem:[%s20691_s1 + $0x1f28] sm:$0xff]  ;;  %v13927_v46 = vcombine.low %v1078_v19, %v1082_v8 }
 0x288   :  { %10528 = vmatprep.subr.bf16.mxu1 %v13760_v50  ;;  %v1134_v34 = vld [vmem:[%s20691_s1 + $0x2108] sm:$0xff]  ;;  %v13991_v50 = vcombine.low %v1142_v24, %v1146_v4  ;;  %v13920_v52 = vcombine.high %v1070_v11, %v1074_v41 }
 0x289   :  { %v1138_v43 = vld [vmem:[%s20691_s1 + $0x2128] sm:$0xff] }
 0x28a   :  { %10554 = vmatpush1.bf16.msra.mxu0 %v13823_v61  ;;  %v13984_v60 = vcombine.high %v1134_v34, %v1138_v43  ;;  %v1062_v54 = vld [vmem:[%s20691_s1 + $0x1ec8] sm:$0xff]  ;;  %v13983_v47 = vcombine.low %v1134_v34, %v1138_v43 }
 0x28b   :  { %10529 = vmatpush2.bf16.msra.mxu1 %v13759_v5  ;;  %10555 = vmatprep.subr.bf16.mxu0 %v13944_v15  ;;  %v1066_v61 = vld [vmem:[%s20691_s1 + $0x1ee8] sm:$0xff] }
 0x28c   :  { %10580 = vmatprep.subr.bf16.mxu1 %v14008_v17  ;;  %v1126_v5 = vld [vmem:[%s20691_s1 + $0x20c8] sm:$0xff]  ;;  %v13919_v17 = vcombine.low %v1070_v11, %v1074_v41  ;;  %v13912_v0 = vcombine.high %v1062_v54, %v1066_v61 }
 0x28d   :  { %v1130_v15 = vld [vmem:[%s20691_s1 + $0x20e8] sm:$0xff] }
 0x28e   :  { %v17105_v27 = vpop.f32.mrf.mxu1  ;;  %10531 = vmatmul.mubr.bf16.vlgmr.msra.gmra.mxu1 %v15810_v49  ;;  %10556 = vmatpush2.bf16.msra.mxu0 %v13943_v9  ;;  %v13976_v3 = vcombine.high %v1126_v5, %v1130_v15  ;;  %v1054_v63 = vld [vmem:[%s20691_s1 + $0x1e88] sm:$0xff]  ;;  %v13975_v19 = vcombine.low %v1126_v5, %v1130_v15 }
 0x28f   :  { %10581 = vmatpush1.bf16.msra.mxu1 %v14007_v10  ;;  %10557 = vmatprep.subr.bf16.mxu0 %v13936_v62  ;;  %v1058_v9 = vld [vmem:[%s20691_s1 + $0x1ea8] sm:$0xff] }
 0x290   :  { %v17108_v37 = vpop.f32.mrf.mxu1  ;;  %10582 = vmatprep.subr.bf16.mxu1 %v14000_v12  ;;  %10612 = vmatprep.mubr.bf16.mxu1 %v15835_v1  ;;  %v1118_v10 = vld [vmem:[%s20691_s1 + $0x2088] sm:$0xff]  ;;  %v13911_v12 = vcombine.low %v1062_v54, %v1066_v61  ;;  %v13904_v8 = vcombine.high %v1054_v63, %v1058_v9  ;;  %v1689_v54 = vsub.s32 2, %v15778_v26 }
 0x291   :  { %v1122_v62 = vld [vmem:[%s20691_s1 + $0x20a8] sm:$0xff] }
 0x292   :  { %v10290_v44 = vpop.f32.mrf.mxu1  ;;  %10558 = vmatpush2.bf16.msra.mxu0 %v13935_v30  ;;  %v13968_v24 = vcombine.high %v1118_v10, %v1122_v62  ;;  %v1046_v4 = vld [vmem:[%s20691_s1 + $0x1e48] sm:$0xff]  ;;  %v13967_v11 = vcombine.low %v1118_v10, %v1122_v62  ;;  %v14882_v10 = vld [vmem:[%s20693_s2] sm:$0xff] }
 0x293   :  { %10583 = vmatpush1.bf16.msra.mxu1 %v13999_v33  ;;  %10559 = vmatprep.subr.bf16.mxu0 %v13928_v35  ;;  %v1050_v30 = vld [vmem:[%s20691_s1 + $0x1e68] sm:$0xff]  ;;  %v1690_v62 = vrot.slane %v14882_v10, %v1689_v54 }
 0x294   :  { %v10291_v53 = vpop.f32.mrf.mxu1  ;;  %10584 = vmatprep.subr.bf16.mxu1 %v13992_v42  ;;  %v1110_v33 = vld [vmem:[%s20691_s1 + $0x2048] sm:$0xff]  ;;  %v13903_v42 = vcombine.low %v1054_v63, %v1058_v9  ;;  %v13896_v41 = vcombine.high %v1046_v4, %v1050_v30 }
 0x295   :  { %v1114_v35 = vld [vmem:[%s20691_s1 + $0x2068] sm:$0xff] }
 0x296   :  { %10560 = vmatpush2.bf16.msra.mxu0 %v13927_v46  ;;  %v13960_v34 = vcombine.high %v1110_v33, %v1114_v35  ;;  %v1038_v43 = vld [vmem:[%s20691_s1 + $0x1e08] sm:$0xff]  ;;  %v13959_v53 = vcombine.low %v1110_v33, %v1114_v35 }
 0x297   :  { %10585 = vmatpush1.bf16.msra.mxu1 %v13991_v50  ;;  %10561 = vmatprep.subr.bf16.mxu0 %v13920_v52  ;;  %v1042_v44 = vld [vmem:[%s20691_s1 + $0x1e28] sm:$0xff]  ;;  %v13895_v52 = vcombine.low %v1046_v4, %v1050_v30 }
 0x298   :  { %10586 = vmatprep.subr.bf16.mxu1 %v13984_v60  ;;  %v1102_v46 = vld [vmem:[%s20691_s1 + $0x2008] sm:$0xff]  ;;  %v13888_v60 = vcombine.high %v1038_v43, %v1042_v44 }
 0x299   :  { %v1106_v50 = vld [vmem:[%s20691_s1 + $0x2028] sm:$0xff] }
 0x29a   :  { %10562 = vmatpush2.bf16.msra.mxu0 %v13919_v17  ;;  %v13952_v61 = vcombine.high %v1102_v46, %v1106_v50  ;;  %v1286_v5 = vld [vmem:[%s20691_s1 + $0x25c8] sm:$0xff]  ;;  %v13951_v63 = vcombine.low %v1102_v46, %v1106_v50 }
 0x29b   :  { %10587 = vmatpush1.bf16.msra.mxu1 %v13983_v47  ;;  %10563 = vmatprep.subr.bf16.mxu0 %v13912_v0  ;;  %v1290_v15 = vld [vmem:[%s20691_s1 + $0x25e8] sm:$0xff]  ;;  %v1693_v0 = vsub.s32 3, %v15778_v26 }
 0x29c   :  { %10588 = vmatprep.subr.bf16.mxu1 %v13976_v3  ;;  %v1222_v17 = vld [vmem:[%s20691_s1 + $0x23c8] sm:$0xff]  ;;  %v13887_v3 = vcombine.low %v1038_v43, %v1042_v44  ;;  %v14136_v9 = vcombine.high %v1286_v5, %v1290_v15  ;;  %v14135_v33 = vcombine.low %v1286_v5, %v1290_v15 }
 0x29d   :  { %v1226_v47 = vld [vmem:[%s20691_s1 + $0x23e8] sm:$0xff]  ;;  %v1694_v30 = vrot.slane %v14882_v10, %v1693_v0 }
 0x29e   :  { %10564 = vmatpush2.bf16.msra.mxu0 %v13911_v12  ;;  %v14072_v12 = vcombine.high %v1222_v17, %v1226_v47  ;;  %v1218_v4 = vld [vmem:[%s20691_s1 + $0x23a8] sm:$0xff]  ;;  %v14071_v35 = vcombine.low %v1222_v17, %v1226_v47 }
 0x29f   :  { %10589 = vmatpush1.bf16.msra.mxu1 %v13975_v19  ;;  %10565 = vmatprep.subr.bf16.mxu0 %v13904_v8  ;;  %v1278_v19 = vld [vmem:[%s20691_s1 + $0x2588] sm:$0xff]  ;;  %v10289_v50 = vadd.f32 %v17108_v37, %v1694_v30 }
 0x2a0   :  { %10590 = vmatprep.subr.bf16.mxu1 %v13968_v24  ;;  %v1282_v8 = vld [vmem:[%s20691_s1 + $0x25a8] sm:$0xff] }
 0x2a1   :  { %v1214_v24 = vld [vmem:[%s20691_s1 + $0x2388] sm:$0xff] }
 0x2a2   :  { %10566 = vmatpush2.bf16.msra.mxu0 %v13903_v42  ;;  %v14128_v42 = vcombine.high %v1278_v19, %v1282_v8  ;;  %v1274_v43 = vld [vmem:[%s20691_s1 + $0x2568] sm:$0xff]  ;;  %v14063_v54 = vcombine.low %v1214_v24, %v1218_v4 }
 0x2a3   :  { %10591 = vmatpush1.bf16.msra.mxu1 %v13967_v11  ;;  %10567 = vmatprep.subr.bf16.mxu0 %v13896_v41  ;;  %v10287_v11 = vadd.f32 %v17105_v27, %v1690_v62  ;;  %v14064_v41 = vcombine.high %v1214_v24, %v1218_v4  ;;  %v1206_v46 = vld [vmem:[%s20691_s1 + $0x2348] sm:$0xff] }
 0x2a4   :  { %10592 = vmatprep.subr.bf16.mxu1 %v13960_v34  ;;  %v1270_v34 = vld [vmem:[%s20691_s1 + $0x2548] sm:$0xff] }
 0x2a5   :  { %v1210_v27 = vld [vmem:[%s20691_s1 + $0x2368] sm:$0xff] }
 0x2a6   :  { %10568 = vmatpush2.bf16.msra.mxu0 %v13895_v52  ;;  %v14056_v15 = vcombine.high %v1206_v46, %v1210_v27  ;;  %v1262_v17 = vld [vmem:[%s20691_s1 + $0x2508] sm:$0xff]  ;;  %v14055_v10 = vcombine.low %v1206_v46, %v1210_v27 }
 0x2a7   :  { %10593 = vmatpush1.bf16.msra.mxu1 %v13959_v53  ;;  %10569 = vmatprep.subr.bf16.mxu0 %v13888_v60  ;;  %v14127_v53 = vcombine.low %v1278_v19, %v1282_v8  ;;  %v1266_v37 = vld [vmem:[%s20691_s1 + $0x2528] sm:$0xff] }
 0x2a8   :  { %10594 = vmatprep.subr.bf16.mxu1 %v13952_v61  ;;  %v14120_v61 = vcombine.high %v1270_v34, %v1274_v43  ;;  %v1198_v0 = vld [vmem:[%s20691_s1 + $0x2308] sm:$0xff]  ;;  %v14112_v62 = vcombine.high %v1262_v17, %v1266_v37  ;;  %v14111_v30 = vcombine.low %v1262_v17, %v1266_v37 }
 0x2a9   :  { %v1254_v19 = vld [vmem:[%s20691_s1 + $0x24c8] sm:$0xff] }
 0x2aa   :  { %10570 = vmatpush2.bf16.msra.mxu0 %v13887_v3  ;;  %v1202_v3 = vld [vmem:[%s20691_s1 + $0x2328] sm:$0xff] }
 0x2ab   :  { %10595 = vmatpush1.bf16.msra.mxu1 %v13951_v63  ;;  %10621 = vmatprep.subr.bf16.mxu0 %v14136_v9  ;;  %v14119_v63 = vcombine.low %v1270_v34, %v1274_v43  ;;  %v1258_v8 = vld [vmem:[%s20691_s1 + $0x24e8] sm:$0xff] }
 0x2ac   :  { %10596 = vmatprep.subr.bf16.mxu1 %v14072_v12  ;;  %v14048_v12 = vcombine.high %v1198_v0, %v1202_v3  ;;  %v1190_v24 = vld [vmem:[%s20691_s1 + $0x22c8] sm:$0xff] }
 0x2ad   :  { %v10327_v44 = vpop.f32.mrf.mxu0  ;;  %10572 = vmatmul.mubr.bf16.vlgmr.msra.gmra.mxu0 %v15824_v55  ;;  %v1194_v4 = vld [vmem:[%s20691_s1 + $0x22e8] sm:$0xff] }
 0x2ae   :  { %v17215_v52 = vadd.f32 %v10327_v44, %v10287_v11  ;;  %10622 = vmatpush1.bf16.msra.mxu0 %v14135_v33  ;;  %10653 = vmatprep.mubr.bf16.mxu0 %v15844_v7  ;;  %v14047_v33 = vcombine.low %v1198_v0, %v1202_v3  ;;  %v1246_v11 = vld [vmem:[%s20691_s1 + $0x2488] sm:$0xff]  ;;  %v14103_v44 = vcombine.low %v1254_v19, %v1258_v8 }
 0x2af   :  { %10597 = vmatpush2.bf16.msra.mxu1 %v14071_v35  ;;  %v10329_v60 = vpop.f32.mrf.mxu0  ;;  %10623 = vmatprep.subr.bf16.mxu0 %v14128_v42  ;;  %v14104_v35 = vcombine.high %v1254_v19, %v1258_v8  ;;  %v14040_v42 = vcombine.high %v1190_v24, %v1194_v4  ;;  %v1182_v34 = vld [vmem:[%s20691_s1 + $0x2288] sm:$0xff]  ;;  %v14039_v46 = vcombine.low %v1190_v24, %v1194_v4 }
 0x2b0   :  { %v17218_v5 = vadd.f32 %v10329_v60, %v10289_v50  ;;  %10598 = vmatprep.subr.bf16.mxu1 %v14064_v41  ;;  %v1250_v41 = vld [vmem:[%s20691_s1 + $0x24a8] sm:$0xff] }
 0x2b1   :  { %v10331_v47 = vpop.f32.mrf.mxu0  ;;  %v1186_v43 = vld [vmem:[%s20691_s1 + $0x22a8] sm:$0xff]  ;;  %v14096_v27 = vcombine.high %v1246_v11, %v1250_v41 }
 0x2b2   :  { %10624 = vmatpush1.bf16.msra.mxu0 %v14127_v53  ;;  %v14032_v50 = vcombine.high %v1182_v34, %v1186_v43  ;;  %v1238_v53 = vld [vmem:[%s20691_s1 + $0x2448] sm:$0xff]  ;;  %v14031_v17 = vcombine.low %v1182_v34, %v1186_v43 }
 0x2b3   :  { %10599 = vmatpush2.bf16.msra.mxu1 %v14063_v54  ;;  %v10332_v9 = vpop.f32.mrf.mxu0  ;;  %10625 = vmatprep.subr.bf16.mxu0 %v14120_v61  ;;  %v1242_v60 = vld [vmem:[%s20691_s1 + $0x2468] sm:$0xff] }
 0x2b4   :  { %10600 = vmatprep.subr.bf16.mxu1 %v14056_v15  ;;  %v1174_v54 = vld [vmem:[%s20691_s1 + $0x2248] sm:$0xff]  ;;  %v14095_v15 = vcombine.low %v1246_v11, %v1250_v41  ;;  %v14088_v37 = vcombine.high %v1238_v53, %v1242_v60 }
 0x2b5   :  { %v1178_v61 = vld [vmem:[%s20691_s1 + $0x2268] sm:$0xff] }
 0x2b6   :  { %10626 = vmatpush1.bf16.msra.mxu0 %v14119_v63  ;;  %v14024_v47 = vcombine.high %v1174_v54, %v1178_v61  ;;  %v1230_v0 = vld [vmem:[%s20691_s1 + $0x2408] sm:$0xff] }
 0x2b7   :  { %10601 = vmatpush2.bf16.msra.mxu1 %v14055_v10  ;;  %10627 = vmatprep.subr.bf16.mxu0 %v14112_v62  ;;  %v1234_v3 = vld [vmem:[%s20691_s1 + $0x2428] sm:$0xff]  ;;  %v14087_v10 = vcombine.low %v1238_v53, %v1242_v60  ;;  %v14023_v62 = vcombine.low %v1174_v54, %v1178_v61 }
 0x2b8   :  { %10602 = vmatprep.subr.bf16.mxu1 %v14048_v12  ;;  %v1166_v63 = vld [vmem:[%s20691_s1 + $0x2208] sm:$0xff]  ;;  %v14080_v12 = vcombine.high %v1230_v0, %v1234_v3 }
 0x2b9   :  { %v1170_v9 = vld [vmem:[%s20691_s1 + $0x2228] sm:$0xff] }
 0x2ba   :  { %10628 = vmatpush1.bf16.msra.mxu0 %v14111_v30  ;;  %v14016_v19 = vcombine.high %v1166_v63, %v1170_v9  ;;  %v1350_v8 = vld [vmem:[%s20691_s1 + $0x27c8] sm:$0xff] }
 0x2bb   :  { %10603 = vmatpush2.bf16.msra.mxu1 %v14047_v33  ;;  %10629 = vmatprep.subr.bf16.mxu0 %v14104_v35  ;;  %v1354_v24 = vld [vmem:[%s20691_s1 + $0x27e8] sm:$0xff]  ;;  %v14079_v33 = vcombine.low %v1230_v0, %v1234_v3  ;;  %v14015_v35 = vcombine.low %v1166_v63, %v1170_v9 }
 0x2bc   :  { %10604 = vmatprep.subr.bf16.mxu1 %v14040_v42  ;;  %v1414_v4 = vld [vmem:[%s20691_s1 + $0x29c8] sm:$0xff]  ;;  %v14200_v42 = vcombine.high %v1350_v8, %v1354_v24 }
 0x2bd   :  { %v1418_v30 = vld [vmem:[%s20691_s1 + $0x29e8] sm:$0xff] }
 0x2be   :  { %10630 = vmatpush1.bf16.msra.mxu0 %v14103_v44  ;;  %v14264_v11 = vcombine.high %v1414_v4, %v1418_v30  ;;  %v1342_v41 = vld [vmem:[%s20691_s1 + $0x2788] sm:$0xff] }
 0x2bf   :  { %10605 = vmatpush2.bf16.msra.mxu1 %v14039_v46  ;;  %10631 = vmatprep.subr.bf16.mxu0 %v14096_v27  ;;  %v1346_v34 = vld [vmem:[%s20691_s1 + $0x27a8] sm:$0xff]  ;;  %v14199_v46 = vcombine.low %v1350_v8, %v1354_v24  ;;  %v14263_v27 = vcombine.low %v1414_v4, %v1418_v30 }
 0x2c0   :  { %10606 = vmatprep.subr.bf16.mxu1 %v14032_v50  ;;  %v1406_v43 = vld [vmem:[%s20691_s1 + $0x2988] sm:$0xff]  ;;  %v14192_v50 = vcombine.high %v1342_v41, %v1346_v34 }
 0x2c1   :  { %v1410_v44 = vld [vmem:[%s20691_s1 + $0x29a8] sm:$0xff] }
 0x2c2   :  { %10632 = vmatpush1.bf16.msra.mxu0 %v14095_v15  ;;  %v14256_v53 = vcombine.high %v1406_v43, %v1410_v44  ;;  %v1334_v60 = vld [vmem:[%s20691_s1 + $0x2748] sm:$0xff]  ;;  %v14255_v0 = vcombine.low %v1406_v43, %v1410_v44 }
 0x2c3   :  { %10607 = vmatpush2.bf16.msra.mxu1 %v14031_v17  ;;  %10633 = vmatprep.subr.bf16.mxu0 %v14088_v37  ;;  %v1338_v54 = vld [vmem:[%s20691_s1 + $0x2768] sm:$0xff]  ;;  %v14191_v37 = vcombine.low %v1342_v41, %v1346_v34 }
 0x2c4   :  { %10608 = vmatprep.subr.bf16.mxu1 %v14024_v47  ;;  %v1398_v61 = vld [vmem:[%s20691_s1 + $0x2948] sm:$0xff]  ;;  %v14184_v3 = vcombine.high %v1334_v60, %v1338_v54  ;;  %v14183_v24 = vcombine.low %v1334_v60, %v1338_v54 }
 0x2c5   :  { %v1402_v15 = vld [vmem:[%s20691_s1 + $0x2968] sm:$0xff] }
 0x2c6   :  { %10634 = vmatpush1.bf16.msra.mxu0 %v14087_v10  ;;  %v14248_v9 = vcombine.high %v1398_v61, %v1402_v15  ;;  %v1326_v10 = vld [vmem:[%s20691_s1 + $0x2708] sm:$0xff]  ;;  %v14247_v4 = vcombine.low %v1398_v61, %v1402_v15 }
 0x2c7   :  { %10609 = vmatpush2.bf16.msra.mxu1 %v14023_v62  ;;  %10635 = vmatprep.subr.bf16.mxu0 %v14080_v12  ;;  %v1330_v62 = vld [vmem:[%s20691_s1 + $0x2728] sm:$0xff] }
 0x2c8   :  { %10610 = vmatprep.subr.bf16.mxu1 %v14016_v19  ;;  %v1390_v12 = vld [vmem:[%s20691_s1 + $0x2908] sm:$0xff]  ;;  %v14176_v30 = vcombine.high %v1326_v10, %v1330_v62  ;;  %v14175_v34 = vcombine.low %v1326_v10, %v1330_v62 }
 0x2c9   :  { %v1394_v19 = vld [vmem:[%s20691_s1 + $0x2928] sm:$0xff] }
 0x2ca   :  { %10636 = vmatpush1.bf16.msra.mxu0 %v14079_v33  ;;  %v1386_v41 = vld [vmem:[%s20691_s1 + $0x28e8] sm:$0xff]  ;;  %v14239_v43 = vcombine.low %v1390_v12, %v1394_v19 }
 0x2cb   :  { %10611 = vmatpush2.bf16.msra.mxu1 %v14015_v35  ;;  %10637 = vmatprep.subr.bf16.mxu0 %v14200_v42  ;;  %v14240_v35 = vcombine.high %v1390_v12, %v1394_v19  ;;  %v1322_v42 = vld [vmem:[%s20691_s1 + $0x26e8] sm:$0xff] }
 0x2cc   :  { %10662 = vmatprep.subr.bf16.mxu1 %v14264_v11  ;;  %v1382_v11 = vld [vmem:[%s20691_s1 + $0x28c8] sm:$0xff] }
 0x2cd   :  { %v1378_v60 = vld [vmem:[%s20691_s1 + $0x28a8] sm:$0xff]  ;;  %v14231_v61 = vcombine.low %v1382_v11, %v1386_v41 }
 0x2ce   :  { %v10368_v17 = vpop.f32.mrf.mxu1  ;;  %10613 = vmatmul.mubr.bf16.vlgmr.msra.gmra.mxu1 %v16039_v22  ;;  %10638 = vmatpush2.bf16.msra.mxu0 %v14199_v46  ;;  %v14232_v46 = vcombine.high %v1382_v11, %v1386_v41  ;;  %v1294_v19 = vld [vmem:[%s20691_s1 + $0x2608] sm:$0xff] }
 0x2cf   :  { %v17318_v47 = vadd.f32 %v10368_v17, %v17215_v52  ;;  %10663 = vmatpush1.bf16.msra.mxu1 %v14263_v27  ;;  %10639 = vmatprep.subr.bf16.mxu0 %v14192_v50  ;;  %v1310_v27 = vld [vmem:[%s20691_s1 + $0x2688] sm:$0xff] }
 0x2d0   :  { %v10370_v63 = vpop.f32.mrf.mxu1  ;;  %10664 = vmatprep.subr.bf16.mxu1 %v14256_v53  ;;  %10694 = vmatprep.mubr.bf16.mxu1 %v16062_v39  ;;  %v1314_v50 = vld [vmem:[%s20691_s1 + $0x26a8] sm:$0xff] }
 0x2d1   :  { %v17328_v52 = vadd.f32 %v10370_v63, %v17218_v5  ;;  %v1318_v5 = vld [vmem:[%s20691_s1 + $0x26c8] sm:$0xff]  ;;  %v14160_v15 = vcombine.high %v1310_v27, %v1314_v50 }
 0x2d2   :  { %v10372_v8 = vpop.f32.mrf.mxu1  ;;  %10640 = vmatpush2.bf16.msra.mxu0 %v14191_v37  ;;  %v14168_v44 = vcombine.high %v1318_v5, %v1322_v42  ;;  %v1374_v53 = vld [vmem:[%s20691_s1 + $0x2888] sm:$0xff]  ;;  %v14167_v54 = vcombine.low %v1318_v5, %v1322_v42 }
 0x2d3   :  { %10665 = vmatpush1.bf16.msra.mxu1 %v14255_v0  ;;  %10641 = vmatprep.subr.bf16.mxu0 %v14184_v3  ;;  %v14224_v17 = vcombine.high %v1374_v53, %v1378_v60  ;;  %v1302_v37 = vld [vmem:[%s20691_s1 + $0x2648] sm:$0xff]  ;;  %v14223_v10 = vcombine.low %v1374_v53, %v1378_v60 }
 0x2d4   :  { %v10373_v33 = vpop.f32.mrf.mxu1  ;;  %10666 = vmatprep.subr.bf16.mxu1 %v14248_v9  ;;  %v1306_v0 = vld [vmem:[%s20691_s1 + $0x2668] sm:$0xff]  ;;  %v14159_v9 = vcombine.low %v1310_v27, %v1314_v50 }
 0x2d5   :  { %v1366_v3 = vld [vmem:[%s20691_s1 + $0x2848] sm:$0xff]  ;;  %v14152_v62 = vcombine.high %v1302_v37, %v1306_v0 }
 0x2d6   :  { %10642 = vmatpush2.bf16.msra.mxu0 %v14183_v24  ;;  %v1370_v63 = vld [vmem:[%s20691_s1 + $0x2868] sm:$0xff] }
 0x2d7   :  { %10667 = vmatpush1.bf16.msra.mxu1 %v14247_v4  ;;  %10643 = vmatprep.subr.bf16.mxu0 %v14176_v30  ;;  %v14216_v12 = vcombine.high %v1366_v3, %v1370_v63  ;;  %v1298_v8 = vld [vmem:[%s20691_s1 + $0x2628] sm:$0xff]  ;;  %v14151_v30 = vcombine.low %v1302_v37, %v1306_v0  ;;  %v14215_v33 = vcombine.low %v1366_v3, %v1370_v63 }
 0x2d8   :  { %10668 = vmatprep.subr.bf16.mxu1 %v14240_v35  ;;  %v1358_v24 = vld [vmem:[%s20691_s1 + $0x2808] sm:$0xff]  ;;  %v14144_v35 = vcombine.high %v1294_v19, %v1298_v8 }
 0x2d9   :  { %v1362_v4 = vld [vmem:[%s20691_s1 + $0x2828] sm:$0xff] }
 0x2da   :  { %10644 = vmatpush2.bf16.msra.mxu0 %v14175_v34  ;;  %v14208_v5 = vcombine.high %v1358_v24, %v1362_v4  ;;  %v1542_v42 = vld [vmem:[%s20691_s1 + $0x2dc8] sm:$0xff] }
 0x2db   :  { %10669 = vmatpush1.bf16.msra.mxu1 %v14239_v43  ;;  %10645 = vmatprep.subr.bf16.mxu0 %v14168_v44  ;;  %v1546_v11 = vld [vmem:[%s20691_s1 + $0x2de8] sm:$0xff]  ;;  %v14143_v43 = vcombine.low %v1294_v19, %v1298_v8  ;;  %v14207_v44 = vcombine.low %v1358_v24, %v1362_v4 }
 0x2dc   :  { %10670 = vmatprep.subr.bf16.mxu1 %v14232_v46  ;;  %v1478_v41 = vld [vmem:[%s20691_s1 + $0x2bc8] sm:$0xff]  ;;  %v14392_v46 = vcombine.high %v1542_v42, %v1546_v11 }
 0x2dd   :  { %v1482_v34 = vld [vmem:[%s20691_s1 + $0x2be8] sm:$0xff] }
 0x2de   :  { %10646 = vmatpush2.bf16.msra.mxu0 %v14167_v54  ;;  %v14328_v27 = vcombine.high %v1478_v41, %v1482_v34  ;;  %v1534_v50 = vld [vmem:[%s20691_s1 + $0x2d88] sm:$0xff] }
 0x2df   :  { %10671 = vmatpush1.bf16.msra.mxu1 %v14231_v61  ;;  %10647 = vmatprep.subr.bf16.mxu0 %v14160_v15  ;;  %v1538_v53 = vld [vmem:[%s20691_s1 + $0x2da8] sm:$0xff]  ;;  %v14391_v61 = vcombine.low %v1542_v42, %v1546_v11  ;;  %v14327_v15 = vcombine.low %v1478_v41, %v1482_v34 }
 0x2e0   :  { %10672 = vmatprep.subr.bf16.mxu1 %v14224_v17  ;;  %v1470_v60 = vld [vmem:[%s20691_s1 + $0x2b88] sm:$0xff]  ;;  %v14384_v17 = vcombine.high %v1534_v50, %v1538_v53 }
 0x2e1   :  { %v1474_v54 = vld [vmem:[%s20691_s1 + $0x2ba8] sm:$0xff] }
 0x2e2   :  { %10648 = vmatpush2.bf16.msra.mxu0 %v14159_v9  ;;  %v14320_v37 = vcombine.high %v1470_v60, %v1474_v54  ;;  %v1526_v0 = vld [vmem:[%s20691_s1 + $0x2d48] sm:$0xff]  ;;  %v14319_v8 = vcombine.low %v1470_v60, %v1474_v54 }
 0x2e3   :  { %10673 = vmatpush1.bf16.msra.mxu1 %v14223_v10  ;;  %10649 = vmatprep.subr.bf16.mxu0 %v14152_v62  ;;  %v1530_v3 = vld [vmem:[%s20691_s1 + $0x2d68] sm:$0xff] }
 0x2e4   :  { %10674 = vmatprep.subr.bf16.mxu1 %v14216_v12  ;;  %v1462_v9 = vld [vmem:[%s20691_s1 + $0x2b48] sm:$0xff]  ;;  %v14383_v12 = vcombine.low %v1534_v50, %v1538_v53  ;;  %v14376_v24 = vcombine.high %v1526_v0, %v1530_v3  ;;  %v14375_v42 = vcombine.low %v1526_v0, %v1530_v3 }
 0x2e5   :  { %v1466_v10 = vld [vmem:[%s20691_s1 + $0x2b68] sm:$0xff] }
 0x2e6   :  { %10650 = vmatpush2.bf16.msra.mxu0 %v14151_v30  ;;  %v14312_v30 = vcombine.high %v1462_v9, %v1466_v10  ;;  %v14311_v41 = vcombine.low %v1462_v9, %v1466_v10  ;;  %v1450_v50 = vld [vmem:[%s20691_s1 + $0x2ae8] sm:$0xff] }
 0x2e7   :  { %10675 = vmatpush1.bf16.msra.mxu1 %v14215_v33  ;;  %10651 = vmatprep.subr.bf16.mxu0 %v14144_v35  ;;  %v1518_v33 = vld [vmem:[%s20691_s1 + $0x2d08] sm:$0xff] }
 0x2e8   :  { %10676 = vmatprep.subr.bf16.mxu1 %v14208_v5  ;;  %v1454_v5 = vld [vmem:[%s20691_s1 + $0x2b08] sm:$0xff] }
 0x2e9   :  { %v1442_v0 = vld [vmem:[%s20691_s1 + $0x2aa8] sm:$0xff] }
 0x2ea   :  { %10652 = vmatpush2.bf16.msra.mxu0 %v14143_v43 }
 0x2eb   :  { %10677 = vmatpush1.bf16.msra.mxu1 %v14207_v44  ;;  %10703 = vmatprep.subr.bf16.mxu0 %v14392_v46  ;;  %v1510_v44 = vld [vmem:[%s20691_s1 + $0x2cc8] sm:$0xff] }
 0x2ec   :  { %10678 = vmatprep.subr.bf16.mxu1 %v14328_v27  ;;  %v1514_v46 = vld [vmem:[%s20691_s1 + $0x2ce8] sm:$0xff] }
 0x2ed   :  { %v10409_v63 = vpop.f32.mrf.mxu0  ;;  %10654 = vmatmul.mubr.bf16.vlgmr.msra.gmra.mxu0 %v16051_v29  ;;  %v1446_v27 = vld [vmem:[%s20691_s1 + $0x2ac8] sm:$0xff]  ;;  %v14360_v54 = vcombine.high %v1510_v44, %v1514_v46  ;;  %v14359_v3 = vcombine.low %v1510_v44, %v1514_v46 }
 0x2ee   :  { %v17422_v62 = vadd.f32 %v10409_v63, %v17318_v47  ;;  %10704 = vmatpush1.bf16.msra.mxu0 %v14391_v61  ;;  %10735 = vmatprep.mubr.bf16.mxu0 %v16071_v45  ;;  %v1522_v47 = vld [vmem:[%s20691_s1 + $0x2d28] sm:$0xff]  ;;  %v14296_v61 = vcombine.high %v1446_v27, %v1450_v50  ;;  %v14295_v63 = vcombine.low %v1446_v27, %v1450_v50 }
 0x2ef   :  { %10679 = vmatpush2.bf16.msra.mxu1 %v14327_v15  ;;  %v10411_v19 = vpop.f32.mrf.mxu0  ;;  %10705 = vmatprep.subr.bf16.mxu0 %v14384_v17  ;;  %v14368_v34 = vcombine.high %v1518_v33, %v1522_v47  ;;  %v14367_v53 = vcombine.low %v1518_v33, %v1522_v47  ;;  %v1502_v15 = vld [vmem:[%s20691_s1 + $0x2c88] sm:$0xff] }
 0x2f0   :  { %v17426_v4 = vadd.f32 %v10411_v19, %v17328_v52  ;;  %10680 = vmatprep.subr.bf16.mxu1 %v14320_v37  ;;  %v1458_v52 = vld [vmem:[%s20691_s1 + $0x2b28] sm:$0xff] }
 0x2f1   :  { %v10413_v35 = vpop.f32.mrf.mxu0  ;;  %v14304_v43 = vcombine.high %v1454_v5, %v1458_v52  ;;  %v14303_v60 = vcombine.low %v1454_v5, %v1458_v52  ;;  %v1506_v17 = vld [vmem:[%s20691_s1 + $0x2ca8] sm:$0xff] }
 0x2f2   :  { %10706 = vmatpush1.bf16.msra.mxu0 %v14383_v12  ;;  %v1438_v37 = vld [vmem:[%s20691_s1 + $0x2a88] sm:$0xff]  ;;  %v14352_v9 = vcombine.high %v1502_v15, %v1506_v17 }
 0x2f3   :  { %10681 = vmatpush2.bf16.msra.mxu1 %v14319_v8  ;;  %v10414_v11 = vpop.f32.mrf.mxu0  ;;  %10707 = vmatprep.subr.bf16.mxu0 %v14376_v24  ;;  %v14288_v10 = vcombine.high %v1438_v37, %v1442_v0  ;;  %v1494_v12 = vld [vmem:[%s20691_s1 + $0x2c48] sm:$0xff]  ;;  %v14287_v33 = vcombine.low %v1438_v37, %v1442_v0 }
 0x2f4   :  { %10682 = vmatprep.subr.bf16.mxu1 %v14312_v30  ;;  %v1498_v19 = vld [vmem:[%s20691_s1 + $0x2c68] sm:$0xff]  ;;  %v14351_v30 = vcombine.low %v1502_v15, %v1506_v17 }
 0x2f5   :  { %v1430_v8 = vld [vmem:[%s20691_s1 + $0x2a48] sm:$0xff]  ;;  %v14344_v47 = vcombine.high %v1494_v12, %v1498_v19 }
 0x2f6   :  { %10708 = vmatpush1.bf16.msra.mxu0 %v14375_v42  ;;  %v1434_v24 = vld [vmem:[%s20691_s1 + $0x2a68] sm:$0xff] }
 0x2f7   :  { %10683 = vmatpush2.bf16.msra.mxu1 %v14311_v41  ;;  %10709 = vmatprep.subr.bf16.mxu0 %v14368_v34  ;;  %v14280_v35 = vcombine.high %v1430_v8, %v1434_v24  ;;  %v1486_v5 = vld [vmem:[%s20691_s1 + $0x2c08] sm:$0xff]  ;;  %v14343_v41 = vcombine.low %v1494_v12, %v1498_v19  ;;  %v14279_v34 = vcombine.low %v1430_v8, %v1434_v24 }
 0x2f8   :  { %10684 = vmatprep.subr.bf16.mxu1 %v14304_v43  ;;  %v1490_v52 = vld [vmem:[%s20691_s1 + $0x2c28] sm:$0xff] }
 0x2f9   :  { %v1422_v42 = vld [vmem:[%s20691_s1 + $0x2a08] sm:$0xff]  ;;  %v14336_v43 = vcombine.high %v1486_v5, %v1490_v52 }
 0x2fa   :  { %10710 = vmatpush1.bf16.msra.mxu0 %v14367_v53  ;;  %v1426_v11 = vld [vmem:[%s20691_s1 + $0x2a28] sm:$0xff] }
 0x2fb   :  { %10685 = vmatpush2.bf16.msra.mxu1 %v14303_v60  ;;  %10711 = vmatprep.subr.bf16.mxu0 %v14360_v54  ;;  %v14272_v44 = vcombine.high %v1422_v42, %v1426_v11  ;;  %v1606_v46 = vld [vmem:[%s20691_s1 + $0x2fc8] sm:$0xff]  ;;  %v14335_v60 = vcombine.low %v1486_v5, %v1490_v52  ;;  %v14271_v54 = vcombine.low %v1422_v42, %v1426_v11 }
 0x2fc   :  { %10686 = vmatprep.subr.bf16.mxu1 %v14296_v61  ;;  %v1610_v27 = vld [vmem:[%s20691_s1 + $0x2fe8] sm:$0xff] }
 0x2fd   :  { %v1670_v50 = vld [vmem:[%s20691_s1 + $0x31c8] sm:$0xff]  ;;  %v14456_v61 = vcombine.high %v1606_v46, %v1610_v27 }
 0x2fe   :  { %10712 = vmatpush1.bf16.msra.mxu0 %v14359_v3  ;;  %v1674_v53 = vld [vmem:[%s20691_s1 + $0x31e8] sm:$0xff] }
 0x2ff   :  { %10687 = vmatpush2.bf16.msra.mxu1 %v14295_v63  ;;  %10713 = vmatprep.subr.bf16.mxu0 %v14352_v9  ;;  %v14520_v15 = vcombine.high %v1670_v50, %v1674_v53  ;;  %v1598_v17 = vld [vmem:[%s20691_s1 + $0x2f88] sm:$0xff]  ;;  %v14455_v63 = vcombine.low %v1606_v46, %v1610_v27  ;;  %v14519_v9 = vcombine.low %v1670_v50, %v1674_v53 }
 0x300   :  { %10688 = vmatprep.subr.bf16.mxu1 %v14288_v10  ;;  %v1602_v37 = vld [vmem:[%s20691_s1 + $0x2fa8] sm:$0xff] }
 0x301   :  { %v1662_v0 = vld [vmem:[%s20691_s1 + $0x3188] sm:$0xff]  ;;  %v14448_v10 = vcombine.high %v1598_v17, %v1602_v37 }
 0x302   :  { %10714 = vmatpush1.bf16.msra.mxu0 %v14351_v30  ;;  %v1666_v3 = vld [vmem:[%s20691_s1 + $0x31a8] sm:$0xff] }
 0x303   :  { %10689 = vmatpush2.bf16.msra.mxu1 %v14287_v33  ;;  %10715 = vmatprep.subr.bf16.mxu0 %v14344_v47  ;;  %v14512_v12 = vcombine.high %v1662_v0, %v1666_v3  ;;  %v1590_v19 = vld [vmem:[%s20691_s1 + $0x2f48] sm:$0xff]  ;;  %v14447_v47 = vcombine.low %v1598_v17, %v1602_v37  ;;  %v14511_v5 = vcombine.low %v1662_v0, %v1666_v3 }
 0x304   :  { %10690 = vmatprep.subr.bf16.mxu1 %v14280_v35  ;;  %v1594_v8 = vld [vmem:[%s20691_s1 + $0x2f68] sm:$0xff] }
 0x305   :  { %v1654_v24 = vld [vmem:[%s20691_s1 + $0x3148] sm:$0xff]  ;;  %v14440_v52 = vcombine.high %v1590_v19, %v1594_v8  ;;  %v14439_v27 = vcombine.low %v1590_v19, %v1594_v8 }
 0x306   :  { %10716 = vmatpush1.bf16.msra.mxu0 %v14343_v41  ;;  %v1658_v30 = vld [vmem:[%s20691_s1 + $0x3168] sm:$0xff] }
 0x307   :  { %10691 = vmatpush2.bf16.msra.mxu1 %v14279_v34  ;;  %10717 = vmatprep.subr.bf16.mxu0 %v14336_v43  ;;  %v14504_v11 = vcombine.high %v1654_v24, %v1658_v30  ;;  %v1582_v41 = vld [vmem:[%s20691_s1 + $0x2f08] sm:$0xff]  ;;  %v14503_v50 = vcombine.low %v1654_v24, %v1658_v30 }
 0x308   :  { %10692 = vmatprep.subr.bf16.mxu1 %v14272_v44  ;;  %v1586_v34 = vld [vmem:[%s20691_s1 + $0x2f28] sm:$0xff] }
 0x309   :  { %v1646_v43 = vld [vmem:[%s20691_s1 + $0x3108] sm:$0xff]  ;;  %v14432_v53 = vcombine.high %v1582_v41, %v1586_v34  ;;  %v14431_v37 = vcombine.low %v1582_v41, %v1586_v34 }
 0x30a   :  { %10718 = vmatpush1.bf16.msra.mxu0 %v14335_v60  ;;  %v1650_v44 = vld [vmem:[%s20691_s1 + $0x3128] sm:$0xff] }
 0x30b   :  { %10693 = vmatpush2.bf16.msra.mxu1 %v14271_v54  ;;  %10719 = vmatprep.subr.bf16.mxu0 %v14456_v61  ;;  %v14496_v54 = vcombine.high %v1646_v43, %v1650_v44  ;;  %v1578_v61 = vld [vmem:[%s20691_s1 + $0x2ee8] sm:$0xff]  ;;  %v14495_v0 = vcombine.low %v1646_v43, %v1650_v44 }
 0x30c   :  { %10744 = vmatprep.subr.bf16.mxu1 %v14520_v15  ;;  %v1638_v15 = vld [vmem:[%s20691_s1 + $0x30c8] sm:$0xff] }
 0x30d   :  { %v1642_v17 = vld [vmem:[%s20691_s1 + $0x30e8] sm:$0xff] }
 0x30e   :  { %v10450_v33 = vpop.f32.mrf.mxu1  ;;  %10695 = vmatmul.mubr.bf16.vlgmr.msra.gmra.mxu1 %v16262_v13  ;;  %10720 = vmatpush2.bf16.msra.mxu0 %v14455_v63  ;;  %v14488_v63 = vcombine.high %v1638_v15, %v1642_v17  ;;  %v1634_v19 = vld [vmem:[%s20691_s1 + $0x30a8] sm:$0xff]  ;;  %v14487_v24 = vcombine.low %v1638_v15, %v1642_v17  ;;  %v139_v15 = vld [vmem:[%s20691_s1 + $0x1f0] sm:$0xff] }
 0x30f   :  { %v17526_v35 = vadd.f32 %v10450_v33, %v17422_v62  ;;  %10745 = vmatpush1.bf16.msra.mxu1 %v14519_v9  ;;  %10721 = vmatprep.subr.bf16.mxu0 %v14448_v10  ;;  %v1566_v9 = vld [vmem:[%s20691_s1 + $0x2e88] sm:$0xff]  ;;  %v263_v17 = vld [vmem:[%s20691_s1 + $0x5d0] sm:$0xff] }
 0x310   :  { %v10452_v42 = vpop.f32.mrf.mxu1  ;;  %10746 = vmatprep.subr.bf16.mxu1 %v14512_v12  ;;  %10776 = vmatprep.mubr.bf16.mxu1 %v14885_v57  ;;  %v1570_v10 = vld [vmem:[%s20691_s1 + $0x2ea8] sm:$0xff] }
 0x311   :  { %v17536_v62 = vadd.f32 %v10452_v42, %v17426_v4  ;;  %v1574_v4 = vld [vmem:[%s20691_s1 + $0x2ec8] sm:$0xff]  ;;  %v14416_v30 = vcombine.high %v1566_v9, %v1570_v10 }
 0x312   :  { %v10454_v46 = vpop.f32.mrf.mxu1  ;;  %10722 = vmatpush2.bf16.msra.mxu0 %v14447_v47  ;;  %v14424_v3 = vcombine.high %v1574_v4, %v1578_v61  ;;  %v1630_v12 = vld [vmem:[%s20691_s1 + $0x3088] sm:$0xff]  ;;  %v14423_v8 = vcombine.low %v1574_v4, %v1578_v61  ;;  %v135_v61 = vld [vmem:[%s20691_s1 + $0x1d0] sm:$0xff] }
 0x313   :  { %10747 = vmatpush1.bf16.msra.mxu1 %v14511_v5  ;;  %10723 = vmatprep.subr.bf16.mxu0 %v14440_v52  ;;  %v14480_v33 = vcombine.high %v1630_v12, %v1634_v19  ;;  %v1558_v47 = vld [vmem:[%s20691_s1 + $0x2e48] sm:$0xff]  ;;  %v14479_v41 = vcombine.low %v1630_v12, %v1634_v19  ;;  %v131_v12 = vld [vmem:[%s20691_s1 + $0x1b0] sm:$0xff] }
 0x314   :  { %v10455_v60 = vpop.f32.mrf.mxu1  ;;  %10748 = vmatprep.subr.bf16.mxu1 %v14504_v11  ;;  %v1562_v5 = vld [vmem:[%s20691_s1 + $0x2e68] sm:$0xff]  ;;  %v14415_v11 = vcombine.low %v1566_v9, %v1570_v10  ;;  %v127_v10 = vld [vmem:[%s20691_s1 + $0x190] sm:$0xff] }
 0x315   :  { %v1622_v52 = vld [vmem:[%s20691_s1 + $0x3048] sm:$0xff]  ;;  %v14408_v34 = vcombine.high %v1558_v47, %v1562_v5  ;;  %v255_v19 = vld [vmem:[%s20691_s1 + $0x590] sm:$0xff] }
 0x316   :  { %10724 = vmatpush2.bf16.msra.mxu0 %v14439_v27  ;;  %v1626_v42 = vld [vmem:[%s20691_s1 + $0x3068] sm:$0xff] }
 0x317   :  { %10749 = vmatpush1.bf16.msra.mxu1 %v14503_v50  ;;  %10725 = vmatprep.subr.bf16.mxu0 %v14432_v53  ;;  %v14472_v43 = vcombine.high %v1622_v52, %v1626_v42  ;;  %v1550_v44 = vld [vmem:[%s20691_s1 + $0x2e08] sm:$0xff]  ;;  %v14407_v53 = vcombine.low %v1558_v47, %v1562_v5  ;;  %v14471_v60 = vcombine.low %v1622_v52, %v1626_v42  ;;  %v119_v5 = vld [vmem:[%s20691_s1 + $0x150] sm:$0xff] }
 0x318   :  { %10750 = vmatprep.subr.bf16.mxu1 %v14496_v54  ;;  %v1554_v46 = vld [vmem:[%s20691_s1 + $0x2e28] sm:$0xff]  ;;  %v123_v52 = vld [vmem:[%s20691_s1 + $0x170] sm:$0xff] }
 0x319   :  { %v1614_v27 = vld [vmem:[%s20691_s1 + $0x3008] sm:$0xff]  ;;  %v14400_v54 = vcombine.high %v1550_v44, %v1554_v46 }
 0x31a   :  { %10726 = vmatpush2.bf16.msra.mxu0 %v14431_v37  ;;  %v1618_v50 = vld [vmem:[%s20691_s1 + $0x3028] sm:$0xff]  ;;  %v267_v37 = vld [vmem:[%s20691_s1 + $0x5f0] sm:$0xff] }
 0x31b   :  { %10751 = vmatpush1.bf16.msra.mxu1 %v14495_v0  ;;  %10727 = vmatprep.subr.bf16.mxu0 %v14424_v3  ;;  %v14464_v4 = vcombine.high %v1614_v27, %v1618_v50  ;;  %v14399_v0 = vcombine.low %v1550_v44, %v1554_v46  ;;  %v14463_v3 = vcombine.low %v1614_v27, %v1618_v50 }
 0x31c   :  { %10752 = vmatprep.subr.bf16.mxu1 %v14488_v63  ;;  %v12986_v63 = vcombine.high %v135_v61, %v139_v15  ;;  %v13114_v9 = vcombine.high %v263_v17, %v267_v37  ;;  %v12970_v27 = vcombine.high %v119_v5, %v123_v52 }
 0x31e   :  { %10728 = vmatpush2.bf16.msra.mxu0 %v14423_v8  ;;  %v259_v8 = vld [vmem:[%s20691_s1 + $0x5b0] sm:$0xff] }
 0x31f   :  { %10753 = vmatpush1.bf16.msra.mxu1 %v14487_v24  ;;  %10729 = vmatprep.subr.bf16.mxu0 %v14416_v30  ;;  %v12985_v24 = vcombine.low %v135_v61, %v139_v15  ;;  %v13113_v30 = vcombine.low %v263_v17, %v267_v37  ;;  %v13106_v47 = vcombine.high %v255_v19, %v259_v8 }
 0x320   :  { %10754 = vmatprep.subr.bf16.mxu1 %v14480_v33  ;;  %v12978_v33 = vcombine.high %v127_v10, %v131_v12  ;;  %v13105_v46 = vcombine.low %v255_v19, %v259_v8  ;;  %v12969_v61 = vcombine.low %v119_v5, %v123_v52  ;;  %v227_v5 = vld [vmem:[%s20691_s1 + $0x4b0] sm:$0xff] }
 0x322   :  { %10730 = vmatpush2.bf16.msra.mxu0 %v14415_v11  ;;  %v247_v11 = vld [vmem:[%s20691_s1 + $0x550] sm:$0xff] }
 0x323   :  { %10755 = vmatpush1.bf16.msra.mxu1 %v14479_v41  ;;  %10731 = vmatprep.subr.bf16.mxu0 %v14408_v34  ;;  %v251_v41 = vld [vmem:[%s20691_s1 + $0x570] sm:$0xff] }
 0x324   :  { %10756 = vmatprep.subr.bf16.mxu1 %v14472_v43  ;;  %v12977_v43 = vcombine.low %v127_v10, %v131_v12  ;;  %v13097_v17 = vcombine.low %v247_v11, %v251_v41  ;;  %v235_v10 = vld [vmem:[%s20691_s1 + $0x4f0] sm:$0xff] }
 0x326   :  { %10732 = vmatpush2.bf16.msra.mxu0 %v14407_v53  ;;  %v13098_v53 = vcombine.high %v247_v11, %v251_v41 }
 0x327   :  { %10757 = vmatpush1.bf16.msra.mxu1 %v14471_v60  ;;  %10733 = vmatprep.subr.bf16.mxu0 %v14400_v54  ;;  %v111_v60 = vld [vmem:[%s20691_s1 + $0x110] sm:$0xff] }
 0x328   :  { %10758 = vmatprep.subr.bf16.mxu1 %v14464_v4  ;;  %v239_v4 = vld [vmem:[%s20691_s1 + $0x510] sm:$0xff] }
 0x32a   :  { %10734 = vmatpush2.bf16.msra.mxu0 %v14399_v0 }
 0x32b   :  { %10759 = vmatpush1.bf16.msra.mxu1 %v14463_v3  ;;  %10785 = vmatprep.subr.bf16.mxu0 %v12986_v63  ;;  %v103_v3 = vld [vmem:[%s20691_s1 + $0xd0] sm:$0xff] }
 0x32c   :  { %10826 = vmatprep.subr.bf16.mxu1 %v13114_v9  ;;  %v107_v63 = vld [vmem:[%s20691_s1 + $0xf0] sm:$0xff] }
 0x32d   :  { %v10491_v42 = vpop.f32.mrf.mxu0  ;;  %10736 = vmatmul.mubr.bf16.vlgmr.msra.gmra.mxu0 %v16270_v21  ;;  %v231_v9 = vld [vmem:[%s20691_s1 + $0x4d0] sm:$0xff]  ;;  %v12954_v8 = vcombine.high %v103_v3, %v107_v63  ;;  %v12953_v52 = vcombine.low %v103_v3, %v107_v63 }
 0x32e   :  { %v17630_v34 = vadd.f32 %v10491_v42, %v17526_v35  ;;  %10777 = vmatmul.mubr.bf16.vlgmr.msra.gmra.mxu1 %v16375_v32  ;;  %10786 = vmatpush1.bf16.msra.mxu0 %v12985_v24  ;;  %v115_v35 = vld [vmem:[%s20691_s1 + $0x130] sm:$0xff]  ;;  %v13082_v24 = vcombine.high %v231_v9, %v235_v10  ;;  %v13081_v42 = vcombine.low %v231_v9, %v235_v10 }
 0x32f   :  { %10827 = vmatpush1.bf16.msra.mxu1 %v13113_v30  ;;  %v10493_v44 = vpop.f32.mrf.mxu0  ;;  %10787 = vmatprep.subr.bf16.mxu0 %v12978_v33  ;;  %v12962_v37 = vcombine.high %v111_v60, %v115_v35  ;;  %v12961_v12 = vcombine.low %v111_v60, %v115_v35  ;;  %v95_v30 = vld [vmem:[%s20691_s1 + $0x90] sm:$0xff] }
 0x330   :  { %v17634_v50 = vadd.f32 %v10493_v44, %v17536_v62  ;;  %10828 = vmatprep.subr.bf16.mxu1 %v13106_v47  ;;  %10817 = vmatprep.mubr.bf16.mxu0 %v15022_v58  ;;  %v243_v62 = vld [vmem:[%s20691_s1 + $0x530] sm:$0xff] }
 0x331   :  { %v10495_v54 = vpop.f32.mrf.mxu0  ;;  %10858 = vmatprep.mubr.bf16.mxu1 %v15024_v59  ;;  %v13090_v0 = vcombine.high %v239_v4, %v243_v62  ;;  %v13089_v19 = vcombine.low %v239_v4, %v243_v62  ;;  %v99_v33 = vld [vmem:[%s20691_s1 + $0xb0] sm:$0xff] }
 0x332   :  { %10788 = vmatpush1.bf16.msra.mxu0 %v12977_v43  ;;  %v223_v47 = vld [vmem:[%s20691_s1 + $0x490] sm:$0xff]  ;;  %v12946_v11 = vcombine.high %v95_v30, %v99_v33 }
 0x333   :  { %10829 = vmatpush1.bf16.msra.mxu1 %v13105_v46  ;;  %v10496_v15 = vpop.f32.mrf.mxu0  ;;  %10789 = vmatprep.subr.bf16.mxu0 %v12970_v27  ;;  %v13074_v41 = vcombine.high %v223_v47, %v227_v5  ;;  %v87_v43 = vld [vmem:[%s20691_s1 + $0x50] sm:$0xff]  ;;  %v13073_v60 = vcombine.low %v223_v47, %v227_v5 }
 0x334   :  { %10830 = vmatprep.subr.bf16.mxu1 %v13098_v53  ;;  %v91_v44 = vld [vmem:[%s20691_s1 + $0x70] sm:$0xff]  ;;  %v12945_v53 = vcombine.low %v95_v30, %v99_v33 }
 0x335   :  { %v215_v46 = vld [vmem:[%s20691_s1 + $0x450] sm:$0xff]  ;;  %v12938_v35 = vcombine.high %v87_v43, %v91_v44 }
 0x336   :  { %10790 = vmatpush1.bf16.msra.mxu0 %v12969_v61  ;;  %v219_v27 = vld [vmem:[%s20691_s1 + $0x470] sm:$0xff] }
 0x337   :  { %10831 = vmatpush1.bf16.msra.mxu1 %v13097_v17  ;;  %10791 = vmatprep.subr.bf16.mxu0 %v12962_v37  ;;  %v13066_v54 = vcombine.high %v215_v46, %v219_v27  ;;  %v79_v4 = vld [vmem:[%s20691_s1 + $0x10] sm:$0xff]  ;;  %v12937_v17 = vcombine.low %v87_v43, %v91_v44  ;;  %v13065_v37 = vcombine.low %v215_v46, %v219_v27 }
 0x338   :  { %10832 = vmatprep.subr.bf16.mxu1 %v13090_v0  ;;  %v83_v62 = vld [vmem:[%s20691_s1 + $0x30] sm:$0xff] }
 0x339   :  { %v207_v61 = vld [vmem:[%s20691_s1 + $0x410] sm:$0xff]  ;;  %v12930_v0 = vcombine.high %v79_v4, %v83_v62 }
 0x33a   :  { %10792 = vmatpush1.bf16.msra.mxu0 %v12961_v12  ;;  %v211_v15 = vld [vmem:[%s20691_s1 + $0x430] sm:$0xff] }
 0x33b   :  { %10833 = vmatpush1.bf16.msra.mxu1 %v13089_v19  ;;  %10793 = vmatprep.subr.bf16.mxu0 %v12954_v8  ;;  %v13058_v3 = vcombine.high %v207_v61, %v211_v15  ;;  %v199_v63 = vld [vmem:[%s20691_s1 + $0x3d0] sm:$0xff]  ;;  %v12929_v19 = vcombine.low %v79_v4, %v83_v62  ;;  %v13057_v8 = vcombine.low %v207_v61, %v211_v15 }
 0x33c   :  { %10834 = vmatprep.subr.bf16.mxu1 %v13082_v24  ;;  %v203_v9 = vld [vmem:[%s20691_s1 + $0x3f0] sm:$0xff] }
 0x33d   :  { %v327_v10 = vld [vmem:[%s20691_s1 + $0x7d0] sm:$0xff]  ;;  %v13050_v24 = vcombine.high %v199_v63, %v203_v9 }
 0x33e   :  { %10794 = vmatpush1.bf16.msra.mxu0 %v12953_v52  ;;  %v331_v12 = vld [vmem:[%s20691_s1 + $0x7f0] sm:$0xff] }
 0x33f   :  { %10835 = vmatpush1.bf16.msra.mxu1 %v13081_v42  ;;  %10795 = vmatprep.subr.bf16.mxu0 %v12946_v11  ;;  %v13178_v30 = vcombine.high %v327_v10, %v331_v12  ;;  %v191_v33 = vld [vmem:[%s20691_s1 + $0x390] sm:$0xff]  ;;  %v13049_v42 = vcombine.low %v199_v63, %v203_v9  ;;  %v13177_v11 = vcombine.low %v327_v10, %v331_v12 }
 0x340   :  { %10836 = vmatprep.subr.bf16.mxu1 %v13074_v41  ;;  %v195_v47 = vld [vmem:[%s20691_s1 + $0x3b0] sm:$0xff] }
 0x341   :  { %v319_v5 = vld [vmem:[%s20691_s1 + $0x790] sm:$0xff]  ;;  %v13042_v41 = vcombine.high %v191_v33, %v195_v47 }
 0x342   :  { %10796 = vmatpush1.bf16.msra.mxu0 %v12945_v53  ;;  %v323_v52 = vld [vmem:[%s20691_s1 + $0x7b0] sm:$0xff] }
 0x343   :  { %10837 = vmatpush1.bf16.msra.mxu1 %v13073_v60  ;;  %10797 = vmatprep.subr.bf16.mxu0 %v12938_v35  ;;  %v13170_v43 = vcombine.high %v319_v5, %v323_v52  ;;  %v183_v44 = vld [vmem:[%s20691_s1 + $0x350] sm:$0xff]  ;;  %v13041_v35 = vcombine.low %v191_v33, %v195_v47  ;;  %v13169_v4 = vcombine.low %v319_v5, %v323_v52 }
 0x344   :  { %10838 = vmatprep.subr.bf16.mxu1 %v13066_v54  ;;  %v187_v46 = vld [vmem:[%s20691_s1 + $0x370] sm:$0xff] }
 0x345   :  { %v311_v27 = vld [vmem:[%s20691_s1 + $0x750] sm:$0xff]  ;;  %v13034_v62 = vcombine.high %v183_v44, %v187_v46  ;;  %v13033_v9 = vcombine.low %v183_v44, %v187_v46 }
 0x346   :  { %10798 = vmatpush1.bf16.msra.mxu0 %v12937_v17  ;;  %v315_v53 = vld [vmem:[%s20691_s1 + $0x770] sm:$0xff] }
 0x347   :  { %10839 = vmatpush1.bf16.msra.mxu1 %v13065_v37  ;;  %10799 = vmatprep.subr.bf16.mxu0 %v12930_v0  ;;  %v13162_v15 = vcombine.high %v311_v27, %v315_v53  ;;  %v175_v17 = vld [vmem:[%s20691_s1 + $0x310] sm:$0xff]  ;;  %v13161_v10 = vcombine.low %v311_v27, %v315_v53 }
 0x348   :  { %10840 = vmatprep.subr.bf16.mxu1 %v13058_v3  ;;  %v179_v37 = vld [vmem:[%s20691_s1 + $0x330] sm:$0xff] }
 0x349   :  { %v307_v3 = vld [vmem:[%s20691_s1 + $0x730] sm:$0xff]  ;;  %v13026_v12 = vcombine.high %v175_v17, %v179_v37  ;;  %v13025_v47 = vcombine.low %v175_v17, %v179_v37 }
 0x34a   :  { %10800 = vmatpush1.bf16.msra.mxu0 %v12929_v19  ;;  %v299_v33 = vld [vmem:[%s20691_s1 + $0x6f0] sm:$0xff] }
 0x34b   :  { %10841 = vmatpush1.bf16.msra.mxu1 %v13057_v8  ;;  %10801 = vmatprep.subr.bf16.mxu0 %v13050_v24  ;;  %v171_v24 = vld [vmem:[%s20691_s1 + $0x2f0] sm:$0xff] }
 0x34c   :  { %10842 = vmatprep.subr.bf16.mxu1 %v13178_v30  ;;  %v295_v30 = vld [vmem:[%s20691_s1 + $0x6d0] sm:$0xff] }
 0x34d   :  { %v291_v44 = vld [vmem:[%s20691_s1 + $0x6b0] sm:$0xff]  ;;  %v13145_v27 = vcombine.low %v295_v30, %v299_v33 }
 0x34e   :  { %v10532_v60 = vpop.f32.mrf.mxu1  ;;  %10802 = vmatpush2.bf16.msra.mxu0 %v13049_v42  ;;  %v13146_v42 = vcombine.high %v295_v30, %v299_v33  ;;  %v395_v30 = vld [vmem:[%s20691_s1 + $0x9f0] sm:$0xff] }
 0x34f   :  { %v17735_v54 = vadd.f32 %v10532_v60, %v17630_v34  ;;  %10843 = vmatpush2.bf16.msra.mxu1 %v13177_v11  ;;  %10803 = vmatprep.subr.bf16.mxu0 %v13042_v41  ;;  %v303_v34 = vld [vmem:[%s20691_s1 + $0x710] sm:$0xff] }
 0x350   :  { %v10534_v61 = vpop.f32.mrf.mxu1  ;;  %10844 = vmatprep.subr.bf16.mxu1 %v13170_v43  ;;  %v13154_v8 = vcombine.high %v303_v34, %v307_v3  ;;  %v13153_v5 = vcombine.low %v303_v34, %v307_v3  ;;  %v159_v11 = vld [vmem:[%s20691_s1 + $0x290] sm:$0xff] }
 0x351   :  { %v17744_v0 = vadd.f32 %v10534_v61, %v17634_v50  ;;  %v167_v50 = vld [vmem:[%s20691_s1 + $0x2d0] sm:$0xff] }
 0x352   :  { %v10536_v63 = vpop.f32.mrf.mxu1  ;;  %10804 = vmatpush2.bf16.msra.mxu0 %v13041_v35  ;;  %v13018_v52 = vcombine.high %v167_v50, %v171_v24  ;;  %v163_v41 = vld [vmem:[%s20691_s1 + $0x2b0] sm:$0xff]  ;;  %v13017_v46 = vcombine.low %v167_v50, %v171_v24 }
 0x353   :  { %10845 = vmatpush2.bf16.msra.mxu1 %v13169_v4  ;;  %10805 = vmatprep.subr.bf16.mxu0 %v13034_v62  ;;  %v287_v43 = vld [vmem:[%s20691_s1 + $0x690] sm:$0xff]  ;;  %v13010_v53 = vcombine.high %v159_v11, %v163_v41 }
 0x354   :  { %v10537_v19 = vpop.f32.mrf.mxu1  ;;  %10846 = vmatprep.subr.bf16.mxu1 %v13162_v15  ;;  %v13138_v60 = vcombine.high %v287_v43, %v291_v44  ;;  %v151_v35 = vld [vmem:[%s20691_s1 + $0x250] sm:$0xff]  ;;  %v13009_v15 = vcombine.low %v159_v11, %v163_v41  ;;  %v13137_v17 = vcombine.low %v287_v43, %v291_v44 }
 0x355   :  { %v155_v4 = vld [vmem:[%s20691_s1 + $0x270] sm:$0xff] }
 0x356   :  { %10806 = vmatpush2.bf16.msra.mxu0 %v13033_v9  ;;  %v279_v62 = vld [vmem:[%s20691_s1 + $0x650] sm:$0xff]  ;;  %v13002_v37 = vcombine.high %v151_v35, %v155_v4 }
 0x357   :  { %10847 = vmatpush2.bf16.msra.mxu1 %v13161_v10  ;;  %10807 = vmatprep.subr.bf16.mxu0 %v13026_v12  ;;  %v283_v61 = vld [vmem:[%s20691_s1 + $0x670] sm:$0xff]  ;;  %v13001_v12 = vcombine.low %v151_v35, %v155_v4 }
 0x358   :  { %10848 = vmatprep.subr.bf16.mxu1 %v13154_v8  ;;  %v13130_v34 = vcombine.high %v279_v62, %v283_v61  ;;  %v143_v3 = vld [vmem:[%s20691_s1 + $0x210] sm:$0xff]  ;;  %v13129_v19 = vcombine.low %v279_v62, %v283_v61 }
 0x359   :  { %v147_v63 = vld [vmem:[%s20691_s1 + $0x230] sm:$0xff] }
 0x35a   :  { %10808 = vmatpush2.bf16.msra.mxu0 %v13025_v47  ;;  %v271_v9 = vld [vmem:[%s20691_s1 + $0x610] sm:$0xff]  ;;  %v12994_v8 = vcombine.high %v143_v3, %v147_v63 }
 0x35b   :  { %10849 = vmatpush2.bf16.msra.mxu1 %v13153_v5  ;;  %10809 = vmatprep.subr.bf16.mxu0 %v13018_v52  ;;  %v275_v10 = vld [vmem:[%s20691_s1 + $0x630] sm:$0xff]  ;;  %v12993_v5 = vcombine.low %v143_v3, %v147_v63 }
 0x35c   :  { %10850 = vmatprep.subr.bf16.mxu1 %v13146_v42  ;;  %v13122_v50 = vcombine.high %v271_v9, %v275_v10  ;;  %v391_v24 = vld [vmem:[%s20691_s1 + $0x9d0] sm:$0xff]  ;;  %v13121_v52 = vcombine.low %v271_v9, %v275_v10 }
 0x35d   :  { %v519_v33 = vld [vmem:[%s20691_s1 + $0xdd0] sm:$0xff]  ;;  %v13242_v42 = vcombine.high %v391_v24, %v395_v30 }
 0x35e   :  { %10810 = vmatpush2.bf16.msra.mxu0 %v13017_v46  ;;  %v523_v47 = vld [vmem:[%s20691_s1 + $0xdf0] sm:$0xff] }
 0x35f   :  { %10851 = vmatpush2.bf16.msra.mxu1 %v13145_v27  ;;  %10811 = vmatprep.subr.bf16.mxu0 %v13010_v53  ;;  %v13370_v11 = vcombine.high %v519_v33, %v523_v47  ;;  %v383_v41 = vld [vmem:[%s20691_s1 + $0x990] sm:$0xff]  ;;  %v13241_v27 = vcombine.low %v391_v24, %v395_v30  ;;  %v13369_v53 = vcombine.low %v519_v33, %v523_v47 }
 0x360   :  { %10852 = vmatprep.subr.bf16.mxu1 %v13138_v60  ;;  %v387_v43 = vld [vmem:[%s20691_s1 + $0x9b0] sm:$0xff] }
 0x361   :  { %v511_v44 = vld [vmem:[%s20691_s1 + $0xd90] sm:$0xff]  ;;  %v13234_v60 = vcombine.high %v383_v41, %v387_v43 }
 0x362   :  { %10812 = vmatpush2.bf16.msra.mxu0 %v13009_v15  ;;  %v515_v46 = vld [vmem:[%s20691_s1 + $0xdb0] sm:$0xff] }
 0x363   :  { %10853 = vmatpush2.bf16.msra.mxu1 %v13137_v17  ;;  %10813 = vmatprep.subr.bf16.mxu0 %v13002_v37  ;;  %v13362_v35 = vcombine.high %v511_v44, %v515_v46  ;;  %v375_v4 = vld [vmem:[%s20691_s1 + $0x950] sm:$0xff]  ;;  %v13361_v63 = vcombine.low %v511_v44, %v515_v46 }
 0x364   :  { %10854 = vmatprep.subr.bf16.mxu1 %v13130_v34  ;;  %v379_v62 = vld [vmem:[%s20691_s1 + $0x970] sm:$0xff]  ;;  %v13233_v34 = vcombine.low %v383_v41, %v387_v43 }
 0x365   :  { %v503_v15 = vld [vmem:[%s20691_s1 + $0xd50] sm:$0xff]  ;;  %v13226_v9 = vcombine.high %v375_v4, %v379_v62  ;;  %v13225_v24 = vcombine.low %v375_v4, %v379_v62 }
 0x366   :  { %10814 = vmatpush2.bf16.msra.mxu0 %v13001_v12  ;;  %v507_v17 = vld [vmem:[%s20691_s1 + $0xd70] sm:$0xff] }
 0x367   :  { %10855 = vmatpush2.bf16.msra.mxu1 %v13129_v19  ;;  %10815 = vmatprep.subr.bf16.mxu0 %v12994_v8  ;;  %v13354_v12 = vcombine.high %v503_v15, %v507_v17  ;;  %v367_v19 = vld [vmem:[%s20691_s1 + $0x910] sm:$0xff]  ;;  %v13353_v33 = vcombine.low %v503_v15, %v507_v17 }
 0x368   :  { %10856 = vmatprep.subr.bf16.mxu1 %v13122_v50  ;;  %v495_v50 = vld [vmem:[%s20691_s1 + $0xd10] sm:$0xff] }
 0x369   :  { %v491_v41 = vld [vmem:[%s20691_s1 + $0xcf0] sm:$0xff] }
 0x36a   :  { %10816 = vmatpush2.bf16.msra.mxu0 %v12993_v5  ;;  %v483_v4 = vld [vmem:[%s20691_s1 + $0xcb0] sm:$0xff] }
 0x36b   :  { %10857 = vmatpush2.bf16.msra.mxu1 %v13121_v52  ;;  %10867 = vmatprep.subr.bf16.mxu0 %v13242_v42  ;;  %v359_v52 = vld [vmem:[%s20691_s1 + $0x8d0] sm:$0xff] }
 0x36c   :  { %10908 = vmatprep.subr.bf16.mxu1 %v13370_v11  ;;  %v363_v42 = vld [vmem:[%s20691_s1 + $0x8f0] sm:$0xff] }
 0x36d   :  { %v10573_v61 = vpop.f32.mrf.mxu0  ;;  %10818 = vmatmul.mubr.bf16.vlgmr.msra.gmra.mxu0 %v15154_v16  ;;  %v487_v11 = vld [vmem:[%s20691_s1 + $0xcd0] sm:$0xff]  ;;  %v13210_v46 = vcombine.high %v359_v52, %v363_v42  ;;  %v13209_v62 = vcombine.low %v359_v52, %v363_v42 }
 0x36e   :  { %v17838_v37 = vadd.f32 %v10573_v61, %v17735_v54  ;;  %10859 = vmatmul.mubr.bf16.vlgmr.msra.gmra.mxu1 %v15165_v20  ;;  %10868 = vmatpush1.bf16.msra.mxu0 %v13241_v27  ;;  %v371_v54 = vld [vmem:[%s20691_s1 + $0x930] sm:$0xff]  ;;  %v13338_v27 = vcombine.high %v487_v11, %v491_v41  ;;  %v13337_v61 = vcombine.low %v487_v11, %v491_v41 }
 0x36f   :  { %10909 = vmatpush1.bf16.msra.mxu1 %v13369_v53  ;;  %v10575_v3 = vpop.f32.mrf.mxu0  ;;  %10869 = vmatprep.subr.bf16.mxu0 %v13234_v60  ;;  %v13218_v47 = vcombine.high %v367_v19, %v371_v54  ;;  %v13217_v43 = vcombine.low %v367_v19, %v371_v54  ;;  %v351_v53 = vld [vmem:[%s20691_s1 + $0x890] sm:$0xff] }
 0x370   :  { %v17842_v10 = vadd.f32 %v10575_v3, %v17744_v0  ;;  %10910 = vmatprep.subr.bf16.mxu1 %v13362_v35  ;;  %10899 = vmatprep.mubr.bf16.mxu0 %v15176_v28  ;;  %v499_v0 = vld [vmem:[%s20691_s1 + $0xd30] sm:$0xff] }
 0x371   :  { %v10577_v8 = vpop.f32.mrf.mxu0  ;;  %10940 = vmatprep.mubr.bf16.mxu1 %v15185_v31  ;;  %v13346_v5 = vcombine.high %v495_v50, %v499_v0  ;;  %v13345_v44 = vcombine.low %v495_v50, %v499_v0  ;;  %v355_v60 = vld [vmem:[%s20691_s1 + $0x8b0] sm:$0xff] }
 0x372   :  { %10870 = vmatpush1.bf16.msra.mxu0 %v13233_v34  ;;  %v479_v35 = vld [vmem:[%s20691_s1 + $0xc90] sm:$0xff]  ;;  %v13202_v15 = vcombine.high %v351_v53, %v355_v60 }
 0x373   :  { %10911 = vmatpush1.bf16.msra.mxu1 %v13361_v63  ;;  %v10578_v30 = vpop.f32.mrf.mxu0  ;;  %10871 = vmatprep.subr.bf16.mxu0 %v13226_v9  ;;  %v13330_v17 = vcombine.high %v479_v35, %v483_v4  ;;  %v343_v34 = vld [vmem:[%s20691_s1 + $0x850] sm:$0xff]  ;;  %v13329_v19 = vcombine.low %v479_v35, %v483_v4 }
 0x374   :  { %10912 = vmatprep.subr.bf16.mxu1 %v13354_v12  ;;  %v347_v3 = vld [vmem:[%s20691_s1 + $0x870] sm:$0xff]  ;;  %v13201_v12 = vcombine.low %v351_v53, %v355_v60 }
 0x375   :  { %v471_v63 = vld [vmem:[%s20691_s1 + $0xc50] sm:$0xff]  ;;  %v13194_v54 = vcombine.high %v343_v34, %v347_v3 }
 0x376   :  { %10872 = vmatpush1.bf16.msra.mxu0 %v13225_v24  ;;  %v475_v9 = vld [vmem:[%s20691_s1 + $0xc70] sm:$0xff] }
 0x377   :  { %10913 = vmatpush1.bf16.msra.mxu1 %v13353_v33  ;;  %10873 = vmatprep.subr.bf16.mxu0 %v13218_v47  ;;  %v13322_v8 = vcombine.high %v471_v63, %v475_v9  ;;  %v335_v50 = vld [vmem:[%s20691_s1 + $0x810] sm:$0xff]  ;;  %v13193_v33 = vcombine.low %v343_v34, %v347_v3  ;;  %v13321_v47 = vcombine.low %v471_v63, %v475_v9 }
 0x378   :  { %10914 = vmatprep.subr.bf16.mxu1 %v13346_v5  ;;  %v339_v0 = vld [vmem:[%s20691_s1 + $0x830] sm:$0xff] }
 0x379   :  { %v463_v24 = vld [vmem:[%s20691_s1 + $0xc10] sm:$0xff]  ;;  %v13186_v5 = vcombine.high %v335_v50, %v339_v0 }
 0x37a   :  { %10874 = vmatpush1.bf16.msra.mxu0 %v13217_v43  ;;  %v467_v30 = vld [vmem:[%s20691_s1 + $0xc30] sm:$0xff] }
 0x37b   :  { %10915 = vmatpush1.bf16.msra.mxu1 %v13345_v44  ;;  %10875 = vmatprep.subr.bf16.mxu0 %v13210_v46  ;;  %v13314_v52 = vcombine.high %v463_v24, %v467_v30  ;;  %v455_v42 = vld [vmem:[%s20691_s1 + $0xbd0] sm:$0xff]  ;;  %v13185_v44 = vcombine.low %v335_v50, %v339_v0  ;;  %v13313_v46 = vcombine.low %v463_v24, %v467_v30 }
 0x37c   :  { %10916 = vmatprep.subr.bf16.mxu1 %v13338_v27  ;;  %v459_v11 = vld [vmem:[%s20691_s1 + $0xbf0] sm:$0xff] }
 0x37d   :  { %v583_v41 = vld [vmem:[%s20691_s1 + $0xfd0] sm:$0xff]  ;;  %v13306_v27 = vcombine.high %v455_v42, %v459_v11 }
 0x37e   :  { %10876 = vmatpush1.bf16.msra.mxu0 %v13209_v62  ;;  %v587_v43 = vld [vmem:[%s20691_s1 + $0xff0] sm:$0xff] }
 0x37f   :  { %10917 = vmatpush1.bf16.msra.mxu1 %v13337_v61  ;;  %10877 = vmatprep.subr.bf16.mxu0 %v13202_v15  ;;  %v13434_v53 = vcombine.high %v583_v41, %v587_v43  ;;  %v447_v60 = vld [vmem:[%s20691_s1 + $0xb90] sm:$0xff]  ;;  %v13305_v61 = vcombine.low %v455_v42, %v459_v11  ;;  %v13433_v15 = vcombine.low %v583_v41, %v587_v43 }
 0x380   :  { %10918 = vmatprep.subr.bf16.mxu1 %v13330_v17  ;;  %v451_v35 = vld [vmem:[%s20691_s1 + $0xbb0] sm:$0xff] }
 0x381   :  { %v575_v4 = vld [vmem:[%s20691_s1 + $0xf90] sm:$0xff]  ;;  %v13298_v17 = vcombine.high %v447_v60, %v451_v35 }
 0x382   :  { %10878 = vmatpush1.bf16.msra.mxu0 %v13201_v12  ;;  %v579_v62 = vld [vmem:[%s20691_s1 + $0xfb0] sm:$0xff] }
 0x383   :  { %10919 = vmatpush1.bf16.msra.mxu1 %v13329_v19  ;;  %10879 = vmatprep.subr.bf16.mxu0 %v13194_v54  ;;  %v13426_v34 = vcombine.high %v575_v4, %v579_v62  ;;  %v439_v3 = vld [vmem:[%s20691_s1 + $0xb50] sm:$0xff]  ;;  %v13297_v54 = vcombine.low %v447_v60, %v451_v35  ;;  %v13425_v50 = vcombine.low %v575_v4, %v579_v62 }
 0x384   :  { %10920 = vmatprep.subr.bf16.mxu1 %v13322_v8  ;;  %v443_v63 = vld [vmem:[%s20691_s1 + $0xb70] sm:$0xff] }
 0x385   :  { %v567_v9 = vld [vmem:[%s20691_s1 + $0xf50] sm:$0xff]  ;;  %v13290_v0 = vcombine.high %v439_v3, %v443_v63  ;;  %v13289_v11 = vcombine.low %v439_v3, %v443_v63 }
 0x386   :  { %10880 = vmatpush1.bf16.msra.mxu0 %v13193_v33  ;;  %v571_v12 = vld [vmem:[%s20691_s1 + $0xf70] sm:$0xff] }
 0x387   :  { %10921 = vmatpush1.bf16.msra.mxu1 %v13321_v47  ;;  %10881 = vmatprep.subr.bf16.mxu0 %v13186_v5  ;;  %v13418_v30 = vcombine.high %v567_v9, %v571_v12  ;;  %v431_v33 = vld [vmem:[%s20691_s1 + $0xb10] sm:$0xff]  ;;  %v13417_v41 = vcombine.low %v567_v9, %v571_v12 }
 0x388   :  { %10922 = vmatprep.subr.bf16.mxu1 %v13314_v52  ;;  %v435_v47 = vld [vmem:[%s20691_s1 + $0xb30] sm:$0xff] }
 0x389   :  { %v563_v52 = vld [vmem:[%s20691_s1 + $0xf30] sm:$0xff]  ;;  %v13282_v43 = vcombine.high %v431_v33, %v435_v47  ;;  %v13281_v35 = vcombine.low %v431_v33, %v435_v47 }
 0x38a   :  { %10882 = vmatpush1.bf16.msra.mxu0 %v13185_v44  ;;  %v555_v60 = vld [vmem:[%s20691_s1 + $0xef0] sm:$0xff] }
 0x38b   :  { %10923 = vmatpush1.bf16.msra.mxu1 %v13313_v46  ;;  %10883 = vmatprep.subr.bf16.mxu0 %v13306_v27  ;;  %v427_v27 = vld [vmem:[%s20691_s1 + $0xaf0] sm:$0xff] }
 0x38c   :  { %10924 = vmatprep.subr.bf16.mxu1 %v13434_v53  ;;  %v551_v53 = vld [vmem:[%s20691_s1 + $0xed0] sm:$0xff] }
 0x38d   :  { %v547_v3 = vld [vmem:[%s20691_s1 + $0xeb0] sm:$0xff]  ;;  %v13401_v9 = vcombine.low %v551_v53, %v555_v60 }
 0x38e   :  { %v10614_v19 = vpop.f32.mrf.mxu1  ;;  %10884 = vmatpush2.bf16.msra.mxu0 %v13305_v61  ;;  %v13402_v61 = vcombine.high %v551_v53, %v555_v60  ;;  %v651_v53 = vld [vmem:[%s20691_s1 + $0x11f0] sm:$0xff] }
 0x38f   :  { %v17943_v8 = vadd.f32 %v10614_v19, %v17838_v37  ;;  %10925 = vmatpush2.bf16.msra.mxu1 %v13433_v15  ;;  %10885 = vmatprep.subr.bf16.mxu0 %v13298_v17  ;;  %v559_v37 = vld [vmem:[%s20691_s1 + $0xf10] sm:$0xff] }
 0x390   :  { %v10616_v24 = vpop.f32.mrf.mxu1  ;;  %10926 = vmatprep.subr.bf16.mxu1 %v13426_v34  ;;  %v13410_v46 = vcombine.high %v559_v37, %v563_v52  ;;  %v13409_v4 = vcombine.low %v559_v37, %v563_v52  ;;  %v415_v15 = vld [vmem:[%s20691_s1 + $0xa90] sm:$0xff] }
 0x391   :  { %v17952_v5 = vadd.f32 %v10616_v24, %v17842_v10  ;;  %v423_v10 = vld [vmem:[%s20691_s1 + $0xad0] sm:$0xff] }
 0x392   :  { %v10618_v42 = vpop.f32.mrf.mxu1  ;;  %10886 = vmatpush2.bf16.msra.mxu0 %v13297_v54  ;;  %v13274_v62 = vcombine.high %v423_v10, %v427_v27  ;;  %v419_v17 = vld [vmem:[%s20691_s1 + $0xab0] sm:$0xff]  ;;  %v13273_v63 = vcombine.low %v423_v10, %v427_v27 }
 0x393   :  { %10927 = vmatpush2.bf16.msra.mxu1 %v13425_v50  ;;  %10887 = vmatprep.subr.bf16.mxu0 %v13290_v0  ;;  %v543_v34 = vld [vmem:[%s20691_s1 + $0xe90] sm:$0xff]  ;;  %v13266_v12 = vcombine.high %v415_v15, %v419_v17 }
 0x394   :  { %v10619_v44 = vpop.f32.mrf.mxu1  ;;  %10928 = vmatprep.subr.bf16.mxu1 %v13418_v30  ;;  %v13394_v19 = vcombine.high %v543_v34, %v547_v3  ;;  %v407_v54 = vld [vmem:[%s20691_s1 + $0xa50] sm:$0xff]  ;;  %v13265_v30 = vcombine.low %v415_v15, %v419_v17  ;;  %v13393_v33 = vcombine.low %v543_v34, %v547_v3 }
 0x395   :  { %v411_v50 = vld [vmem:[%s20691_s1 + $0xa70] sm:$0xff] }
 0x396   :  { %10888 = vmatpush2.bf16.msra.mxu0 %v13289_v11  ;;  %v535_v0 = vld [vmem:[%s20691_s1 + $0xe50] sm:$0xff]  ;;  %v13258_v47 = vcombine.high %v407_v54, %v411_v50 }
 0x397   :  { %10929 = vmatpush2.bf16.msra.mxu1 %v13417_v41  ;;  %10889 = vmatprep.subr.bf16.mxu0 %v13282_v43  ;;  %v539_v24 = vld [vmem:[%s20691_s1 + $0xe70] sm:$0xff]  ;;  %v13257_v43 = vcombine.low %v407_v54, %v411_v50 }
 0x398   :  { %10930 = vmatprep.subr.bf16.mxu1 %v13410_v46  ;;  %v13386_v37 = vcombine.high %v535_v0, %v539_v24  ;;  %v399_v52 = vld [vmem:[%s20691_s1 + $0xa10] sm:$0xff]  ;;  %v13385_v44 = vcombine.low %v535_v0, %v539_v24 }
 0x399   :  { %v403_v42 = vld [vmem:[%s20691_s1 + $0xa30] sm:$0xff] }
 0x39a   :  { %10890 = vmatpush2.bf16.msra.mxu0 %v13281_v35  ;;  %v527_v11 = vld [vmem:[%s20691_s1 + $0xe10] sm:$0xff]  ;;  %v13250_v46 = vcombine.high %v399_v52, %v403_v42 }
 0x39b   :  { %10931 = vmatpush2.bf16.msra.mxu1 %v13409_v4  ;;  %10891 = vmatprep.subr.bf16.mxu0 %v13274_v62  ;;  %v531_v41 = vld [vmem:[%s20691_s1 + $0xe30] sm:$0xff]  ;;  %v13249_v4 = vcombine.low %v399_v52, %v403_v42 }
 0x39c   :  { %10932 = vmatprep.subr.bf16.mxu1 %v13402_v61  ;;  %v13378_v10 = vcombine.high %v527_v11, %v531_v41  ;;  %v647_v27 = vld [vmem:[%s20691_s1 + $0x11d0] sm:$0xff]  ;;  %v13377_v62 = vcombine.low %v527_v11, %v531_v41 }
 0x39d   :  { %v775_v60 = vld [vmem:[%s20691_s1 + $0x15d0] sm:$0xff]  ;;  %v13498_v61 = vcombine.high %v647_v27, %v651_v53 }
 0x39e   :  { %10892 = vmatpush2.bf16.msra.mxu0 %v13273_v63  ;;  %v779_v35 = vld [vmem:[%s20691_s1 + $0x15f0] sm:$0xff] }
 0x39f   :  { %10933 = vmatpush2.bf16.msra.mxu1 %v13401_v9  ;;  %10893 = vmatprep.subr.bf16.mxu0 %v13266_v12  ;;  %v13626_v15 = vcombine.high %v775_v60, %v779_v35  ;;  %v639_v17 = vld [vmem:[%s20691_s1 + $0x1190] sm:$0xff]  ;;  %v13497_v9 = vcombine.low %v647_v27, %v651_v53  ;;  %v13625_v12 = vcombine.low %v775_v60, %v779_v35 }
 0x3a0   :  { %10934 = vmatprep.subr.bf16.mxu1 %v13394_v19  ;;  %v643_v34 = vld [vmem:[%s20691_s1 + $0x11b0] sm:$0xff] }
 0x3a1   :  { %v767_v3 = vld [vmem:[%s20691_s1 + $0x1590] sm:$0xff]  ;;  %v13490_v19 = vcombine.high %v639_v17, %v643_v34 }
 0x3a2   :  { %10894 = vmatpush2.bf16.msra.mxu0 %v13265_v30  ;;  %v771_v63 = vld [vmem:[%s20691_s1 + $0x15b0] sm:$0xff] }
 0x3a3   :  { %10935 = vmatpush2.bf16.msra.mxu1 %v13393_v33  ;;  %10895 = vmatprep.subr.bf16.mxu0 %v13258_v47  ;;  %v13618_v54 = vcombine.high %v767_v3, %v771_v63  ;;  %v631_v50 = vld [vmem:[%s20691_s1 + $0x1150] sm:$0xff]  ;;  %v13617_v42 = vcombine.low %v767_v3, %v771_v63 }
 0x3a4   :  { %10936 = vmatprep.subr.bf16.mxu1 %v13386_v37  ;;  %v635_v0 = vld [vmem:[%s20691_s1 + $0x1170] sm:$0xff]  ;;  %v13489_v37 = vcombine.low %v639_v17, %v643_v34 }
 0x3a5   :  { %v759_v30 = vld [vmem:[%s20691_s1 + $0x1550] sm:$0xff]  ;;  %v13482_v11 = vcombine.high %v631_v50, %v635_v0  ;;  %v13481_v27 = vcombine.low %v631_v50, %v635_v0 }
 0x3a6   :  { %10896 = vmatpush2.bf16.msra.mxu0 %v13257_v43  ;;  %v763_v33 = vld [vmem:[%s20691_s1 + $0x1570] sm:$0xff] }
 0x3a7   :  { %10937 = vmatpush2.bf16.msra.mxu1 %v13385_v44  ;;  %10897 = vmatprep.subr.bf16.mxu0 %v13250_v46  ;;  %v13610_v43 = vcombine.high %v759_v30, %v763_v33  ;;  %v623_v44 = vld [vmem:[%s20691_s1 + $0x1110] sm:$0xff]  ;;  %v13609_v60 = vcombine.low %v759_v30, %v763_v33 }
 0x3a8   :  { %10938 = vmatprep.subr.bf16.mxu1 %v13378_v10  ;;  %v751_v10 = vld [vmem:[%s20691_s1 + $0x1510] sm:$0xff] }
 0x3a9   :  { %v747_v17 = vld [vmem:[%s20691_s1 + $0x14f0] sm:$0xff] }
 0x3aa   :  { %10898 = vmatpush2.bf16.msra.mxu0 %v13249_v4  ;;  %v739_v50 = vld [vmem:[%s20691_s1 + $0x14b0] sm:$0xff] }
 0x3ab   :  { %10939 = vmatpush2.bf16.msra.mxu1 %v13377_v62  ;;  %10949 = vmatprep.subr.bf16.mxu0 %v13498_v61  ;;  %v615_v62 = vld [vmem:[%s20691_s1 + $0x10d0] sm:$0xff] }
 0x3ac   :  { %10990 = vmatprep.subr.bf16.mxu1 %v13626_v15  ;;  %v619_v61 = vld [vmem:[%s20691_s1 + $0x10f0] sm:$0xff] }
 0x3ad   :  { %v10655_v24 = vpop.f32.mrf.mxu0  ;;  %10900 = vmatmul.mubr.bf16.vlgmr.msra.gmra.mxu0 %v15370_v36  ;;  %v743_v15 = vld [vmem:[%s20691_s1 + $0x14d0] sm:$0xff]  ;;  %v13466_v63 = vcombine.high %v615_v62, %v619_v61  ;;  %v13465_v0 = vcombine.low %v615_v62, %v619_v61 }
 0x3ae   :  { %v18046_v47 = vadd.f32 %v10655_v24, %v17943_v8  ;;  %10941 = vmatmul.mubr.bf16.vlgmr.msra.gmra.mxu1 %v15381_v40  ;;  %10950 = vmatpush1.bf16.msra.mxu0 %v13497_v9  ;;  %v627_v8 = vld [vmem:[%s20691_s1 + $0x1130] sm:$0xff]  ;;  %v13594_v9 = vcombine.high %v743_v15, %v747_v17  ;;  %v13593_v24 = vcombine.low %v743_v15, %v747_v17 }
 0x3af   :  { %10991 = vmatpush1.bf16.msra.mxu1 %v13625_v12  ;;  %v10657_v52 = vpop.f32.mrf.mxu0  ;;  %10951 = vmatprep.subr.bf16.mxu0 %v13490_v19  ;;  %v13474_v35 = vcombine.high %v623_v44, %v627_v8  ;;  %v13473_v34 = vcombine.low %v623_v44, %v627_v8  ;;  %v607_v12 = vld [vmem:[%s20691_s1 + $0x1090] sm:$0xff] }
 0x3b0   :  { %v18050_v41 = vadd.f32 %v10657_v52, %v17952_v5  ;;  %10992 = vmatprep.subr.bf16.mxu1 %v13618_v54  ;;  %10981 = vmatprep.mubr.bf16.mxu0 %v15392_v48  ;;  %v755_v5 = vld [vmem:[%s20691_s1 + $0x1530] sm:$0xff] }
 0x3b1   :  { %v10659_v46 = vpop.f32.mrf.mxu0  ;;  %11022 = vmatprep.mubr.bf16.mxu1 %v15401_v51  ;;  %v13602_v4 = vcombine.high %v751_v10, %v755_v5  ;;  %v13601_v3 = vcombine.low %v751_v10, %v755_v5  ;;  %v611_v19 = vld [vmem:[%s20691_s1 + $0x10b0] sm:$0xff] }
 0x3b2   :  { %10952 = vmatpush1.bf16.msra.mxu0 %v13489_v37  ;;  %v735_v54 = vld [vmem:[%s20691_s1 + $0x1490] sm:$0xff]  ;;  %v13458_v30 = vcombine.high %v607_v12, %v611_v19 }
 0x3b3   :  { %10993 = vmatpush1.bf16.msra.mxu1 %v13617_v42  ;;  %v10660_v53 = vpop.f32.mrf.mxu0  ;;  %10953 = vmatprep.subr.bf16.mxu0 %v13482_v11  ;;  %v13586_v33 = vcombine.high %v735_v54, %v739_v50  ;;  %v599_v37 = vld [vmem:[%s20691_s1 + $0x1050] sm:$0xff]  ;;  %v13585_v44 = vcombine.low %v735_v54, %v739_v50 }
 0x3b4   :  { %10994 = vmatprep.subr.bf16.mxu1 %v13610_v43  ;;  %v603_v52 = vld [vmem:[%s20691_s1 + $0x1070] sm:$0xff]  ;;  %v13457_v43 = vcombine.low %v607_v12, %v611_v19 }
 0x3b5   :  { %v727_v42 = vld [vmem:[%s20691_s1 + $0x1450] sm:$0xff]  ;;  %v13450_v8 = vcombine.high %v599_v37, %v603_v52 }
 0x3b6   :  { %10954 = vmatpush1.bf16.msra.mxu0 %v13481_v27  ;;  %v731_v11 = vld [vmem:[%s20691_s1 + $0x1470] sm:$0xff] }
 0x3b7   :  { %10995 = vmatpush1.bf16.msra.mxu1 %v13609_v60  ;;  %10955 = vmatprep.subr.bf16.mxu0 %v13474_v35  ;;  %v13578_v46 = vcombine.high %v727_v42, %v731_v11  ;;  %v591_v10 = vld [vmem:[%s20691_s1 + $0x1010] sm:$0xff]  ;;  %v13449_v60 = vcombine.low %v599_v37, %v603_v52  ;;  %v13577_v35 = vcombine.low %v727_v42, %v731_v11 }
 0x3b8   :  { %10996 = vmatprep.subr.bf16.mxu1 %v13602_v4  ;;  %v595_v5 = vld [vmem:[%s20691_s1 + $0x1030] sm:$0xff] }
 0x3b9   :  { %v719_v27 = vld [vmem:[%s20691_s1 + $0x1410] sm:$0xff]  ;;  %v13442_v4 = vcombine.high %v591_v10, %v595_v5 }
 0x3ba   :  { %10956 = vmatpush1.bf16.msra.mxu0 %v13473_v34  ;;  %v723_v53 = vld [vmem:[%s20691_s1 + $0x1430] sm:$0xff] }
 0x3bb   :  { %10997 = vmatpush1.bf16.msra.mxu1 %v13601_v3  ;;  %10957 = vmatprep.subr.bf16.mxu0 %v13466_v63  ;;  %v13570_v62 = vcombine.high %v719_v27, %v723_v53  ;;  %v711_v61 = vld [vmem:[%s20691_s1 + $0x13d0] sm:$0xff]  ;;  %v13441_v3 = vcombine.low %v591_v10, %v595_v5  ;;  %v13569_v63 = vcombine.low %v719_v27, %v723_v53 }
 0x3bc   :  { %10998 = vmatprep.subr.bf16.mxu1 %v13594_v9  ;;  %v715_v15 = vld [vmem:[%s20691_s1 + $0x13f0] sm:$0xff] }
 0x3bd   :  { %v839_v17 = vld [vmem:[%s20691_s1 + $0x17d0] sm:$0xff]  ;;  %v13562_v9 = vcombine.high %v711_v61, %v715_v15 }
 0x3be   :  { %10958 = vmatpush1.bf16.msra.mxu0 %v13465_v0  ;;  %v843_v34 = vld [vmem:[%s20691_s1 + $0x17f0] sm:$0xff] }
 0x3bf   :  { %10999 = vmatpush1.bf16.msra.mxu1 %v13593_v24  ;;  %10959 = vmatprep.subr.bf16.mxu0 %v13458_v30  ;;  %v13690_v12 = vcombine.high %v839_v17, %v843_v34  ;;  %v703_v19 = vld [vmem:[%s20691_s1 + $0x1390] sm:$0xff]  ;;  %v13561_v24 = vcombine.low %v711_v61, %v715_v15  ;;  %v13689_v30 = vcombine.low %v839_v17, %v843_v34 }
 0x3c0   :  { %11000 = vmatprep.subr.bf16.mxu1 %v13586_v33  ;;  %v707_v54 = vld [vmem:[%s20691_s1 + $0x13b0] sm:$0xff] }
 0x3c1   :  { %v831_v50 = vld [vmem:[%s20691_s1 + $0x1790] sm:$0xff]  ;;  %v13554_v33 = vcombine.high %v703_v19, %v707_v54 }
 0x3c2   :  { %10960 = vmatpush1.bf16.msra.mxu0 %v13457_v43  ;;  %v835_v0 = vld [vmem:[%s20691_s1 + $0x17b0] sm:$0xff] }
 0x3c3   :  { %11001 = vmatpush1.bf16.msra.mxu1 %v13585_v44  ;;  %10961 = vmatprep.subr.bf16.mxu0 %v13450_v8  ;;  %v13682_v37 = vcombine.high %v831_v50, %v835_v0  ;;  %v695_v52 = vld [vmem:[%s20691_s1 + $0x1350] sm:$0xff]  ;;  %v13553_v8 = vcombine.low %v703_v19, %v707_v54  ;;  %v13681_v10 = vcombine.low %v831_v50, %v835_v0 }
 0x3c4   :  { %11002 = vmatprep.subr.bf16.mxu1 %v13578_v46  ;;  %v699_v42 = vld [vmem:[%s20691_s1 + $0x1370] sm:$0xff] }
 0x3c5   :  { %v823_v11 = vld [vmem:[%s20691_s1 + $0x1750] sm:$0xff]  ;;  %v13546_v5 = vcombine.high %v695_v52, %v699_v42  ;;  %v13545_v15 = vcombine.low %v695_v52, %v699_v42 }
 0x3c6   :  { %10962 = vmatpush1.bf16.msra.mxu0 %v13449_v60  ;;  %v827_v43 = vld [vmem:[%s20691_s1 + $0x1770] sm:$0xff] }
 0x3c7   :  { %11003 = vmatpush1.bf16.msra.mxu1 %v13577_v35  ;;  %10963 = vmatprep.subr.bf16.mxu0 %v13442_v4  ;;  %v13674_v53 = vcombine.high %v823_v11, %v827_v43  ;;  %v687_v60 = vld [vmem:[%s20691_s1 + $0x1310] sm:$0xff]  ;;  %v13673_v17 = vcombine.low %v823_v11, %v827_v43 }
 0x3c8   :  { %11004 = vmatprep.subr.bf16.mxu1 %v13570_v62  ;;  %v691_v35 = vld [vmem:[%s20691_s1 + $0x1330] sm:$0xff] }
 0x3c9   :  { %v819_v62 = vld [vmem:[%s20691_s1 + $0x1730] sm:$0xff]  ;;  %v13538_v34 = vcombine.high %v687_v60, %v691_v35  ;;  %v13537_v54 = vcombine.low %v687_v60, %v691_v35 }
 0x3ca   :  { %10964 = vmatpush1.bf16.msra.mxu0 %v13441_v3  ;;  %v811_v19 = vld [vmem:[%s20691_s1 + $0x16f0] sm:$0xff] }
 0x3cb   :  { %11005 = vmatpush1.bf16.msra.mxu1 %v13569_v63  ;;  %10965 = vmatprep.subr.bf16.mxu0 %v13562_v9  ;;  %v683_v9 = vld [vmem:[%s20691_s1 + $0x12f0] sm:$0xff] }
 0x3cc   :  { %11006 = vmatprep.subr.bf16.mxu1 %v13690_v12  ;;  %v807_v12 = vld [vmem:[%s20691_s1 + $0x16d0] sm:$0xff] }
 0x3cd   :  { %v803_v52 = vld [vmem:[%s20691_s1 + $0x16b0] sm:$0xff]  ;;  %v13657_v11 = vcombine.low %v807_v12, %v811_v19 }
 0x3ce   :  { %v10696_v44 = vpop.f32.mrf.mxu1  ;;  %10966 = vmatpush2.bf16.msra.mxu0 %v13561_v24  ;;  %v13658_v24 = vcombine.high %v807_v12, %v811_v19  ;;  %v907_v12 = vld [vmem:[%s20691_s1 + $0x19f0] sm:$0xff] }
 0x3cf   :  { %v18151_v46 = vadd.f32 %v10696_v44, %v18046_v47  ;;  %11007 = vmatpush2.bf16.msra.mxu1 %v13689_v30  ;;  %10967 = vmatprep.subr.bf16.mxu0 %v13554_v33  ;;  %v815_v47 = vld [vmem:[%s20691_s1 + $0x1710] sm:$0xff] }
 0x3d0   :  { %v10698_v27 = vpop.f32.mrf.mxu1  ;;  %11008 = vmatprep.subr.bf16.mxu1 %v13682_v37  ;;  %v13666_v63 = vcombine.high %v815_v47, %v819_v62  ;;  %v13665_v50 = vcombine.low %v815_v47, %v819_v62  ;;  %v671_v30 = vld [vmem:[%s20691_s1 + $0x1290] sm:$0xff] }
 0x3d1   :  { %v18160_v4 = vadd.f32 %v10698_v27, %v18050_v41  ;;  %v679_v41 = vld [vmem:[%s20691_s1 + $0x12d0] sm:$0xff] }
 0x3d2   :  { %v10700_v61 = vpop.f32.mrf.mxu1  ;;  %10968 = vmatpush2.bf16.msra.mxu0 %v13553_v8  ;;  %v13530_v0 = vcombine.high %v679_v41, %v683_v9  ;;  %v675_v33 = vld [vmem:[%s20691_s1 + $0x12b0] sm:$0xff]  ;;  %v13529_v42 = vcombine.low %v679_v41, %v683_v9 }
 0x3d3   :  { %11009 = vmatpush2.bf16.msra.mxu1 %v13681_v10  ;;  %10969 = vmatprep.subr.bf16.mxu0 %v13546_v5  ;;  %v799_v37 = vld [vmem:[%s20691_s1 + $0x1690] sm:$0xff]  ;;  %v13522_v43 = vcombine.high %v671_v30, %v675_v33 }
 0x3d4   :  { %v10701_v3 = vpop.f32.mrf.mxu1  ;;  %11010 = vmatprep.subr.bf16.mxu1 %v13674_v53  ;;  %v13650_v44 = vcombine.high %v799_v37, %v803_v52  ;;  %v663_v8 = vld [vmem:[%s20691_s1 + $0x1250] sm:$0xff]  ;;  %v13521_v53 = vcombine.low %v671_v30, %v675_v33  ;;  %v13649_v60 = vcombine.low %v799_v37, %v803_v52 }
 0x3d5   :  { %v667_v10 = vld [vmem:[%s20691_s1 + $0x1270] sm:$0xff] }
 0x3d6   :  { %10970 = vmatpush2.bf16.msra.mxu0 %v13545_v15  ;;  %v791_v5 = vld [vmem:[%s20691_s1 + $0x1650] sm:$0xff]  ;;  %v13514_v35 = vcombine.high %v663_v8, %v667_v10 }
 0x3d7   :  { %11011 = vmatpush2.bf16.msra.mxu1 %v13673_v17  ;;  %10971 = vmatprep.subr.bf16.mxu0 %v13538_v34  ;;  %v795_v27 = vld [vmem:[%s20691_s1 + $0x1670] sm:$0xff]  ;;  %v13513_v34 = vcombine.low %v663_v8, %v667_v10 }
 0x3d8   :  { %11012 = vmatprep.subr.bf16.mxu1 %v13666_v63  ;;  %v13642_v47 = vcombine.high %v791_v5, %v795_v27  ;;  %v655_v62 = vld [vmem:[%s20691_s1 + $0x1210] sm:$0xff]  ;;  %v13641_v3 = vcombine.low %v791_v5, %v795_v27 }
 0x3d9   :  { %v659_v61 = vld [vmem:[%s20691_s1 + $0x1230] sm:$0xff] }
 0x3da   :  { %10972 = vmatpush2.bf16.msra.mxu0 %v13537_v54  ;;  %v783_v15 = vld [vmem:[%s20691_s1 + $0x1610] sm:$0xff]  ;;  %v13506_v63 = vcombine.high %v655_v62, %v659_v61 }
 0x3db   :  { %11013 = vmatpush2.bf16.msra.mxu1 %v13665_v50  ;;  %10973 = vmatprep.subr.bf16.mxu0 %v13530_v0  ;;  %v787_v17 = vld [vmem:[%s20691_s1 + $0x1630] sm:$0xff]  ;;  %v13505_v50 = vcombine.low %v655_v62, %v659_v61 }
 0x3dc   :  { %11014 = vmatprep.subr.bf16.mxu1 %v13658_v24  ;;  %v13634_v41 = vcombine.high %v783_v15, %v787_v17  ;;  %v903_v9 = vld [vmem:[%s20691_s1 + $0x19d0] sm:$0xff]  ;;  %v13633_v0 = vcombine.low %v783_v15, %v787_v17 }
 0x3dd   :  { %v1031_v19 = vld [vmem:[%s20691_s1 + $0x1dd0] sm:$0xff]  ;;  %v13754_v24 = vcombine.high %v903_v9, %v907_v12 }
 0x3de   :  { %10974 = vmatpush2.bf16.msra.mxu0 %v13529_v42  ;;  %v1035_v54 = vld [vmem:[%s20691_s1 + $0x1df0] sm:$0xff] }
 0x3df   :  { %11015 = vmatpush2.bf16.msra.mxu1 %v13657_v11  ;;  %10975 = vmatprep.subr.bf16.mxu0 %v13522_v43  ;;  %v13882_v30 = vcombine.high %v1031_v19, %v1035_v54  ;;  %v895_v33 = vld [vmem:[%s20691_s1 + $0x1990] sm:$0xff]  ;;  %v13753_v11 = vcombine.low %v903_v9, %v907_v12  ;;  %v13881_v43 = vcombine.low %v1031_v19, %v1035_v54 }
 0x3e0   :  { %11016 = vmatprep.subr.bf16.mxu1 %v13650_v44  ;;  %v899_v37 = vld [vmem:[%s20691_s1 + $0x19b0] sm:$0xff] }
 0x3e1   :  { %v1023_v52 = vld [vmem:[%s20691_s1 + $0x1d90] sm:$0xff]  ;;  %v13746_v44 = vcombine.high %v895_v33, %v899_v37  ;;  %v13745_v62 = vcombine.low %v895_v33, %v899_v37 }
 0x3e2   :  { %10976 = vmatpush2.bf16.msra.mxu0 %v13521_v53  ;;  %v1027_v42 = vld [vmem:[%s20691_s1 + $0x1db0] sm:$0xff] }
 0x3e3   :  { %11017 = vmatpush2.bf16.msra.mxu1 %v13649_v60  ;;  %10977 = vmatprep.subr.bf16.mxu0 %v13514_v35  ;;  %v13874_v8 = vcombine.high %v1023_v52, %v1027_v42  ;;  %v887_v10 = vld [vmem:[%s20691_s1 + $0x1950] sm:$0xff]  ;;  %v13873_v15 = vcombine.low %v1023_v52, %v1027_v42 }
 0x3e4   :  { %11018 = vmatprep.subr.bf16.mxu1 %v13642_v47  ;;  %v891_v5 = vld [vmem:[%s20691_s1 + $0x1970] sm:$0xff] }
 0x3e5   :  { %v1015_v53 = vld [vmem:[%s20691_s1 + $0x1d50] sm:$0xff]  ;;  %v13738_v17 = vcombine.high %v887_v10, %v891_v5 }
 0x3e6   :  { %10978 = vmatpush2.bf16.msra.mxu0 %v13513_v34  ;;  %v1019_v60 = vld [vmem:[%s20691_s1 + $0x1d70] sm:$0xff] }
 0x3e7   :  { %11019 = vmatpush2.bf16.msra.mxu1 %v13641_v3  ;;  %10979 = vmatprep.subr.bf16.mxu0 %v13506_v63  ;;  %v883_v9 = vld [vmem:[%s20691_s1 + $0x1930] sm:$0xff] }
 0x3e8   :  { %11020 = vmatprep.subr.bf16.mxu1 %v13634_v41  ;;  %v13866_v41 = vcombine.high %v1015_v53, %v1019_v60  ;;  %v1007_v19 = vld [vmem:[%s20691_s1 + $0x1d10] sm:$0xff] }
 0x3e9   :  { %v871_v42 = vld [vmem:[%s20691_s1 + $0x18d0] sm:$0xff] }
 0x3ea   :  { %10980 = vmatpush2.bf16.msra.mxu0 %v13505_v50 }
 0x3eb   :  { %11021 = vmatpush2.bf16.msra.mxu1 %v13633_v0  ;;  %11031 = vmatprep.subr.bf16.mxu0 %v13754_v24  ;;  %v13737_v0 = vcombine.low %v887_v10, %v891_v5 }
 0x3ec   :  { %11072 = vmatprep.subr.bf16.mxu1 %v13882_v30  ;;  %v13865_v30 = vcombine.low %v1015_v53, %v1019_v60  ;;  %v863_v53 = vld [vmem:[%s20691_s1 + $0x1890] sm:$0xff] }
 0x3ed   :  { %v10737_v27 = vpop.f32.mrf.mxu0  ;;  %10982 = vmatmul.mubr.bf16.vlgmr.msra.gmra.mxu0 %v15586_v2  ;;  %v867_v60 = vld [vmem:[%s20691_s1 + $0x18b0] sm:$0xff] }
 0x3ee   :  { %v10738_v35 = vadd.f32 %v10737_v27, %v18151_v46  ;;  %v10778_v47 = vpop.f32.mrf.mxu1  ;;  %11023 = vmatmul.mubr.bf16.vlgmr.msra.gmra.mxu1 %v15597_v6  ;;  %11032 = vmatpush1.bf16.msra.mxu0 %v13753_v11  ;;  %v879_v46 = vld [vmem:[%s20691_s1 + $0x1910] sm:$0xff] }
 0x3ef   :  { %11073 = vmatpush1.bf16.msra.mxu1 %v13881_v43  ;;  %v10739_v61 = vpop.f32.mrf.mxu0  ;;  %11033 = vmatprep.subr.bf16.mxu0 %v13746_v44  ;;  %v13730_v33 = vcombine.high %v879_v46, %v883_v9  ;;  %v875_v11 = vld [vmem:[%s20691_s1 + $0x18f0] sm:$0xff] }
 0x3f0   :  { %v18255_v34 = vadd.f32 %v10778_v47, %v10738_v35  ;;  %v10740_v3 = vadd.f32 %v10739_v61, %v18160_v4  ;;  %v10780_v63 = vpop.f32.mrf.mxu1  ;;  %11074 = vmatprep.subr.bf16.mxu1 %v13874_v8  ;;  %11063 = vmatprep.mubr.bf16.mxu0 %v15608_v14  ;;  %v1011_v4 = vld [vmem:[%s20691_s1 + $0x1d30] sm:$0xff]  ;;  %v13729_v8 = vcombine.low %v879_v46, %v883_v9 }
 0x3f1   :  { %v10741_v12 = vpop.f32.mrf.mxu0  ;;  %11104 = vmatprep.mubr.bf16.mxu1 %v15617_v18  ;;  %v13858_v52 = vcombine.high %v1007_v19, %v1011_v4  ;;  %v999_v43 = vld [vmem:[%s20691_s1 + $0x1cd0] sm:$0xff]  ;;  %v13857_v10 = vcombine.low %v1007_v19, %v1011_v4  ;;  %v13722_v5 = vcombine.high %v871_v42, %v875_v11  ;;  %v13713_v9 = vcombine.low %v863_v53, %v867_v60 }
 0x3f2   :  { %v18272_v54 = vadd.f32 %v10780_v63, %v10740_v3  ;;  %v10782_v50 = vpop.f32.mrf.mxu1  ;;  %11034 = vmatpush1.bf16.msra.mxu0 %v13745_v62  ;;  %v1003_v44 = vld [vmem:[%s20691_s1 + $0x1cf0] sm:$0xff]  ;;  %v13721_v62 = vcombine.low %v871_v42, %v875_v11 }
 0x3f3   :  { %11075 = vmatpush1.bf16.msra.mxu1 %v13873_v15  ;;  %v10742_v24 = vpop.f32.mrf.mxu0  ;;  %11035 = vmatprep.subr.bf16.mxu0 %v13738_v17  ;;  %v13850_v27 = vcombine.high %v999_v43, %v1003_v44  ;;  %v991_v35 = vld [vmem:[%s20691_s1 + $0x1c90] sm:$0xff]  ;;  %v13849_v61 = vcombine.low %v999_v43, %v1003_v44  ;;  %v13714_v15 = vcombine.high %v863_v53, %v867_v60 }
 0x3f4   :  { %v10783_v37 = vpop.f32.mrf.mxu1  ;;  %11076 = vmatprep.subr.bf16.mxu1 %v13866_v41  ;;  %v995_v47 = vld [vmem:[%s20691_s1 + $0x1cb0] sm:$0xff] }
 0x3f5   :  { %v13842_v17 = vcombine.high %v991_v35, %v995_v47  ;;  %v855_v3 = vld [vmem:[%s20691_s1 + $0x1850] sm:$0xff]  ;;  %v13841_v12 = vcombine.low %v991_v35, %v995_v47 }
 0x3f6   :  { %11036 = vmatpush1.bf16.msra.mxu0 %v13737_v0  ;;  %v859_v63 = vld [vmem:[%s20691_s1 + $0x1870] sm:$0xff] }
 0x3f7   :  { %11077 = vmatpush1.bf16.msra.mxu1 %v13865_v30  ;;  %11037 = vmatprep.subr.bf16.mxu0 %v13730_v33  ;;  %v983_v41 = vld [vmem:[%s20691_s1 + $0x1c50] sm:$0xff]  ;;  %v13706_v19 = vcombine.high %v855_v3, %v859_v63  ;;  %v13705_v33 = vcombine.low %v855_v3, %v859_v63 }
 0x3f8   :  { %11078 = vmatprep.subr.bf16.mxu1 %v13858_v52  ;;  %v987_v46 = vld [vmem:[%s20691_s1 + $0x1c70] sm:$0xff] }
 0x3f9   :  { %v13834_v4 = vcombine.high %v983_v41, %v987_v46  ;;  %v847_v50 = vld [vmem:[%s20691_s1 + $0x1810] sm:$0xff]  ;;  %v13833_v37 = vcombine.low %v983_v41, %v987_v46 }
 0x3fa   :  { %11038 = vmatpush1.bf16.msra.mxu0 %v13729_v8  ;;  %v851_v0 = vld [vmem:[%s20691_s1 + $0x1830] sm:$0xff] }
 0x3fb   :  { %11079 = vmatpush1.bf16.msra.mxu1 %v13857_v10  ;;  %11039 = vmatprep.subr.bf16.mxu0 %v13722_v5  ;;  %v975_v24 = vld [vmem:[%s20691_s1 + $0x1c10] sm:$0xff]  ;;  %v13698_v52 = vcombine.high %v847_v50, %v851_v0  ;;  %v13697_v10 = vcombine.low %v847_v50, %v851_v0 }
 0x3fc   :  { %11080 = vmatprep.subr.bf16.mxu1 %v13850_v27  ;;  %v979_v30 = vld [vmem:[%s20691_s1 + $0x1c30] sm:$0xff] }
 0x3fd   :  { %v13826_v42 = vcombine.high %v975_v24, %v979_v30  ;;  %v967_v11 = vld [vmem:[%s20691_s1 + $0x1bd0] sm:$0xff]  ;;  %v13825_v5 = vcombine.low %v975_v24, %v979_v30 }
 0x3fe   :  { %11040 = vmatpush1.bf16.msra.mxu0 %v13721_v62  ;;  %v971_v43 = vld [vmem:[%s20691_s1 + $0x1bf0] sm:$0xff] }
 0x3ff   :  { %11081 = vmatpush1.bf16.msra.mxu1 %v13849_v61  ;;  %11041 = vmatprep.subr.bf16.mxu0 %v13714_v15  ;;  %v1095_v44 = vld [vmem:[%s20691_s1 + $0x1fd0] sm:$0xff]  ;;  %v13818_v27 = vcombine.high %v967_v11, %v971_v43  ;;  %v13817_v61 = vcombine.low %v967_v11, %v971_v43 }
 0x400   :  { %11082 = vmatprep.subr.bf16.mxu1 %v13842_v17  ;;  %v1099_v8 = vld [vmem:[%s20691_s1 + $0x1ff0] sm:$0xff] }
 0x401   :  { %v13946_v53 = vcombine.high %v1095_v44, %v1099_v8  ;;  %v959_v60 = vld [vmem:[%s20691_s1 + $0x1b90] sm:$0xff]  ;;  %v13945_v15 = vcombine.low %v1095_v44, %v1099_v8 }
 0x402   :  { %11042 = vmatpush1.bf16.msra.mxu0 %v13713_v9  ;;  %v963_v35 = vld [vmem:[%s20691_s1 + $0x1bb0] sm:$0xff] }
 0x403   :  { %11083 = vmatpush1.bf16.msra.mxu1 %v13841_v12  ;;  %11043 = vmatprep.subr.bf16.mxu0 %v13706_v19  ;;  %v1087_v47 = vld [vmem:[%s20691_s1 + $0x1f90] sm:$0xff]  ;;  %v13810_v17 = vcombine.high %v959_v60, %v963_v35  ;;  %v13809_v12 = vcombine.low %v959_v60, %v963_v35 }
 0x404   :  { %11084 = vmatprep.subr.bf16.mxu1 %v13834_v4  ;;  %v1091_v62 = vld [vmem:[%s20691_s1 + $0x1fb0] sm:$0xff] }
 0x405   :  { %v13938_v3 = vcombine.high %v1087_v47, %v1091_v62  ;;  %v951_v63 = vld [vmem:[%s20691_s1 + $0x1b50] sm:$0xff]  ;;  %v13937_v19 = vcombine.low %v1087_v47, %v1091_v62 }
 0x406   :  { %11044 = vmatpush1.bf16.msra.mxu0 %v13705_v33  ;;  %v955_v41 = vld [vmem:[%s20691_s1 + $0x1b70] sm:$0xff] }
 0x407   :  { %11085 = vmatpush1.bf16.msra.mxu1 %v13833_v37  ;;  %11045 = vmatprep.subr.bf16.mxu0 %v13698_v52  ;;  %v1079_v46 = vld [vmem:[%s20691_s1 + $0x1f50] sm:$0xff]  ;;  %v13802_v4 = vcombine.high %v951_v63, %v955_v41  ;;  %v13801_v37 = vcombine.low %v951_v63, %v955_v41 }
 0x408   :  { %11086 = vmatprep.subr.bf16.mxu1 %v13826_v42  ;;  %v1083_v9 = vld [vmem:[%s20691_s1 + $0x1f70] sm:$0xff] }
 0x409   :  { %v13930_v50 = vcombine.high %v1079_v46, %v1083_v9  ;;  %v943_v0 = vld [vmem:[%s20691_s1 + $0x1b10] sm:$0xff]  ;;  %v13929_v52 = vcombine.low %v1079_v46, %v1083_v9 }
 0x40a   :  { %11046 = vmatpush1.bf16.msra.mxu0 %v13697_v10  ;;  %v947_v24 = vld [vmem:[%s20691_s1 + $0x1b30] sm:$0xff] }
 0x40b   :  { %11087 = vmatpush1.bf16.msra.mxu1 %v13825_v5  ;;  %11047 = vmatprep.subr.bf16.mxu0 %v13818_v27  ;;  %v1071_v30 = vld [vmem:[%s20691_s1 + $0x1f10] sm:$0xff]  ;;  %v13794_v42 = vcombine.high %v943_v0, %v947_v24  ;;  %v13793_v5 = vcombine.low %v943_v0, %v947_v24 }
 0x40c   :  { %11088 = vmatprep.subr.bf16.mxu1 %v13946_v53  ;;  %v1075_v33 = vld [vmem:[%s20691_s1 + $0x1f30] sm:$0xff] }
 0x40d   :  { %v13922_v11 = vcombine.high %v1071_v30, %v1075_v33  ;;  %v935_v43 = vld [vmem:[%s20691_s1 + $0x1ad0] sm:$0xff]  ;;  %v13921_v27 = vcombine.low %v1071_v30, %v1075_v33 }
 0x40e   :  { %11048 = vmatpush2.bf16.msra.mxu0 %v13817_v61  ;;  %v939_v44 = vld [vmem:[%s20691_s1 + $0x1af0] sm:$0xff] }
 0x40f   :  { %11089 = vmatpush2.bf16.msra.mxu1 %v13945_v15  ;;  %11049 = vmatprep.subr.bf16.mxu0 %v13810_v17  ;;  %v1063_v8 = vld [vmem:[%s20691_s1 + $0x1ed0] sm:$0xff]  ;;  %v13786_v53 = vcombine.high %v935_v43, %v939_v44  ;;  %v13785_v15 = vcombine.low %v935_v43, %v939_v44 }
 0x410   :  { %11090 = vmatprep.subr.bf16.mxu1 %v13938_v3  ;;  %v1067_v10 = vld [vmem:[%s20691_s1 + $0x1ef0] sm:$0xff] }
 0x411   :  { %v13914_v60 = vcombine.high %v1063_v8, %v1067_v10  ;;  %v927_v35 = vld [vmem:[%s20691_s1 + $0x1a90] sm:$0xff]  ;;  %v13913_v17 = vcombine.low %v1063_v8, %v1067_v10 }
 0x412   :  { %11050 = vmatpush2.bf16.msra.mxu0 %v13809_v12  ;;  %v931_v47 = vld [vmem:[%s20691_s1 + $0x1ab0] sm:$0xff] }
 0x413   :  { %11091 = vmatpush2.bf16.msra.mxu1 %v13937_v19  ;;  %11051 = vmatprep.subr.bf16.mxu0 %v13802_v4  ;;  %v1055_v62 = vld [vmem:[%s20691_s1 + $0x1e90] sm:$0xff]  ;;  %v13778_v3 = vcombine.high %v927_v35, %v931_v47  ;;  %v13777_v19 = vcombine.low %v927_v35, %v931_v47 }
 0x414   :  { %11092 = vmatprep.subr.bf16.mxu1 %v13930_v50  ;;  %v1059_v61 = vld [vmem:[%s20691_s1 + $0x1eb0] sm:$0xff] }
 0x415   :  { %v13906_v63 = vcombine.high %v1055_v62, %v1059_v61  ;;  %v919_v41 = vld [vmem:[%s20691_s1 + $0x1a50] sm:$0xff]  ;;  %v13905_v4 = vcombine.low %v1055_v62, %v1059_v61  ;;  %v1701_v62 = vsub.s32 5, %v15778_v26 }
 0x416   :  { %11052 = vmatpush2.bf16.msra.mxu0 %v13801_v37  ;;  %v923_v46 = vld [vmem:[%s20691_s1 + $0x1a70] sm:$0xff] }
 0x417   :  { %11093 = vmatpush2.bf16.msra.mxu1 %v13929_v52  ;;  %11053 = vmatprep.subr.bf16.mxu0 %v13794_v42  ;;  %v1047_v9 = vld [vmem:[%s20691_s1 + $0x1e50] sm:$0xff]  ;;  %v13770_v50 = vcombine.high %v919_v41, %v923_v46  ;;  %v13769_v52 = vcombine.low %v919_v41, %v923_v46 }
 0x418   :  { %11094 = vmatprep.subr.bf16.mxu1 %v13922_v11  ;;  %v1051_v12 = vld [vmem:[%s20691_s1 + $0x1e70] sm:$0xff] }
 0x419   :  { %v13898_v0 = vcombine.high %v1047_v9, %v1051_v12  ;;  %v911_v24 = vld [vmem:[%s20691_s1 + $0x1a10] sm:$0xff]  ;;  %v13897_v42 = vcombine.low %v1047_v9, %v1051_v12 }
 0x41a   :  { %11054 = vmatpush2.bf16.msra.mxu0 %v13793_v5  ;;  %v915_v30 = vld [vmem:[%s20691_s1 + $0x1a30] sm:$0xff] }
 0x41b   :  { %11095 = vmatpush2.bf16.msra.mxu1 %v13921_v27  ;;  %11055 = vmatprep.subr.bf16.mxu0 %v13786_v53  ;;  %v1039_v33 = vld [vmem:[%s20691_s1 + $0x1e10] sm:$0xff]  ;;  %v13762_v11 = vcombine.high %v911_v24, %v915_v30  ;;  %v13761_v27 = vcombine.low %v911_v24, %v915_v30  ;;  %v1697_v53 = vsub.s32 4, %v15778_v26 }
 0x41c   :  { %11096 = vmatprep.subr.bf16.mxu1 %v13914_v60  ;;  %v1043_v37 = vld [vmem:[%s20691_s1 + $0x1e30] sm:$0xff] }
 0x41d   :  { %v13890_v43 = vcombine.high %v1039_v33, %v1043_v37  ;;  %v1159_v44 = vld [vmem:[%s20691_s1 + $0x21d0] sm:$0xff]  ;;  %v13889_v60 = vcombine.low %v1039_v33, %v1043_v37 }
 0x41e   :  { %11056 = vmatpush2.bf16.msra.mxu0 %v13785_v15  ;;  %v1163_v8 = vld [vmem:[%s20691_s1 + $0x21f0] sm:$0xff] }
 0x41f   :  { %11097 = vmatpush2.bf16.msra.mxu1 %v13913_v17  ;;  %11057 = vmatprep.subr.bf16.mxu0 %v13778_v3  ;;  %v1287_v10 = vld [vmem:[%s20691_s1 + $0x25d0] sm:$0xff]  ;;  %v14010_v35 = vcombine.high %v1159_v44, %v1163_v8  ;;  %v14009_v46 = vcombine.low %v1159_v44, %v1163_v8 }
 0x420   :  { %11098 = vmatprep.subr.bf16.mxu1 %v13906_v63  ;;  %v1291_v5 = vld [vmem:[%s20691_s1 + $0x25f0] sm:$0xff]  ;;  %v14883_v63 = vld [vmem:[%s20693_s2] sm:$0xff] }
 0x421   :  { %v14138_v47 = vcombine.high %v1287_v10, %v1291_v5  ;;  %v1151_v61 = vld [vmem:[%s20691_s1 + $0x2190] sm:$0xff]  ;;  %v1698_v41 = vrot.slane %v14883_v63, %v1697_v53  ;;  %v14137_v9 = vcombine.low %v1287_v10, %v1291_v5 }
 0x422   :  { %11058 = vmatpush2.bf16.msra.mxu0 %v13777_v19  ;;  %v1155_v15 = vld [vmem:[%s20691_s1 + $0x21b0] sm:$0xff]  ;;  %v1702_v19 = vrot.slane %v14883_v63, %v1701_v62 }
 0x423   :  { %11099 = vmatpush2.bf16.msra.mxu1 %v13905_v4  ;;  %11059 = vmatprep.subr.bf16.mxu0 %v13770_v50  ;;  %v1279_v17 = vld [vmem:[%s20691_s1 + $0x2590] sm:$0xff]  ;;  %v14002_v12 = vcombine.high %v1151_v61, %v1155_v15 }
 0x424   :  { %11100 = vmatprep.subr.bf16.mxu1 %v13898_v0  ;;  %v1283_v3 = vld [vmem:[%s20691_s1 + $0x25b0] sm:$0xff] }
 0x425   :  { %v14130_v4 = vcombine.high %v1279_v17, %v1283_v3  ;;  %v1143_v50 = vld [vmem:[%s20691_s1 + $0x2150] sm:$0xff] }
 0x426   :  { %11060 = vmatpush2.bf16.msra.mxu0 %v13769_v52  ;;  %v1147_v0 = vld [vmem:[%s20691_s1 + $0x2170] sm:$0xff] }
 0x427   :  { %11101 = vmatpush2.bf16.msra.mxu1 %v13897_v42  ;;  %11061 = vmatprep.subr.bf16.mxu0 %v13762_v11  ;;  %v1271_v30 = vld [vmem:[%s20691_s1 + $0x2550] sm:$0xff]  ;;  %v14001_v42 = vcombine.low %v1151_v61, %v1155_v15  ;;  %v13994_v44 = vcombine.high %v1143_v50, %v1147_v0 }
 0x428   :  { %11102 = vmatprep.subr.bf16.mxu1 %v13890_v43  ;;  %v1275_v33 = vld [vmem:[%s20691_s1 + $0x2570] sm:$0xff]  ;;  %v14129_v43 = vcombine.low %v1279_v17, %v1283_v3  ;;  %v13993_v17 = vcombine.low %v1143_v50, %v1147_v0 }
 0x429   :  { %v1135_v53 = vld [vmem:[%s20691_s1 + $0x2110] sm:$0xff]  ;;  %v14121_v63 = vcombine.low %v1271_v30, %v1275_v33 }
 0x42a   :  { %11062 = vmatpush2.bf16.msra.mxu0 %v13761_v27  ;;  %v14122_v27 = vcombine.high %v1271_v30, %v1275_v33  ;;  %v1267_v62 = vld [vmem:[%s20691_s1 + $0x2530] sm:$0xff] }
 0x42b   :  { %11103 = vmatpush2.bf16.msra.mxu1 %v13889_v60  ;;  %11113 = vmatprep.subr.bf16.mxu0 %v14010_v35  ;;  %v1139_v60 = vld [vmem:[%s20691_s1 + $0x2130] sm:$0xff] }
 0x42c   :  { %11154 = vmatprep.subr.bf16.mxu1 %v14138_v47  ;;  %v1263_v47 = vld [vmem:[%s20691_s1 + $0x2510] sm:$0xff]  ;;  %v13985_v0 = vcombine.low %v1135_v53, %v1139_v60 }
 0x42d   :  { %v10819_v24 = vpop.f32.mrf.mxu0  ;;  %11064 = vmatmul.mubr.bf16.vlgmr.msra.gmra.mxu0 %v15810_v49  ;;  %v1259_v50 = vld [vmem:[%s20691_s1 + $0x24f0] sm:$0xff] }
 0x42e   :  { %v10820_v37 = vadd.f32 %v10819_v24, %v1698_v41  ;;  %v10860_v52 = vpop.f32.mrf.mxu1  ;;  %11105 = vmatmul.mubr.bf16.vlgmr.msra.gmra.mxu1 %v15824_v55  ;;  %11114 = vmatpush1.bf16.msra.mxu0 %v14009_v46  ;;  %v13986_v41 = vcombine.high %v1135_v53, %v1139_v60  ;;  %v14113_v24 = vcombine.low %v1263_v47, %v1267_v62  ;;  %v1115_v53 = vld [vmem:[%s20691_s1 + $0x2070] sm:$0xff] }
 0x42f   :  { %11155 = vmatpush1.bf16.msra.mxu1 %v14137_v9  ;;  %v10821_v11 = vpop.f32.mrf.mxu0  ;;  %11115 = vmatprep.subr.bf16.mxu0 %v14002_v12  ;;  %v14114_v9 = vcombine.high %v1263_v47, %v1267_v62  ;;  %v1127_v12 = vld [vmem:[%s20691_s1 + $0x20d0] sm:$0xff] }
 0x430   :  { %v18461_v8 = vadd.f32 %v10860_v52, %v10820_v37  ;;  %v10822_v10 = vadd.f32 %v10821_v11, %v1702_v19  ;;  %v10862_v5 = vpop.f32.mrf.mxu1  ;;  %11156 = vmatprep.subr.bf16.mxu1 %v14130_v4  ;;  %11145 = vmatprep.mubr.bf16.mxu0 %v15835_v1  ;;  %v1131_v19 = vld [vmem:[%s20691_s1 + $0x20f0] sm:$0xff] }
 0x431   :  { %v10823_v35 = vpop.f32.mrf.mxu0  ;;  %11186 = vmatprep.mubr.bf16.mxu1 %v15844_v7  ;;  %v1255_v4 = vld [vmem:[%s20691_s1 + $0x24d0] sm:$0xff]  ;;  %v13978_v30 = vcombine.high %v1127_v12, %v1131_v19 }
 0x432   :  { %v18477_v61 = vadd.f32 %v10862_v5, %v10822_v10  ;;  %v10864_v15 = vpop.f32.mrf.mxu1  ;;  %11116 = vmatpush1.bf16.msra.mxu0 %v14001_v42  ;;  %v14106_v33 = vcombine.high %v1255_v4, %v1259_v50  ;;  %v1119_v37 = vld [vmem:[%s20691_s1 + $0x2090] sm:$0xff] }
 0x433   :  { %11157 = vmatpush1.bf16.msra.mxu1 %v14129_v43  ;;  %v10824_v3 = vpop.f32.mrf.mxu0  ;;  %11117 = vmatprep.subr.bf16.mxu0 %v13994_v44  ;;  %v1123_v52 = vld [vmem:[%s20691_s1 + $0x20b0] sm:$0xff]  ;;  %v13977_v43 = vcombine.low %v1127_v12, %v1131_v19  ;;  %v14105_v44 = vcombine.low %v1255_v4, %v1259_v50 }
 0x434   :  { %v10865_v46 = vpop.f32.mrf.mxu1  ;;  %11158 = vmatprep.subr.bf16.mxu1 %v14122_v27  ;;  %v1247_v42 = vld [vmem:[%s20691_s1 + $0x2490] sm:$0xff]  ;;  %v13970_v10 = vcombine.high %v1119_v37, %v1123_v52  ;;  %v13969_v47 = vcombine.low %v1119_v37, %v1123_v52 }
 0x435   :  { %v1251_v11 = vld [vmem:[%s20691_s1 + $0x24b0] sm:$0xff] }
 0x436   :  { %11118 = vmatpush1.bf16.msra.mxu0 %v13993_v17  ;;  %v14098_v5 = vcombine.high %v1247_v42, %v1251_v11  ;;  %v1111_v27 = vld [vmem:[%s20691_s1 + $0x2050] sm:$0xff]  ;;  %v14097_v62 = vcombine.low %v1247_v42, %v1251_v11 }
 0x437   :  { %11159 = vmatpush1.bf16.msra.mxu1 %v14121_v63  ;;  %11119 = vmatprep.subr.bf16.mxu0 %v13986_v41  ;;  %v1239_v60 = vld [vmem:[%s20691_s1 + $0x2450] sm:$0xff]  ;;  %v13962_v15 = vcombine.high %v1111_v27, %v1115_v53 }
 0x438   :  { %11160 = vmatprep.subr.bf16.mxu1 %v14114_v9  ;;  %v1243_v35 = vld [vmem:[%s20691_s1 + $0x2470] sm:$0xff]  ;;  %v13961_v9 = vcombine.low %v1111_v27, %v1115_v53 }
 0x439   :  { %v14090_v17 = vcombine.high %v1239_v60, %v1243_v35  ;;  %v1103_v3 = vld [vmem:[%s20691_s1 + $0x2010] sm:$0xff]  ;;  %v14089_v12 = vcombine.low %v1239_v60, %v1243_v35 }
 0x43a   :  { %11120 = vmatpush1.bf16.msra.mxu0 %v13985_v0  ;;  %v1107_v63 = vld [vmem:[%s20691_s1 + $0x2030] sm:$0xff] }
 0x43b   :  { %11161 = vmatpush1.bf16.msra.mxu1 %v14113_v24  ;;  %11121 = vmatprep.subr.bf16.mxu0 %v13978_v30  ;;  %v1231_v41 = vld [vmem:[%s20691_s1 + $0x2410] sm:$0xff]  ;;  %v13954_v19 = vcombine.high %v1103_v3, %v1107_v63 }
 0x43c   :  { %11162 = vmatprep.subr.bf16.mxu1 %v14106_v33  ;;  %v1235_v46 = vld [vmem:[%s20691_s1 + $0x2430] sm:$0xff]  ;;  %v13953_v33 = vcombine.low %v1103_v3, %v1107_v63 }
 0x43d   :  { %v14082_v4 = vcombine.high %v1231_v41, %v1235_v46  ;;  %v1223_v50 = vld [vmem:[%s20691_s1 + $0x23d0] sm:$0xff]  ;;  %v14081_v37 = vcombine.low %v1231_v41, %v1235_v46 }
 0x43e   :  { %11122 = vmatpush1.bf16.msra.mxu0 %v13977_v43  ;;  %v1227_v0 = vld [vmem:[%s20691_s1 + $0x23f0] sm:$0xff] }
 0x43f   :  { %11163 = vmatpush1.bf16.msra.mxu1 %v14105_v44  ;;  %11123 = vmatprep.subr.bf16.mxu0 %v13970_v10  ;;  %v1351_v24 = vld [vmem:[%s20691_s1 + $0x27d0] sm:$0xff]  ;;  %v14074_v52 = vcombine.high %v1223_v50, %v1227_v0 }
 0x440   :  { %11164 = vmatprep.subr.bf16.mxu1 %v14098_v5  ;;  %v1355_v30 = vld [vmem:[%s20691_s1 + $0x27f0] sm:$0xff]  ;;  %v14073_v5 = vcombine.low %v1223_v50, %v1227_v0 }
 0x441   :  { %v14202_v42 = vcombine.high %v1351_v24, %v1355_v30  ;;  %v1215_v11 = vld [vmem:[%s20691_s1 + $0x2390] sm:$0xff]  ;;  %v14201_v27 = vcombine.low %v1351_v24, %v1355_v30 }
 0x442   :  { %11124 = vmatpush1.bf16.msra.mxu0 %v13969_v47  ;;  %v1219_v43 = vld [vmem:[%s20691_s1 + $0x23b0] sm:$0xff] }
 0x443   :  { %11165 = vmatpush1.bf16.msra.mxu1 %v14097_v62  ;;  %11125 = vmatprep.subr.bf16.mxu0 %v13962_v15  ;;  %v1343_v44 = vld [vmem:[%s20691_s1 + $0x2790] sm:$0xff]  ;;  %v14066_v53 = vcombine.high %v1215_v11, %v1219_v43 }
 0x444   :  { %11166 = vmatprep.subr.bf16.mxu1 %v14090_v17  ;;  %v1347_v10 = vld [vmem:[%s20691_s1 + $0x27b0] sm:$0xff]  ;;  %v14065_v17 = vcombine.low %v1215_v11, %v1219_v43 }
 0x445   :  { %v14194_v60 = vcombine.high %v1343_v44, %v1347_v10  ;;  %v1207_v35 = vld [vmem:[%s20691_s1 + $0x2350] sm:$0xff]  ;;  %v14193_v3 = vcombine.low %v1343_v44, %v1347_v10 }
 0x446   :  { %11126 = vmatpush1.bf16.msra.mxu0 %v13961_v9  ;;  %v1211_v47 = vld [vmem:[%s20691_s1 + $0x2370] sm:$0xff] }
 0x447   :  { %11167 = vmatpush1.bf16.msra.mxu1 %v14089_v12  ;;  %11127 = vmatprep.subr.bf16.mxu0 %v13954_v19  ;;  %v1335_v62 = vld [vmem:[%s20691_s1 + $0x2750] sm:$0xff]  ;;  %v14058_v63 = vcombine.high %v1207_v35, %v1211_v47 }
 0x448   :  { %11168 = vmatprep.subr.bf16.mxu1 %v14082_v4  ;;  %v1339_v15 = vld [vmem:[%s20691_s1 + $0x2770] sm:$0xff]  ;;  %v14057_v4 = vcombine.low %v1207_v35, %v1211_v47 }
 0x449   :  { %v14186_v41 = vcombine.high %v1335_v62, %v1339_v15  ;;  %v1199_v46 = vld [vmem:[%s20691_s1 + $0x2310] sm:$0xff]  ;;  %v14185_v50 = vcombine.low %v1335_v62, %v1339_v15 }
 0x44a   :  { %11128 = vmatpush1.bf16.msra.mxu0 %v13953_v33  ;;  %v1203_v9 = vld [vmem:[%s20691_s1 + $0x2330] sm:$0xff] }
 0x44b   :  { %11169 = vmatpush1.bf16.msra.mxu1 %v14081_v37  ;;  %11129 = vmatprep.subr.bf16.mxu0 %v14074_v52  ;;  %v1327_v12 = vld [vmem:[%s20691_s1 + $0x2710] sm:$0xff]  ;;  %v14050_v0 = vcombine.high %v1199_v46, %v1203_v9 }
 0x44c   :  { %11170 = vmatprep.subr.bf16.mxu1 %v14202_v42  ;;  %v1331_v19 = vld [vmem:[%s20691_s1 + $0x2730] sm:$0xff]  ;;  %v14049_v42 = vcombine.low %v1199_v46, %v1203_v9 }
 0x44d   :  { %v14178_v24 = vcombine.high %v1327_v12, %v1331_v19  ;;  %v1191_v30 = vld [vmem:[%s20691_s1 + $0x22d0] sm:$0xff]  ;;  %v14177_v11 = vcombine.low %v1327_v12, %v1331_v19 }
 0x44e   :  { %11130 = vmatpush2.bf16.msra.mxu0 %v14073_v5  ;;  %v1195_v33 = vld [vmem:[%s20691_s1 + $0x22f0] sm:$0xff] }
 0x44f   :  { %11171 = vmatpush2.bf16.msra.mxu1 %v14201_v27  ;;  %11131 = vmatprep.subr.bf16.mxu0 %v14066_v53  ;;  %v1319_v37 = vld [vmem:[%s20691_s1 + $0x26d0] sm:$0xff]  ;;  %v14042_v43 = vcombine.high %v1191_v30, %v1195_v33 }
 0x450   :  { %11172 = vmatprep.subr.bf16.mxu1 %v14194_v60  ;;  %v1323_v52 = vld [vmem:[%s20691_s1 + $0x26f0] sm:$0xff]  ;;  %v14041_v60 = vcombine.low %v1191_v30, %v1195_v33 }
 0x451   :  { %v14170_v44 = vcombine.high %v1319_v37, %v1323_v52  ;;  %v1183_v10 = vld [vmem:[%s20691_s1 + $0x2290] sm:$0xff]  ;;  %v14169_v35 = vcombine.low %v1319_v37, %v1323_v52 }
 0x452   :  { %11132 = vmatpush2.bf16.msra.mxu0 %v14065_v17  ;;  %v1187_v5 = vld [vmem:[%s20691_s1 + $0x22b0] sm:$0xff] }
 0x453   :  { %11173 = vmatpush2.bf16.msra.mxu1 %v14193_v3  ;;  %11133 = vmatprep.subr.bf16.mxu0 %v14058_v63  ;;  %v1311_v27 = vld [vmem:[%s20691_s1 + $0x2690] sm:$0xff]  ;;  %v14034_v47 = vcombine.high %v1183_v10, %v1187_v5 }
 0x454   :  { %11174 = vmatprep.subr.bf16.mxu1 %v14186_v41  ;;  %v1315_v53 = vld [vmem:[%s20691_s1 + $0x26b0] sm:$0xff]  ;;  %v14033_v41 = vcombine.low %v1183_v10, %v1187_v5 }
 0x455   :  { %v14162_v62 = vcombine.high %v1311_v27, %v1315_v53  ;;  %v1175_v15 = vld [vmem:[%s20691_s1 + $0x2250] sm:$0xff]  ;;  %v14161_v46 = vcombine.low %v1311_v27, %v1315_v53 }
 0x456   :  { %11134 = vmatpush2.bf16.msra.mxu0 %v14057_v4  ;;  %v1179_v17 = vld [vmem:[%s20691_s1 + $0x2270] sm:$0xff] }
 0x457   :  { %11175 = vmatpush2.bf16.msra.mxu1 %v14185_v50  ;;  %11135 = vmatprep.subr.bf16.mxu0 %v14050_v0  ;;  %v1303_v3 = vld [vmem:[%s20691_s1 + $0x2650] sm:$0xff]  ;;  %v14026_v9 = vcombine.high %v1175_v15, %v1179_v17 }
 0x458   :  { %11176 = vmatprep.subr.bf16.mxu1 %v14178_v24  ;;  %v1307_v63 = vld [vmem:[%s20691_s1 + $0x2670] sm:$0xff]  ;;  %v14025_v24 = vcombine.low %v1175_v15, %v1179_v17 }
 0x459   :  { %v14154_v12 = vcombine.high %v1303_v3, %v1307_v63  ;;  %v1167_v19 = vld [vmem:[%s20691_s1 + $0x2210] sm:$0xff]  ;;  %v14153_v30 = vcombine.low %v1303_v3, %v1307_v63 }
 0x45a   :  { %11136 = vmatpush2.bf16.msra.mxu0 %v14049_v42  ;;  %v1171_v4 = vld [vmem:[%s20691_s1 + $0x2230] sm:$0xff] }
 0x45b   :  { %11177 = vmatpush2.bf16.msra.mxu1 %v14177_v11  ;;  %11137 = vmatprep.subr.bf16.mxu0 %v14042_v43  ;;  %v1295_v50 = vld [vmem:[%s20691_s1 + $0x2610] sm:$0xff]  ;;  %v14018_v33 = vcombine.high %v1167_v19, %v1171_v4 }
 0x45c   :  { %11178 = vmatprep.subr.bf16.mxu1 %v14170_v44  ;;  %v1299_v0 = vld [vmem:[%s20691_s1 + $0x2630] sm:$0xff]  ;;  %v14017_v44 = vcombine.low %v1167_v19, %v1171_v4 }
 0x45d   :  { %v14146_v37 = vcombine.high %v1295_v50, %v1299_v0  ;;  %v1415_v52 = vld [vmem:[%s20691_s1 + $0x29d0] sm:$0xff]  ;;  %v14145_v10 = vcombine.low %v1295_v50, %v1299_v0 }
 0x45e   :  { %11138 = vmatpush2.bf16.msra.mxu0 %v14041_v60  ;;  %v1419_v42 = vld [vmem:[%s20691_s1 + $0x29f0] sm:$0xff] }
 0x45f   :  { %11179 = vmatpush2.bf16.msra.mxu1 %v14169_v35  ;;  %11139 = vmatprep.subr.bf16.mxu0 %v14034_v47  ;;  %v1543_v11 = vld [vmem:[%s20691_s1 + $0x2dd0] sm:$0xff]  ;;  %v14266_v5 = vcombine.high %v1415_v52, %v1419_v42 }
 0x460   :  { %11180 = vmatprep.subr.bf16.mxu1 %v14162_v62  ;;  %v1547_v43 = vld [vmem:[%s20691_s1 + $0x2df0] sm:$0xff]  ;;  %v14265_v62 = vcombine.low %v1415_v52, %v1419_v42 }
 0x461   :  { %v14394_v27 = vcombine.high %v1543_v11, %v1547_v43  ;;  %v1407_v53 = vld [vmem:[%s20691_s1 + $0x2990] sm:$0xff]  ;;  %v14393_v15 = vcombine.low %v1543_v11, %v1547_v43 }
 0x462   :  { %11140 = vmatpush2.bf16.msra.mxu0 %v14033_v41  ;;  %v1411_v60 = vld [vmem:[%s20691_s1 + $0x29b0] sm:$0xff] }
 0x463   :  { %11181 = vmatpush2.bf16.msra.mxu1 %v14161_v46  ;;  %11141 = vmatprep.subr.bf16.mxu0 %v14026_v9  ;;  %v1535_v35 = vld [vmem:[%s20691_s1 + $0x2d90] sm:$0xff]  ;;  %v14258_v17 = vcombine.high %v1407_v53, %v1411_v60  ;;  %v14257_v50 = vcombine.low %v1407_v53, %v1411_v60 }
 0x464   :  { %11182 = vmatprep.subr.bf16.mxu1 %v14154_v12  ;;  %v1539_v47 = vld [vmem:[%s20691_s1 + $0x2db0] sm:$0xff] }
 0x465   :  { %v14386_v3 = vcombine.high %v1535_v35, %v1539_v47  ;;  %v1399_v63 = vld [vmem:[%s20691_s1 + $0x2950] sm:$0xff] }
 0x466   :  { %11142 = vmatpush2.bf16.msra.mxu0 %v14025_v24  ;;  %v1403_v41 = vld [vmem:[%s20691_s1 + $0x2970] sm:$0xff]  ;;  %v14385_v24 = vcombine.low %v1535_v35, %v1539_v47 }
 0x467   :  { %11183 = vmatpush2.bf16.msra.mxu1 %v14153_v30  ;;  %11143 = vmatprep.subr.bf16.mxu0 %v14018_v33  ;;  %v1527_v9 = vld [vmem:[%s20691_s1 + $0x2d50] sm:$0xff]  ;;  %v14250_v30 = vcombine.high %v1399_v63, %v1403_v41 }
 0x468   :  { %11184 = vmatprep.subr.bf16.mxu1 %v14146_v37  ;;  %v1531_v12 = vld [vmem:[%s20691_s1 + $0x2d70] sm:$0xff] }
 0x469   :  { %v14378_v42 = vcombine.high %v1527_v9, %v1531_v12  ;;  %v1395_v11 = vld [vmem:[%s20691_s1 + $0x2930] sm:$0xff]  ;;  %v14377_v60 = vcombine.low %v1527_v9, %v1531_v12 }
 0x46a   :  { %11144 = vmatpush2.bf16.msra.mxu0 %v14017_v44  ;;  %v1519_v44 = vld [vmem:[%s20691_s1 + $0x2d10] sm:$0xff] }
 0x46b   :  { %11185 = vmatpush2.bf16.msra.mxu1 %v14145_v10  ;;  %11195 = vmatprep.subr.bf16.mxu0 %v14266_v5 }
 0x46c   :  { %11236 = vmatprep.subr.bf16.mxu1 %v14394_v27  ;;  %v14249_v27 = vcombine.low %v1399_v63, %v1403_v41  ;;  %v1515_v63 = vld [vmem:[%s20691_s1 + $0x2cf0] sm:$0xff] }
 0x46d   :  { %v10901_v46 = vpop.f32.mrf.mxu0  ;;  %11146 = vmatmul.mubr.bf16.vlgmr.msra.gmra.mxu0 %v16039_v22 }
 0x46e   :  { %v10902_v19 = vadd.f32 %v10901_v46, %v18461_v8  ;;  %v10942_v4 = vpop.f32.mrf.mxu1  ;;  %11187 = vmatmul.mubr.bf16.vlgmr.msra.gmra.mxu1 %v16051_v29  ;;  %11196 = vmatpush1.bf16.msra.mxu0 %v14265_v62  ;;  %v1391_v8 = vld [vmem:[%s20691_s1 + $0x2910] sm:$0xff] }
 0x46f   :  { %11237 = vmatpush1.bf16.msra.mxu1 %v14393_v15  ;;  %v10903_v0 = vpop.f32.mrf.mxu0  ;;  %11197 = vmatprep.subr.bf16.mxu0 %v14258_v17  ;;  %v14242_v35 = vcombine.high %v1391_v8, %v1395_v11  ;;  %v1383_v15 = vld [vmem:[%s20691_s1 + $0x28d0] sm:$0xff]  ;;  %v14241_v41 = vcombine.low %v1391_v8, %v1395_v11 }
 0x470   :  { %v18662_v33 = vadd.f32 %v10942_v4, %v10902_v19  ;;  %v10904_v37 = vadd.f32 %v10903_v0, %v18477_v61  ;;  %v10944_v52 = vpop.f32.mrf.mxu1  ;;  %11238 = vmatprep.subr.bf16.mxu1 %v14386_v3  ;;  %11227 = vmatprep.mubr.bf16.mxu0 %v16062_v39  ;;  %v1523_v61 = vld [vmem:[%s20691_s1 + $0x2d30] sm:$0xff] }
 0x471   :  { %v10905_v43 = vpop.f32.mrf.mxu0  ;;  %11268 = vmatprep.mubr.bf16.mxu1 %v16071_v45  ;;  %v14370_v62 = vcombine.high %v1519_v44, %v1523_v61  ;;  %v1387_v17 = vld [vmem:[%s20691_s1 + $0x28f0] sm:$0xff]  ;;  %v14369_v46 = vcombine.low %v1519_v44, %v1523_v61 }
 0x472   :  { %v18679_v10 = vadd.f32 %v10944_v52, %v10904_v37  ;;  %v10946_v5 = vpop.f32.mrf.mxu1  ;;  %11198 = vmatpush1.bf16.msra.mxu0 %v14257_v50  ;;  %v1511_v3 = vld [vmem:[%s20691_s1 + $0x2cd0] sm:$0xff]  ;;  %v14234_v9 = vcombine.high %v1383_v15, %v1387_v17 }
 0x473   :  { %11239 = vmatpush1.bf16.msra.mxu1 %v14385_v24  ;;  %v10906_v53 = vpop.f32.mrf.mxu0  ;;  %11199 = vmatprep.subr.bf16.mxu0 %v14250_v30  ;;  %v14362_v12 = vcombine.high %v1511_v3, %v1515_v63  ;;  %v1375_v19 = vld [vmem:[%s20691_s1 + $0x2890] sm:$0xff]  ;;  %v14233_v24 = vcombine.low %v1383_v15, %v1387_v17  ;;  %v14361_v30 = vcombine.low %v1511_v3, %v1515_v63 }
 0x474   :  { %v10947_v47 = vpop.f32.mrf.mxu1  ;;  %11240 = vmatprep.subr.bf16.mxu1 %v14378_v42  ;;  %v1379_v4 = vld [vmem:[%s20691_s1 + $0x28b0] sm:$0xff] }
 0x475   :  { %v1503_v50 = vld [vmem:[%s20691_s1 + $0x2c90] sm:$0xff]  ;;  %v14226_v37 = vcombine.high %v1375_v19, %v1379_v4  ;;  %v14225_v44 = vcombine.low %v1375_v19, %v1379_v4 }
 0x476   :  { %11200 = vmatpush1.bf16.msra.mxu0 %v14249_v27  ;;  %v1507_v0 = vld [vmem:[%s20691_s1 + $0x2cb0] sm:$0xff] }
 0x477   :  { %11241 = vmatpush1.bf16.msra.mxu1 %v14377_v60  ;;  %11201 = vmatprep.subr.bf16.mxu0 %v14242_v35  ;;  %v14354_v52 = vcombine.high %v1503_v50, %v1507_v0  ;;  %v1367_v42 = vld [vmem:[%s20691_s1 + $0x2850] sm:$0xff]  ;;  %v14353_v61 = vcombine.low %v1503_v50, %v1507_v0 }
 0x478   :  { %11242 = vmatprep.subr.bf16.mxu1 %v14370_v62  ;;  %v1371_v8 = vld [vmem:[%s20691_s1 + $0x2870] sm:$0xff] }
 0x479   :  { %v1495_v11 = vld [vmem:[%s20691_s1 + $0x2c50] sm:$0xff]  ;;  %v14218_v5 = vcombine.high %v1367_v42, %v1371_v8  ;;  %v14217_v62 = vcombine.low %v1367_v42, %v1371_v8 }
 0x47a   :  { %11202 = vmatpush1.bf16.msra.mxu0 %v14241_v41  ;;  %v1499_v43 = vld [vmem:[%s20691_s1 + $0x2c70] sm:$0xff] }
 0x47b   :  { %11243 = vmatpush1.bf16.msra.mxu1 %v14369_v46  ;;  %11203 = vmatprep.subr.bf16.mxu0 %v14234_v9  ;;  %v14346_v27 = vcombine.high %v1495_v11, %v1499_v43  ;;  %v1359_v53 = vld [vmem:[%s20691_s1 + $0x2810] sm:$0xff]  ;;  %v14345_v15 = vcombine.low %v1495_v11, %v1499_v43 }
 0x47c   :  { %11244 = vmatprep.subr.bf16.mxu1 %v14362_v12  ;;  %v1363_v60 = vld [vmem:[%s20691_s1 + $0x2830] sm:$0xff] }
 0x47d   :  { %v1487_v35 = vld [vmem:[%s20691_s1 + $0x2c10] sm:$0xff]  ;;  %v14210_v17 = vcombine.high %v1359_v53, %v1363_v60  ;;  %v14209_v12 = vcombine.low %v1359_v53, %v1363_v60 }
 0x47e   :  { %11204 = vmatpush1.bf16.msra.mxu0 %v14233_v24  ;;  %v1491_v47 = vld [vmem:[%s20691_s1 + $0x2c30] sm:$0xff] }
 0x47f   :  { %11245 = vmatpush1.bf16.msra.mxu1 %v14361_v30  ;;  %11205 = vmatprep.subr.bf16.mxu0 %v14226_v37  ;;  %v14338_v3 = vcombine.high %v1487_v35, %v1491_v47  ;;  %v1479_v63 = vld [vmem:[%s20691_s1 + $0x2bd0] sm:$0xff]  ;;  %v14337_v19 = vcombine.low %v1487_v35, %v1491_v47 }
 0x480   :  { %11246 = vmatprep.subr.bf16.mxu1 %v14354_v52  ;;  %v1483_v41 = vld [vmem:[%s20691_s1 + $0x2bf0] sm:$0xff] }
 0x481   :  { %v1607_v46 = vld [vmem:[%s20691_s1 + $0x2fd0] sm:$0xff]  ;;  %v14330_v4 = vcombine.high %v1479_v63, %v1483_v41  ;;  %v14329_v52 = vcombine.low %v1479_v63, %v1483_v41 }
 0x482   :  { %11206 = vmatpush1.bf16.msra.mxu0 %v14225_v44  ;;  %v1611_v9 = vld [vmem:[%s20691_s1 + $0x2ff0] sm:$0xff] }
 0x483   :  { %11247 = vmatpush1.bf16.msra.mxu1 %v14353_v61  ;;  %11207 = vmatprep.subr.bf16.mxu0 %v14218_v5  ;;  %v14458_v50 = vcombine.high %v1607_v46, %v1611_v9  ;;  %v1471_v0 = vld [vmem:[%s20691_s1 + $0x2b90] sm:$0xff]  ;;  %v14457_v42 = vcombine.low %v1607_v46, %v1611_v9 }
 0x484   :  { %11248 = vmatprep.subr.bf16.mxu1 %v14346_v27  ;;  %v1475_v24 = vld [vmem:[%s20691_s1 + $0x2bb0] sm:$0xff] }
 0x485   :  { %v1599_v30 = vld [vmem:[%s20691_s1 + $0x2f90] sm:$0xff]  ;;  %v14322_v8 = vcombine.high %v1471_v0, %v1475_v24  ;;  %v14321_v27 = vcombine.low %v1471_v0, %v1475_v24 }
 0x486   :  { %11208 = vmatpush1.bf16.msra.mxu0 %v14217_v62  ;;  %v1603_v37 = vld [vmem:[%s20691_s1 + $0x2fb0] sm:$0xff] }
 0x487   :  { %11249 = vmatpush1.bf16.msra.mxu1 %v14345_v15  ;;  %11209 = vmatprep.subr.bf16.mxu0 %v14210_v17  ;;  %v14450_v11 = vcombine.high %v1599_v30, %v1603_v37  ;;  %v1463_v43 = vld [vmem:[%s20691_s1 + $0x2b50] sm:$0xff]  ;;  %v14449_v53 = vcombine.low %v1599_v30, %v1603_v37 }
 0x488   :  { %11250 = vmatprep.subr.bf16.mxu1 %v14338_v3  ;;  %v1467_v44 = vld [vmem:[%s20691_s1 + $0x2b70] sm:$0xff] }
 0x489   :  { %v1591_v61 = vld [vmem:[%s20691_s1 + $0x2f50] sm:$0xff]  ;;  %v14314_v60 = vcombine.high %v1463_v43, %v1467_v44  ;;  %v14313_v3 = vcombine.low %v1463_v43, %v1467_v44 }
 0x48a   :  { %11210 = vmatpush1.bf16.msra.mxu0 %v14209_v12  ;;  %v1595_v5 = vld [vmem:[%s20691_s1 + $0x2f70] sm:$0xff] }
 0x48b   :  { %11251 = vmatpush1.bf16.msra.mxu1 %v14337_v19  ;;  %11211 = vmatprep.subr.bf16.mxu0 %v14330_v4  ;;  %v14442_v35 = vcombine.high %v1591_v61, %v1595_v5  ;;  %v1455_v47 = vld [vmem:[%s20691_s1 + $0x2b10] sm:$0xff]  ;;  %v14441_v63 = vcombine.low %v1591_v61, %v1595_v5 }
 0x48c   :  { %11252 = vmatprep.subr.bf16.mxu1 %v14458_v50  ;;  %v1459_v62 = vld [vmem:[%s20691_s1 + $0x2b30] sm:$0xff] }
 0x48d   :  { %v1583_v15 = vld [vmem:[%s20691_s1 + $0x2f10] sm:$0xff]  ;;  %v14306_v41 = vcombine.high %v1455_v47, %v1459_v62  ;;  %v14305_v50 = vcombine.low %v1455_v47, %v1459_v62 }
 0x48e   :  { %11212 = vmatpush2.bf16.msra.mxu0 %v14329_v52  ;;  %v1587_v17 = vld [vmem:[%s20691_s1 + $0x2f30] sm:$0xff] }
 0x48f   :  { %11253 = vmatpush2.bf16.msra.mxu1 %v14457_v42  ;;  %11213 = vmatprep.subr.bf16.mxu0 %v14322_v8  ;;  %v14434_v46 = vcombine.high %v1583_v15, %v1587_v17  ;;  %v1447_v9 = vld [vmem:[%s20691_s1 + $0x2ad0] sm:$0xff]  ;;  %v14433_v0 = vcombine.low %v1583_v15, %v1587_v17 }
 0x490   :  { %11254 = vmatprep.subr.bf16.mxu1 %v14450_v11  ;;  %v1451_v12 = vld [vmem:[%s20691_s1 + $0x2af0] sm:$0xff] }
 0x491   :  { %v1575_v19 = vld [vmem:[%s20691_s1 + $0x2ed0] sm:$0xff]  ;;  %v14298_v24 = vcombine.high %v1447_v9, %v1451_v12  ;;  %v14297_v11 = vcombine.low %v1447_v9, %v1451_v12 }
 0x492   :  { %11214 = vmatpush2.bf16.msra.mxu0 %v14321_v27  ;;  %v1579_v4 = vld [vmem:[%s20691_s1 + $0x2ef0] sm:$0xff] }
 0x493   :  { %11255 = vmatpush2.bf16.msra.mxu1 %v14449_v53  ;;  %11215 = vmatprep.subr.bf16.mxu0 %v14314_v60  ;;  %v14426_v30 = vcombine.high %v1575_v19, %v1579_v4  ;;  %v1439_v37 = vld [vmem:[%s20691_s1 + $0x2a90] sm:$0xff]  ;;  %v14425_v43 = vcombine.low %v1575_v19, %v1579_v4 }
 0x494   :  { %11256 = vmatprep.subr.bf16.mxu1 %v14442_v35  ;;  %v1443_v52 = vld [vmem:[%s20691_s1 + $0x2ab0] sm:$0xff] }
 0x495   :  { %v1567_v42 = vld [vmem:[%s20691_s1 + $0x2e90] sm:$0xff]  ;;  %v14290_v44 = vcombine.high %v1439_v37, %v1443_v52  ;;  %v14289_v35 = vcombine.low %v1439_v37, %v1443_v52 }
 0x496   :  { %11216 = vmatpush2.bf16.msra.mxu0 %v14313_v3  ;;  %v1571_v8 = vld [vmem:[%s20691_s1 + $0x2eb0] sm:$0xff] }
 0x497   :  { %11257 = vmatpush2.bf16.msra.mxu1 %v14441_v63  ;;  %11217 = vmatprep.subr.bf16.mxu0 %v14306_v41  ;;  %v14418_v61 = vcombine.high %v1567_v42, %v1571_v8  ;;  %v1431_v5 = vld [vmem:[%s20691_s1 + $0x2a50] sm:$0xff]  ;;  %v14417_v47 = vcombine.low %v1567_v42, %v1571_v8 }
 0x498   :  { %11258 = vmatprep.subr.bf16.mxu1 %v14434_v46  ;;  %v1435_v27 = vld [vmem:[%s20691_s1 + $0x2a70] sm:$0xff] }
 0x499   :  { %v1559_v53 = vld [vmem:[%s20691_s1 + $0x2e50] sm:$0xff]  ;;  %v14282_v62 = vcombine.high %v1431_v5, %v1435_v27  ;;  %v14281_v46 = vcombine.low %v1431_v5, %v1435_v27 }
 0x49a   :  { %11218 = vmatpush2.bf16.msra.mxu0 %v14305_v50  ;;  %v1563_v60 = vld [vmem:[%s20691_s1 + $0x2e70] sm:$0xff] }
 0x49b   :  { %11259 = vmatpush2.bf16.msra.mxu1 %v14433_v0  ;;  %11219 = vmatprep.subr.bf16.mxu0 %v14298_v24  ;;  %v14410_v15 = vcombine.high %v1559_v53, %v1563_v60  ;;  %v1423_v17 = vld [vmem:[%s20691_s1 + $0x2a10] sm:$0xff]  ;;  %v14409_v9 = vcombine.low %v1559_v53, %v1563_v60  ;;  %v136_v0 = vld [vmem:[%s20691_s1 + $0x1d8] sm:$0xff] }
 0x49c   :  { %11260 = vmatprep.subr.bf16.mxu1 %v14426_v30  ;;  %v1427_v3 = vld [vmem:[%s20691_s1 + $0x2a30] sm:$0xff]  ;;  %v140_v24 = vld [vmem:[%s20691_s1 + $0x1f8] sm:$0xff] }
 0x49d   :  { %v1551_v63 = vld [vmem:[%s20691_s1 + $0x2e10] sm:$0xff]  ;;  %v14274_v12 = vcombine.high %v1423_v17, %v1427_v3  ;;  %v14273_v30 = vcombine.low %v1423_v17, %v1427_v3  ;;  %v12988_v42 = vcombine.high %v136_v0, %v140_v24  ;;  %v12987_v5 = vcombine.low %v136_v0, %v140_v24 }
 0x49e   :  { %11220 = vmatpush2.bf16.msra.mxu0 %v14297_v11  ;;  %v1555_v41 = vld [vmem:[%s20691_s1 + $0x2e30] sm:$0xff] }
 0x49f   :  { %11261 = vmatpush2.bf16.msra.mxu1 %v14425_v43  ;;  %11221 = vmatprep.subr.bf16.mxu0 %v14290_v44  ;;  %v14402_v19 = vcombine.high %v1551_v63, %v1555_v41  ;;  %v1671_v4 = vld [vmem:[%s20691_s1 + $0x31d0] sm:$0xff]  ;;  %v14401_v37 = vcombine.low %v1551_v63, %v1555_v41  ;;  %v128_v43 = vld [vmem:[%s20691_s1 + $0x198] sm:$0xff] }
 0x4a0   :  { %11262 = vmatprep.subr.bf16.mxu1 %v14418_v61  ;;  %v1675_v50 = vld [vmem:[%s20691_s1 + $0x31f0] sm:$0xff]  ;;  %v132_v44 = vld [vmem:[%s20691_s1 + $0x1b8] sm:$0xff] }
 0x4a1   :  { %v14522_v52 = vcombine.high %v1671_v4, %v1675_v50  ;;  %v1663_v8 = vld [vmem:[%s20691_s1 + $0x3190] sm:$0xff]  ;;  %v14521_v61 = vcombine.low %v1671_v4, %v1675_v50  ;;  %v12980_v53 = vcombine.high %v128_v43, %v132_v44 }
 0x4a2   :  { %11222 = vmatpush2.bf16.msra.mxu0 %v14289_v35  ;;  %v1667_v11 = vld [vmem:[%s20691_s1 + $0x31b0] sm:$0xff] }
 0x4a3   :  { %11263 = vmatpush2.bf16.msra.mxu1 %v14417_v47  ;;  %11223 = vmatprep.subr.bf16.mxu0 %v14282_v62  ;;  %v14514_v27 = vcombine.high %v1663_v8, %v1667_v11  ;;  %v1655_v60 = vld [vmem:[%s20691_s1 + $0x3150] sm:$0xff]  ;;  %v120_v62 = vld [vmem:[%s20691_s1 + $0x158] sm:$0xff]  ;;  %v14513_v63 = vcombine.low %v1663_v8, %v1667_v11 }
 0x4a4   :  { %11264 = vmatprep.subr.bf16.mxu1 %v14410_v15  ;;  %v1659_v35 = vld [vmem:[%s20691_s1 + $0x3170] sm:$0xff]  ;;  %v124_v15 = vld [vmem:[%s20691_s1 + $0x178] sm:$0xff] }
 0x4a5   :  { %v12972_v50 = vcombine.high %v120_v62, %v124_v15  ;;  %v1651_v0 = vld [vmem:[%s20691_s1 + $0x3130] sm:$0xff]  ;;  %v12971_v11 = vcombine.low %v120_v62, %v124_v15 }
 0x4a6   :  { %11224 = vmatpush2.bf16.msra.mxu0 %v14281_v46  ;;  %v12979_v46 = vcombine.low %v128_v43, %v132_v44  ;;  %v1631_v15 = vld [vmem:[%s20691_s1 + $0x3090] sm:$0xff] }
 0x4a7   :  { %11265 = vmatpush2.bf16.msra.mxu1 %v14409_v9  ;;  %11225 = vmatprep.subr.bf16.mxu0 %v14274_v12  ;;  %v14506_v9 = vcombine.high %v1655_v60, %v1659_v35 }
 0x4a8   :  { %11266 = vmatprep.subr.bf16.mxu1 %v14402_v19 }
 0x4aa   :  { %11226 = vmatpush2.bf16.msra.mxu0 %v14273_v30  ;;  %v112_v30 = vld [vmem:[%s20691_s1 + $0x118] sm:$0xff] }
 0x4ab   :  { %11267 = vmatpush2.bf16.msra.mxu1 %v14401_v37  ;;  %11277 = vmatprep.subr.bf16.mxu0 %v14522_v52 }
 0x4ac   :  { %11318 = vmatprep.subr.bf16.mxu1 %v12988_v42  ;;  %v14505_v42 = vcombine.low %v1655_v60, %v1659_v35 }
 0x4ad   :  { %v10983_v47 = vpop.f32.mrf.mxu0  ;;  %11228 = vmatmul.mubr.bf16.vlgmr.msra.gmra.mxu0 %v16262_v13 }
 0x4ae   :  { %v10984_v17 = vadd.f32 %v10983_v47, %v18662_v33  ;;  %v11024_v3 = vpop.f32.mrf.mxu1  ;;  %11269 = vmatmul.mubr.bf16.vlgmr.msra.gmra.mxu1 %v16270_v21  ;;  %11278 = vmatpush1.bf16.msra.mxu0 %v14521_v61  ;;  %v1647_v33 = vld [vmem:[%s20691_s1 + $0x3110] sm:$0xff] }
 0x4af   :  { %11319 = vmatpush1.bf16.msra.mxu1 %v12987_v5  ;;  %v10985_v41 = vpop.f32.mrf.mxu0  ;;  %11279 = vmatprep.subr.bf16.mxu0 %v14514_v27  ;;  %v14498_v43 = vcombine.high %v1647_v33, %v1651_v0  ;;  %v1639_v5 = vld [vmem:[%s20691_s1 + $0x30d0] sm:$0xff]  ;;  %v104_v27 = vld [vmem:[%s20691_s1 + $0xd8] sm:$0xff]  ;;  %v14497_v60 = vcombine.low %v1647_v33, %v1651_v0 }
 0x4b0   :  { %v18864_v12 = vadd.f32 %v11024_v3, %v10984_v17  ;;  %v10986_v19 = vadd.f32 %v10985_v41, %v18679_v10  ;;  %v11026_v4 = vpop.f32.mrf.mxu1  ;;  %11320 = vmatprep.subr.bf16.mxu1 %v12980_v53  ;;  %11309 = vmatprep.mubr.bf16.mxu0 %v14885_v57  ;;  %v116_v10 = vld [vmem:[%s20691_s1 + $0x138] sm:$0xff]  ;;  %v1635_v17 = vld [vmem:[%s20691_s1 + $0x30b0] sm:$0xff] }
 0x4b1   :  { %v10987_v24 = vpop.f32.mrf.mxu0  ;;  %11350 = vmatprep.mubr.bf16.mxu1 %v15022_v58  ;;  %v12964_v61 = vcombine.high %v112_v30, %v116_v10  ;;  %v1643_v58 = vld [vmem:[%s20691_s1 + $0x30f0] sm:$0xff]  ;;  %v108_v53 = vld [vmem:[%s20691_s1 + $0xf8] sm:$0xff]  ;;  %v12963_v35 = vcombine.low %v112_v30, %v116_v10 }
 0x4b2   :  { %v18881_v37 = vadd.f32 %v11026_v4, %v10986_v19  ;;  %v11028_v52 = vpop.f32.mrf.mxu1  ;;  %11280 = vmatpush1.bf16.msra.mxu0 %v14513_v63  ;;  %v14490_v47 = vcombine.high %v1639_v5, %v1643_v58  ;;  %v12956_v62 = vcombine.high %v104_v27, %v108_v53  ;;  %v96_v3 = vld [vmem:[%s20691_s1 + $0x98] sm:$0xff]  ;;  %v14489_v41 = vcombine.low %v1639_v5, %v1643_v58  ;;  %v1623_v4 = vld [vmem:[%s20691_s1 + $0x3050] sm:$0xff] }
 0x4b3   :  { %11321 = vmatpush1.bf16.msra.mxu1 %v12979_v46  ;;  %v10988_v8 = vpop.f32.mrf.mxu0  ;;  %11281 = vmatprep.subr.bf16.mxu0 %v14506_v9  ;;  %v100_v63 = vld [vmem:[%s20691_s1 + $0xb8] sm:$0xff]  ;;  %v12955_v46 = vcombine.low %v104_v27, %v108_v53  ;;  %v14482_v9 = vcombine.high %v1631_v15, %v1635_v17  ;;  %v14481_v24 = vcombine.low %v1631_v15, %v1635_v17 }
 0x4b4   :  { %v11029_v44 = vpop.f32.mrf.mxu1  ;;  %11322 = vmatprep.subr.bf16.mxu1 %v12972_v50  ;;  %v12948_v19 = vcombine.high %v96_v3, %v100_v63  ;;  %v1627_v50 = vld [vmem:[%s20691_s1 + $0x3070] sm:$0xff]  ;;  %v88_v33 = vld [vmem:[%s20691_s1 + $0x58] sm:$0xff]  ;;  %v12947_v30 = vcombine.low %v96_v3, %v100_v63 }
 0x4b5   :  { %v92_v0 = vld [vmem:[%s20691_s1 + $0x78] sm:$0xff]  ;;  %v14474_v10 = vcombine.high %v1623_v4, %v1627_v50  ;;  %v1619_v8 = vld [vmem:[%s20691_s1 + $0x3030] sm:$0xff]  ;;  %v14473_v44 = vcombine.low %v1623_v4, %v1627_v50 }
 0x4b6   :  { %11282 = vmatpush1.bf16.msra.mxu0 %v14505_v42  ;;  %v12940_v52 = vcombine.high %v88_v33, %v92_v0  ;;  %v1615_v42 = vld [vmem:[%s20691_s1 + $0x3010] sm:$0xff]  ;;  %v264_v27 = vld [vmem:[%s20691_s1 + $0x5d8] sm:$0xff] }
 0x4b7   :  { %11323 = vmatpush1.bf16.msra.mxu1 %v12971_v11  ;;  %11283 = vmatprep.subr.bf16.mxu0 %v14498_v43  ;;  %v80_v11 = vld [vmem:[%s20691_s1 + $0x18] sm:$0xff]  ;;  %v14466_v5 = vcombine.high %v1615_v42, %v1619_v8 }
 0x4b8   :  { %11324 = vmatprep.subr.bf16.mxu1 %v12964_v61  ;;  %v84_v43 = vld [vmem:[%s20691_s1 + $0x38] sm:$0xff]  ;;  %v12939_v61 = vcombine.low %v88_v33, %v92_v0 }
 0x4b9   :  { %v12932_v58 = vcombine.high %v80_v11, %v84_v43  ;;  %v268_v53 = vld [vmem:[%s20691_s1 + $0x5f8] sm:$0xff] }
 0x4ba   :  { %11284 = vmatpush1.bf16.msra.mxu0 %v14497_v60  ;;  %v200_v60 = vld [vmem:[%s20691_s1 + $0x3d8] sm:$0xff]  ;;  %v13116_v15 = vcombine.high %v264_v27, %v268_v53 }
 0x4bb   :  { %11325 = vmatpush1.bf16.msra.mxu1 %v12963_v35  ;;  %11285 = vmatprep.subr.bf16.mxu0 %v14490_v47  ;;  %v204_v35 = vld [vmem:[%s20691_s1 + $0x3f8] sm:$0xff]  ;;  %v14465_v47 = vcombine.low %v1615_v42, %v1619_v8 }
 0x4bc   :  { %11326 = vmatprep.subr.bf16.mxu1 %v12956_v62  ;;  %v12931_v62 = vcombine.low %v80_v11, %v84_v43  ;;  %v13052_v17 = vcombine.high %v200_v60, %v204_v35  ;;  %v256_v3 = vld [vmem:[%s20691_s1 + $0x598] sm:$0xff] }
 0x4bd   :  { %v260_v63 = vld [vmem:[%s20691_s1 + $0x5b8] sm:$0xff] }
 0x4be   :  { %11286 = vmatpush1.bf16.msra.mxu0 %v14489_v41  ;;  %v192_v41 = vld [vmem:[%s20691_s1 + $0x398] sm:$0xff]  ;;  %v13108_v4 = vcombine.high %v256_v3, %v260_v63 }
 0x4bf   :  { %11327 = vmatpush1.bf16.msra.mxu1 %v12955_v46  ;;  %11287 = vmatprep.subr.bf16.mxu0 %v14482_v9  ;;  %v196_v46 = vld [vmem:[%s20691_s1 + $0x3b8] sm:$0xff]  ;;  %v13115_v9 = vcombine.low %v264_v27, %v268_v53 }
 0x4c0   :  { %11328 = vmatprep.subr.bf16.mxu1 %v12948_v19  ;;  %v13051_v19 = vcombine.low %v200_v60, %v204_v35  ;;  %v13044_v50 = vcombine.high %v192_v41, %v196_v46  ;;  %v248_v33 = vld [vmem:[%s20691_s1 + $0x558] sm:$0xff] }
 0x4c1   :  { %v252_v0 = vld [vmem:[%s20691_s1 + $0x578] sm:$0xff] }
 0x4c2   :  { %11288 = vmatpush1.bf16.msra.mxu0 %v14481_v24  ;;  %v184_v24 = vld [vmem:[%s20691_s1 + $0x358] sm:$0xff]  ;;  %v13100_v42 = vcombine.high %v248_v33, %v252_v0 }
 0x4c3   :  { %11329 = vmatpush1.bf16.msra.mxu1 %v12947_v30  ;;  %11289 = vmatprep.subr.bf16.mxu0 %v14474_v10  ;;  %v188_v30 = vld [vmem:[%s20691_s1 + $0x378] sm:$0xff]  ;;  %v13107_v10 = vcombine.low %v256_v3, %v260_v63 }
 0x4c4   :  { %11330 = vmatprep.subr.bf16.mxu1 %v12940_v52  ;;  %v13043_v52 = vcombine.low %v192_v41, %v196_v46  ;;  %v13036_v8 = vcombine.high %v184_v24, %v188_v30  ;;  %v240_v11 = vld [vmem:[%s20691_s1 + $0x518] sm:$0xff] }
 0x4c5   :  { %v244_v43 = vld [vmem:[%s20691_s1 + $0x538] sm:$0xff] }
 0x4c6   :  { %11290 = vmatpush1.bf16.msra.mxu0 %v14473_v44  ;;  %v176_v44 = vld [vmem:[%s20691_s1 + $0x318] sm:$0xff] }
 0x4c7   :  { %11331 = vmatpush1.bf16.msra.mxu1 %v12939_v61  ;;  %11291 = vmatprep.subr.bf16.mxu0 %v14466_v5  ;;  %v13099_v61 = vcombine.low %v248_v33, %v252_v0  ;;  %v13035_v5 = vcombine.low %v184_v24, %v188_v30  ;;  %v232_v53 = vld [vmem:[%s20691_s1 + $0x4d8] sm:$0xff] }
 0x4c8   :  { %11332 = vmatprep.subr.bf16.mxu1 %v12932_v58  ;;  %v13092_v58 = vcombine.high %v240_v11, %v244_v43  ;;  %v236_v60 = vld [vmem:[%s20691_s1 + $0x4f8] sm:$0xff] }
 0x4c9   :  { %v168_v35 = vld [vmem:[%s20691_s1 + $0x2d8] sm:$0xff] }
 0x4ca   :  { %11292 = vmatpush1.bf16.msra.mxu0 %v14465_v47  ;;  %v172_v47 = vld [vmem:[%s20691_s1 + $0x2f8] sm:$0xff] }
 0x4cb   :  { %11333 = vmatpush1.bf16.msra.mxu1 %v12931_v62  ;;  %11359 = vmatprep.subr.bf16.mxu0 %v13116_v15  ;;  %v13091_v62 = vcombine.low %v240_v11, %v244_v43  ;;  %v13020_v3 = vcombine.high %v168_v35, %v172_v47  ;;  %v224_v63 = vld [vmem:[%s20691_s1 + $0x498] sm:$0xff] }
 0x4cc   :  { %11334 = vmatprep.subr.bf16.mxu1 %v13052_v17  ;;  %v13084_v17 = vcombine.high %v232_v53, %v236_v60  ;;  %v228_v41 = vld [vmem:[%s20691_s1 + $0x4b8] sm:$0xff] }
 0x4cd   :  { %11310 = vmatmul.mubr.bf16.vlgmr.msra.gmra.mxu0 %v16375_v32  ;;  %v160_v46 = vld [vmem:[%s20691_s1 + $0x298] sm:$0xff] }
 0x4ce   :  { %11360 = vmatpush1.bf16.msra.mxu0 %v13115_v9  ;;  %11391 = vmatprep.mubr.bf16.mxu0 %v15024_v59  ;;  %v180_v59 = vld [vmem:[%s20691_s1 + $0x338] sm:$0xff] }
 0x4cf   :  { %11335 = vmatpush2.bf16.msra.mxu1 %v13051_v19  ;;  %11361 = vmatprep.subr.bf16.mxu0 %v13108_v4  ;;  %v13028_v27 = vcombine.high %v176_v44, %v180_v59  ;;  %v13027_v15 = vcombine.low %v176_v44, %v180_v59  ;;  %v164_v9 = vld [vmem:[%s20691_s1 + $0x2b8] sm:$0xff]  ;;  %v13083_v19 = vcombine.low %v232_v53, %v236_v60 }
 0x4d0   :  { %11336 = vmatprep.subr.bf16.mxu1 %v13044_v50  ;;  %v13019_v4 = vcombine.low %v168_v35, %v172_v47  ;;  %v13076_v50 = vcombine.high %v224_v63, %v228_v41  ;;  %v13012_v33 = vcombine.high %v160_v46, %v164_v9  ;;  %v216_v0 = vld [vmem:[%s20691_s1 + $0x458] sm:$0xff] }
 0x4d1   :  { %v220_v24 = vld [vmem:[%s20691_s1 + $0x478] sm:$0xff] }
 0x4d2   :  { %11362 = vmatpush1.bf16.msra.mxu0 %v13107_v10  ;;  %v152_v30 = vld [vmem:[%s20691_s1 + $0x258] sm:$0xff] }
 0x4d3   :  { %11337 = vmatpush2.bf16.msra.mxu1 %v13043_v52  ;;  %11363 = vmatprep.subr.bf16.mxu0 %v13100_v42  ;;  %v156_v10 = vld [vmem:[%s20691_s1 + $0x278] sm:$0xff]  ;;  %v13075_v52 = vcombine.low %v224_v63, %v228_v41  ;;  %v13011_v42 = vcombine.low %v160_v46, %v164_v9 }
 0x4d4   :  { %11338 = vmatprep.subr.bf16.mxu1 %v13036_v8  ;;  %v13068_v8 = vcombine.high %v216_v0, %v220_v24  ;;  %v13004_v11 = vcombine.high %v152_v30, %v156_v10  ;;  %v208_v43 = vld [vmem:[%s20691_s1 + $0x418] sm:$0xff] }
 0x4d5   :  { %v212_v44 = vld [vmem:[%s20691_s1 + $0x438] sm:$0xff] }
 0x4d6   :  { %11364 = vmatpush1.bf16.msra.mxu0 %v13099_v61  ;;  %v144_v59 = vld [vmem:[%s20691_s1 + $0x218] sm:$0xff] }
 0x4d7   :  { %11339 = vmatpush2.bf16.msra.mxu1 %v13035_v5  ;;  %11365 = vmatprep.subr.bf16.mxu0 %v13092_v58  ;;  %v148_v61 = vld [vmem:[%s20691_s1 + $0x238] sm:$0xff]  ;;  %v13067_v5 = vcombine.low %v216_v0, %v220_v24  ;;  %v13003_v58 = vcombine.low %v152_v30, %v156_v10 }
 0x4d8   :  { %11340 = vmatprep.subr.bf16.mxu1 %v13028_v27  ;;  %v13060_v27 = vcombine.high %v208_v43, %v212_v44  ;;  %v12996_v53 = vcombine.high %v144_v59, %v148_v61  ;;  %v328_v60 = vld [vmem:[%s20691_s1 + $0x7d8] sm:$0xff] }
 0x4d9   :  { %v332_v35 = vld [vmem:[%s20691_s1 + $0x7f8] sm:$0xff] }
 0x4da   :  { %11366 = vmatpush1.bf16.msra.mxu0 %v13091_v62  ;;  %v392_v47 = vld [vmem:[%s20691_s1 + $0x9d8] sm:$0xff] }
 0x4db   :  { %11341 = vmatpush2.bf16.msra.mxu1 %v13027_v15  ;;  %11367 = vmatprep.subr.bf16.mxu0 %v13084_v17  ;;  %v396_v62 = vld [vmem:[%s20691_s1 + $0x9f8] sm:$0xff]  ;;  %v13059_v15 = vcombine.low %v208_v43, %v212_v44  ;;  %v12995_v17 = vcombine.low %v144_v59, %v148_v61 }
 0x4dc   :  { %11342 = vmatprep.subr.bf16.mxu1 %v13020_v3  ;;  %v13180_v3 = vcombine.high %v328_v60, %v332_v35  ;;  %v13244_v63 = vcombine.high %v392_v47, %v396_v62  ;;  %v320_v41 = vld [vmem:[%s20691_s1 + $0x798] sm:$0xff] }
 0x4dd   :  { %v324_v46 = vld [vmem:[%s20691_s1 + $0x7b8] sm:$0xff] }
 0x4de   :  { %11368 = vmatpush1.bf16.msra.mxu0 %v13083_v19  ;;  %v384_v9 = vld [vmem:[%s20691_s1 + $0x998] sm:$0xff]  ;;  %v13171_v43 = vcombine.low %v320_v41, %v324_v46 }
 0x4df   :  { %11343 = vmatpush2.bf16.msra.mxu1 %v13019_v4  ;;  %11369 = vmatprep.subr.bf16.mxu0 %v13076_v50  ;;  %v388_v19 = vld [vmem:[%s20691_s1 + $0x9b8] sm:$0xff]  ;;  %v13179_v4 = vcombine.low %v328_v60, %v332_v35  ;;  %v13243_v50 = vcombine.low %v392_v47, %v396_v62 }
 0x4e0   :  { %11344 = vmatprep.subr.bf16.mxu1 %v13012_v33  ;;  %v13172_v33 = vcombine.high %v320_v41, %v324_v46  ;;  %v13236_v0 = vcombine.high %v384_v9, %v388_v19  ;;  %v312_v24 = vld [vmem:[%s20691_s1 + $0x758] sm:$0xff]  ;;  %v13235_v59 = vcombine.low %v384_v9, %v388_v19 }
 0x4e1   :  { %v316_v30 = vld [vmem:[%s20691_s1 + $0x778] sm:$0xff] }
 0x4e2   :  { %11370 = vmatpush1.bf16.msra.mxu0 %v13075_v52  ;;  %v376_v52 = vld [vmem:[%s20691_s1 + $0x958] sm:$0xff]  ;;  %v13164_v61 = vcombine.high %v312_v24, %v316_v30 }
 0x4e3   :  { %11345 = vmatpush2.bf16.msra.mxu1 %v13011_v42  ;;  %11371 = vmatprep.subr.bf16.mxu0 %v13068_v8  ;;  %v380_v42 = vld [vmem:[%s20691_s1 + $0x978] sm:$0xff] }
 0x4e4   :  { %11346 = vmatprep.subr.bf16.mxu1 %v13004_v11  ;;  %v368_v35 = vld [vmem:[%s20691_s1 + $0x918] sm:$0xff] }
 0x4e5   :  { %v296_v46 = vld [vmem:[%s20691_s1 + $0x6d8] sm:$0xff] }
 0x4e6   :  { %11372 = vmatpush1.bf16.msra.mxu0 %v13067_v5  ;;  %v300_v9 = vld [vmem:[%s20691_s1 + $0x6f8] sm:$0xff] }
 0x4e7   :  { %11347 = vmatpush2.bf16.msra.mxu1 %v13003_v58  ;;  %11373 = vmatprep.subr.bf16.mxu0 %v13060_v27  ;;  %v360_v19 = vld [vmem:[%s20691_s1 + $0x8d8] sm:$0xff] }
 0x4e8   :  { %11348 = vmatprep.subr.bf16.mxu1 %v12996_v53  ;;  %v13228_v53 = vcombine.high %v376_v52, %v380_v42 }
 0x4ea   :  { %11374 = vmatpush1.bf16.msra.mxu0 %v13059_v15  ;;  %v13163_v15 = vcombine.low %v312_v24, %v316_v30  ;;  %v288_v30 = vld [vmem:[%s20691_s1 + $0x698] sm:$0xff] }
 0x4eb   :  { %11349 = vmatpush2.bf16.msra.mxu1 %v12995_v17  ;;  %11375 = vmatprep.subr.bf16.mxu0 %v13180_v3  ;;  %v13227_v3 = vcombine.low %v376_v52, %v380_v42  ;;  %v352_v52 = vld [vmem:[%s20691_s1 + $0x898] sm:$0xff] }
 0x4ec   :  { %11400 = vmatprep.subr.bf16.mxu1 %v13244_v63  ;;  %v356_v42 = vld [vmem:[%s20691_s1 + $0x8b8] sm:$0xff] }
 0x4ed   :  { %v11065_v10 = vpop.f32.mrf.mxu0 }
 0x4ee   :  { %v11066_v8 = vadd.f32 %v11065_v10, %v18864_v12  ;;  %v11106_v11 = vpop.f32.mrf.mxu1  ;;  %11351 = vmatmul.mubr.bf16.vlgmr.msra.gmra.mxu1 %v15154_v16  ;;  %11376 = vmatpush2.bf16.msra.mxu0 %v13179_v4  ;;  %v304_v12 = vld [vmem:[%s20691_s1 + $0x718] sm:$0xff] }
 0x4ef   :  { %11401 = vmatpush1.bf16.msra.mxu1 %v13243_v50  ;;  %v11067_v44 = vpop.f32.mrf.mxu0  ;;  %11377 = vmatprep.subr.bf16.mxu0 %v13172_v33  ;;  %v308_v16 = vld [vmem:[%s20691_s1 + $0x738] sm:$0xff] }
 0x4f0   :  { %v19067_v5 = vadd.f32 %v11106_v11, %v11066_v8  ;;  %v11068_v58 = vadd.f32 %v11067_v44, %v18881_v37  ;;  %v11108_v27 = vpop.f32.mrf.mxu1  ;;  %11402 = vmatprep.subr.bf16.mxu1 %v13236_v0  ;;  %11432 = vmatprep.mubr.bf16.mxu1 %v15176_v28  ;;  %v372_v37 = vld [vmem:[%s20691_s1 + $0x938] sm:$0xff]  ;;  %v13156_v63 = vcombine.high %v304_v12, %v308_v16 }
 0x4f1   :  { %v11069_v60 = vpop.f32.mrf.mxu0  ;;  %v13220_v41 = vcombine.high %v368_v35, %v372_v37  ;;  %v364_v4 = vld [vmem:[%s20691_s1 + $0x8f8] sm:$0xff]  ;;  %v13155_v50 = vcombine.low %v304_v12, %v308_v16  ;;  %v13219_v33 = vcombine.low %v368_v35, %v372_v37  ;;  %v13148_v0 = vcombine.high %v296_v46, %v300_v9 }
 0x4f2   :  { %v19083_v47 = vadd.f32 %v11108_v27, %v11068_v58  ;;  %v11110_v62 = vpop.f32.mrf.mxu1  ;;  %11378 = vmatpush2.bf16.msra.mxu0 %v13171_v43  ;;  %v13212_v24 = vcombine.high %v360_v19, %v364_v4  ;;  %v292_v10 = vld [vmem:[%s20691_s1 + $0x6b8] sm:$0xff]  ;;  %v13147_v8 = vcombine.low %v296_v46, %v300_v9  ;;  %v13211_v11 = vcombine.low %v360_v19, %v364_v4 }
 0x4f3   :  { %11403 = vmatpush1.bf16.msra.mxu1 %v13235_v59  ;;  %v11070_v17 = vpop.f32.mrf.mxu0  ;;  %11379 = vmatprep.subr.bf16.mxu0 %v13164_v61  ;;  %v13140_v43 = vcombine.high %v288_v30, %v292_v10  ;;  %v13204_v44 = vcombine.high %v352_v52, %v356_v42  ;;  %v280_v59 = vld [vmem:[%s20691_s1 + $0x658] sm:$0xff]  ;;  %v13203_v12 = vcombine.low %v352_v52, %v356_v42 }
 0x4f4   :  { %v11111_v28 = vpop.f32.mrf.mxu1  ;;  %11404 = vmatprep.subr.bf16.mxu1 %v13228_v53  ;;  %v284_v61 = vld [vmem:[%s20691_s1 + $0x678] sm:$0xff]  ;;  %v13139_v53 = vcombine.low %v288_v30, %v292_v10 }
 0x4f5   :  { %v344_v58 = vld [vmem:[%s20691_s1 + $0x858] sm:$0xff]  ;;  %v13132_v16 = vcombine.high %v280_v59, %v284_v61  ;;  %v13131_v17 = vcombine.low %v280_v59, %v284_v61 }
 0x4f6   :  { %11380 = vmatpush2.bf16.msra.mxu0 %v13163_v15  ;;  %v348_v27 = vld [vmem:[%s20691_s1 + $0x878] sm:$0xff] }
 0x4f7   :  { %11405 = vmatpush1.bf16.msra.mxu1 %v13227_v3  ;;  %11381 = vmatprep.subr.bf16.mxu0 %v13156_v63  ;;  %v13196_v60 = vcombine.high %v344_v58, %v348_v27  ;;  %v272_v35 = vld [vmem:[%s20691_s1 + $0x618] sm:$0xff]  ;;  %v13195_v3 = vcombine.low %v344_v58, %v348_v27 }
 0x4f8   :  { %11406 = vmatprep.subr.bf16.mxu1 %v13220_v41  ;;  %v276_v37 = vld [vmem:[%s20691_s1 + $0x638] sm:$0xff] }
 0x4f9   :  { %v336_v62 = vld [vmem:[%s20691_s1 + $0x818] sm:$0xff]  ;;  %v13124_v63 = vcombine.high %v272_v35, %v276_v37  ;;  %v13123_v4 = vcombine.low %v272_v35, %v276_v37 }
 0x4fa   :  { %11382 = vmatpush2.bf16.msra.mxu0 %v13155_v50  ;;  %v340_v15 = vld [vmem:[%s20691_s1 + $0x838] sm:$0xff] }
 0x4fb   :  { %11407 = vmatpush1.bf16.msra.mxu1 %v13219_v33  ;;  %11383 = vmatprep.subr.bf16.mxu0 %v13148_v0  ;;  %v13188_v28 = vcombine.high %v336_v62, %v340_v15  ;;  %v520_v41 = vld [vmem:[%s20691_s1 + $0xdd8] sm:$0xff]  ;;  %v13187_v50 = vcombine.low %v336_v62, %v340_v15 }
 0x4fc   :  { %11408 = vmatprep.subr.bf16.mxu1 %v13212_v24  ;;  %v524_v46 = vld [vmem:[%s20691_s1 + $0xdf8] sm:$0xff] }
 0x4fd   :  { %v456_v9 = vld [vmem:[%s20691_s1 + $0xbd8] sm:$0xff]  ;;  %v13372_v33 = vcombine.high %v520_v41, %v524_v46  ;;  %v13371_v42 = vcombine.low %v520_v41, %v524_v46 }
 0x4fe   :  { %11384 = vmatpush2.bf16.msra.mxu0 %v13147_v8  ;;  %v460_v19 = vld [vmem:[%s20691_s1 + $0xbf8] sm:$0xff] }
 0x4ff   :  { %11409 = vmatpush1.bf16.msra.mxu1 %v13211_v11  ;;  %11385 = vmatprep.subr.bf16.mxu0 %v13140_v43  ;;  %v13308_v0 = vcombine.high %v456_v9, %v460_v19  ;;  %v512_v24 = vld [vmem:[%s20691_s1 + $0xd98] sm:$0xff]  ;;  %v13307_v8 = vcombine.low %v456_v9, %v460_v19 }
 0x500   :  { %11410 = vmatprep.subr.bf16.mxu1 %v13204_v44  ;;  %v516_v30 = vld [vmem:[%s20691_s1 + $0xdb8] sm:$0xff] }
 0x501   :  { %v448_v10 = vld [vmem:[%s20691_s1 + $0xb98] sm:$0xff]  ;;  %v13364_v11 = vcombine.high %v512_v24, %v516_v30  ;;  %v13363_v27 = vcombine.low %v512_v24, %v516_v30 }
 0x502   :  { %11386 = vmatpush2.bf16.msra.mxu0 %v13139_v53  ;;  %v452_v52 = vld [vmem:[%s20691_s1 + $0xbb8] sm:$0xff] }
 0x503   :  { %11411 = vmatpush1.bf16.msra.mxu1 %v13203_v12  ;;  %11387 = vmatprep.subr.bf16.mxu0 %v13132_v16  ;;  %v13300_v43 = vcombine.high %v448_v10, %v452_v52  ;;  %v504_v44 = vld [vmem:[%s20691_s1 + $0xd58] sm:$0xff]  ;;  %v13299_v53 = vcombine.low %v448_v10, %v452_v52 }
 0x504   :  { %11412 = vmatprep.subr.bf16.mxu1 %v13196_v60  ;;  %v508_v59 = vld [vmem:[%s20691_s1 + $0xd78] sm:$0xff] }
 0x505   :  { %v440_v61 = vld [vmem:[%s20691_s1 + $0xb58] sm:$0xff]  ;;  %v13356_v12 = vcombine.high %v504_v44, %v508_v59  ;;  %v13355_v37 = vcombine.low %v504_v44, %v508_v59 }
 0x506   :  { %11388 = vmatpush2.bf16.msra.mxu0 %v13131_v17  ;;  %v444_v58 = vld [vmem:[%s20691_s1 + $0xb78] sm:$0xff] }
 0x507   :  { %11413 = vmatpush1.bf16.msra.mxu1 %v13195_v3  ;;  %11389 = vmatprep.subr.bf16.mxu0 %v13124_v63  ;;  %v13292_v16 = vcombine.high %v440_v61, %v444_v58  ;;  %v500_v60 = vld [vmem:[%s20691_s1 + $0xd38] sm:$0xff]  ;;  %v13291_v62 = vcombine.low %v440_v61, %v444_v58 }
 0x508   :  { %11414 = vmatprep.subr.bf16.mxu1 %v13188_v28  ;;  %v432_v35 = vld [vmem:[%s20691_s1 + $0xb18] sm:$0xff] }
 0x509   :  { %v488_v3 = vld [vmem:[%s20691_s1 + $0xcd8] sm:$0xff] }
 0x50a   :  { %11390 = vmatpush2.bf16.msra.mxu0 %v13123_v4  ;;  %v492_v63 = vld [vmem:[%s20691_s1 + $0xcf8] sm:$0xff] }
 0x50b   :  { %11415 = vmatpush1.bf16.msra.mxu1 %v13187_v50  ;;  %11441 = vmatprep.subr.bf16.mxu0 %v13372_v33  ;;  %v424_v28 = vld [vmem:[%s20691_s1 + $0xad8] sm:$0xff]  ;;  %v13340_v19 = vcombine.high %v488_v3, %v492_v63  ;;  %v13339_v30 = vcombine.low %v488_v3, %v492_v63 }
 0x50c   :  { %11416 = vmatprep.subr.bf16.mxu1 %v13308_v0  ;;  %v428_v41 = vld [vmem:[%s20691_s1 + $0xaf8] sm:$0xff] }
 0x50d   :  { %11392 = vmatmul.mubr.bf16.vlgmr.msra.gmra.mxu0 %v15165_v20  ;;  %v496_v20 = vld [vmem:[%s20691_s1 + $0xd18] sm:$0xff]  ;;  %v13276_v4 = vcombine.high %v424_v28, %v428_v41  ;;  %v13275_v10 = vcombine.low %v424_v28, %v428_v41 }
 0x50e   :  { %11442 = vmatpush1.bf16.msra.mxu0 %v13371_v42  ;;  %11473 = vmatprep.mubr.bf16.mxu0 %v15185_v31  ;;  %v436_v31 = vld [vmem:[%s20691_s1 + $0xb38] sm:$0xff]  ;;  %v13348_v15 = vcombine.high %v496_v20, %v500_v60  ;;  %v13347_v46 = vcombine.low %v496_v20, %v500_v60 }
 0x50f   :  { %11417 = vmatpush2.bf16.msra.mxu1 %v13307_v8  ;;  %11443 = vmatprep.subr.bf16.mxu0 %v13364_v11  ;;  %v13284_v17 = vcombine.high %v432_v35, %v436_v31  ;;  %v13283_v9 = vcombine.low %v432_v35, %v436_v31  ;;  %v480_v50 = vld [vmem:[%s20691_s1 + $0xc98] sm:$0xff] }
 0x510   :  { %11418 = vmatprep.subr.bf16.mxu1 %v13300_v43  ;;  %v484_v33 = vld [vmem:[%s20691_s1 + $0xcb8] sm:$0xff] }
 0x511   :  { %v416_v0 = vld [vmem:[%s20691_s1 + $0xa98] sm:$0xff]  ;;  %v13332_v52 = vcombine.high %v480_v50, %v484_v33  ;;  %v13331_v59 = vcombine.low %v480_v50, %v484_v33 }
 0x512   :  { %11444 = vmatpush1.bf16.msra.mxu0 %v13363_v27  ;;  %v420_v24 = vld [vmem:[%s20691_s1 + $0xab8] sm:$0xff] }
 0x513   :  { %11419 = vmatpush2.bf16.msra.mxu1 %v13299_v53  ;;  %11445 = vmatprep.subr.bf16.mxu0 %v13356_v12  ;;  %v13268_v42 = vcombine.high %v416_v0, %v420_v24  ;;  %v472_v8 = vld [vmem:[%s20691_s1 + $0xc58] sm:$0xff]  ;;  %v13267_v61 = vcombine.low %v416_v0, %v420_v24 }
 0x514   :  { %11420 = vmatprep.subr.bf16.mxu1 %v13292_v16  ;;  %v476_v11 = vld [vmem:[%s20691_s1 + $0xc78] sm:$0xff] }
 0x515   :  { %v408_v43 = vld [vmem:[%s20691_s1 + $0xa58] sm:$0xff]  ;;  %v13324_v58 = vcombine.high %v472_v8, %v476_v11  ;;  %v13323_v60 = vcombine.low %v472_v8, %v476_v11 }
 0x516   :  { %11446 = vmatpush1.bf16.msra.mxu0 %v13355_v37  ;;  %v412_v44 = vld [vmem:[%s20691_s1 + $0xa78] sm:$0xff] }
 0x517   :  { %11421 = vmatpush2.bf16.msra.mxu1 %v13291_v62  ;;  %11447 = vmatprep.subr.bf16.mxu0 %v13348_v15  ;;  %v13260_v27 = vcombine.high %v408_v43, %v412_v44  ;;  %v464_v53 = vld [vmem:[%s20691_s1 + $0xc18] sm:$0xff]  ;;  %v13259_v35 = vcombine.low %v408_v43, %v412_v44 }
 0x518   :  { %11422 = vmatprep.subr.bf16.mxu1 %v13284_v17  ;;  %v468_v12 = vld [vmem:[%s20691_s1 + $0xc38] sm:$0xff] }
 0x519   :  { %v400_v16 = vld [vmem:[%s20691_s1 + $0xa18] sm:$0xff]  ;;  %v13316_v31 = vcombine.high %v464_v53, %v468_v12  ;;  %v13315_v63 = vcombine.low %v464_v53, %v468_v12 }
 0x51a   :  { %11448 = vmatpush1.bf16.msra.mxu0 %v13347_v46  ;;  %v404_v20 = vld [vmem:[%s20691_s1 + $0xa38] sm:$0xff] }
 0x51b   :  { %11423 = vmatpush2.bf16.msra.mxu1 %v13283_v9  ;;  %11449 = vmatprep.subr.bf16.mxu0 %v13340_v19  ;;  %v13252_v37 = vcombine.high %v400_v16, %v404_v20  ;;  %v584_v62 = vld [vmem:[%s20691_s1 + $0xfd8] sm:$0xff]  ;;  %v13251_v28 = vcombine.low %v400_v16, %v404_v20 }
 0x51c   :  { %11424 = vmatprep.subr.bf16.mxu1 %v13276_v4  ;;  %v588_v15 = vld [vmem:[%s20691_s1 + $0xff8] sm:$0xff] }
 0x51d   :  { %v648_v17 = vld [vmem:[%s20691_s1 + $0x11d8] sm:$0xff]  ;;  %v13436_v41 = vcombine.high %v584_v62, %v588_v15  ;;  %v13435_v33 = vcombine.low %v584_v62, %v588_v15 }
 0x51e   :  { %11450 = vmatpush1.bf16.msra.mxu0 %v13339_v30  ;;  %v652_v3 = vld [vmem:[%s20691_s1 + $0x11f8] sm:$0xff] }
 0x51f   :  { %11425 = vmatpush2.bf16.msra.mxu1 %v13275_v10  ;;  %11451 = vmatprep.subr.bf16.mxu0 %v13332_v52  ;;  %v13500_v46 = vcombine.high %v648_v17, %v652_v3  ;;  %v576_v9 = vld [vmem:[%s20691_s1 + $0xf98] sm:$0xff]  ;;  %v13499_v0 = vcombine.low %v648_v17, %v652_v3 }
 0x520   :  { %11426 = vmatprep.subr.bf16.mxu1 %v13268_v42  ;;  %v580_v19 = vld [vmem:[%s20691_s1 + $0xfb8] sm:$0xff] }
 0x521   :  { %v640_v4 = vld [vmem:[%s20691_s1 + $0x1198] sm:$0xff]  ;;  %v13428_v24 = vcombine.high %v576_v9, %v580_v19 }
 0x522   :  { %11452 = vmatpush1.bf16.msra.mxu0 %v13331_v59  ;;  %v644_v50 = vld [vmem:[%s20691_s1 + $0x11b8] sm:$0xff]  ;;  %v13427_v59 = vcombine.low %v576_v9, %v580_v19 }
 0x523   :  { %11427 = vmatpush2.bf16.msra.mxu1 %v13267_v61  ;;  %11453 = vmatprep.subr.bf16.mxu0 %v13324_v58  ;;  %v13492_v30 = vcombine.high %v640_v4, %v644_v50  ;;  %v568_v10 = vld [vmem:[%s20691_s1 + $0xf58] sm:$0xff]  ;;  %v13491_v58 = vcombine.low %v640_v4, %v644_v50 }
 0x524   :  { %11428 = vmatprep.subr.bf16.mxu1 %v13260_v27  ;;  %v572_v52 = vld [vmem:[%s20691_s1 + $0xf78] sm:$0xff] }
 0x525   :  { %v632_v8 = vld [vmem:[%s20691_s1 + $0x1158] sm:$0xff]  ;;  %v13420_v27 = vcombine.high %v568_v10, %v572_v52  ;;  %v13419_v62 = vcombine.low %v568_v10, %v572_v52 }
 0x526   :  { %11454 = vmatpush1.bf16.msra.mxu0 %v13323_v60  ;;  %v636_v11 = vld [vmem:[%s20691_s1 + $0x1178] sm:$0xff] }
 0x527   :  { %11429 = vmatpush2.bf16.msra.mxu1 %v13259_v35  ;;  %11455 = vmatprep.subr.bf16.mxu0 %v13316_v31  ;;  %v13484_v20 = vcombine.high %v632_v8, %v636_v11  ;;  %v624_v35 = vld [vmem:[%s20691_s1 + $0x1118] sm:$0xff]  ;;  %v13483_v17 = vcombine.low %v632_v8, %v636_v11 }
 0x528   :  { %11430 = vmatprep.subr.bf16.mxu1 %v13252_v37  ;;  %v620_v9 = vld [vmem:[%s20691_s1 + $0x10f8] sm:$0xff] }
 0x529   :  { %v612_v10 = vld [vmem:[%s20691_s1 + $0x10b8] sm:$0xff] }
 0x52a   :  { %11456 = vmatpush1.bf16.msra.mxu0 %v13315_v63 }
 0x52b   :  { %11431 = vmatpush2.bf16.msra.mxu1 %v13251_v28  ;;  %11457 = vmatprep.subr.bf16.mxu0 %v13436_v41  ;;  %v552_v28 = vld [vmem:[%s20691_s1 + $0xed8] sm:$0xff] }
 0x52c   :  { %11482 = vmatprep.subr.bf16.mxu1 %v13500_v46  ;;  %v556_v41 = vld [vmem:[%s20691_s1 + $0xef8] sm:$0xff] }
 0x52d   :  { %v11147_v42 = vpop.f32.mrf.mxu0  ;;  %v616_v46 = vld [vmem:[%s20691_s1 + $0x10d8] sm:$0xff]  ;;  %v13404_v50 = vcombine.high %v552_v28, %v556_v41  ;;  %v13403_v52 = vcombine.low %v552_v28, %v556_v41 }
 0x52e   :  { %v11148_v43 = vadd.f32 %v11147_v42, %v19067_v5  ;;  %v11188_v44 = vpop.f32.mrf.mxu1  ;;  %11433 = vmatmul.mubr.bf16.vlgmr.msra.gmra.mxu1 %v15370_v36  ;;  %11458 = vmatpush2.bf16.msra.mxu0 %v13435_v33  ;;  %v560_v5 = vld [vmem:[%s20691_s1 + $0xf18] sm:$0xff]  ;;  %v13468_v33 = vcombine.high %v616_v46, %v620_v9  ;;  %v13467_v42 = vcombine.low %v616_v46, %v620_v9 }
 0x52f   :  { %11483 = vmatpush1.bf16.msra.mxu1 %v13499_v0  ;;  %v11149_v61 = vpop.f32.mrf.mxu0  ;;  %11459 = vmatprep.subr.bf16.mxu0 %v13428_v24  ;;  %v564_v36 = vld [vmem:[%s20691_s1 + $0xf38] sm:$0xff] }
 0x530   :  { %v19269_v53 = vadd.f32 %v11188_v44, %v11148_v43  ;;  %v11150_v12 = vadd.f32 %v11149_v61, %v19083_v47  ;;  %v11190_v16 = vpop.f32.mrf.mxu1  ;;  %11484 = vmatprep.subr.bf16.mxu1 %v13492_v30  ;;  %11514 = vmatprep.mubr.bf16.mxu1 %v15392_v48  ;;  %v628_v47 = vld [vmem:[%s20691_s1 + $0x1138] sm:$0xff]  ;;  %v13412_v3 = vcombine.high %v560_v5, %v564_v36 }
 0x531   :  { %v11151_v60 = vpop.f32.mrf.mxu0  ;;  %v13476_v63 = vcombine.high %v624_v35, %v628_v47  ;;  %v13411_v19 = vcombine.low %v560_v5, %v564_v36  ;;  %v13475_v4 = vcombine.low %v624_v35, %v628_v47  ;;  %v544_v0 = vld [vmem:[%s20691_s1 + $0xe98] sm:$0xff] }
 0x532   :  { %v19285_v31 = vadd.f32 %v11190_v16, %v11150_v12  ;;  %v11192_v37 = vpop.f32.mrf.mxu1  ;;  %11460 = vmatpush2.bf16.msra.mxu0 %v13427_v59  ;;  %v548_v24 = vld [vmem:[%s20691_s1 + $0xeb8] sm:$0xff] }
 0x533   :  { %11485 = vmatpush1.bf16.msra.mxu1 %v13491_v58  ;;  %v11152_v15 = vpop.f32.mrf.mxu0  ;;  %11461 = vmatprep.subr.bf16.mxu0 %v13420_v27  ;;  %v608_v30 = vld [vmem:[%s20691_s1 + $0x1098] sm:$0xff]  ;;  %v13396_v8 = vcombine.high %v544_v0, %v548_v24  ;;  %v13395_v58 = vcombine.low %v544_v0, %v548_v24 }
 0x534   :  { %v11193_v48 = vpop.f32.mrf.mxu1  ;;  %11486 = vmatprep.subr.bf16.mxu1 %v13484_v20  ;;  %v13460_v11 = vcombine.high %v608_v30, %v612_v10  ;;  %v536_v43 = vld [vmem:[%s20691_s1 + $0xe58] sm:$0xff]  ;;  %v13459_v27 = vcombine.low %v608_v30, %v612_v10 }
 0x535   :  { %v540_v44 = vld [vmem:[%s20691_s1 + $0xe78] sm:$0xff] }
 0x536   :  { %11462 = vmatpush2.bf16.msra.mxu0 %v13419_v62  ;;  %v600_v59 = vld [vmem:[%s20691_s1 + $0x1058] sm:$0xff]  ;;  %v13388_v12 = vcombine.high %v536_v43, %v540_v44  ;;  %v13387_v35 = vcombine.low %v536_v43, %v540_v44 }
 0x537   :  { %11487 = vmatpush1.bf16.msra.mxu1 %v13483_v17  ;;  %11463 = vmatprep.subr.bf16.mxu0 %v13412_v3  ;;  %v604_v61 = vld [vmem:[%s20691_s1 + $0x1078] sm:$0xff] }
 0x538   :  { %11488 = vmatprep.subr.bf16.mxu1 %v13476_v63  ;;  %v13452_v16 = vcombine.high %v600_v59, %v604_v61  ;;  %v528_v20 = vld [vmem:[%s20691_s1 + $0xe18] sm:$0xff]  ;;  %v13451_v47 = vcombine.low %v600_v59, %v604_v61 }
 0x539   :  { %v532_v5 = vld [vmem:[%s20691_s1 + $0xe38] sm:$0xff] }
 0x53a   :  { %11464 = vmatpush2.bf16.msra.mxu0 %v13411_v19  ;;  %v592_v36 = vld [vmem:[%s20691_s1 + $0x1018] sm:$0xff]  ;;  %v13380_v37 = vcombine.high %v528_v20, %v532_v5  ;;  %v13379_v63 = vcombine.low %v528_v20, %v532_v5 }
 0x53b   :  { %11489 = vmatpush1.bf16.msra.mxu1 %v13475_v4  ;;  %11465 = vmatprep.subr.bf16.mxu0 %v13404_v50  ;;  %v596_v60 = vld [vmem:[%s20691_s1 + $0x1038] sm:$0xff] }
 0x53c   :  { %11490 = vmatprep.subr.bf16.mxu1 %v13468_v33  ;;  %v13444_v62 = vcombine.high %v592_v36, %v596_v60  ;;  %v776_v15 = vld [vmem:[%s20691_s1 + $0x15d8] sm:$0xff]  ;;  %v13443_v28 = vcombine.low %v592_v36, %v596_v60 }
 0x53d   :  { %v780_v17 = vld [vmem:[%s20691_s1 + $0x15f8] sm:$0xff] }
 0x53e   :  { %11466 = vmatpush2.bf16.msra.mxu0 %v13403_v52  ;;  %v712_v3 = vld [vmem:[%s20691_s1 + $0x13d8] sm:$0xff]  ;;  %v13628_v41 = vcombine.high %v776_v15, %v780_v17  ;;  %v13627_v33 = vcombine.low %v776_v15, %v780_v17 }
 0x53f   :  { %11491 = vmatpush1.bf16.msra.mxu1 %v13467_v42  ;;  %11467 = vmatprep.subr.bf16.mxu0 %v13396_v8  ;;  %v716_v48 = vld [vmem:[%s20691_s1 + $0x13f8] sm:$0xff] }
 0x540   :  { %11492 = vmatprep.subr.bf16.mxu1 %v13460_v11  ;;  %v13564_v46 = vcombine.high %v712_v3, %v716_v48  ;;  %v768_v9 = vld [vmem:[%s20691_s1 + $0x1598] sm:$0xff]  ;;  %v13563_v0 = vcombine.low %v712_v3, %v716_v48 }
 0x541   :  { %v772_v19 = vld [vmem:[%s20691_s1 + $0x15b8] sm:$0xff] }
 0x542   :  { %11468 = vmatpush2.bf16.msra.mxu0 %v13395_v58  ;;  %v704_v4 = vld [vmem:[%s20691_s1 + $0x1398] sm:$0xff]  ;;  %v13620_v24 = vcombine.high %v768_v9, %v772_v19  ;;  %v13619_v11 = vcombine.low %v768_v9, %v772_v19 }
 0x543   :  { %11493 = vmatpush1.bf16.msra.mxu1 %v13459_v27  ;;  %11469 = vmatprep.subr.bf16.mxu0 %v13388_v12  ;;  %v708_v50 = vld [vmem:[%s20691_s1 + $0x13b8] sm:$0xff] }
 0x544   :  { %11494 = vmatprep.subr.bf16.mxu1 %v13452_v16  ;;  %v13556_v30 = vcombine.high %v704_v4, %v708_v50  ;;  %v760_v10 = vld [vmem:[%s20691_s1 + $0x1558] sm:$0xff]  ;;  %v13555_v43 = vcombine.low %v704_v4, %v708_v50 }
 0x545   :  { %v764_v52 = vld [vmem:[%s20691_s1 + $0x1578] sm:$0xff] }
 0x546   :  { %11470 = vmatpush2.bf16.msra.mxu0 %v13387_v35  ;;  %v696_v42 = vld [vmem:[%s20691_s1 + $0x1358] sm:$0xff]  ;;  %v13612_v44 = vcombine.high %v760_v10, %v764_v52  ;;  %v13611_v27 = vcombine.low %v760_v10, %v764_v52 }
 0x547   :  { %11495 = vmatpush1.bf16.msra.mxu1 %v13451_v47  ;;  %11471 = vmatprep.subr.bf16.mxu0 %v13380_v37  ;;  %v700_v8 = vld [vmem:[%s20691_s1 + $0x1378] sm:$0xff] }
 0x548   :  { %11496 = vmatprep.subr.bf16.mxu1 %v13444_v62  ;;  %v13548_v59 = vcombine.high %v696_v42, %v700_v8  ;;  %v756_v61 = vld [vmem:[%s20691_s1 + $0x1538] sm:$0xff]  ;;  %v13547_v12 = vcombine.low %v696_v42, %v700_v8 }
 0x549   :  { %v688_v58 = vld [vmem:[%s20691_s1 + $0x1318] sm:$0xff] }
 0x54a   :  { %11472 = vmatpush2.bf16.msra.mxu0 %v13379_v63  ;;  %v744_v5 = vld [vmem:[%s20691_s1 + $0x14d8] sm:$0xff] }
 0x54b   :  { %11497 = vmatpush1.bf16.msra.mxu1 %v13443_v28  ;;  %11523 = vmatprep.subr.bf16.mxu0 %v13628_v41  ;;  %v748_v36 = vld [vmem:[%s20691_s1 + $0x14f8] sm:$0xff] }
 0x54c   :  { %11498 = vmatprep.subr.bf16.mxu1 %v13564_v46  ;;  %v680_v60 = vld [vmem:[%s20691_s1 + $0x12d8] sm:$0xff]  ;;  %v13596_v62 = vcombine.high %v744_v5, %v748_v36  ;;  %v13595_v28 = vcombine.low %v744_v5, %v748_v36 }
 0x54d   :  { %11474 = vmatmul.mubr.bf16.vlgmr.msra.gmra.mxu0 %v15381_v40  ;;  %v752_v40 = vld [vmem:[%s20691_s1 + $0x1518] sm:$0xff] }
 0x54e   :  { %11524 = vmatpush1.bf16.msra.mxu0 %v13627_v33  ;;  %11555 = vmatprep.mubr.bf16.mxu0 %v15401_v51  ;;  %v692_v51 = vld [vmem:[%s20691_s1 + $0x1338] sm:$0xff]  ;;  %v13604_v16 = vcombine.high %v752_v40, %v756_v61  ;;  %v13603_v47 = vcombine.low %v752_v40, %v756_v61 }
 0x54f   :  { %11499 = vmatpush2.bf16.msra.mxu1 %v13563_v0  ;;  %11525 = vmatprep.subr.bf16.mxu0 %v13620_v24  ;;  %v13540_v20 = vcombine.high %v688_v58, %v692_v51  ;;  %v684_v35 = vld [vmem:[%s20691_s1 + $0x12f8] sm:$0xff]  ;;  %v13539_v37 = vcombine.low %v688_v58, %v692_v51 }
 0x550   :  { %11500 = vmatprep.subr.bf16.mxu1 %v13556_v30  ;;  %v13532_v15 = vcombine.high %v680_v60, %v684_v35  ;;  %v736_v17 = vld [vmem:[%s20691_s1 + $0x1498] sm:$0xff]  ;;  %v13531_v41 = vcombine.low %v680_v60, %v684_v35 }
 0x551   :  { %v740_v3 = vld [vmem:[%s20691_s1 + $0x14b8] sm:$0xff] }
 0x552   :  { %11526 = vmatpush1.bf16.msra.mxu0 %v13619_v11  ;;  %v672_v48 = vld [vmem:[%s20691_s1 + $0x1298] sm:$0xff]  ;;  %v13588_v46 = vcombine.high %v736_v17, %v740_v3  ;;  %v13587_v0 = vcombine.low %v736_v17, %v740_v3 }
 0x553   :  { %11501 = vmatpush2.bf16.msra.mxu1 %v13555_v43  ;;  %11527 = vmatprep.subr.bf16.mxu0 %v13612_v44  ;;  %v676_v63 = vld [vmem:[%s20691_s1 + $0x12b8] sm:$0xff] }
 0x554   :  { %11502 = vmatprep.subr.bf16.mxu1 %v13548_v59  ;;  %v13524_v9 = vcombine.high %v672_v48, %v676_v63  ;;  %v728_v19 = vld [vmem:[%s20691_s1 + $0x1458] sm:$0xff]  ;;  %v13523_v24 = vcombine.low %v672_v48, %v676_v63 }
 0x555   :  { %v732_v4 = vld [vmem:[%s20691_s1 + $0x1478] sm:$0xff] }
 0x556   :  { %11528 = vmatpush1.bf16.msra.mxu0 %v13611_v27  ;;  %v664_v50 = vld [vmem:[%s20691_s1 + $0x1258] sm:$0xff]  ;;  %v13580_v30 = vcombine.high %v728_v19, %v732_v4  ;;  %v13579_v43 = vcombine.low %v728_v19, %v732_v4 }
 0x557   :  { %11503 = vmatpush2.bf16.msra.mxu1 %v13547_v12  ;;  %11529 = vmatprep.subr.bf16.mxu0 %v13604_v16  ;;  %v668_v33 = vld [vmem:[%s20691_s1 + $0x1278] sm:$0xff] }
 0x558   :  { %11504 = vmatprep.subr.bf16.mxu1 %v13540_v20  ;;  %v13516_v10 = vcombine.high %v664_v50, %v668_v33  ;;  %v720_v52 = vld [vmem:[%s20691_s1 + $0x1418] sm:$0xff]  ;;  %v13515_v44 = vcombine.low %v664_v50, %v668_v33 }
 0x559   :  { %v724_v42 = vld [vmem:[%s20691_s1 + $0x1438] sm:$0xff] }
 0x55a   :  { %11530 = vmatpush1.bf16.msra.mxu0 %v13603_v47  ;;  %v656_v8 = vld [vmem:[%s20691_s1 + $0x1218] sm:$0xff]  ;;  %v13572_v59 = vcombine.high %v720_v52, %v724_v42  ;;  %v13571_v12 = vcombine.low %v720_v52, %v724_v42 }
 0x55b   :  { %11505 = vmatpush2.bf16.msra.mxu1 %v13539_v37  ;;  %11531 = vmatprep.subr.bf16.mxu0 %v13596_v62  ;;  %v660_v11 = vld [vmem:[%s20691_s1 + $0x1238] sm:$0xff] }
 0x55c   :  { %11506 = vmatprep.subr.bf16.mxu1 %v13532_v15  ;;  %v13508_v40 = vcombine.high %v656_v8, %v660_v11  ;;  %v840_v61 = vld [vmem:[%s20691_s1 + $0x17d8] sm:$0xff]  ;;  %v13507_v16 = vcombine.low %v656_v8, %v660_v11 }
 0x55d   :  { %v844_v58 = vld [vmem:[%s20691_s1 + $0x17f8] sm:$0xff] }
 0x55e   :  { %11532 = vmatpush1.bf16.msra.mxu0 %v13595_v28  ;;  %v904_v51 = vld [vmem:[%s20691_s1 + $0x19d8] sm:$0xff]  ;;  %v13692_v20 = vcombine.high %v840_v61, %v844_v58  ;;  %v13691_v37 = vcombine.low %v840_v61, %v844_v58 }
 0x55f   :  { %11507 = vmatpush2.bf16.msra.mxu1 %v13531_v41  ;;  %11533 = vmatprep.subr.bf16.mxu0 %v13588_v46  ;;  %v908_v27 = vld [vmem:[%s20691_s1 + $0x19f8] sm:$0xff] }
 0x560   :  { %11508 = vmatprep.subr.bf16.mxu1 %v13524_v9  ;;  %v13756_v5 = vcombine.high %v904_v51, %v908_v27  ;;  %v832_v36 = vld [vmem:[%s20691_s1 + $0x1798] sm:$0xff]  ;;  %v13755_v62 = vcombine.low %v904_v51, %v908_v27 }
 0x561   :  { %v836_v60 = vld [vmem:[%s20691_s1 + $0x17b8] sm:$0xff] }
 0x562   :  { %11534 = vmatpush1.bf16.msra.mxu0 %v13587_v0  ;;  %v896_v35 = vld [vmem:[%s20691_s1 + $0x1998] sm:$0xff]  ;;  %v13684_v15 = vcombine.high %v832_v36, %v836_v60  ;;  %v13683_v19 = vcombine.low %v832_v36, %v836_v60 }
 0x563   :  { %11509 = vmatpush2.bf16.msra.mxu1 %v13523_v24  ;;  %11535 = vmatprep.subr.bf16.mxu0 %v13580_v30  ;;  %v900_v47 = vld [vmem:[%s20691_s1 + $0x19b8] sm:$0xff] }
 0x564   :  { %11510 = vmatprep.subr.bf16.mxu1 %v13516_v10  ;;  %v13748_v17 = vcombine.high %v896_v35, %v900_v47  ;;  %v824_v3 = vld [vmem:[%s20691_s1 + $0x1758] sm:$0xff]  ;;  %v13747_v50 = vcombine.low %v896_v35, %v900_v47 }
 0x565   :  { %v828_v48 = vld [vmem:[%s20691_s1 + $0x1778] sm:$0xff] }
 0x566   :  { %11536 = vmatpush1.bf16.msra.mxu0 %v13579_v43  ;;  %v888_v28 = vld [vmem:[%s20691_s1 + $0x1958] sm:$0xff]  ;;  %v13676_v33 = vcombine.high %v824_v3, %v828_v48  ;;  %v13675_v43 = vcombine.low %v824_v3, %v828_v48 }
 0x567   :  { %11511 = vmatpush2.bf16.msra.mxu1 %v13515_v44  ;;  %11537 = vmatprep.subr.bf16.mxu0 %v13572_v59  ;;  %v892_v41 = vld [vmem:[%s20691_s1 + $0x1978] sm:$0xff] }
 0x568   :  { %11512 = vmatprep.subr.bf16.mxu1 %v13508_v40  ;;  %v13740_v10 = vcombine.high %v888_v28, %v892_v41  ;;  %v880_v42 = vld [vmem:[%s20691_s1 + $0x1918] sm:$0xff]  ;;  %v13739_v59 = vcombine.low %v888_v28, %v892_v41 }
 0x569   :  { %v808_v58 = vld [vmem:[%s20691_s1 + $0x16d8] sm:$0xff] }
 0x56a   :  { %11538 = vmatpush1.bf16.msra.mxu0 %v13571_v12  ;;  %v812_v51 = vld [vmem:[%s20691_s1 + $0x16f8] sm:$0xff] }
 0x56b   :  { %11513 = vmatpush2.bf16.msra.mxu1 %v13507_v16  ;;  %11539 = vmatprep.subr.bf16.mxu0 %v13692_v20  ;;  %v872_v27 = vld [vmem:[%s20691_s1 + $0x18d8] sm:$0xff] }
 0x56c   :  { %11564 = vmatprep.subr.bf16.mxu1 %v13756_v5  ;;  %v876_v12 = vld [vmem:[%s20691_s1 + $0x18f8] sm:$0xff]  ;;  %v13660_v5 = vcombine.high %v808_v58, %v812_v51 }
 0x56d   :  { %v11229_v63 = vpop.f32.mrf.mxu0  ;;  %v13724_v36 = vcombine.high %v872_v27, %v876_v12  ;;  %v800_v60 = vld [vmem:[%s20691_s1 + $0x1698] sm:$0xff] }
 0x56e   :  { %v11230_v46 = vadd.f32 %v11229_v63, %v19269_v53  ;;  %v11270_v9 = vpop.f32.mrf.mxu1  ;;  %11515 = vmatmul.mubr.bf16.vlgmr.msra.gmra.mxu1 %v15586_v2  ;;  %11540 = vmatpush2.bf16.msra.mxu0 %v13691_v37  ;;  %v816_v53 = vld [vmem:[%s20691_s1 + $0x1718] sm:$0xff] }
 0x56f   :  { %11565 = vmatpush1.bf16.msra.mxu1 %v13755_v62  ;;  %v11231_v4 = vpop.f32.mrf.mxu0  ;;  %11541 = vmatprep.subr.bf16.mxu0 %v13684_v15  ;;  %v820_v2 = vld [vmem:[%s20691_s1 + $0x1738] sm:$0xff]  ;;  %v13659_v62 = vcombine.low %v808_v58, %v812_v51  ;;  %v13723_v15 = vcombine.low %v872_v27, %v876_v12 }
 0x570   :  { %v19471_v0 = vadd.f32 %v11270_v9, %v11230_v46  ;;  %v11232_v24 = vadd.f32 %v11231_v4, %v19285_v31  ;;  %v11272_v30 = vpop.f32.mrf.mxu1  ;;  %11566 = vmatprep.subr.bf16.mxu1 %v13748_v17  ;;  %11596 = vmatprep.mubr.bf16.mxu1 %v15608_v14  ;;  %v884_v31 = vld [vmem:[%s20691_s1 + $0x1938] sm:$0xff]  ;;  %v13668_v40 = vcombine.high %v816_v53, %v820_v2 }
 0x571   :  { %v11233_v52 = vpop.f32.mrf.mxu0  ;;  %v13732_v61 = vcombine.high %v880_v42, %v884_v31  ;;  %v13667_v16 = vcombine.low %v816_v53, %v820_v2  ;;  %v13731_v20 = vcombine.low %v880_v42, %v884_v31  ;;  %v804_v35 = vld [vmem:[%s20691_s1 + $0x16b8] sm:$0xff] }
 0x572   :  { %v19487_v8 = vadd.f32 %v11272_v30, %v11232_v24  ;;  %v11274_v11 = vpop.f32.mrf.mxu1  ;;  %11542 = vmatpush2.bf16.msra.mxu0 %v13683_v19  ;;  %v864_v47 = vld [vmem:[%s20691_s1 + $0x1898] sm:$0xff]  ;;  %v13652_v17 = vcombine.high %v800_v60, %v804_v35  ;;  %v13651_v46 = vcombine.low %v800_v60, %v804_v35 }
 0x573   :  { %11567 = vmatpush1.bf16.msra.mxu1 %v13747_v50  ;;  %v11234_v44 = vpop.f32.mrf.mxu0  ;;  %11543 = vmatprep.subr.bf16.mxu0 %v13676_v33  ;;  %v868_v37 = vld [vmem:[%s20691_s1 + $0x18b8] sm:$0xff] }
 0x574   :  { %v11275_v14 = vpop.f32.mrf.mxu1  ;;  %11568 = vmatprep.subr.bf16.mxu1 %v13740_v10  ;;  %v13716_v3 = vcombine.high %v864_v47, %v868_v37  ;;  %v792_v48 = vld [vmem:[%s20691_s1 + $0x1658] sm:$0xff]  ;;  %v13715_v9 = vcombine.low %v864_v47, %v868_v37 }
 0x575   :  { %v796_v63 = vld [vmem:[%s20691_s1 + $0x1678] sm:$0xff] }
 0x576   :  { %11544 = vmatpush2.bf16.msra.mxu0 %v13675_v43  ;;  %v856_v28 = vld [vmem:[%s20691_s1 + $0x1858] sm:$0xff]  ;;  %v13644_v19 = vcombine.high %v792_v48, %v796_v63  ;;  %v13643_v10 = vcombine.low %v792_v48, %v796_v63 }
 0x577   :  { %11569 = vmatpush1.bf16.msra.mxu1 %v13739_v59  ;;  %11545 = vmatprep.subr.bf16.mxu0 %v13668_v40  ;;  %v860_v41 = vld [vmem:[%s20691_s1 + $0x1878] sm:$0xff] }
 0x578   :  { %11570 = vmatprep.subr.bf16.mxu1 %v13732_v61  ;;  %v13708_v4 = vcombine.high %v856_v28, %v860_v41  ;;  %v784_v50 = vld [vmem:[%s20691_s1 + $0x1618] sm:$0xff]  ;;  %v13707_v53 = vcombine.low %v856_v28, %v860_v41 }
 0x579   :  { %v788_v33 = vld [vmem:[%s20691_s1 + $0x1638] sm:$0xff] }
 0x57a   :  { %11546 = vmatpush2.bf16.msra.mxu0 %v13667_v16  ;;  %v848_v24 = vld [vmem:[%s20691_s1 + $0x1818] sm:$0xff]  ;;  %v13636_v2 = vcombine.high %v784_v50, %v788_v33  ;;  %v13635_v44 = vcombine.low %v784_v50, %v788_v33 }
 0x57b   :  { %11571 = vmatpush1.bf16.msra.mxu1 %v13731_v20  ;;  %11547 = vmatprep.subr.bf16.mxu0 %v13660_v5  ;;  %v852_v30 = vld [vmem:[%s20691_s1 + $0x1838] sm:$0xff] }
 0x57c   :  { %11572 = vmatprep.subr.bf16.mxu1 %v13724_v36  ;;  %v13700_v52 = vcombine.high %v848_v24, %v852_v30  ;;  %v1032_v42 = vld [vmem:[%s20691_s1 + $0x1dd8] sm:$0xff]  ;;  %v13699_v59 = vcombine.low %v848_v24, %v852_v30 }
 0x57d   :  { %v1036_v31 = vld [vmem:[%s20691_s1 + $0x1df8] sm:$0xff] }
 0x57e   :  { %11548 = vmatpush2.bf16.msra.mxu0 %v13659_v62  ;;  %v968_v11 = vld [vmem:[%s20691_s1 + $0x1bd8] sm:$0xff]  ;;  %v13884_v40 = vcombine.high %v1032_v42, %v1036_v31  ;;  %v13883_v12 = vcombine.low %v1032_v42, %v1036_v31 }
 0x57f   :  { %11573 = vmatpush1.bf16.msra.mxu1 %v13723_v15  ;;  %11549 = vmatprep.subr.bf16.mxu0 %v13652_v17  ;;  %v972_v43 = vld [vmem:[%s20691_s1 + $0x1bf8] sm:$0xff] }
 0x580   :  { %11574 = vmatprep.subr.bf16.mxu1 %v13716_v3  ;;  %v13820_v14 = vcombine.high %v968_v11, %v972_v43  ;;  %v1024_v61 = vld [vmem:[%s20691_s1 + $0x1d98] sm:$0xff]  ;;  %v13819_v16 = vcombine.low %v968_v11, %v972_v43 }
 0x581   :  { %v1028_v58 = vld [vmem:[%s20691_s1 + $0x1db8] sm:$0xff] }
 0x582   :  { %11550 = vmatpush2.bf16.msra.mxu0 %v13651_v46  ;;  %v960_v51 = vld [vmem:[%s20691_s1 + $0x1b98] sm:$0xff]  ;;  %v13876_v20 = vcombine.high %v1024_v61, %v1028_v58  ;;  %v13875_v15 = vcombine.low %v1024_v61, %v1028_v58 }
 0x583   :  { %11575 = vmatpush1.bf16.msra.mxu1 %v13715_v9  ;;  %11551 = vmatprep.subr.bf16.mxu0 %v13644_v19  ;;  %v964_v27 = vld [vmem:[%s20691_s1 + $0x1bb8] sm:$0xff] }
 0x584   :  { %11576 = vmatprep.subr.bf16.mxu1 %v13708_v4  ;;  %v13812_v5 = vcombine.high %v960_v51, %v964_v27  ;;  %v1016_v36 = vld [vmem:[%s20691_s1 + $0x1d58] sm:$0xff]  ;;  %v13811_v3 = vcombine.low %v960_v51, %v964_v27 }
 0x585   :  { %v1020_v60 = vld [vmem:[%s20691_s1 + $0x1d78] sm:$0xff] }
 0x586   :  { %11552 = vmatpush2.bf16.msra.mxu0 %v13643_v10  ;;  %v952_v47 = vld [vmem:[%s20691_s1 + $0x1b58] sm:$0xff]  ;;  %v13867_v46 = vcombine.low %v1016_v36, %v1020_v60 }
 0x587   :  { %11577 = vmatpush1.bf16.msra.mxu1 %v13707_v53  ;;  %11553 = vmatprep.subr.bf16.mxu0 %v13636_v2  ;;  %v956_v37 = vld [vmem:[%s20691_s1 + $0x1b78] sm:$0xff] }
 0x588   :  { %11578 = vmatprep.subr.bf16.mxu1 %v13700_v52  ;;  %v13804_v63 = vcombine.high %v952_v47, %v956_v37  ;;  %v1008_v28 = vld [vmem:[%s20691_s1 + $0x1d18] sm:$0xff]  ;;  %v13803_v19 = vcombine.low %v952_v47, %v956_v37 }
 0x589   :  { %v1000_v33 = vld [vmem:[%s20691_s1 + $0x1cd8] sm:$0xff] }
 0x58a   :  { %11554 = vmatpush2.bf16.msra.mxu0 %v13635_v44  ;;  %v1004_v24 = vld [vmem:[%s20691_s1 + $0x1cf8] sm:$0xff] }
 0x58b   :  { %11579 = vmatpush1.bf16.msra.mxu1 %v13699_v59  ;;  %11605 = vmatprep.subr.bf16.mxu0 %v13884_v40  ;;  %v936_v30 = vld [vmem:[%s20691_s1 + $0x1ad8] sm:$0xff]  ;;  %v13852_v52 = vcombine.high %v1000_v33, %v1004_v24  ;;  %v13851_v59 = vcombine.low %v1000_v33, %v1004_v24 }
 0x58c   :  { %11580 = vmatprep.subr.bf16.mxu1 %v13820_v14  ;;  %v940_v10 = vld [vmem:[%s20691_s1 + $0x1af8] sm:$0xff] }
 0x58d   :  { %v11311_v35 = vpop.f32.mrf.mxu0  ;;  %11556 = vmatmul.mubr.bf16.vlgmr.msra.gmra.mxu0 %v15597_v6  ;;  %v13868_v6 = vcombine.high %v1016_v36, %v1020_v60  ;;  %v13788_v42 = vcombine.high %v936_v30, %v940_v10  ;;  %v992_v31 = vld [vmem:[%s20691_s1 + $0x1c98] sm:$0xff]  ;;  %v13787_v40 = vcombine.low %v936_v30, %v940_v10 }
 0x58e   :  { %v19575_v62 = vadd.f32 %v11311_v35, %v19471_v0  ;;  %11606 = vmatpush1.bf16.msra.mxu0 %v13883_v12  ;;  %11637 = vmatprep.mubr.bf16.mxu0 %v15617_v18  ;;  %v1012_v0 = vld [vmem:[%s20691_s1 + $0x1d38] sm:$0xff] }
 0x58f   :  { %11581 = vmatpush2.bf16.msra.mxu1 %v13819_v16  ;;  %v11313_v17 = vpop.f32.mrf.mxu0  ;;  %11607 = vmatprep.subr.bf16.mxu0 %v13876_v20  ;;  %v944_v18 = vld [vmem:[%s20691_s1 + $0x1b18] sm:$0xff]  ;;  %v13860_v4 = vcombine.high %v1008_v28, %v1012_v0  ;;  %v13859_v53 = vcombine.low %v1008_v28, %v1012_v0 }
 0x590   :  { %v19579_v48 = vadd.f32 %v11313_v17, %v19487_v8  ;;  %11582 = vmatprep.subr.bf16.mxu1 %v13812_v5  ;;  %v948_v8 = vld [vmem:[%s20691_s1 + $0x1b38] sm:$0xff] }
 0x591   :  { %v11315_v41 = vpop.f32.mrf.mxu0  ;;  %v13796_v50 = vcombine.high %v944_v18, %v948_v8  ;;  %v13795_v2 = vcombine.low %v944_v18, %v948_v8  ;;  %v996_v11 = vld [vmem:[%s20691_s1 + $0x1cb8] sm:$0xff] }
 0x592   :  { %11608 = vmatpush1.bf16.msra.mxu0 %v13875_v15  ;;  %v928_v43 = vld [vmem:[%s20691_s1 + $0x1a98] sm:$0xff]  ;;  %v13844_v14 = vcombine.high %v992_v31, %v996_v11  ;;  %v13843_v16 = vcombine.low %v992_v31, %v996_v11 }
 0x593   :  { %11583 = vmatpush2.bf16.msra.mxu1 %v13811_v3  ;;  %v11316_v9 = vpop.f32.mrf.mxu0  ;;  %11609 = vmatprep.subr.bf16.mxu0 %v13868_v6  ;;  %v932_v44 = vld [vmem:[%s20691_s1 + $0x1ab8] sm:$0xff] }
 0x594   :  { %11584 = vmatprep.subr.bf16.mxu1 %v13804_v63  ;;  %v13780_v61 = vcombine.high %v928_v43, %v932_v44  ;;  %v984_v58 = vld [vmem:[%s20691_s1 + $0x1c58] sm:$0xff]  ;;  %v13779_v20 = vcombine.low %v928_v43, %v932_v44 }
 0x595   :  { %v988_v51 = vld [vmem:[%s20691_s1 + $0x1c78] sm:$0xff] }
 0x596   :  { %11610 = vmatpush1.bf16.msra.mxu0 %v13867_v46  ;;  %v920_v27 = vld [vmem:[%s20691_s1 + $0x1a58] sm:$0xff]  ;;  %v13836_v5 = vcombine.high %v984_v58, %v988_v51  ;;  %v13835_v15 = vcombine.low %v984_v58, %v988_v51 }
 0x597   :  { %11585 = vmatpush2.bf16.msra.mxu1 %v13803_v19  ;;  %11611 = vmatprep.subr.bf16.mxu0 %v13860_v4  ;;  %v924_v12 = vld [vmem:[%s20691_s1 + $0x1a78] sm:$0xff] }
 0x598   :  { %11586 = vmatprep.subr.bf16.mxu1 %v13796_v50  ;;  %v13772_v36 = vcombine.high %v920_v27, %v924_v12  ;;  %v976_v60 = vld [vmem:[%s20691_s1 + $0x1c18] sm:$0xff]  ;;  %v13771_v17 = vcombine.low %v920_v27, %v924_v12 }
 0x599   :  { %v980_v35 = vld [vmem:[%s20691_s1 + $0x1c38] sm:$0xff] }
 0x59a   :  { %11612 = vmatpush1.bf16.msra.mxu0 %v13859_v53  ;;  %v912_v47 = vld [vmem:[%s20691_s1 + $0x1a18] sm:$0xff]  ;;  %v13828_v3 = vcombine.high %v976_v60, %v980_v35  ;;  %v13827_v18 = vcombine.low %v976_v60, %v980_v35 }
 0x59b   :  { %11587 = vmatpush2.bf16.msra.mxu1 %v13795_v2  ;;  %11613 = vmatprep.subr.bf16.mxu0 %v13852_v52  ;;  %v916_v37 = vld [vmem:[%s20691_s1 + $0x1a38] sm:$0xff] }
 0x59c   :  { %11588 = vmatprep.subr.bf16.mxu1 %v13788_v42  ;;  %v13764_v6 = vcombine.high %v912_v47, %v916_v37  ;;  %v1096_v63 = vld [vmem:[%s20691_s1 + $0x1fd8] sm:$0xff]  ;;  %v13763_v8 = vcombine.low %v912_v47, %v916_v37 }
 0x59d   :  { %v1100_v28 = vld [vmem:[%s20691_s1 + $0x1ff8] sm:$0xff] }
 0x59e   :  { %11614 = vmatpush1.bf16.msra.mxu0 %v13851_v59  ;;  %v1160_v0 = vld [vmem:[%s20691_s1 + $0x21d8] sm:$0xff]  ;;  %v13948_v46 = vcombine.high %v1096_v63, %v1100_v28  ;;  %v13947_v24 = vcombine.low %v1096_v63, %v1100_v28 }
 0x59f   :  { %11589 = vmatpush2.bf16.msra.mxu1 %v13787_v40  ;;  %11615 = vmatprep.subr.bf16.mxu0 %v13844_v14  ;;  %v1164_v41 = vld [vmem:[%s20691_s1 + $0x21f8] sm:$0xff] }
 0x5a0   :  { %11590 = vmatprep.subr.bf16.mxu1 %v13780_v61  ;;  %v14012_v9 = vcombine.high %v1160_v0, %v1164_v41  ;;  %v1088_v19 = vld [vmem:[%s20691_s1 + $0x1f98] sm:$0xff]  ;;  %v14011_v30 = vcombine.low %v1160_v0, %v1164_v41 }
 0x5a1   :  { %v1092_v4 = vld [vmem:[%s20691_s1 + $0x1fb8] sm:$0xff] }
 0x5a2   :  { %11616 = vmatpush1.bf16.msra.mxu0 %v13843_v16  ;;  %v1152_v50 = vld [vmem:[%s20691_s1 + $0x2198] sm:$0xff]  ;;  %v13940_v10 = vcombine.high %v1088_v19, %v1092_v4  ;;  %v13939_v43 = vcombine.low %v1088_v19, %v1092_v4 }
 0x5a3   :  { %11591 = vmatpush2.bf16.msra.mxu1 %v13779_v20  ;;  %11617 = vmatprep.subr.bf16.mxu0 %v13836_v5  ;;  %v1156_v33 = vld [vmem:[%s20691_s1 + $0x21b8] sm:$0xff] }
 0x5a4   :  { %11592 = vmatprep.subr.bf16.mxu1 %v13772_v36  ;;  %v14004_v53 = vcombine.high %v1152_v50, %v1156_v33  ;;  %v1080_v2 = vld [vmem:[%s20691_s1 + $0x1f58] sm:$0xff]  ;;  %v14003_v44 = vcombine.low %v1152_v50, %v1156_v33 }
 0x5a5   :  { %v1084_v52 = vld [vmem:[%s20691_s1 + $0x1f78] sm:$0xff] }
 0x5a6   :  { %11618 = vmatpush1.bf16.msra.mxu0 %v13835_v15  ;;  %v1144_v42 = vld [vmem:[%s20691_s1 + $0x2158] sm:$0xff]  ;;  %v13932_v59 = vcombine.high %v1080_v2, %v1084_v52  ;;  %v13931_v12 = vcombine.low %v1080_v2, %v1084_v52 }
 0x5a7   :  { %11593 = vmatpush2.bf16.msra.mxu1 %v13771_v17  ;;  %11619 = vmatprep.subr.bf16.mxu0 %v13828_v3  ;;  %v1148_v31 = vld [vmem:[%s20691_s1 + $0x2178] sm:$0xff] }
 0x5a8   :  { %11594 = vmatprep.subr.bf16.mxu1 %v13764_v6  ;;  %v13996_v14 = vcombine.high %v1144_v42, %v1148_v31  ;;  %v1072_v61 = vld [vmem:[%s20691_s1 + $0x1f18] sm:$0xff]  ;;  %v13995_v16 = vcombine.low %v1144_v42, %v1148_v31 }
 0x5a9   :  { %v1076_v58 = vld [vmem:[%s20691_s1 + $0x1f38] sm:$0xff] }
 0x5aa   :  { %11620 = vmatpush1.bf16.msra.mxu0 %v13827_v18  ;;  %v1140_v51 = vld [vmem:[%s20691_s1 + $0x2138] sm:$0xff]  ;;  %v13924_v20 = vcombine.high %v1072_v61, %v1076_v58  ;;  %v13923_v37 = vcombine.low %v1072_v61, %v1076_v58 }
 0x5ab   :  { %11595 = vmatpush2.bf16.msra.mxu1 %v13763_v8  ;;  %11621 = vmatprep.subr.bf16.mxu0 %v13948_v46  ;;  %v1068_v60 = vld [vmem:[%s20691_s1 + $0x1ef8] sm:$0xff] }
 0x5ac   :  { %11646 = vmatprep.subr.bf16.mxu1 %v14012_v9  ;;  %v1128_v35 = vld [vmem:[%s20691_s1 + $0x20d8] sm:$0xff] }
 0x5ad   :  { %v1132_v47 = vld [vmem:[%s20691_s1 + $0x20f8] sm:$0xff] }
 0x5ae   :  { %v19677_v11 = vpop.f32.mrf.mxu1  ;;  %11597 = vmatmul.mubr.bf16.vlgmr.msra.gmra.mxu1 %v15810_v49  ;;  %11622 = vmatpush2.bf16.msra.mxu0 %v13947_v24  ;;  %v1136_v49 = vld [vmem:[%s20691_s1 + $0x2118] sm:$0xff]  ;;  %v13980_v3 = vcombine.high %v1128_v35, %v1132_v47  ;;  %v13979_v18 = vcombine.low %v1128_v35, %v1132_v47 }
 0x5af   :  { %11647 = vmatpush1.bf16.msra.mxu1 %v14011_v30  ;;  %11623 = vmatprep.subr.bf16.mxu0 %v13940_v10  ;;  %v13988_v36 = vcombine.high %v1136_v49, %v1140_v51  ;;  %v13987_v15 = vcombine.low %v1136_v49, %v1140_v51  ;;  %v1056_v6 = vld [vmem:[%s20691_s1 + $0x1e98] sm:$0xff] }
 0x5b0   :  { %v19680_v40 = vpop.f32.mrf.mxu1  ;;  %11648 = vmatprep.subr.bf16.mxu1 %v14004_v53  ;;  %11678 = vmatprep.mubr.bf16.mxu1 %v15835_v1  ;;  %v1064_v1 = vld [vmem:[%s20691_s1 + $0x1ed8] sm:$0xff] }
 0x5b1   :  { %v13916_v17 = vcombine.high %v1064_v1, %v1068_v60  ;;  %v1060_v63 = vld [vmem:[%s20691_s1 + $0x1eb8] sm:$0xff]  ;;  %v13915_v41 = vcombine.low %v1064_v1, %v1068_v60 }
 0x5b2   :  { %v11356_v27 = vpop.f32.mrf.mxu1  ;;  %11624 = vmatpush2.bf16.msra.mxu0 %v13939_v43  ;;  %v1120_v28 = vld [vmem:[%s20691_s1 + $0x2098] sm:$0xff]  ;;  %v13908_v8 = vcombine.high %v1056_v6, %v1060_v63  ;;  %v13907_v33 = vcombine.low %v1056_v6, %v1060_v63 }
 0x5b3   :  { %11649 = vmatpush1.bf16.msra.mxu1 %v14003_v44  ;;  %11625 = vmatprep.subr.bf16.mxu0 %v13932_v59  ;;  %v1124_v0 = vld [vmem:[%s20691_s1 + $0x20b8] sm:$0xff]  ;;  %v1705_v59 = vsub.s32 6, %v15778_v26  ;;  %v1709_v27 = vsub.s32 7, %v15778_v26  ;;  %v12813_v26 = vld [vmem:[%s20695_s5 + $0x10] sm:$0xff] }
 0x5b4   :  { %v11357_v5 = vpop.f32.mrf.mxu1  ;;  %11650 = vmatprep.subr.bf16.mxu1 %v13996_v14  ;;  %v13972_v46 = vcombine.high %v1120_v28, %v1124_v0  ;;  %v1048_v9 = vld [vmem:[%s20691_s1 + $0x1e58] sm:$0xff]  ;;  %v13971_v24 = vcombine.low %v1120_v28, %v1124_v0 }
 0x5b5   :  { %v1052_v19 = vld [vmem:[%s20691_s1 + $0x1e78] sm:$0xff]  ;;  %v14884_v5 = vld [vmem:[%s20693_s2] sm:$0xff] }
 0x5b6   :  { %11626 = vmatpush2.bf16.msra.mxu0 %v13931_v12  ;;  %v1112_v4 = vld [vmem:[%s20691_s1 + $0x2058] sm:$0xff]  ;;  %v13900_v30 = vcombine.high %v1048_v9, %v1052_v19  ;;  %v13899_v31 = vcombine.low %v1048_v9, %v1052_v19 }
 0x5b7   :  { %11651 = vmatpush1.bf16.msra.mxu1 %v13995_v16  ;;  %11627 = vmatprep.subr.bf16.mxu0 %v13924_v20  ;;  %v1116_v50 = vld [vmem:[%s20691_s1 + $0x2078] sm:$0xff] }
 0x5b8   :  { %11652 = vmatprep.subr.bf16.mxu1 %v13988_v36  ;;  %v13964_v10 = vcombine.high %v1112_v4, %v1116_v50  ;;  %v1040_v53 = vld [vmem:[%s20691_s1 + $0x1e18] sm:$0xff]  ;;  %v13963_v43 = vcombine.low %v1112_v4, %v1116_v50  ;;  %v1706_v36 = vrot.slane %v14884_v5, %v1705_v59 }
 0x5b9   :  { %v1044_v2 = vld [vmem:[%s20691_s1 + $0x1e38] sm:$0xff] }
 0x5ba   :  { %11628 = vmatpush2.bf16.msra.mxu0 %v13923_v37  ;;  %v1104_v52 = vld [vmem:[%s20691_s1 + $0x2018] sm:$0xff]  ;;  %v13892_v44 = vcombine.high %v1040_v53, %v1044_v2  ;;  %v13891_v12 = vcombine.low %v1040_v53, %v1044_v2  ;;  %v11353_v0 = vadd.f32 %v19677_v11, %v1706_v36 }
 0x5bb   :  { %11653 = vmatpush1.bf16.msra.mxu1 %v13987_v15  ;;  %11629 = vmatprep.subr.bf16.mxu0 %v13916_v17  ;;  %v1108_v42 = vld [vmem:[%s20691_s1 + $0x2038] sm:$0xff]  ;;  %v1710_v15 = vrot.slane %v14884_v5, %v1709_v27 }
 0x5bc   :  { %11654 = vmatprep.subr.bf16.mxu1 %v13980_v3  ;;  %v13956_v14 = vcombine.high %v1104_v52, %v1108_v42  ;;  %v1288_v61 = vld [vmem:[%s20691_s1 + $0x25d8] sm:$0xff]  ;;  %v13955_v16 = vcombine.low %v1104_v52, %v1108_v42 }
 0x5bd   :  { %v1292_v58 = vld [vmem:[%s20691_s1 + $0x25f8] sm:$0xff]  ;;  %v11355_v9 = vadd.f32 %v19680_v40, %v1710_v15 }
 0x5be   :  { %11630 = vmatpush2.bf16.msra.mxu0 %v13915_v41  ;;  %v1224_v49 = vld [vmem:[%s20691_s1 + $0x23d8] sm:$0xff]  ;;  %v14140_v20 = vcombine.high %v1288_v61, %v1292_v58  ;;  %v14139_v17 = vcombine.low %v1288_v61, %v1292_v58 }
 0x5bf   :  { %11655 = vmatpush1.bf16.msra.mxu1 %v13979_v18  ;;  %11631 = vmatprep.subr.bf16.mxu0 %v13908_v8  ;;  %v1228_v51 = vld [vmem:[%s20691_s1 + $0x23f8] sm:$0xff] }
 0x5c0   :  { %11656 = vmatprep.subr.bf16.mxu1 %v13972_v46  ;;  %v14076_v1 = vcombine.high %v1224_v49, %v1228_v51  ;;  %v1280_v60 = vld [vmem:[%s20691_s1 + $0x2598] sm:$0xff]  ;;  %v14075_v3 = vcombine.low %v1224_v49, %v1228_v51 }
 0x5c1   :  { %v1284_v35 = vld [vmem:[%s20691_s1 + $0x25b8] sm:$0xff] }
 0x5c2   :  { %11632 = vmatpush2.bf16.msra.mxu0 %v13907_v33  ;;  %v1216_v47 = vld [vmem:[%s20691_s1 + $0x2398] sm:$0xff]  ;;  %v14132_v6 = vcombine.high %v1280_v60, %v1284_v35  ;;  %v14131_v4 = vcombine.low %v1280_v60, %v1284_v35 }
 0x5c3   :  { %11657 = vmatpush1.bf16.msra.mxu1 %v13971_v24  ;;  %11633 = vmatprep.subr.bf16.mxu0 %v13900_v30  ;;  %v1220_v37 = vld [vmem:[%s20691_s1 + $0x23b8] sm:$0xff] }
 0x5c4   :  { %11658 = vmatprep.subr.bf16.mxu1 %v13964_v10  ;;  %v1208_v63 = vld [vmem:[%s20691_s1 + $0x2358] sm:$0xff]  ;;  %v14068_v41 = vcombine.high %v1216_v47, %v1220_v37  ;;  %v14067_v33 = vcombine.low %v1216_v47, %v1220_v37 }
 0x5c5   :  { %v1272_v28 = vld [vmem:[%s20691_s1 + $0x2558] sm:$0xff] }
 0x5c6   :  { %11634 = vmatpush2.bf16.msra.mxu0 %v13899_v31  ;;  %v1276_v18 = vld [vmem:[%s20691_s1 + $0x2578] sm:$0xff] }
 0x5c7   :  { %11659 = vmatpush1.bf16.msra.mxu1 %v13963_v43  ;;  %11635 = vmatprep.subr.bf16.mxu0 %v13892_v44  ;;  %v1212_v46 = vld [vmem:[%s20691_s1 + $0x2378] sm:$0xff]  ;;  %v14124_v24 = vcombine.high %v1272_v28, %v1276_v18 }
 0x5c8   :  { %11660 = vmatprep.subr.bf16.mxu1 %v13956_v14  ;;  %v1264_v11 = vld [vmem:[%s20691_s1 + $0x2518] sm:$0xff]  ;;  %v14060_v30 = vcombine.high %v1208_v63, %v1212_v46  ;;  %v14059_v42 = vcombine.low %v1208_v63, %v1212_v46 }
 0x5c9   :  { %v1268_v50 = vld [vmem:[%s20691_s1 + $0x2538] sm:$0xff] }
 0x5ca   :  { %11636 = vmatpush2.bf16.msra.mxu0 %v13891_v12  ;;  %v1200_v53 = vld [vmem:[%s20691_s1 + $0x2318] sm:$0xff]  ;;  %v14116_v31 = vcombine.high %v1264_v11, %v1268_v50  ;;  %v14115_v58 = vcombine.low %v1264_v11, %v1268_v50 }
 0x5cb   :  { %11661 = vmatpush1.bf16.msra.mxu1 %v13955_v16  ;;  %11687 = vmatprep.subr.bf16.mxu0 %v14140_v20  ;;  %v1204_v2 = vld [vmem:[%s20691_s1 + $0x2338] sm:$0xff] }
 0x5cc   :  { %11662 = vmatprep.subr.bf16.mxu1 %v14076_v1  ;;  %v1192_v43 = vld [vmem:[%s20691_s1 + $0x22d8] sm:$0xff]  ;;  %v14052_v14 = vcombine.high %v1200_v53, %v1204_v2  ;;  %v14051_v49 = vcombine.low %v1200_v53, %v1204_v2 }
 0x5cd   :  { %v11393_v8 = vpop.f32.mrf.mxu0  ;;  %11638 = vmatmul.mubr.bf16.vlgmr.msra.gmra.mxu0 %v15824_v55  ;;  %v1196_v44 = vld [vmem:[%s20691_s1 + $0x22f8] sm:$0xff] }
 0x5ce   :  { %v19787_v19 = vadd.f32 %v11393_v8, %v11353_v0  ;;  %11688 = vmatpush1.bf16.msra.mxu0 %v14139_v17  ;;  %11719 = vmatprep.mubr.bf16.mxu0 %v15844_v7  ;;  %v14123_v7 = vcombine.low %v1272_v28, %v1276_v18  ;;  %v1256_v59 = vld [vmem:[%s20691_s1 + $0x24d8] sm:$0xff]  ;;  %v14044_v20 = vcombine.high %v1192_v43, %v1196_v44 }
 0x5cf   :  { %11663 = vmatpush2.bf16.msra.mxu1 %v14075_v3  ;;  %v11395_v55 = vpop.f32.mrf.mxu0  ;;  %11689 = vmatprep.subr.bf16.mxu0 %v14132_v6  ;;  %v1260_v61 = vld [vmem:[%s20691_s1 + $0x24f8] sm:$0xff]  ;;  %v14043_v1 = vcombine.low %v1192_v43, %v1196_v44 }
 0x5d0   :  { %v19796_v40 = vadd.f32 %v11395_v55, %v11355_v9  ;;  %11664 = vmatprep.subr.bf16.mxu1 %v14068_v41  ;;  %v14108_v51 = vcombine.high %v1256_v59, %v1260_v61  ;;  %v1184_v27 = vld [vmem:[%s20691_s1 + $0x2298] sm:$0xff]  ;;  %v14107_v36 = vcombine.low %v1256_v59, %v1260_v61 }
 0x5d1   :  { %v11397_v10 = vpop.f32.mrf.mxu0  ;;  %v1188_v12 = vld [vmem:[%s20691_s1 + $0x22b8] sm:$0xff] }
 0x5d2   :  { %11690 = vmatpush1.bf16.msra.mxu0 %v14131_v4  ;;  %v1248_v16 = vld [vmem:[%s20691_s1 + $0x2498] sm:$0xff]  ;;  %v14036_v15 = vcombine.high %v1184_v27, %v1188_v12  ;;  %v14035_v6 = vcombine.low %v1184_v27, %v1188_v12 }
 0x5d3   :  { %11665 = vmatpush2.bf16.msra.mxu1 %v14067_v33  ;;  %v11398_v52 = vpop.f32.mrf.mxu0  ;;  %11691 = vmatprep.subr.bf16.mxu0 %v14124_v24  ;;  %v1252_v5 = vld [vmem:[%s20691_s1 + $0x24b8] sm:$0xff] }
 0x5d4   :  { %11666 = vmatprep.subr.bf16.mxu1 %v14060_v30  ;;  %v14100_v60 = vcombine.high %v1248_v16, %v1252_v5  ;;  %v1176_v35 = vld [vmem:[%s20691_s1 + $0x2258] sm:$0xff]  ;;  %v14099_v3 = vcombine.low %v1248_v16, %v1252_v5 }
 0x5d5   :  { %v1180_v47 = vld [vmem:[%s20691_s1 + $0x2278] sm:$0xff] }
 0x5d6   :  { %11692 = vmatpush1.bf16.msra.mxu0 %v14123_v7  ;;  %v1240_v37 = vld [vmem:[%s20691_s1 + $0x2458] sm:$0xff]  ;;  %v14028_v18 = vcombine.high %v1176_v35, %v1180_v47  ;;  %v14027_v9 = vcombine.low %v1176_v35, %v1180_v47 }
 0x5d7   :  { %11667 = vmatpush2.bf16.msra.mxu1 %v14059_v42  ;;  %11693 = vmatprep.subr.bf16.mxu0 %v14116_v31  ;;  %v1244_v17 = vld [vmem:[%s20691_s1 + $0x2478] sm:$0xff] }
 0x5d8   :  { %11668 = vmatprep.subr.bf16.mxu1 %v14052_v14  ;;  %v14092_v63 = vcombine.high %v1240_v37, %v1244_v17  ;;  %v1168_v28 = vld [vmem:[%s20691_s1 + $0x2218] sm:$0xff]  ;;  %v14091_v46 = vcombine.low %v1240_v37, %v1244_v17 }
 0x5d9   :  { %v1172_v0 = vld [vmem:[%s20691_s1 + $0x2238] sm:$0xff] }
 0x5da   :  { %11694 = vmatpush1.bf16.msra.mxu0 %v14115_v58  ;;  %v1232_v41 = vld [vmem:[%s20691_s1 + $0x2418] sm:$0xff]  ;;  %v14020_v33 = vcombine.high %v1168_v28, %v1172_v0  ;;  %v14019_v10 = vcombine.low %v1168_v28, %v1172_v0 }
 0x5db   :  { %11669 = vmatpush2.bf16.msra.mxu1 %v14051_v49  ;;  %11695 = vmatprep.subr.bf16.mxu0 %v14108_v51  ;;  %v1236_v8 = vld [vmem:[%s20691_s1 + $0x2438] sm:$0xff] }
 0x5dc   :  { %11670 = vmatprep.subr.bf16.mxu1 %v14044_v20  ;;  %v14084_v4 = vcombine.high %v1232_v41, %v1236_v8  ;;  %v1352_v11 = vld [vmem:[%s20691_s1 + $0x27d8] sm:$0xff]  ;;  %v14083_v30 = vcombine.low %v1232_v41, %v1236_v8 }
 0x5dd   :  { %v1356_v50 = vld [vmem:[%s20691_s1 + $0x27f8] sm:$0xff] }
 0x5de   :  { %11696 = vmatpush1.bf16.msra.mxu0 %v14107_v36  ;;  %v1416_v55 = vld [vmem:[%s20691_s1 + $0x29d8] sm:$0xff]  ;;  %v14204_v53 = vcombine.high %v1352_v11, %v1356_v50  ;;  %v14203_v43 = vcombine.low %v1352_v11, %v1356_v50 }
 0x5df   :  { %11671 = vmatpush2.bf16.msra.mxu1 %v14043_v1  ;;  %11697 = vmatprep.subr.bf16.mxu0 %v14100_v60  ;;  %v1420_v24 = vld [vmem:[%s20691_s1 + $0x29f8] sm:$0xff] }
 0x5e0   :  { %11672 = vmatprep.subr.bf16.mxu1 %v14036_v15  ;;  %v1344_v2 = vld [vmem:[%s20691_s1 + $0x2798] sm:$0xff]  ;;  %v14268_v42 = vcombine.high %v1416_v55, %v1420_v24  ;;  %v14267_v14 = vcombine.low %v1416_v55, %v1420_v24 }
 0x5e1   :  { %v1348_v7 = vld [vmem:[%s20691_s1 + $0x27b8] sm:$0xff] }
 0x5e2   :  { %11698 = vmatpush1.bf16.msra.mxu0 %v14099_v3  ;;  %v1408_v52 = vld [vmem:[%s20691_s1 + $0x2998] sm:$0xff]  ;;  %v14196_v61 = vcombine.high %v1344_v2, %v1348_v7  ;;  %v14195_v12 = vcombine.low %v1344_v2, %v1348_v7 }
 0x5e3   :  { %11673 = vmatpush2.bf16.msra.mxu1 %v14035_v6  ;;  %11699 = vmatprep.subr.bf16.mxu0 %v14092_v63  ;;  %v1412_v31 = vld [vmem:[%s20691_s1 + $0x29b8] sm:$0xff] }
 0x5e4   :  { %11674 = vmatprep.subr.bf16.mxu1 %v14028_v18  ;;  %v1336_v44 = vld [vmem:[%s20691_s1 + $0x2758] sm:$0xff]  ;;  %v14260_v58 = vcombine.high %v1408_v52, %v1412_v31  ;;  %v14259_v36 = vcombine.low %v1408_v52, %v1412_v31 }
 0x5e5   :  { %v1340_v59 = vld [vmem:[%s20691_s1 + $0x2778] sm:$0xff] }
 0x5e6   :  { %11700 = vmatpush1.bf16.msra.mxu0 %v14091_v46  ;;  %v1400_v49 = vld [vmem:[%s20691_s1 + $0x2958] sm:$0xff]  ;;  %v14188_v1 = vcombine.high %v1336_v44, %v1340_v59  ;;  %v14187_v15 = vcombine.low %v1336_v44, %v1340_v59 }
 0x5e7   :  { %11675 = vmatpush2.bf16.msra.mxu1 %v14027_v9  ;;  %11701 = vmatprep.subr.bf16.mxu0 %v14084_v4  ;;  %v1404_v51 = vld [vmem:[%s20691_s1 + $0x2978] sm:$0xff] }
 0x5e8   :  { %11676 = vmatprep.subr.bf16.mxu1 %v14020_v33  ;;  %v1328_v16 = vld [vmem:[%s20691_s1 + $0x2718] sm:$0xff]  ;;  %v14251_v17 = vcombine.low %v1400_v49, %v1404_v51 }
 0x5e9   :  { %v1332_v20 = vld [vmem:[%s20691_s1 + $0x2738] sm:$0xff] }
 0x5ea   :  { %11702 = vmatpush1.bf16.msra.mxu0 %v14083_v30  ;;  %v1392_v47 = vld [vmem:[%s20691_s1 + $0x2918] sm:$0xff]  ;;  %v14180_v3 = vcombine.high %v1328_v16, %v1332_v20  ;;  %v14179_v41 = vcombine.low %v1328_v16, %v1332_v20 }
 0x5eb   :  { %11677 = vmatpush2.bf16.msra.mxu1 %v14019_v10  ;;  %11703 = vmatprep.subr.bf16.mxu0 %v14204_v53  ;;  %v1324_v63 = vld [vmem:[%s20691_s1 + $0x26f8] sm:$0xff] }
 0x5ec   :  { %11728 = vmatprep.subr.bf16.mxu1 %v14268_v42  ;;  %v1384_v28 = vld [vmem:[%s20691_s1 + $0x28d8] sm:$0xff] }
 0x5ed   :  { %v1388_v0 = vld [vmem:[%s20691_s1 + $0x28f8] sm:$0xff] }
 0x5ee   :  { %v11434_v27 = vpop.f32.mrf.mxu1  ;;  %11679 = vmatmul.mubr.bf16.vlgmr.msra.gmra.mxu1 %v16039_v22  ;;  %11704 = vmatpush2.bf16.msra.mxu0 %v14203_v43  ;;  %v14252_v22 = vcombine.high %v1400_v49, %v1404_v51  ;;  %v1312_v46 = vld [vmem:[%s20691_s1 + $0x2698] sm:$0xff]  ;;  %v14236_v11 = vcombine.high %v1384_v28, %v1388_v0  ;;  %v14235_v33 = vcombine.low %v1384_v28, %v1388_v0 }
 0x5ef   :  { %v19896_v5 = vadd.f32 %v11434_v27, %v19787_v19  ;;  %11729 = vmatpush1.bf16.msra.mxu1 %v14267_v14  ;;  %11705 = vmatprep.subr.bf16.mxu0 %v14196_v61  ;;  %v1396_v19 = vld [vmem:[%s20691_s1 + $0x2938] sm:$0xff] }
 0x5f0   :  { %v11436_v60 = vpop.f32.mrf.mxu1  ;;  %11730 = vmatprep.subr.bf16.mxu1 %v14260_v58  ;;  %11760 = vmatprep.mubr.bf16.mxu1 %v16062_v39  ;;  %v14244_v39 = vcombine.high %v1392_v47, %v1396_v19  ;;  %v14243_v18 = vcombine.low %v1392_v47, %v1396_v19  ;;  %v1316_v9 = vld [vmem:[%s20691_s1 + $0x26b8] sm:$0xff] }
 0x5f1   :  { %v19900_v35 = vadd.f32 %v11436_v60, %v19796_v40  ;;  %v1320_v40 = vld [vmem:[%s20691_s1 + $0x26d8] sm:$0xff]  ;;  %v14164_v24 = vcombine.high %v1312_v46, %v1316_v9  ;;  %v14163_v52 = vcombine.low %v1312_v46, %v1316_v9 }
 0x5f2   :  { %v11438_v37 = vpop.f32.mrf.mxu1  ;;  %11706 = vmatpush2.bf16.msra.mxu0 %v14195_v12  ;;  %v14172_v8 = vcombine.high %v1320_v40, %v1324_v63  ;;  %v1376_v4 = vld [vmem:[%s20691_s1 + $0x2898] sm:$0xff]  ;;  %v14171_v55 = vcombine.low %v1320_v40, %v1324_v63 }
 0x5f3   :  { %11731 = vmatpush1.bf16.msra.mxu1 %v14259_v36  ;;  %11707 = vmatprep.subr.bf16.mxu0 %v14188_v1  ;;  %v1380_v50 = vld [vmem:[%s20691_s1 + $0x28b8] sm:$0xff] }
 0x5f4   :  { %v11439_v6 = vpop.f32.mrf.mxu1  ;;  %11732 = vmatprep.subr.bf16.mxu1 %v14252_v22  ;;  %v1304_v30 = vld [vmem:[%s20691_s1 + $0x2658] sm:$0xff]  ;;  %v14228_v2 = vcombine.high %v1376_v4, %v1380_v50  ;;  %v14227_v42 = vcombine.low %v1376_v4, %v1380_v50 }
 0x5f5   :  { %v1308_v10 = vld [vmem:[%s20691_s1 + $0x2678] sm:$0xff] }
 0x5f6   :  { %11708 = vmatpush2.bf16.msra.mxu0 %v14187_v15  ;;  %v1368_v53 = vld [vmem:[%s20691_s1 + $0x2858] sm:$0xff]  ;;  %v14156_v31 = vcombine.high %v1304_v30, %v1308_v10  ;;  %v14155_v58 = vcombine.low %v1304_v30, %v1308_v10 }
 0x5f7   :  { %11733 = vmatpush1.bf16.msra.mxu1 %v14251_v17  ;;  %11709 = vmatprep.subr.bf16.mxu0 %v14180_v3  ;;  %v1372_v7 = vld [vmem:[%s20691_s1 + $0x2878] sm:$0xff] }
 0x5f8   :  { %11734 = vmatprep.subr.bf16.mxu1 %v14244_v39  ;;  %v1296_v43 = vld [vmem:[%s20691_s1 + $0x2618] sm:$0xff]  ;;  %v14220_v14 = vcombine.high %v1368_v53, %v1372_v7  ;;  %v14219_v49 = vcombine.low %v1368_v53, %v1372_v7 }
 0x5f9   :  { %v1300_v44 = vld [vmem:[%s20691_s1 + $0x2638] sm:$0xff] }
 0x5fa   :  { %11710 = vmatpush2.bf16.msra.mxu0 %v14179_v41  ;;  %v1360_v59 = vld [vmem:[%s20691_s1 + $0x2818] sm:$0xff]  ;;  %v14148_v51 = vcombine.high %v1296_v43, %v1300_v44  ;;  %v14147_v1 = vcombine.low %v1296_v43, %v1300_v44 }
 0x5fb   :  { %11735 = vmatpush1.bf16.msra.mxu1 %v14243_v18  ;;  %11711 = vmatprep.subr.bf16.mxu0 %v14172_v8  ;;  %v1364_v61 = vld [vmem:[%s20691_s1 + $0x2838] sm:$0xff] }
 0x5fc   :  { %11736 = vmatprep.subr.bf16.mxu1 %v14236_v11  ;;  %v1480_v27 = vld [vmem:[%s20691_s1 + $0x2bd8] sm:$0xff]  ;;  %v14212_v20 = vcombine.high %v1360_v59, %v1364_v61  ;;  %v14211_v60 = vcombine.low %v1360_v59, %v1364_v61 }
 0x5fd   :  { %v1484_v12 = vld [vmem:[%s20691_s1 + $0x2bf8] sm:$0xff] }
 0x5fe   :  { %11712 = vmatpush2.bf16.msra.mxu0 %v14171_v55  ;;  %v1544_v16 = vld [vmem:[%s20691_s1 + $0x2dd8] sm:$0xff]  ;;  %v14332_v15 = vcombine.high %v1480_v27, %v1484_v12  ;;  %v14331_v6 = vcombine.low %v1480_v27, %v1484_v12 }
 0x5ff   :  { %11737 = vmatpush1.bf16.msra.mxu1 %v14235_v33  ;;  %11713 = vmatprep.subr.bf16.mxu0 %v14164_v24  ;;  %v1548_v36 = vld [vmem:[%s20691_s1 + $0x2df8] sm:$0xff] }
 0x600   :  { %11738 = vmatprep.subr.bf16.mxu1 %v14228_v2  ;;  %v14396_v22 = vcombine.high %v1544_v16, %v1548_v36  ;;  %v1472_v47 = vld [vmem:[%s20691_s1 + $0x2b98] sm:$0xff]  ;;  %v14395_v3 = vcombine.low %v1544_v16, %v1548_v36 }
 0x601   :  { %v1476_v19 = vld [vmem:[%s20691_s1 + $0x2bb8] sm:$0xff] }
 0x602   :  { %11714 = vmatpush2.bf16.msra.mxu0 %v14163_v52  ;;  %v1536_v37 = vld [vmem:[%s20691_s1 + $0x2d98] sm:$0xff]  ;;  %v14324_v40 = vcombine.high %v1472_v47, %v1476_v19  ;;  %v14323_v4 = vcombine.low %v1472_v47, %v1476_v19 }
 0x603   :  { %11739 = vmatpush1.bf16.msra.mxu1 %v14227_v42  ;;  %11715 = vmatprep.subr.bf16.mxu0 %v14156_v31  ;;  %v1540_v17 = vld [vmem:[%s20691_s1 + $0x2db8] sm:$0xff] }
 0x604   :  { %11740 = vmatprep.subr.bf16.mxu1 %v14220_v14  ;;  %v14388_v39 = vcombine.high %v1536_v37, %v1540_v17  ;;  %v1528_v63 = vld [vmem:[%s20691_s1 + $0x2d58] sm:$0xff]  ;;  %v14387_v46 = vcombine.low %v1536_v37, %v1540_v17 }
 0x605   :  { %v1532_v28 = vld [vmem:[%s20691_s1 + $0x2d78] sm:$0xff] }
 0x606   :  { %11716 = vmatpush2.bf16.msra.mxu0 %v14155_v58  ;;  %v1464_v41 = vld [vmem:[%s20691_s1 + $0x2b58] sm:$0xff]  ;;  %v14379_v24 = vcombine.low %v1528_v63, %v1532_v28 }
 0x607   :  { %11741 = vmatpush1.bf16.msra.mxu1 %v14219_v49  ;;  %11717 = vmatprep.subr.bf16.mxu0 %v14148_v51  ;;  %v1468_v18 = vld [vmem:[%s20691_s1 + $0x2b78] sm:$0xff] }
 0x608   :  { %11742 = vmatprep.subr.bf16.mxu1 %v14212_v20  ;;  %v14316_v50 = vcombine.high %v1464_v41, %v1468_v18  ;;  %v1520_v55 = vld [vmem:[%s20691_s1 + $0x2d18] sm:$0xff]  ;;  %v14315_v10 = vcombine.low %v1464_v41, %v1468_v18 }
 0x609   :  { %v1512_v7 = vld [vmem:[%s20691_s1 + $0x2cd8] sm:$0xff] }
 0x60a   :  { %11718 = vmatpush2.bf16.msra.mxu0 %v14147_v1  ;;  %v1516_v52 = vld [vmem:[%s20691_s1 + $0x2cf8] sm:$0xff] }
 0x60b   :  { %11743 = vmatpush1.bf16.msra.mxu1 %v14211_v60  ;;  %11769 = vmatprep.subr.bf16.mxu0 %v14396_v22  ;;  %v1448_v42 = vld [vmem:[%s20691_s1 + $0x2ad8] sm:$0xff]  ;;  %v14364_v59 = vcombine.high %v1512_v7, %v1516_v52  ;;  %v14363_v27 = vcombine.low %v1512_v7, %v1516_v52 }
 0x60c   :  { %11744 = vmatprep.subr.bf16.mxu1 %v14332_v15  ;;  %v1452_v31 = vld [vmem:[%s20691_s1 + $0x2af8] sm:$0xff] }
 0x60d   :  { %v11475_v0 = vpop.f32.mrf.mxu0  ;;  %11720 = vmatmul.mubr.bf16.vlgmr.msra.gmra.mxu0 %v16051_v29  ;;  %v14380_v29 = vcombine.high %v1528_v63, %v1532_v28  ;;  %v14300_v14 = vcombine.high %v1448_v42, %v1452_v31  ;;  %v1504_v61 = vld [vmem:[%s20691_s1 + $0x2c98] sm:$0xff]  ;;  %v14299_v12 = vcombine.low %v1448_v42, %v1452_v31 }
 0x60e   :  { %v19994_v8 = vadd.f32 %v11475_v0, %v19896_v5  ;;  %11770 = vmatpush1.bf16.msra.mxu0 %v14395_v3  ;;  %11801 = vmatprep.mubr.bf16.mxu0 %v16071_v45  ;;  %v1524_v5 = vld [vmem:[%s20691_s1 + $0x2d38] sm:$0xff] }
 0x60f   :  { %11745 = vmatpush2.bf16.msra.mxu1 %v14331_v6  ;;  %v11477_v9 = vpop.f32.mrf.mxu0  ;;  %11771 = vmatprep.subr.bf16.mxu0 %v14388_v39  ;;  %v1456_v45 = vld [vmem:[%s20691_s1 + $0x2b18] sm:$0xff]  ;;  %v14372_v53 = vcombine.high %v1520_v55, %v1524_v5  ;;  %v14371_v43 = vcombine.low %v1520_v55, %v1524_v5 }
 0x610   :  { %v19998_v11 = vadd.f32 %v11477_v9, %v19900_v35  ;;  %11746 = vmatprep.subr.bf16.mxu1 %v14324_v40  ;;  %v1460_v35 = vld [vmem:[%s20691_s1 + $0x2b38] sm:$0xff] }
 0x611   :  { %v11479_v33 = vpop.f32.mrf.mxu0  ;;  %v14308_v2 = vcombine.high %v1456_v45, %v1460_v35  ;;  %v14307_v44 = vcombine.low %v1456_v45, %v1460_v35  ;;  %v1508_v58 = vld [vmem:[%s20691_s1 + $0x2cb8] sm:$0xff] }
 0x612   :  { %11772 = vmatpush1.bf16.msra.mxu0 %v14387_v46  ;;  %v1440_v49 = vld [vmem:[%s20691_s1 + $0x2a98] sm:$0xff]  ;;  %v14356_v16 = vcombine.high %v1504_v61, %v1508_v58  ;;  %v14355_v47 = vcombine.low %v1504_v61, %v1508_v58 }
 0x613   :  { %11747 = vmatpush2.bf16.msra.mxu1 %v14323_v4  ;;  %v11480_v30 = vpop.f32.mrf.mxu0  ;;  %11773 = vmatprep.subr.bf16.mxu0 %v14380_v29  ;;  %v1444_v51 = vld [vmem:[%s20691_s1 + $0x2ab8] sm:$0xff] }
 0x614   :  { %11748 = vmatprep.subr.bf16.mxu1 %v14316_v50  ;;  %v14292_v20 = vcombine.high %v1440_v49, %v1444_v51  ;;  %v1496_v36 = vld [vmem:[%s20691_s1 + $0x2c58] sm:$0xff]  ;;  %v14291_v19 = vcombine.low %v1440_v49, %v1444_v51 }
 0x615   :  { %v1500_v1 = vld [vmem:[%s20691_s1 + $0x2c78] sm:$0xff] }
 0x616   :  { %11774 = vmatpush1.bf16.msra.mxu0 %v14379_v24  ;;  %v1432_v60 = vld [vmem:[%s20691_s1 + $0x2a58] sm:$0xff]  ;;  %v14348_v37 = vcombine.high %v1496_v36, %v1500_v1  ;;  %v14347_v40 = vcombine.low %v1496_v36, %v1500_v1 }
 0x617   :  { %11749 = vmatpush2.bf16.msra.mxu1 %v14315_v10  ;;  %11775 = vmatprep.subr.bf16.mxu0 %v14372_v53  ;;  %v1436_v22 = vld [vmem:[%s20691_s1 + $0x2a78] sm:$0xff] }
 0x618   :  { %11750 = vmatprep.subr.bf16.mxu1 %v14308_v2  ;;  %v14284_v15 = vcombine.high %v1432_v60, %v1436_v22  ;;  %v1488_v17 = vld [vmem:[%s20691_s1 + $0x2c18] sm:$0xff]  ;;  %v14283_v63 = vcombine.low %v1432_v60, %v1436_v22 }
 0x619   :  { %v1492_v3 = vld [vmem:[%s20691_s1 + $0x2c38] sm:$0xff] }
 0x61a   :  { %11776 = vmatpush1.bf16.msra.mxu0 %v14371_v43  ;;  %v1424_v6 = vld [vmem:[%s20691_s1 + $0x2a18] sm:$0xff]  ;;  %v14340_v28 = vcombine.high %v1488_v17, %v1492_v3  ;;  %v14339_v4 = vcombine.low %v1488_v17, %v1492_v3 }
 0x61b   :  { %11751 = vmatpush2.bf16.msra.mxu1 %v14307_v44  ;;  %11777 = vmatprep.subr.bf16.mxu0 %v14364_v59  ;;  %v1428_v39 = vld [vmem:[%s20691_s1 + $0x2a38] sm:$0xff] }
 0x61c   :  { %11752 = vmatprep.subr.bf16.mxu1 %v14300_v14  ;;  %v14276_v0 = vcombine.high %v1424_v6, %v1428_v39  ;;  %v1608_v41 = vld [vmem:[%s20691_s1 + $0x2fd8] sm:$0xff]  ;;  %v14275_v29 = vcombine.low %v1424_v6, %v1428_v39 }
 0x61d   :  { %v1612_v18 = vld [vmem:[%s20691_s1 + $0x2ff8] sm:$0xff] }
 0x61e   :  { %11778 = vmatpush1.bf16.msra.mxu0 %v14363_v27  ;;  %v1672_v46 = vld [vmem:[%s20691_s1 + $0x31d8] sm:$0xff]  ;;  %v14460_v50 = vcombine.high %v1608_v41, %v1612_v18  ;;  %v14459_v24 = vcombine.low %v1608_v41, %v1612_v18 }
 0x61f   :  { %11753 = vmatpush2.bf16.msra.mxu1 %v14299_v12  ;;  %11779 = vmatprep.subr.bf16.mxu0 %v14356_v16  ;;  %v1676_v9 = vld [vmem:[%s20691_s1 + $0x31f8] sm:$0xff] }
 0x620   :  { %11754 = vmatprep.subr.bf16.mxu1 %v14292_v20  ;;  %v14524_v55 = vcombine.high %v1672_v46, %v1676_v9  ;;  %v1600_v5 = vld [vmem:[%s20691_s1 + $0x2f98] sm:$0xff]  ;;  %v14523_v30 = vcombine.low %v1672_v46, %v1676_v9 }
 0x621   :  { %v1604_v33 = vld [vmem:[%s20691_s1 + $0x2fb8] sm:$0xff] }
 0x622   :  { %11780 = vmatpush1.bf16.msra.mxu0 %v14355_v47  ;;  %v1664_v45 = vld [vmem:[%s20691_s1 + $0x3198] sm:$0xff]  ;;  %v14452_v10 = vcombine.high %v1600_v5, %v1604_v33  ;;  %v14451_v43 = vcombine.low %v1600_v5, %v1604_v33 }
 0x623   :  { %11755 = vmatpush2.bf16.msra.mxu1 %v14291_v19  ;;  %11781 = vmatprep.subr.bf16.mxu0 %v14348_v37  ;;  %v1668_v35 = vld [vmem:[%s20691_s1 + $0x31b8] sm:$0xff] }
 0x624   :  { %11756 = vmatprep.subr.bf16.mxu1 %v14284_v15  ;;  %v14516_v53 = vcombine.high %v1664_v45, %v1668_v35  ;;  %v1592_v2 = vld [vmem:[%s20691_s1 + $0x2f58] sm:$0xff]  ;;  %v14515_v59 = vcombine.low %v1664_v45, %v1668_v35 }
 0x625   :  { %v1596_v7 = vld [vmem:[%s20691_s1 + $0x2f78] sm:$0xff] }
 0x626   :  { %11782 = vmatpush1.bf16.msra.mxu0 %v14347_v40  ;;  %v1656_v52 = vld [vmem:[%s20691_s1 + $0x3158] sm:$0xff]  ;;  %v14444_v14 = vcombine.high %v1592_v2, %v1596_v7  ;;  %v14443_v16 = vcombine.low %v1592_v2, %v1596_v7 }
 0x627   :  { %11757 = vmatpush2.bf16.msra.mxu1 %v14283_v63  ;;  %11783 = vmatprep.subr.bf16.mxu0 %v14340_v28  ;;  %v1660_v42 = vld [vmem:[%s20691_s1 + $0x3178] sm:$0xff] }
 0x628   :  { %11758 = vmatprep.subr.bf16.mxu1 %v14276_v0  ;;  %v14508_v58 = vcombine.high %v1656_v52, %v1660_v42  ;;  %v1584_v49 = vld [vmem:[%s20691_s1 + $0x2f18] sm:$0xff]  ;;  %v14507_v20 = vcombine.low %v1656_v52, %v1660_v42 }
 0x629   :  { %v1648_v51 = vld [vmem:[%s20691_s1 + $0x3118] sm:$0xff] }
 0x62a   :  { %11784 = vmatpush1.bf16.msra.mxu0 %v14339_v4  ;;  %v1652_v27 = vld [vmem:[%s20691_s1 + $0x3138] sm:$0xff] }
 0x62b   :  { %11759 = vmatpush2.bf16.msra.mxu1 %v14275_v29  ;;  %11785 = vmatprep.subr.bf16.mxu0 %v14460_v50  ;;  %v1580_v60 = vld [vmem:[%s20691_s1 + $0x2ef8] sm:$0xff]  ;;  %v14499_v37 = vcombine.low %v1648_v51, %v1652_v27 }
 0x62c   :  { %11810 = vmatprep.subr.bf16.mxu1 %v14524_v55  ;;  %v1640_v22 = vld [vmem:[%s20691_s1 + $0x30d8] sm:$0xff] }
 0x62d   :  { %v1644_v47 = vld [vmem:[%s20691_s1 + $0x30f8] sm:$0xff] }
 0x62e   :  { %v11516_v31 = vpop.f32.mrf.mxu1  ;;  %11761 = vmatmul.mubr.bf16.vlgmr.msra.gmra.mxu1 %v16262_v13  ;;  %11786 = vmatpush2.bf16.msra.mxu0 %v14459_v24  ;;  %v1588_v13 = vld [vmem:[%s20691_s1 + $0x2f38] sm:$0xff]  ;;  %v14492_v17 = vcombine.high %v1640_v22, %v1644_v47  ;;  %v14491_v28 = vcombine.low %v1640_v22, %v1644_v47  ;;  %v14711_v22 = vld [vmem:[%s20694_s3 + $0x140] ss:$8 sps:$4 sm:$0xff]  }
 0x62f   :  { %v20098_v44 = vadd.f32 %v11516_v31, %v19994_v8  ;;  %11811 = vmatpush1.bf16.msra.mxu1 %v14523_v30  ;;  %11787 = vmatprep.subr.bf16.mxu0 %v14452_v10  ;;  %v14436_v36 = vcombine.high %v1584_v49, %v1588_v13  ;;  %v14435_v19 = vcombine.low %v1584_v49, %v1588_v13  ;;  %v1568_v3 = vld [vmem:[%s20691_s1 + $0x2e98] sm:$0xff] }
 0x630   :  { %v11518_v61 = vpop.f32.mrf.mxu1  ;;  %11812 = vmatprep.subr.bf16.mxu1 %v14516_v53  ;;  %11842 = vmatprep.mubr.bf16.mxu1 %v14885_v57  ;;  %v14500_v57 = vcombine.high %v1648_v51, %v1652_v27  ;;  %v1572_v6 = vld [vmem:[%s20691_s1 + $0x2eb8] sm:$0xff]  ;;  %v14696_v27 = vld [vmem:[%s20694_s3 + $0x60] ss:$8 sps:$4 sm:$0xff]  }
 0x631   :  { %v20108_v8 = vadd.f32 %v11518_v61, %v19998_v11  ;;  %v1576_v11 = vld [vmem:[%s20691_s1 + $0x2ed8] sm:$0xff]  ;;  %v14420_v0 = vcombine.high %v1568_v3, %v1572_v6  ;;  %v14419_v29 = vcombine.low %v1568_v3, %v1572_v6  ;;  %v14725_v3 = vld [vmem:[%s20694_s3 + $0x124] ss:$8 sps:$4 sm:$0xff]   ;;  %v14720_v6 = vld [vmem:[%s20694_s3 + $0x20] ss:$8 sps:$4 sm:$0xff]  }
 0x632   :  { %v11520_v12 = vpop.f32.mrf.mxu1  ;;  %11788 = vmatpush2.bf16.msra.mxu0 %v14451_v43  ;;  %v14428_v15 = vcombine.high %v1576_v11, %v1580_v60  ;;  %v1632_v39 = vld [vmem:[%s20691_s1 + $0x3098] sm:$0xff]  ;;  %v14427_v63 = vcombine.low %v1576_v11, %v1580_v60  ;;  %v11852_v43 = vmax.f32 %v17007_v23, 0.0  ;;  %v14713_v11 = vld [vmem:[%s20694_s3 + $0x144] ss:$8 sps:$4 sm:$0xff]   ;;  %v14708_v60 = vld [vmem:[%s20694_s3 + $0x40] ss:$8 sps:$4 sm:$0xff]  }
 0x633   :  { %11813 = vmatpush1.bf16.msra.mxu1 %v14515_v59  ;;  %11789 = vmatprep.subr.bf16.mxu0 %v14444_v14  ;;  %v1636_v40 = vld [vmem:[%s20691_s1 + $0x30b8] sm:$0xff]  ;;  %v11854_v59 = vmax.f32 %v18272_v54, 0.0  ;;  %v14701_v54 = vld [vmem:[%s20694_s3 + $0x164] ss:$8 sps:$4 sm:$0xff]  }
 0x634   :  { %v11521_v1 = vpop.f32.mrf.mxu1  ;;  %11814 = vmatprep.subr.bf16.mxu1 %v14508_v58  ;;  %v14484_v41 = vcombine.high %v1632_v39, %v1636_v40  ;;  %v1560_v18 = vld [vmem:[%s20691_s1 + $0x2e58] sm:$0xff]  ;;  %v14483_v50 = vcombine.low %v1632_v39, %v1636_v40  ;;  %v14698_v58 = vld [vmem:[%s20694_s3 + $0x64] ss:$8 sps:$4 sm:$0xff]   ;;  %v11860_v49 = vpack.c.bf16 %v11852_v43, %v11852_v43  ;;  %v14723_v39 = vld [vmem:[%s20694_s3 + $0x120] ss:$8 sps:$4 sm:$0xff]  }
 0x635   :  { %v1564_v46 = vld [vmem:[%s20691_s1 + $0x2e78] sm:$0xff]  ;;  %v11862_v13 = vpack.c.bf16 %v11854_v59, %v11854_v59  ;;  %v14758_v43 = vld [vmem:[%s20694_s3 + $0xc4] ss:$8 sps:$4 sm:$0xff]  }
 0x636   :  { %11790 = vmatpush2.bf16.msra.mxu0 %v14443_v16  ;;  %v1624_v9 = vld [vmem:[%s20691_s1 + $0x3058] sm:$0xff]  ;;  %v14412_v55 = vcombine.high %v1560_v18, %v1564_v46  ;;  %v14411_v30 = vcombine.low %v1560_v18, %v1564_v46  ;;  %v14737_v18 = vld [vmem:[%s20694_s3 + $0x104] ss:$8 sps:$4 sm:$0xff]   ;;  %v14732_v46 = vld [vmem:[%s20694_s3] ss:$8 sps:$4 sm:$0xff]  }
 0x637   :  { %11815 = vmatpush1.bf16.msra.mxu1 %v14507_v20  ;;  %11791 = vmatprep.subr.bf16.mxu0 %v14436_v36  ;;  %v1628_v4 = vld [vmem:[%s20691_s1 + $0x3078] sm:$0xff] }
 0x638   :  { %11816 = vmatprep.subr.bf16.mxu1 %v14500_v57  ;;  %v14476_v5 = vcombine.high %v1624_v9, %v1628_v4  ;;  %v1552_v33 = vld [vmem:[%s20691_s1 + $0x2e18] sm:$0xff]  ;;  %v14475_v10 = vcombine.low %v1624_v9, %v1628_v4  ;;  %v14710_v57 = vld [vmem:[%s20694_s3 + $0x44] ss:$8 sps:$4 sm:$0xff]   ;;  %v14735_v9 = vld [vmem:[%s20694_s3 + $0x100] ss:$8 sps:$4 sm:$0xff]  }
 0x639   :  { %v1556_v45 = vld [vmem:[%s20691_s1 + $0x2e38] sm:$0xff] }
 0x63a   :  { %11792 = vmatpush2.bf16.msra.mxu0 %v14435_v19  ;;  %v1616_v35 = vld [vmem:[%s20691_s1 + $0x3018] sm:$0xff]  ;;  %v14404_v53 = vcombine.high %v1552_v33, %v1556_v45  ;;  %v14403_v7 = vcombine.low %v1552_v33, %v1556_v45  ;;  %v14749_v33 = vld [vmem:[%s20694_s3 + $0x1e4] ss:$8 sps:$4 sm:$0xff]  }
 0x63b   :  { %11817 = vmatpush1.bf16.msra.mxu1 %v14499_v37  ;;  %11793 = vmatprep.subr.bf16.mxu0 %v14428_v15  ;;  %v1620_v24 = vld [vmem:[%s20691_s1 + $0x3038] sm:$0xff] }
 0x63c   :  { %11818 = vmatprep.subr.bf16.mxu1 %v14492_v17  ;;  %v14468_v2 = vcombine.high %v1616_v35, %v1620_v24  ;;  %v14467_v52 = vcombine.low %v1616_v35, %v1620_v24  ;;  %v14692_v42 = vld [vmem:[%s20694_s3 + $0x74] ss:$8 sps:$4 sm:$0xff]   ;;  %v14690_v14 = vld [vmem:[%s20694_s3 + $0x70] ss:$8 sps:$4 sm:$0xff]   ;;  %v14722_v17 = vld [vmem:[%s20694_s3 + $0x24] ss:$8 sps:$4 sm:$0xff]  }
 0x63d   :  { %v14695_v31 = vld [vmem:[%s20694_s3 + $0x174] ss:$8 sps:$4 sm:$0xff]   ;;  %v14693_v61 = vld [vmem:[%s20694_s3 + $0x170] ss:$8 sps:$4 sm:$0xff]   ;;  %v14744_v35 = vld [vmem:[%s20694_s3 + $0xe0] ss:$8 sps:$4 sm:$0xff]  }
 0x63e   :  { %11794 = vmatpush2.bf16.msra.mxu0 %v14427_v63  ;;  %v14704_v16 = vld [vmem:[%s20694_s3 + $0x54] ss:$8 sps:$4 sm:$0xff]   ;;  %v14702_v36 = vld [vmem:[%s20694_s3 + $0x50] ss:$8 sps:$4 sm:$0xff]  }
 0x63f   :  { %11819 = vmatpush1.bf16.msra.mxu1 %v14491_v28  ;;  %11795 = vmatprep.subr.bf16.mxu0 %v14420_v0  ;;  %v14716_v47 = vld [vmem:[%s20694_s3 + $0x34] ss:$8 sps:$4 sm:$0xff]   ;;  %v14714_v37 = vld [vmem:[%s20694_s3 + $0x30] ss:$8 sps:$4 sm:$0xff]  }
 0x640   :  { %11820 = vmatprep.subr.bf16.mxu1 %v14484_v41  ;;  %v14719_v19 = vld [vmem:[%s20694_s3 + $0x134] ss:$8 sps:$4 sm:$0xff]   ;;  %v14717_v15 = vld [vmem:[%s20694_s3 + $0x130] ss:$8 sps:$4 sm:$0xff]   ;;  %v14734_v41 = vld [vmem:[%s20694_s3 + $0x4] ss:$8 sps:$4 sm:$0xff]  }
 0x641   :  { %v14728_v40 = vld [vmem:[%s20694_s3 + $0x14] ss:$8 sps:$4 sm:$0xff]   ;;  %v14726_v28 = vld [vmem:[%s20694_s3 + $0x10] ss:$8 sps:$4 sm:$0xff]  }
 0x642   :  { %11796 = vmatpush2.bf16.msra.mxu0 %v14419_v29  ;;  %v14731_v63 = vld [vmem:[%s20694_s3 + $0x114] ss:$8 sps:$4 sm:$0xff]   ;;  %v14729_v0 = vld [vmem:[%s20694_s3 + $0x110] ss:$8 sps:$4 sm:$0xff]  }
 0x643   :  { %11821 = vmatpush1.bf16.msra.mxu1 %v14483_v50  ;;  %11797 = vmatprep.subr.bf16.mxu0 %v14412_v55  ;;  %v14740_v4 = vld [vmem:[%s20694_s3 + $0xf4] ss:$8 sps:$4 sm:$0xff]   ;;  %v14738_v50 = vld [vmem:[%s20694_s3 + $0xf0] ss:$8 sps:$4 sm:$0xff]  }
 0x644   :  { %11822 = vmatprep.subr.bf16.mxu1 %v14476_v5  ;;  %v14743_v29 = vld [vmem:[%s20694_s3 + $0x1f4] ss:$8 sps:$4 sm:$0xff]   ;;  %v14741_v55 = vld [vmem:[%s20694_s3 + $0x1f0] ss:$8 sps:$4 sm:$0xff]   ;;  %v14746_v5 = vld [vmem:[%s20694_s3 + $0xe4] ss:$8 sps:$4 sm:$0xff]  }
 0x646   :  { %11798 = vmatpush2.bf16.msra.mxu0 %v14411_v30  ;;  %v14747_v30 = vld [vmem:[%s20694_s3 + $0x1e0] ss:$8 sps:$4 sm:$0xff]  }
 0x647   :  { %11823 = vmatpush1.bf16.msra.mxu1 %v14475_v10  ;;  %11799 = vmatprep.subr.bf16.mxu0 %v14404_v53  ;;  %v14752_v10 = vld [vmem:[%s20694_s3 + $0xd4] ss:$8 sps:$4 sm:$0xff]  }
 0x648   :  { %11824 = vmatprep.subr.bf16.mxu1 %v14468_v2  ;;  %v14755_v2 = vld [vmem:[%s20694_s3 + $0x1d4] ss:$8 sps:$4 sm:$0xff]  }
 0x64a   :  { %11800 = vmatpush2.bf16.msra.mxu0 %v14403_v7 }
 0x64b   :  { %11825 = vmatpush1.bf16.msra.mxu1 %v14467_v52  ;;  %12647 = vmatprep.subr.bf16.mxu0 %v14692_v42  ;;  %v14750_v42 = vld [vmem:[%s20694_s3 + $0xd0] ss:$8 sps:$4 sm:$0xff]  }
 0x64c   :  { %12688 = vmatprep.subr.bf16.mxu1 %v14695_v31  ;;  %v14753_v31 = vld [vmem:[%s20694_s3 + $0x1d0] ss:$8 sps:$4 sm:$0xff]  }
 0x64d   :  { %v11557_v23 = vpop.f32.mrf.mxu0  ;;  %11802 = vmatmul.mubr.bf16.vlgmr.msra.gmra.mxu0 %v16270_v21  ;;  %v14699_v21 = vld [vmem:[%s20694_s3 + $0x160] ss:$8 sps:$4 sm:$0xff]  }
 0x64e   :  { %v20186_v51 = vadd.f32 %v11557_v23, %v20098_v44  ;;  %11843 = vmatmul.mubr.bf16.vlgmr.msra.gmra.mxu1 %v16375_v32  ;;  %12648 = vmatpush1.bf16.msra.mxu0 %v14690_v14  ;;  %v14707_v32 = vld [vmem:[%s20694_s3 + $0x154] ss:$8 sps:$4 sm:$0xff]   ;;  %v14761_v14 = vld [vmem:[%s20694_s3 + $0x1c4] ss:$8 sps:$4 sm:$0xff]  }
 0x64f   :  { %12679 = vmatprep.mubr.bf16.mxu0 %v11860_v49  ;;  %12689 = vmatpush1.bf16.msra.mxu1 %v14693_v61  ;;  %v11559_v12 = vpop.f32.mrf.mxu0  ;;  %v14756_v61 = vld [vmem:[%s20694_s3 + $0xc0] ss:$8 sps:$4 sm:$0xff]   ;;  %v14764_v49 = vld [vmem:[%s20694_s3 + $0xb4] ss:$8 sps:$4 sm:$0xff]  }
 0x650   :  { %12720 = vmatprep.mubr.bf16.mxu1 %v11862_v13  ;;  %v20199_v44 = vadd.f32 %v11559_v12, %v20108_v8  ;;  %12649 = vmatprep.subr.bf16.mxu0 %v14698_v58  ;;  %v14705_v8 = vld [vmem:[%s20694_s3 + $0x150] ss:$8 sps:$4 sm:$0xff]   ;;  %v14759_v58 = vld [vmem:[%s20694_s3 + $0x1c0] ss:$8 sps:$4 sm:$0xff]   ;;  %v14767_v23 = vld [vmem:[%s20694_s3 + $0x1b4] ss:$8 sps:$4 sm:$0xff]  }
 0x651   :  { %v11561_v20 = vpop.f32.mrf.mxu0  ;;  %12690 = vmatprep.subr.bf16.mxu1 %v14701_v54  ;;  %v14762_v54 = vld [vmem:[%s20694_s3 + $0xb0] ss:$8 sps:$4 sm:$0xff]   ;;  %v14768_v12 = vld [vmem:[%s20694_s3 + $0xa0] ss:$8 sps:$4 sm:$0xff]  }
 0x652   :  { %12650 = vmatpush1.bf16.msra.mxu0 %v14696_v27  ;;  %v14765_v13 = vld [vmem:[%s20694_s3 + $0x1b0] ss:$8 sps:$4 sm:$0xff]   ;;  %v14773_v27 = vld [vmem:[%s20694_s3 + $0x1a4] ss:$8 sps:$4 sm:$0xff]  }
 0x653   :  { %12691 = vmatpush1.bf16.msra.mxu1 %v14699_v21  ;;  %v11562_v1 = vpop.f32.mrf.mxu0  ;;  %12651 = vmatprep.subr.bf16.mxu0 %v14704_v16  ;;  %v14771_v21 = vld [vmem:[%s20694_s3 + $0x1a0] ss:$8 sps:$4 sm:$0xff]   ;;  %v14776_v16 = vld [vmem:[%s20694_s3 + $0x94] ss:$8 sps:$4 sm:$0xff]   ;;  %v14777_v20 = vld [vmem:[%s20694_s3 + $0x190] ss:$8 sps:$4 sm:$0xff]  }
 0x654   :  { %12692 = vmatprep.subr.bf16.mxu1 %v14707_v32  ;;  %v14774_v32 = vld [vmem:[%s20694_s3 + $0x90] ss:$8 sps:$4 sm:$0xff]   ;;  %v14785_v1 = vld [vmem:[%s20694_s3 + $0x184] ss:$8 sps:$4 sm:$0xff]  }
 0x656   :  { %12652 = vmatpush1.bf16.msra.mxu0 %v14702_v36  ;;  %v14782_v36 = vld [vmem:[%s20694_s3 + $0x84] ss:$8 sps:$4 sm:$0xff]  }
 0x657   :  { %12693 = vmatpush1.bf16.msra.mxu1 %v14705_v8  ;;  %12653 = vmatprep.subr.bf16.mxu0 %v14710_v57  ;;  %v14780_v8 = vld [vmem:[%s20694_s3 + $0x80] ss:$8 sps:$4 sm:$0xff]   ;;  %v11851_v57 = vmax.f32 %v17003_v25, 0.0  ;;  %v14786_v25 = vld [vmem:[%s20694_s3 + $0x270] ss:$8 sps:$4 sm:$0xff]  }
 0x658   :  { %12694 = vmatprep.subr.bf16.mxu1 %v14713_v11  ;;  %v14783_v11 = vld [vmem:[%s20694_s3 + $0x180] ss:$8 sps:$4 sm:$0xff]  }
 0x65a   :  { %12654 = vmatpush1.bf16.msra.mxu0 %v14708_v60  ;;  %v14788_v60 = vld [vmem:[%s20694_s3 + $0x274] ss:$8 sps:$4 sm:$0xff]  }
 0x65b   :  { %12695 = vmatpush1.bf16.msra.mxu1 %v14711_v22  ;;  %12655 = vmatprep.subr.bf16.mxu0 %v14716_v47  ;;  %v11853_v22 = vmax.f32 %v18255_v34, 0.0  ;;  %v14836_v47 = vld [vmem:[%s20694_s3 + $0x374] ss:$8 sps:$4 sm:$0xff]  }
 0x65c   :  { %12696 = vmatprep.subr.bf16.mxu1 %v14719_v19  ;;  %v11856_v19 = vmax.f32 %v19579_v48, 0.0 }
 0x65d   :  { %v11861_v34 = vpack.c.bf16 %v11853_v22, %v11853_v22  ;;  %v14864_v22 = vld [vmem:[%s20694_s3 + $0x3d0] ss:$8 sps:$4 sm:$0xff]  }
 0x65e   :  { %12656 = vmatpush1.bf16.msra.mxu0 %v14714_v37  ;;  %v11859_v37 = vpack.c.bf16 %v11851_v57, %v11851_v57  ;;  %v14816_v57 = vld [vmem:[%s20694_s3 + $0x2d0] ss:$8 sps:$4 sm:$0xff]  }
 0x65f   :  { %12697 = vmatpush1.bf16.msra.mxu1 %v14717_v15  ;;  %12657 = vmatprep.subr.bf16.mxu0 %v14722_v17  ;;  %v14791_v15 = vld [vmem:[%s20694_s3 + $0x264] ss:$8 sps:$4 sm:$0xff]   ;;  %v14834_v17 = vld [vmem:[%s20694_s3 + $0x370] ss:$8 sps:$4 sm:$0xff]  }
 0x660   :  { %12698 = vmatprep.subr.bf16.mxu1 %v14725_v3  ;;  %v11864_v3 = vpack.c.bf16 %v11856_v19, %v11856_v19  ;;  %v14819_v19 = vld [vmem:[%s20694_s3 + $0x2c0] ss:$8 sps:$4 sm:$0xff]  }
 0x662   :  { %12658 = vmatpush1.bf16.msra.mxu0 %v14720_v6  ;;  %v14839_v6 = vld [vmem:[%s20694_s3 + $0x364] ss:$8 sps:$4 sm:$0xff]  }
 0x663   :  { %12699 = vmatpush1.bf16.msra.mxu1 %v14723_v39  ;;  %12659 = vmatprep.subr.bf16.mxu0 %v14728_v40  ;;  %v14789_v40 = vld [vmem:[%s20694_s3 + $0x260] ss:$8 sps:$4 sm:$0xff]  }
 0x664   :  { %12700 = vmatprep.subr.bf16.mxu1 %v14731_v63 }
 0x666   :  { %12660 = vmatpush1.bf16.msra.mxu0 %v14726_v28  ;;  %v14794_v28 = vld [vmem:[%s20694_s3 + $0x254] ss:$8 sps:$4 sm:$0xff]  }
 0x667   :  { %12701 = vmatpush1.bf16.msra.mxu1 %v14729_v0  ;;  %12661 = vmatprep.subr.bf16.mxu0 %v14734_v41  ;;  %v14837_v41 = vld [vmem:[%s20694_s3 + $0x360] ss:$8 sps:$4 sm:$0xff]  }
 0x668   :  { %12702 = vmatprep.subr.bf16.mxu1 %v14737_v18 }
 0x66a   :  { %12662 = vmatpush1.bf16.msra.mxu0 %v14732_v46  ;;  %v14842_v46 = vld [vmem:[%s20694_s3 + $0x354] ss:$8 sps:$4 sm:$0xff]  }
 0x66b   :  { %12703 = vmatpush1.bf16.msra.mxu1 %v14735_v9  ;;  %12663 = vmatprep.subr.bf16.mxu0 %v14740_v4  ;;  %v14792_v9 = vld [vmem:[%s20694_s3 + $0x250] ss:$8 sps:$4 sm:$0xff]  }
 0x66c   :  { %12704 = vmatprep.subr.bf16.mxu1 %v14743_v29  ;;  %v14797_v29 = vld [vmem:[%s20694_s3 + $0x244] ss:$8 sps:$4 sm:$0xff]  }
 0x66e   :  { %v11598_v45 = vpop.f32.mrf.mxu1  ;;  %12664 = vmatpush2.bf16.msra.mxu0 %v14738_v50  ;;  %v14840_v50 = vld [vmem:[%s20694_s3 + $0x350] ss:$8 sps:$4 sm:$0xff]  }
 0x66f   :  { %v20292_v24 = vadd.f32 %v11598_v45, %v20186_v51  ;;  %12705 = vmatpush2.bf16.msra.mxu1 %v14741_v55  ;;  %12665 = vmatprep.subr.bf16.mxu0 %v14746_v5  ;;  %v14770_v51 = vld [vmem:[%s20694_s3 + $0xa4] ss:$8 sps:$4 sm:$0xff]   ;;  %v14795_v5 = vld [vmem:[%s20694_s3 + $0x240] ss:$8 sps:$4 sm:$0xff]  }
 0x670   :  { %v11600_v53 = vpop.f32.mrf.mxu1  ;;  %12706 = vmatprep.subr.bf16.mxu1 %v14749_v33  ;;  %v14845_v55 = vld [vmem:[%s20694_s3 + $0x344] ss:$8 sps:$4 sm:$0xff]   ;;  %v14800_v33 = vld [vmem:[%s20694_s3 + $0x234] ss:$8 sps:$4 sm:$0xff]   ;;  %v14843_v45 = vld [vmem:[%s20694_s3 + $0x340] ss:$8 sps:$4 sm:$0xff]  }
 0x671   :  { %v20304_v7 = vadd.f32 %v11600_v53, %v20199_v44  ;;  %v14779_v44 = vld [vmem:[%s20694_s3 + $0x194] ss:$8 sps:$4 sm:$0xff]   ;;  %v14851_v53 = vld [vmem:[%s20694_s3 + $0x324] ss:$8 sps:$4 sm:$0xff]  }
 0x672   :  { %v11602_v52 = vpop.f32.mrf.mxu1  ;;  %12666 = vmatpush2.bf16.msra.mxu0 %v14744_v35  ;;  %v14848_v35 = vld [vmem:[%s20694_s3 + $0x334] ss:$8 sps:$4 sm:$0xff]  }
 0x673   :  { %12707 = vmatpush2.bf16.msra.mxu1 %v14747_v30  ;;  %12667 = vmatprep.subr.bf16.mxu0 %v14752_v10  ;;  %v14803_v30 = vld [vmem:[%s20694_s3 + $0x224] ss:$8 sps:$4 sm:$0xff]   ;;  %v14846_v10 = vld [vmem:[%s20694_s3 + $0x330] ss:$8 sps:$4 sm:$0xff]   ;;  %v14849_v52 = vld [vmem:[%s20694_s3 + $0x320] ss:$8 sps:$4 sm:$0xff]  }
 0x674   :  { %v11603_v59 = vpop.f32.mrf.mxu1  ;;  %12708 = vmatprep.subr.bf16.mxu1 %v14755_v2  ;;  %v14801_v2 = vld [vmem:[%s20694_s3 + $0x220] ss:$8 sps:$4 sm:$0xff]  }
 0x675   :  { %v14852_v59 = vld [vmem:[%s20694_s3 + $0x310] ss:$8 sps:$4 sm:$0xff]  }
 0x676   :  { %12668 = vmatpush2.bf16.msra.mxu0 %v14750_v42  ;;  %v14854_v42 = vld [vmem:[%s20694_s3 + $0x314] ss:$8 sps:$4 sm:$0xff]  }
 0x677   :  { %12709 = vmatpush2.bf16.msra.mxu1 %v14753_v31  ;;  %12669 = vmatprep.subr.bf16.mxu0 %v14758_v43  ;;  %v14804_v31 = vld [vmem:[%s20694_s3 + $0x210] ss:$8 sps:$4 sm:$0xff]   ;;  %v14809_v43 = vld [vmem:[%s20694_s3 + $0x204] ss:$8 sps:$4 sm:$0xff]  }
 0x678   :  { %12710 = vmatprep.subr.bf16.mxu1 %v14761_v14  ;;  %v14857_v14 = vld [vmem:[%s20694_s3 + $0x304] ss:$8 sps:$4 sm:$0xff]  }
 0x67a   :  { %12670 = vmatpush2.bf16.msra.mxu0 %v14756_v61  ;;  %v14807_v61 = vld [vmem:[%s20694_s3 + $0x200] ss:$8 sps:$4 sm:$0xff]  }
 0x67b   :  { %12711 = vmatpush2.bf16.msra.mxu1 %v14759_v58  ;;  %12671 = vmatprep.subr.bf16.mxu0 %v14764_v49  ;;  %v14812_v58 = vld [vmem:[%s20694_s3 + $0x2f4] ss:$8 sps:$4 sm:$0xff]   ;;  %v14855_v49 = vld [vmem:[%s20694_s3 + $0x300] ss:$8 sps:$4 sm:$0xff]  }
 0x67c   :  { %12712 = vmatprep.subr.bf16.mxu1 %v14767_v23  ;;  %v14860_v23 = vld [vmem:[%s20694_s3 + $0x3f4] ss:$8 sps:$4 sm:$0xff]  }
 0x67e   :  { %12672 = vmatpush2.bf16.msra.mxu0 %v14762_v54  ;;  %v14810_v54 = vld [vmem:[%s20694_s3 + $0x2f0] ss:$8 sps:$4 sm:$0xff]  }
 0x67f   :  { %12713 = vmatpush2.bf16.msra.mxu1 %v14765_v13  ;;  %12673 = vmatprep.subr.bf16.mxu0 %v14770_v51  ;;  %v14815_v13 = vld [vmem:[%s20694_s3 + $0x2e4] ss:$8 sps:$4 sm:$0xff]   ;;  %v14858_v51 = vld [vmem:[%s20694_s3 + $0x3f0] ss:$8 sps:$4 sm:$0xff]  }
 0x680   :  { %12714 = vmatprep.subr.bf16.mxu1 %v14773_v27  ;;  %v14863_v27 = vld [vmem:[%s20694_s3 + $0x3e4] ss:$8 sps:$4 sm:$0xff]  }
 0x682   :  { %12674 = vmatpush2.bf16.msra.mxu0 %v14768_v12 }
 0x683   :  { %12715 = vmatpush2.bf16.msra.mxu1 %v14771_v21  ;;  %12675 = vmatprep.subr.bf16.mxu0 %v14776_v16  ;;  %v14813_v21 = vld [vmem:[%s20694_s3 + $0x2e0] ss:$8 sps:$4 sm:$0xff]  }
 0x684   :  { %12716 = vmatprep.subr.bf16.mxu1 %v14779_v44  ;;  %v14818_v44 = vld [vmem:[%s20694_s3 + $0x2d4] ss:$8 sps:$4 sm:$0xff]  }
 0x686   :  { %12676 = vmatpush2.bf16.msra.mxu0 %v14774_v32 }
 0x687   :  { %12717 = vmatpush2.bf16.msra.mxu1 %v14777_v20  ;;  %12677 = vmatprep.subr.bf16.mxu0 %v14782_v36  ;;  %v14861_v20 = vld [vmem:[%s20694_s3 + $0x3e0] ss:$8 sps:$4 sm:$0xff]  }
 0x688   :  { %12718 = vmatprep.subr.bf16.mxu1 %v14785_v1  ;;  %v14866_v1 = vld [vmem:[%s20694_s3 + $0x3d4] ss:$8 sps:$4 sm:$0xff]  }
 0x68a   :  { %12678 = vmatpush2.bf16.msra.mxu0 %v14780_v8 }
 0x68b   :  { %12719 = vmatpush2.bf16.msra.mxu1 %v14783_v11  ;;  %12729 = vmatprep.subr.bf16.mxu0 %v14788_v60  ;;  %v14821_v11 = vld [vmem:[%s20694_s3 + $0x2c4] ss:$8 sps:$4 sm:$0xff]  }
 0x68c   :  { %12770 = vmatprep.subr.bf16.mxu1 %v14836_v47  ;;  %v14869_v47 = vld [vmem:[%s20694_s3 + $0x3c4] ss:$8 sps:$4 sm:$0xff]  }
 0x68d   :  { %v11639_v48 = vpop.f32.mrf.mxu0  ;;  %12680 = vmatmul.mubr.bf16.vlgmr.msra.gmra.mxu0 %v11859_v37  ;;  %v14867_v37 = vld [vmem:[%s20694_s3 + $0x3c0] ss:$8 sps:$4 sm:$0xff]  }
 0x68e   :  { %v20394_v39 = vadd.f32 %v11639_v48, %v20292_v24  ;;  %12721 = vmatmul.mubr.bf16.vlgmr.msra.gmra.mxu1 %v11861_v34  ;;  %12730 = vmatpush1.bf16.msra.mxu0 %v14786_v25  ;;  %v14798_v24 = vld [vmem:[%s20694_s3 + $0x230] ss:$8 sps:$4 sm:$0xff]   ;;  %v14824_v25 = vld [vmem:[%s20694_s3 + $0x2b4] ss:$8 sps:$4 sm:$0xff]   ;;  %v14875_v48 = vld [vmem:[%s20694_s3 + $0x3a4] ss:$8 sps:$4 sm:$0xff]  }
 0x68f   :  { %12761 = vmatprep.mubr.bf16.mxu0 %v11864_v3  ;;  %v11641_v63 = vpop.f32.mrf.mxu0  ;;  %12731 = vmatprep.subr.bf16.mxu0 %v14791_v15  ;;  %v14872_v15 = vld [vmem:[%s20694_s3 + $0x3b4] ss:$8 sps:$4 sm:$0xff]   ;;  %v14822_v34 = vld [vmem:[%s20694_s3 + $0x2b0] ss:$8 sps:$4 sm:$0xff]  }
 0x690   :  { %v20403_v0 = vadd.f32 %v11641_v63, %v20304_v7  ;;  %12771 = vmatpush1.bf16.msra.mxu1 %v14834_v17  ;;  %v14806_v7 = vld [vmem:[%s20694_s3 + $0x214] ss:$8 sps:$4 sm:$0xff]   ;;  %v14827_v17 = vld [vmem:[%s20694_s3 + $0x2a4] ss:$8 sps:$4 sm:$0xff]   ;;  %v14870_v3 = vld [vmem:[%s20694_s3 + $0x3b0] ss:$8 sps:$4 sm:$0xff]  }
 0x691   :  { %v11643_v18 = vpop.f32.mrf.mxu0  ;;  %12772 = vmatprep.subr.bf16.mxu1 %v14839_v6  ;;  %v14825_v6 = vld [vmem:[%s20694_s3 + $0x2a0] ss:$8 sps:$4 sm:$0xff]   ;;  %v14878_v63 = vld [vmem:[%s20694_s3 + $0x394] ss:$8 sps:$4 sm:$0xff]  }
 0x692   :  { %12732 = vmatpush1.bf16.msra.mxu0 %v14789_v40  ;;  %v14873_v40 = vld [vmem:[%s20694_s3 + $0x3a0] ss:$8 sps:$4 sm:$0xff]   ;;  %v14881_v18 = vld [vmem:[%s20694_s3 + $0x384] ss:$8 sps:$4 sm:$0xff]  }
 0x693   :  { %v11644_v4 = vpop.f32.mrf.mxu0  ;;  %12733 = vmatprep.subr.bf16.mxu0 %v14794_v28  ;;  %v14828_v28 = vld [vmem:[%s20694_s3 + $0x290] ss:$8 sps:$4 sm:$0xff]  }
 0x694   :  { %12773 = vmatpush1.bf16.msra.mxu1 %v14837_v41  ;;  %v14876_v41 = vld [vmem:[%s20694_s3 + $0x390] ss:$8 sps:$4 sm:$0xff]   ;;  %v14879_v4 = vld [vmem:[%s20694_s3 + $0x380] ss:$8 sps:$4 sm:$0xff]  }
 0x695   :  { %12774 = vmatprep.subr.bf16.mxu1 %v14842_v46  ;;  %v14831_v46 = vld [vmem:[%s20694_s3 + $0x280] ss:$8 sps:$4 sm:$0xff]  }
 0x696   :  { %12734 = vmatpush1.bf16.msra.mxu0 %v14792_v9  ;;  %v11855_v9 = vmax.f32 %v19575_v62, 0.0 }
 0x697   :  { %12735 = vmatprep.subr.bf16.mxu0 %v14797_v29 }
 0x698   :  { %12775 = vmatpush1.bf16.msra.mxu1 %v14840_v50  ;;  %v11863_v29 = vpack.c.bf16 %v11855_v9, %v11855_v9 }
 0x699   :  { %12776 = vmatprep.subr.bf16.mxu1 %v14845_v55 }
 0x69a   :  { %12736 = vmatpush1.bf16.msra.mxu0 %v14795_v5 }
 0x69b   :  { %12737 = vmatprep.subr.bf16.mxu0 %v14800_v33 }
 0x69c   :  { %12777 = vmatpush1.bf16.msra.mxu1 %v14843_v45 }
 0x69d   :  { %12778 = vmatprep.subr.bf16.mxu1 %v14848_v35 }
 0x69e   :  { %12738 = vmatpush1.bf16.msra.mxu0 %v14798_v24 }
 0x69f   :  { %12739 = vmatprep.subr.bf16.mxu0 %v14803_v30 }
 0x6a0   :  { %12779 = vmatpush1.bf16.msra.mxu1 %v14846_v10 }
 0x6a1   :  { %12780 = vmatprep.subr.bf16.mxu1 %v14851_v53 }
 0x6a2   :  { %12740 = vmatpush1.bf16.msra.mxu0 %v14801_v2 }
 0x6a3   :  { %12741 = vmatprep.subr.bf16.mxu0 %v14806_v7 }
 0x6a4   :  { %12781 = vmatpush1.bf16.msra.mxu1 %v14849_v52 }
 0x6a5   :  { %12782 = vmatprep.subr.bf16.mxu1 %v14854_v42 }
 0x6a6   :  { %12742 = vmatpush1.bf16.msra.mxu0 %v14804_v31 }
 0x6a7   :  { %12743 = vmatprep.subr.bf16.mxu0 %v14809_v43 }
 0x6a8   :  { %12783 = vmatpush1.bf16.msra.mxu1 %v14852_v59 }
 0x6a9   :  { %12784 = vmatprep.subr.bf16.mxu1 %v14857_v14 }
 0x6aa   :  { %12744 = vmatpush1.bf16.msra.mxu0 %v14807_v61 }
 0x6ab   :  { %12745 = vmatprep.subr.bf16.mxu0 %v14812_v58 }
 0x6ac   :  { %12785 = vmatpush1.bf16.msra.mxu1 %v14855_v49 }
 0x6ad   :  { %12786 = vmatprep.subr.bf16.mxu1 %v14860_v23 }
 0x6ae   :  { %v11680_v12 = vpop.f32.mrf.mxu1  ;;  %12746 = vmatpush2.bf16.msra.mxu0 %v14810_v54 }
 0x6af   :  { %v20499_v16 = vadd.f32 %v11680_v12, %v20394_v39  ;;  %12747 = vmatprep.subr.bf16.mxu0 %v14815_v13  ;;  %v14830_v39 = vld [vmem:[%s20694_s3 + $0x294] ss:$8 sps:$4 sm:$0xff]  }
 0x6b0   :  { %v11682_v32 = vpop.f32.mrf.mxu1  ;;  %12787 = vmatpush2.bf16.msra.mxu1 %v14858_v51  ;;  %v12826_v12 = vld [vmem:[%s20695_s5 + $0x78] sm:$0xff] }
 0x6b1   :  { %v20508_v36 = vadd.f32 %v11682_v32, %v20403_v0  ;;  %12788 = vmatprep.subr.bf16.mxu1 %v14863_v27  ;;  %v14833_v0 = vld [vmem:[%s20694_s3 + $0x284] ss:$8 sps:$4 sm:$0xff]   ;;  %v12842_v27 = vld [vmem:[%s20695_s5 + $0xf8] sm:$0xff] }
 0x6b2   :  { %v11684_v8 = vpop.f32.mrf.mxu1  ;;  %12748 = vmatpush2.bf16.msra.mxu0 %v14813_v21  ;;  %v12841_v21 = vld [vmem:[%s20695_s5 + $0xf0] sm:$0xff]  ;;  %v12840_v32 = vld [vmem:[%s20695_s5 + $0xe8] sm:$0xff] }
 0x6b3   :  { %12749 = vmatprep.subr.bf16.mxu0 %v14818_v44  ;;  %v12823_v8 = vld [vmem:[%s20695_s5 + $0x60] sm:$0xff] }
 0x6b4   :  { %v11685_v60 = vpop.f32.mrf.mxu1  ;;  %12789 = vmatpush2.bf16.msra.mxu1 %v14861_v20 }
 0x6b5   :  { %12790 = vmatprep.subr.bf16.mxu1 %v14866_v1  ;;  %v12839_v1 = vld [vmem:[%s20695_s5 + $0xe0] sm:$0xff]  ;;  %v12837_v60 = vld [vmem:[%s20695_s5 + $0xd0] sm:$0xff] }
 0x6b6   :  { %12750 = vmatpush2.bf16.msra.mxu0 %v14816_v57  ;;  %v12838_v57 = vld [vmem:[%s20695_s5 + $0xd8] sm:$0xff] }
 0x6b7   :  { %12751 = vmatprep.subr.bf16.mxu0 %v14821_v11  ;;  %v12822_v11 = vld [vmem:[%s20695_s5 + $0x58] sm:$0xff] }
 0x6b8   :  { %12791 = vmatpush2.bf16.msra.mxu1 %v14864_v22  ;;  %v12821_v22 = vld [vmem:[%s20695_s5 + $0x50] sm:$0xff] }
 0x6b9   :  { %12792 = vmatprep.subr.bf16.mxu1 %v14869_v47  ;;  %v12836_v47 = vld [vmem:[%s20695_s5 + $0xc8] sm:$0xff] }
 0x6ba   :  { %12752 = vmatpush2.bf16.msra.mxu0 %v14819_v19  ;;  %v12820_v19 = vld [vmem:[%s20695_s5 + $0x48] sm:$0xff] }
 0x6bb   :  { %12753 = vmatprep.subr.bf16.mxu0 %v14824_v25  ;;  %v12835_v25 = vld [vmem:[%s20695_s5 + $0xc0] sm:$0xff] }
 0x6bc   :  { %12793 = vmatpush2.bf16.msra.mxu1 %v14867_v37  ;;  %v12819_v37 = vld [vmem:[%s20695_s5 + $0x40] sm:$0xff] }
 0x6bd   :  { %12794 = vmatprep.subr.bf16.mxu1 %v14872_v15  ;;  %v12834_v15 = vld [vmem:[%s20695_s5 + $0xb8] sm:$0xff] }
 0x6be   :  { %12754 = vmatpush2.bf16.msra.mxu0 %v14822_v34  ;;  %v12818_v34 = vld [vmem:[%s20695_s5 + $0x38] sm:$0xff] }
 0x6bf   :  { %12755 = vmatprep.subr.bf16.mxu0 %v14827_v17  ;;  %v12833_v17 = vld [vmem:[%s20695_s5 + $0xb0] sm:$0xff] }
 0x6c0   :  { %12795 = vmatpush2.bf16.msra.mxu1 %v14870_v3  ;;  %v12817_v3 = vld [vmem:[%s20695_s5 + $0x30] sm:$0xff] }
 0x6c1   :  { %12796 = vmatprep.subr.bf16.mxu1 %v14875_v48  ;;  %v12832_v48 = vld [vmem:[%s20695_s5 + $0xa8] sm:$0xff] }
 0x6c2   :  { %12756 = vmatpush2.bf16.msra.mxu0 %v14825_v6  ;;  %v12816_v6 = vld [vmem:[%s20695_s5 + $0x28] sm:$0xff] }
 0x6c3   :  { %12757 = vmatprep.subr.bf16.mxu0 %v14830_v39  ;;  %v12831_v39 = vld [vmem:[%s20695_s5 + $0xa0] sm:$0xff] }
 0x6c4   :  { %12797 = vmatpush2.bf16.msra.mxu1 %v14873_v40  ;;  %v12815_v40 = vld [vmem:[%s20695_s5 + $0x20] sm:$0xff] }
 0x6c5   :  { %12798 = vmatprep.subr.bf16.mxu1 %v14878_v63  ;;  %v12830_v63 = vld [vmem:[%s20695_s5 + $0x98] sm:$0xff] }
 0x6c6   :  { %12758 = vmatpush2.bf16.msra.mxu0 %v14828_v28  ;;  %v12814_v28 = vld [vmem:[%s20695_s5 + $0x18] sm:$0xff] }
 0x6c7   :  { %12759 = vmatprep.subr.bf16.mxu0 %v14833_v0  ;;  %v11995_v0 = vld [vmem:[%s20696_s4] sm:$0x3] }
 0x6c8   :  { %12799 = vmatpush2.bf16.msra.mxu1 %v14876_v41  ;;  %v12000_v41 = vrot.slane %v11995_v0, %v1681_v38  ;;  %v12828_v38 = vld [vmem:[%s20695_s5 + $0x88] sm:$0xff] }
 0x6c9   :  { %12800 = vmatprep.subr.bf16.mxu1 %v14881_v18  ;;  %v12004_v18 = vrot.slane %v11995_v0, %v1685_v56  ;;  %v12812_v56 = vld [vmem:[%s20695_s5 + $0x8] sm:$0xff] }
 0x6ca   :  { %12760 = vmatpush2.bf16.msra.mxu0 %v14831_v46 }
 0x6cb   :  { %14654 = vmatprep.subr.mxu0 %v12842_v27 }
 0x6cc   :  { %12801 = vmatpush2.bf16.msra.mxu1 %v14879_v4 }
 0x6cd   :  { %v11721_v50 = vpop.f32.mrf.mxu0  ;;  %12762 = vmatmul.mubr.bf16.vlgmr.msra.gmra.mxu0 %v11863_v29 }
 0x6ce   :  { %v11722_v62 = vadd.f32 %v11721_v50, %v20499_v16  ;;  %v12825_v16 = vld [vmem:[%s20695_s5 + $0x70] sm:$0xff]  ;;  %14655 = vmatpush3.msra.mxu0 %v12826_v12 }
 0x6cf   :  { %v11723_v55 = vpop.f32.mrf.mxu0  ;;  %14656 = vmatprep.subr.mxu0 %v12841_v21 }
 0x6d0   :  { %v11724_v10 = vadd.f32 %v11723_v55, %v20508_v36  ;;  %v12824_v36 = vld [vmem:[%s20695_s5 + $0x68] sm:$0xff]  ;;  %14657 = vmatpush3.msra.mxu0 %v12825_v16 }
 0x6d1   :  { %v11725_v5 = vpop.f32.mrf.mxu0  ;;  %14658 = vmatprep.subr.mxu0 %v12840_v32 }
 0x6d2   :  { %14659 = vmatpush3.msra.mxu0 %v12824_v36 }
 0x6d3   :  { %v11726_v33 = vpop.f32.mrf.mxu0  ;;  %14660 = vmatprep.subr.mxu0 %v12839_v1 }
 0x6d4   :  { %14661 = vmatpush3.msra.mxu0 %v12823_v8 }
 0x6d5   :  { %14662 = vmatprep.subr.mxu0 %v12838_v57 }
 0x6d6   :  { %14663 = vmatpush3.msra.mxu0 %v12822_v11 }
 0x6d7   :  { %14664 = vmatprep.subr.mxu0 %v12837_v60 }
 0x6d8   :  { %14665 = vmatpush3.msra.mxu0 %v12821_v22 }
 0x6d9   :  { %14666 = vmatprep.subr.mxu0 %v12836_v47 }
 0x6da   :  { %14667 = vmatpush3.msra.mxu0 %v12820_v19 }
 0x6db   :  { %14668 = vmatprep.subr.mxu0 %v12835_v25 }
 0x6dc   :  { %14669 = vmatpush3.msra.mxu0 %v12819_v37 }
 0x6dd   :  { %14670 = vmatprep.subr.mxu0 %v12834_v15 }
 0x6de   :  { %14671 = vmatpush3.msra.mxu0 %v12818_v34 }
 0x6df   :  { %14672 = vmatprep.subr.mxu0 %v12833_v17 }
 0x6e0   :  { %14673 = vmatpush3.msra.mxu0 %v12817_v3 }
 0x6e1   :  { %14674 = vmatprep.subr.mxu0 %v12832_v48 }
 0x6e2   :  { %14675 = vmatpush3.msra.mxu0 %v12816_v6 }
 0x6e3   :  { %14676 = vmatprep.subr.mxu0 %v12831_v39 }
 0x6e4   :  { %14677 = vmatpush3.msra.mxu0 %v12815_v40 }
 0x6e5   :  { %14678 = vmatprep.subr.mxu0 %v12830_v63 }
 0x6e6   :  { %14679 = vmatpush3.msra.mxu0 %v12814_v28 }
 0x6ee   :  { %v11762_v45 = vpop.f32.mrf.mxu1 }
 0x6ef   :  { %v11763_v53 = vadd.f32 %v11762_v45, %v11722_v62  ;;  %v12829_v62 = vld [vmem:[%s20695_s5 + $0x90] sm:$0xff] }
 0x6f0   :  { %v11764_v35 = vpop.f32.mrf.mxu1  ;;  %14680 = vmatprep.subr.mxu0 %v12829_v62 }
 0x6f1   :  { %v11765_v7 = vadd.f32 %v11764_v35, %v11724_v10  ;;  %14681 = vmatpush3.msra.mxu0 %v12813_v26  ;;  %v12827_v10 = vld [vmem:[%s20695_s5 + $0x80] sm:$0xff] }
 0x6f2   :  { %v11766_v24 = vpop.f32.mrf.mxu1  ;;  %14682 = vmatprep.subr.mxu0 %v12828_v38 }
 0x6f3   :  { %14683 = vmatpush3.msra.mxu0 %v12812_v56 }
 0x6f4   :  { %v11767_v30 = vpop.f32.mrf.mxu1  ;;  %14684 = vmatprep.subr.mxu0 %v12827_v10 }
 0x70d   :  { %v11803_v2 = vpop.f32.mrf.mxu0 }
 0x70e   :  { %v11804_v52 = vadd.f32 %v11803_v2, %v11763_v53  ;;  %v11844_v42 = vpop.f32.mrf.mxu1  ;;  %v12811_v53 = vld [vmem:[%s20695_s5] sm:$0xff] }
 0x70f   :  { %v11805_v31 = vpop.f32.mrf.mxu0  ;;  %14685 = vmatpush3.msra.mxu0 %v12811_v53 }
 0x710   :  { %v11845_v43 = vadd.f32 %v11844_v42, %v11804_v52  ;;  %v11806_v59 = vadd.f32 %v11805_v31, %v11765_v7  ;;  %v11846_v14 = vpop.f32.mrf.mxu1 }
 0x711   :  { %v11807_v61 = vpop.f32.mrf.mxu0 }
 0x712   :  { %v11847_v58 = vadd.f32 %v11846_v14, %v11806_v59  ;;  %v11848_v49 = vpop.f32.mrf.mxu1  ;;  %v11857_v23 = vmax.f32 %v11845_v43, 0.0 }
 0x713   :  { %v11808_v54 = vpop.f32.mrf.mxu0 }
 0x714   :  { %v11858_v13 = vmax.f32 %v11847_v58, 0.0  ;;  %v11849_v51 = vpop.f32.mrf.mxu1  ;;  %v11865_v20 = vpack.c.bf16 %v11857_v23, %v11857_v23 }
 0x716   :  { %v11866_v44 = vpack.c.bf16 %v11858_v13, %v11858_v13  ;;  %v14653_v13 = vld [vmem:[%s20697_s6] ss:$0 sm:$0xff] }
 0x718   :  { %12802 = vmatprep.mubr.bf16.mxu1 %v11866_v44 }
 0x719   :  { %12803 = vmatmul.mubr.bf16.vlgmr.msra.gmra.mxu1 %v11865_v20 }
 0x74d   :  { %v12681_v46 = vpop.f32.mrf.mxu0 }
 0x74e   :  { %v12682_v9 = vadd.f32 %v12681_v46, %v12000_v41  ;;  %v12722_v4 = vpop.f32.mrf.mxu1 }
 0x74f   :  { %v12683_v29 = vpop.f32.mrf.mxu0 }
 0x750   :  { %v12723_v50 = vadd.f32 %v12722_v4, %v12682_v9  ;;  %v12684_v55 = vadd.f32 %v12683_v29, %v12004_v18  ;;  %v12724_v5 = vpop.f32.mrf.mxu1 }
 0x751   :  { %v12685_v33 = vpop.f32.mrf.mxu0 }
 0x752   :  { %v12725_v45 = vadd.f32 %v12724_v5, %v12684_v55  ;;  %v12726_v35 = vpop.f32.mrf.mxu1 }
 0x753   :  { %v12686_v24 = vpop.f32.mrf.mxu0 }
 0x754   :  { %v12727_v30 = vpop.f32.mrf.mxu1 }
 0x78d   :  { %v12763_v2 = vpop.f32.mrf.mxu0 }
 0x78e   :  { %v12764_v7 = vadd.f32 %v12763_v2, %v12723_v50 }
 0x78f   :  { %v12765_v52 = vpop.f32.mrf.mxu0 }
 0x790   :  { %v12766_v42 = vadd.f32 %v12765_v52, %v12725_v45 }
 0x791   :  { %v12767_v31 = vpop.f32.mrf.mxu0 }
 0x793   :  { %v12768_v43 = vpop.f32.mrf.mxu0 }
 0x7d9   :  { %v12804_v59 = vpop.f32.mrf.mxu1 }
 0x7da   :  { %v12805_v58 = vadd.f32 %v12804_v59, %v12764_v7 }
 0x7db   :  { %v12806_v14 = vpop.f32.mrf.mxu1 }
 0x7dc   :  { %v12807_v61 = vadd.f32 %v12806_v14, %v12766_v42 }
 0x7dd   :  { %v12808_v49 = vpop.f32.mrf.mxu1 }
 0x7de   :  { %12914 = vmatprep.mubr.f32.mxu0 %v12807_v61 }
 0x7df   :  { %v12809_v23 = vpop.f32.mrf.mxu1  ;;  %12915 = vmatmul.mubr.f32.vlgmr.msra.gmra.mxu0 %v12805_v58 }
 0x89f   :  { %v14686_v54 = vpop.f32.mrf.mxu0 }
 0x8a1   :  { %v14687_v51 = vpop.f32.mrf.mxu0 }
 0x8a2   :  { %v14688_v27 = vadd.f32 %v14687_v51, %v14686_v54 }
 0x8a4   :  { %v12917_v12 = vadd.f32 %v14688_v27, %v14653_v13 }
 0x8a6   :  { %12920 = vst [vmem:[%s20698_s7] sm:$0xff] %v12917_v12 }

</bundles_post_ra>
